<compile_context>
chip_gen: v6e
topology: v6e:2x2x1
jax: 0.10.0
libtpu: 0.0.40
codegen_flags: <defaults>
</compile_context>

<pallas_src>
import functools

import numpy as np
import jax
import jax.numpy as jnp
from jax.experimental import pallas as pl
from jax.experimental.pallas import tpu as pltpu

EPS = 1e-5
MXU_DTYPE = jnp.bfloat16   # MXU-native operand dtype (accumulation stays f32)

N_TAPS = 9                 # 3x3 kernel taps
PAD_TAPS = 12              # pad K-taps 9 -> 12 so groups of 4 taps span 128 lanes
TAPS_PER_GROUP = 4
N_GROUPS = PAD_TAPS // TAPS_PER_GROUP


def _bn_scale_shift(a, gamma, beta):
    """Training-mode BatchNorm folded to per-channel scale/shift (fused stats)."""
    mean = jnp.mean(a, axis=0, keepdims=True)
    mean_sq = jnp.mean(a * a, axis=0, keepdims=True)
    var = mean_sq - mean * mean                  # biased variance, single pass
    scale = gamma * jax.lax.rsqrt(var + EPS)     # (1, C)
    shift = beta - mean * scale                  # (1, C)
    return a * scale + shift                     # one mul + one add per element


def _tap_shifts(width):
    """Flat row-index shift for each 3x3 tap (plus zero-shift padding taps)."""
    shifts = [(kh - 1) * width + (kw - 1) for kh in range(3) for kw in range(3)]
    return shifts + [0] * (PAD_TAPS - N_TAPS)


def _border_mask_lane_dense(n, h, w, cmid):
    """(N*H*W, PAD_TAPS*cmid) f32 validity mask, pre-broadcast to the grouped
    lane-dense tap layout (1 inside the image, 0 at zero-padding / wrap rows;
    padding taps are all-zero)."""
    hh = np.arange(h).reshape(h, 1)
    ww = np.arange(w).reshape(1, w)
    cols = []
    for kh in range(3):
        for kw in range(3):
            oh, ow = kh - 1, kw - 1
            valid = ((hh + oh >= 0) & (hh + oh < h) &
                     (ww + ow >= 0) & (ww + ow < w))
            col = np.tile(valid.reshape(1, h * w), (n, 1)).reshape(n * h * w, 1)
            cols.append(np.repeat(col.astype(np.float32), cmid, axis=1))
    for _ in range(PAD_TAPS - N_TAPS):
        cols.append(np.zeros((n * h * w, cmid), np.float32))
    return np.concatenate(cols, axis=1)


def bottleneck_kernel(x_ref, mask_ref,
                      w1_ref, g1_ref, be1_ref,
                      w2_ref, g2_ref, be2_ref,
                      w3_ref, g3_ref, be3_ref,
                      o_ref, patch_ref, *, width):
    m_rows = x_ref.shape[0]
    cmid = w1_ref.shape[1]
    lanes = TAPS_PER_GROUP * cmid                # 128-lane tap groups

    # ---- conv1 (1x1) -> bn1 -> relu (conv bias cancelled by BN mean-sub) ----
    a1 = jnp.dot(x_ref[...].astype(MXU_DTYPE), w1_ref[...],
                 preferred_element_type=jnp.float32)          # (M, Cmid)
    o1 = jnp.maximum(_bn_scale_shift(a1, g1_ref[...], be1_ref[...]), 0.0)

    # ---- conv2 (3x3 / stride 1 / pad 1): im2col patch via XLU rolls ----
    # Tap (kh, kw) of output row m is o1[m + shift] when spatially valid, else 0
    # (zero padding).  pltpu.roll builds each shifted tap full-height; the
    # pre-broadcast border mask zeroes exactly the wrapped / out-of-image rows.
    shifts = _tap_shifts(width)
    for g in range(N_GROUPS):
        taps = []
        for j in range(g * TAPS_PER_GROUP, (g + 1) * TAPS_PER_GROUP):
            s = shifts[j]
            if s == 0:
                taps.append(o1)                               # centre / padding tap
            else:
                taps.append(pltpu.roll(o1, shift=(-s) % m_rows, axis=0))
        grp = jnp.concatenate(taps, axis=1)                   # (M, 128) f32
        grp = grp * mask_ref[:, g * lanes:(g + 1) * lanes]    # one wide vmul
        patch_ref[:, g * lanes:(g + 1) * lanes] = grp.astype(MXU_DTYPE)

    a2 = jnp.dot(patch_ref[...], w2_ref[...],
                 preferred_element_type=jnp.float32)          # (M, Cmid), K=384
    o2 = jnp.maximum(_bn_scale_shift(a2, g2_ref[...], be2_ref[...]), 0.0)

    # ---- conv3 (1x1) -> bn3 -> residual add (identity shortcut) -> relu ----
    a3 = jnp.dot(o2.astype(MXU_DTYPE), w3_ref[...],
                 preferred_element_type=jnp.float32)          # (M, Cout)
    o3 = _bn_scale_shift(a3, g3_ref[...], be3_ref[...])
    o_ref[...] = jnp.maximum(o3 + x_ref[...], 0.0)            # re-read x, lane-dense store


def bottleneck_forward(x_nchw, params):
    # NCHW -> NHWC -> flat (M, C) lane-dense slab (wrapper-side layout plumbing).
    xh = jnp.transpose(x_nchw, (0, 2, 3, 1)).astype(jnp.float32)
    N, H, W, Cin = xh.shape
    Cmid = params["w1"].shape[1]
    Cout = params["w3"].shape[1]
    assert Cin == Cout, "identity shortcut needs in_channels == out_channels*expansion"
    M = N * H * W
    x2d = xh.reshape(M, Cin)

    masks = jnp.asarray(_border_mask_lane_dense(N, H, W, Cmid))     # (M, 384) f32
    w1 = params["w1"].astype(MXU_DTYPE)                             # (Cin,  Cmid)
    w2 = params["w2"].reshape(N_TAPS * Cmid, Cmid)                  # (288,  Cmid)
    w2 = jnp.concatenate(                                           # pad K -> 384
        [w2, jnp.zeros(((PAD_TAPS - N_TAPS) * Cmid, Cmid), jnp.float32)],
        axis=0).astype(MXU_DTYPE)
    w3 = params["w3"].astype(MXU_DTYPE)                             # (Cmid, Cout)

    args = (x2d, masks,
            w1, params["g1"], params["be1"],
            w2, params["g2"], params["be2"],
            w3, params["g3"], params["be3"])

    def full(shape):
        nd = len(shape)
        return pl.BlockSpec(shape, lambda i, _nd=nd: (0,) * _nd)

    flops = 2 * M * (Cin * Cmid + N_TAPS * Cmid * Cmid + Cmid * Cout)
    bytes_accessed = sum(int(a.size) * a.dtype.itemsize for a in args) + M * Cout * 4
    cost = pl.CostEstimate(flops=flops, transcendentals=2 * Cmid + Cout,
                           bytes_accessed=bytes_accessed)

    out2d = pl.pallas_call(
        functools.partial(bottleneck_kernel, width=W),
        out_shape=jax.ShapeDtypeStruct((M, Cout), jnp.float32),
        grid=(1,),
        in_specs=[full(a.shape) for a in args],
        out_specs=full((M, Cout)),
        scratch_shapes=[pltpu.VMEM((M, PAD_TAPS * Cmid), MXU_DTYPE)],  # bf16 im2col patch
        compiler_params=pltpu.CompilerParams(
            dimension_semantics=("arbitrary",),
            vmem_limit_bytes=32 * 1024 * 1024),
        cost_estimate=cost,
    )(*args)

    return jnp.transpose(out2d.reshape(N, H, W, Cout), (0, 3, 1, 2))  # -> NCHW


def bottleneck_reference(x_nchw, p):
    """Pure-JAX reference of the training-mode Bottleneck forward.

    Same numerical policy as the kernel (bf16 conv operands, f32 accumulation,
    f32 BN/ReLU/residual) but keeps the conv biases and two-pass variance.
    """
    x = jnp.transpose(x_nchw, (0, 2, 3, 1)).astype(jnp.float32)

    def conv(h, w_hwio, b, padding):
        y = jax.lax.conv_general_dilated(
            h.astype(MXU_DTYPE), w_hwio.astype(MXU_DTYPE),
            window_strides=(1, 1), padding=padding,
            dimension_numbers=("NHWC", "HWIO", "NHWC"),
            preferred_element_type=jnp.float32)
        return y + b.reshape(1, 1, 1, -1)

    def bn(h, g, be):
        m = jnp.mean(h, axis=(0, 1, 2), keepdims=True)
        v = jnp.mean((h - m) ** 2, axis=(0, 1, 2), keepdims=True)
        return ((h - m) * jax.lax.rsqrt(v + EPS) * g.reshape(1, 1, 1, -1)
                + be.reshape(1, 1, 1, -1))

    out = jnp.maximum(bn(conv(x, p["w1"][None, None], p["b1"], "VALID"),
                         p["g1"], p["be1"]), 0.0)
    out = jnp.maximum(bn(conv(out, p["w2"], p["b2"], "SAME"),
                         p["g2"], p["be2"]), 0.0)
    out = bn(conv(out, p["w3"][None, None], p["b3"], "VALID"),
             p["g3"], p["be3"])
    out = jnp.maximum(out + x, 0.0)
    return jnp.transpose(out, (0, 3, 1, 2))


def init_params(key, cin, cmid):
    cout = cmid * 4
    ks = jax.random.split(key, 12)
    f = lambda k, shp, s=0.1: s * jax.random.normal(k, shp, jnp.float32)
    return {
        "w1": f(ks[0], (cin, cmid)),          # 1x1 conv as (Cin, Cmid)
        "b1": f(ks[1], (cmid,)),
        "g1": 1.0 + f(ks[2], (1, cmid)),
        "be1": f(ks[3], (1, cmid)),
        "w2": f(ks[4], (3, 3, cmid, cmid)),   # 3x3 conv, HWIO
        "b2": f(ks[5], (cmid,)),
        "g2": 1.0 + f(ks[6], (1, cmid)),
        "be2": f(ks[7], (1, cmid)),
        "w3": f(ks[8], (cmid, cout)),         # 1x1 conv as (Cmid, Cout)
        "b3": f(ks[9], (cout,)),
        "g3": 1.0 + f(ks[10], (1, cout)),
        "be3": f(ks[11], (1, cout)),
    }


if __name__ == "__main__":
    key = jax.random.PRNGKey(0)
    kx, kp = jax.random.split(key)

    # Bottleneck(in_channels=128, out_channels=32, stride=1, downsample=None):
    # expansion=4 -> conv3 emits 128 channels == in_channels, so the identity
    # shortcut is shape-consistent.  Channel counts also make the kernel's wide
    # activations lane-dense (last dim a multiple of 128).
    N, Cin, H, W = 2, 128, 16, 16
    Cmid = 32
    x = jax.random.normal(kx, (N, Cin, H, W), jnp.float32)
    params = init_params(kp, Cin, Cmid)

    out = jax.block_until_ready(jax.jit(bottleneck_forward)(x, params))

    ref = bottleneck_reference(x, params)
    assert out.shape == ref.shape == (N, Cin, H, W)
    if not jnp.allclose(out, ref, atol=2e-3, rtol=2e-3):
        err = float(jnp.max(jnp.abs(out - ref)))
        raise AssertionError(f"Pallas Bottleneck mismatch vs reference (max abs err {err})")
    print("KERNEL_OK")
</pallas_src>

<mosaic_0001>
module attributes {stable_mosaic.version = 11 : i64} {
  func.func @bottleneck_kernel(%arg0: i32, %arg1: memref<512x128xf32, #tpu.memory_space<vmem>>, %arg2: memref<512x384xf32, #tpu.memory_space<vmem>>, %arg3: memref<128x32xbf16, #tpu.memory_space<vmem>>, %arg4: memref<1x32xf32, #tpu.memory_space<vmem>>, %arg5: memref<1x32xf32, #tpu.memory_space<vmem>>, %arg6: memref<384x32xbf16, #tpu.memory_space<vmem>>, %arg7: memref<1x32xf32, #tpu.memory_space<vmem>>, %arg8: memref<1x32xf32, #tpu.memory_space<vmem>>, %arg9: memref<32x128xbf16, #tpu.memory_space<vmem>>, %arg10: memref<1x128xf32, #tpu.memory_space<vmem>>, %arg11: memref<1x128xf32, #tpu.memory_space<vmem>>, %arg12: memref<512x128xf32, #tpu.memory_space<vmem>>, %arg13: memref<512x384xbf16, #tpu.memory_space<vmem>>) attributes {dimension_semantics = [#tpu.dimension_semantics<arbitrary>], iteration_bounds = array<i64: 1>, scalar_prefetch = 0 : i64, scratch_operands = 1 : i64, tpu.core_type = #tpu.core_type<tc>, window_params = [{pipeline_mode = #tpu.pipeline_mode<synchronous>, transform_indices = @transform_0, window_bounds = array<i64: 512, 128>}, {pipeline_mode = #tpu.pipeline_mode<synchronous>, transform_indices = @transform_1, window_bounds = array<i64: 512, 384>}, {pipeline_mode = #tpu.pipeline_mode<synchronous>, transform_indices = @transform_2, window_bounds = array<i64: 128, 32>}, {pipeline_mode = #tpu.pipeline_mode<synchronous>, transform_indices = @transform_3, window_bounds = array<i64: 1, 32>}, {pipeline_mode = #tpu.pipeline_mode<synchronous>, transform_indices = @transform_4, window_bounds = array<i64: 1, 32>}, {pipeline_mode = #tpu.pipeline_mode<synchronous>, transform_indices = @transform_5, window_bounds = array<i64: 384, 32>}, {pipeline_mode = #tpu.pipeline_mode<synchronous>, transform_indices = @transform_6, window_bounds = array<i64: 1, 32>}, {pipeline_mode = #tpu.pipeline_mode<synchronous>, transform_indices = @transform_7, window_bounds = array<i64: 1, 32>}, {pipeline_mode = #tpu.pipeline_mode<synchronous>, transform_indices = @transform_8, window_bounds = array<i64: 32, 128>}, {pipeline_mode = #tpu.pipeline_mode<synchronous>, transform_indices = @transform_9, window_bounds = array<i64: 1, 128>}, {pipeline_mode = #tpu.pipeline_mode<synchronous>, transform_indices = @transform_10, window_bounds = array<i64: 1, 128>}, {pipeline_mode = #tpu.pipeline_mode<synchronous>, transform_indices = @transform_11, window_bounds = array<i64: 512, 128>}]} {
    %c0 = arith.constant 0 : index
    %c0_0 = arith.constant 0 : index
    %0 = vector.load %arg1[%c0, %c0_0] : memref<512x128xf32, #tpu.memory_space<vmem>>, vector<512x128xf32>
    %1 = arith.truncf %0 : vector<512x128xf32> to vector<512x128xbf16>
    %c0_1 = arith.constant 0 : index
    %c0_2 = arith.constant 0 : index
    %2 = vector.load %arg3[%c0_1, %c0_2] : memref<128x32xbf16, #tpu.memory_space<vmem>>, vector<128x32xbf16>
    %cst = arith.constant dense<0.000000e+00> : vector<512x32xf32>
    %3 = tpu.matmul %1, %2, %cst {dimension_numbers = #tpu.dot_dimension_numbers<[1], [0], [0], [1], [0, 0, 1, 1], [], []>} : vector<512x128xbf16>, vector<128x32xbf16>, vector<512x32xf32> -> vector<512x32xf32>
    %c0_3 = arith.constant 0 : index
    %c0_4 = arith.constant 0 : index
    %4 = vector.load %arg4[%c0_3, %c0_4] : memref<1x32xf32, #tpu.memory_space<vmem>>, vector<1x32xf32>
    %c0_5 = arith.constant 0 : index
    %c0_6 = arith.constant 0 : index
    %5 = vector.load %arg5[%c0_5, %c0_6] : memref<1x32xf32, #tpu.memory_space<vmem>>, vector<1x32xf32>
    %cst_7 = arith.constant dense<0.000000e+00> : vector<32xf32>
    %6 = vector.multi_reduction <add>, %3, %cst_7 [0] : vector<512x32xf32> to vector<32xf32>
    %7 = vector.shape_cast %6 : vector<32xf32> to vector<1x32xf32>
    %cst_8 = arith.constant 5.120000e+02 : f32
    %8 = vector.broadcast %cst_8 : f32 to vector<1x32xf32>
    %9 = arith.divf %7, %8 : vector<1x32xf32>
    %10 = arith.mulf %3, %3 : vector<512x32xf32>
    %cst_9 = arith.constant dense<0.000000e+00> : vector<32xf32>
    %11 = vector.multi_reduction <add>, %10, %cst_9 [0] : vector<512x32xf32> to vector<32xf32>
    %12 = vector.shape_cast %11 : vector<32xf32> to vector<1x32xf32>
    %cst_10 = arith.constant 5.120000e+02 : f32
    %13 = vector.broadcast %cst_10 : f32 to vector<1x32xf32>
    %14 = arith.divf %12, %13 : vector<1x32xf32>
    %15 = arith.mulf %9, %9 : vector<1x32xf32>
    %16 = arith.subf %14, %15 : vector<1x32xf32>
    %cst_11 = arith.constant 9.99999974E-6 : f32
    %17 = vector.broadcast %cst_11 : f32 to vector<1x32xf32>
    %18 = arith.addf %16, %17 : vector<1x32xf32>
    %19 = math.rsqrt %18 : vector<1x32xf32>
    %20 = arith.mulf %4, %19 : vector<1x32xf32>
    %21 = arith.mulf %9, %20 : vector<1x32xf32>
    %22 = arith.subf %5, %21 : vector<1x32xf32>
    %23 = vector.broadcast %20 : vector<1x32xf32> to vector<512x32xf32>
    %24 = arith.mulf %3, %23 : vector<512x32xf32>
    %25 = vector.broadcast %22 : vector<1x32xf32> to vector<512x32xf32>
    %26 = arith.addf %24, %25 : vector<512x32xf32>
    %cst_12 = arith.constant 0.000000e+00 : f32
    %27 = vector.broadcast %cst_12 : f32 to vector<512x32xf32>
    %28 = arith.maximumf %26, %27 : vector<512x32xf32>
    %c17_i32 = arith.constant 17 : i32
    %29 = tpu.dynamic_rotate %28 by %c17_i32 dim 0 : vector<512x32xf32>, i32 -> vector<512x32xf32>
    %c16_i32 = arith.constant 16 : i32
    %30 = tpu.dynamic_rotate %28 by %c16_i32 dim 0 : vector<512x32xf32>, i32 -> vector<512x32xf32>
    %c15_i32 = arith.constant 15 : i32
    %31 = tpu.dynamic_rotate %28 by %c15_i32 dim 0 : vector<512x32xf32>, i32 -> vector<512x32xf32>
    %c1_i32 = arith.constant 1 : i32
    %32 = tpu.dynamic_rotate %28 by %c1_i32 dim 0 : vector<512x32xf32>, i32 -> vector<512x32xf32>
    %33 = tpu.concatenate %29, %30, %31, %32 in 1 : vector<512x32xf32>, vector<512x32xf32>, vector<512x32xf32>, vector<512x32xf32> -> vector<512x128xf32>
    %c0_13 = arith.constant 0 : index
    %c0_14 = arith.constant 0 : index
    %34 = vector.load %arg2[%c0_13, %c0_14] : memref<512x384xf32, #tpu.memory_space<vmem>>, vector<512x128xf32>
    %35 = arith.mulf %33, %34 : vector<512x128xf32>
    %36 = arith.truncf %35 : vector<512x128xf32> to vector<512x128xbf16>
    %c0_15 = arith.constant 0 : index
    %c0_16 = arith.constant 0 : index
    %37 = vector.load %arg13[%c0_15, %c0_16] : memref<512x384xbf16, #tpu.memory_space<vmem>>, vector<512x128xbf16>
    tpu.vector_store %arg13[%c0_15, %c0_16], %36 {strides = array<i32>} : memref<512x384xbf16, #tpu.memory_space<vmem>>, vector<512x128xbf16>,
    %c511_i32 = arith.constant 511 : i32
    %38 = tpu.dynamic_rotate %28 by %c511_i32 dim 0 : vector<512x32xf32>, i32 -> vector<512x32xf32>
    %c497_i32 = arith.constant 497 : i32
    %39 = tpu.dynamic_rotate %28 by %c497_i32 dim 0 : vector<512x32xf32>, i32 -> vector<512x32xf32>
    %c496_i32 = arith.constant 496 : i32
    %40 = tpu.dynamic_rotate %28 by %c496_i32 dim 0 : vector<512x32xf32>, i32 -> vector<512x32xf32>
    %41 = tpu.concatenate %28, %38, %39, %40 in 1 : vector<512x32xf32>, vector<512x32xf32>, vector<512x32xf32>, vector<512x32xf32> -> vector<512x128xf32>
    %c0_17 = arith.constant 0 : index
    %c128 = arith.constant 128 : index
    %42 = vector.load %arg2[%c0_17, %c128] : memref<512x384xf32, #tpu.memory_space<vmem>>, vector<512x128xf32>
    %43 = arith.mulf %41, %42 : vector<512x128xf32>
    %44 = arith.truncf %43 : vector<512x128xf32> to vector<512x128xbf16>
    %c0_18 = arith.constant 0 : index
    %c128_19 = arith.constant 128 : index
    %45 = vector.load %arg13[%c0_18, %c128_19] : memref<512x384xbf16, #tpu.memory_space<vmem>>, vector<512x128xbf16>
    tpu.vector_store %arg13[%c0_18, %c128_19], %44 {strides = array<i32>} : memref<512x384xbf16, #tpu.memory_space<vmem>>, vector<512x128xbf16>,
    %c495_i32 = arith.constant 495 : i32
    %46 = tpu.dynamic_rotate %28 by %c495_i32 dim 0 : vector<512x32xf32>, i32 -> vector<512x32xf32>
    %47 = tpu.concatenate %46, %28, %28, %28 in 1 : vector<512x32xf32>, vector<512x32xf32>, vector<512x32xf32>, vector<512x32xf32> -> vector<512x128xf32>
    %c0_20 = arith.constant 0 : index
    %c256 = arith.constant 256 : index
    %48 = vector.load %arg2[%c0_20, %c256] : memref<512x384xf32, #tpu.memory_space<vmem>>, vector<512x128xf32>
    %49 = arith.mulf %47, %48 : vector<512x128xf32>
    %50 = arith.truncf %49 : vector<512x128xf32> to vector<512x128xbf16>
    %c0_21 = arith.constant 0 : index
    %c256_22 = arith.constant 256 : index
    %51 = vector.load %arg13[%c0_21, %c256_22] : memref<512x384xbf16, #tpu.memory_space<vmem>>, vector<512x128xbf16>
    tpu.vector_store %arg13[%c0_21, %c256_22], %50 {strides = array<i32>} : memref<512x384xbf16, #tpu.memory_space<vmem>>, vector<512x128xbf16>,
    %c0_23 = arith.constant 0 : index
    %c0_24 = arith.constant 0 : index
    %52 = vector.load %arg13[%c0_23, %c0_24] : memref<512x384xbf16, #tpu.memory_space<vmem>>, vector<512x384xbf16>
    %c0_25 = arith.constant 0 : index
    %c0_26 = arith.constant 0 : index
    %53 = vector.load %arg6[%c0_25, %c0_26] : memref<384x32xbf16, #tpu.memory_space<vmem>>, vector<384x32xbf16>
    %cst_27 = arith.constant dense<0.000000e+00> : vector<512x32xf32>
    %54 = tpu.matmul %52, %53, %cst_27 {dimension_numbers = #tpu.dot_dimension_numbers<[1], [0], [0], [1], [0, 0, 1, 1], [], []>} : vector<512x384xbf16>, vector<384x32xbf16>, vector<512x32xf32> -> vector<512x32xf32>
    %c0_28 = arith.constant 0 : index
    %c0_29 = arith.constant 0 : index
    %55 = vector.load %arg7[%c0_28, %c0_29] : memref<1x32xf32, #tpu.memory_space<vmem>>, vector<1x32xf32>
    %c0_30 = arith.constant 0 : index
    %c0_31 = arith.constant 0 : index
    %56 = vector.load %arg8[%c0_30, %c0_31] : memref<1x32xf32, #tpu.memory_space<vmem>>, vector<1x32xf32>
    %cst_32 = arith.constant dense<0.000000e+00> : vector<32xf32>
    %57 = vector.multi_reduction <add>, %54, %cst_32 [0] : vector<512x32xf32> to vector<32xf32>
    %58 = vector.shape_cast %57 : vector<32xf32> to vector<1x32xf32>
    %cst_33 = arith.constant 5.120000e+02 : f32
    %59 = vector.broadcast %cst_33 : f32 to vector<1x32xf32>
    %60 = arith.divf %58, %59 : vector<1x32xf32>
    %61 = arith.mulf %54, %54 : vector<512x32xf32>
    %cst_34 = arith.constant dense<0.000000e+00> : vector<32xf32>
    %62 = vector.multi_reduction <add>, %61, %cst_34 [0] : vector<512x32xf32> to vector<32xf32>
    %63 = vector.shape_cast %62 : vector<32xf32> to vector<1x32xf32>
    %cst_35 = arith.constant 5.120000e+02 : f32
    %64 = vector.broadcast %cst_35 : f32 to vector<1x32xf32>
    %65 = arith.divf %63, %64 : vector<1x32xf32>
    %66 = arith.mulf %60, %60 : vector<1x32xf32>
    %67 = arith.subf %65, %66 : vector<1x32xf32>
    %cst_36 = arith.constant 9.99999974E-6 : f32
    %68 = vector.broadcast %cst_36 : f32 to vector<1x32xf32>
    %69 = arith.addf %67, %68 : vector<1x32xf32>
    %70 = math.rsqrt %69 : vector<1x32xf32>
    %71 = arith.mulf %55, %70 : vector<1x32xf32>
    %72 = arith.mulf %60, %71 : vector<1x32xf32>
    %73 = arith.subf %56, %72 : vector<1x32xf32>
    %74 = vector.broadcast %71 : vector<1x32xf32> to vector<512x32xf32>
    %75 = arith.mulf %54, %74 : vector<512x32xf32>
    %76 = vector.broadcast %73 : vector<1x32xf32> to vector<512x32xf32>
    %77 = arith.addf %75, %76 : vector<512x32xf32>
    %cst_37 = arith.constant 0.000000e+00 : f32
    %78 = vector.broadcast %cst_37 : f32 to vector<512x32xf32>
    %79 = arith.maximumf %77, %78 : vector<512x32xf32>
    %80 = arith.truncf %79 : vector<512x32xf32> to vector<512x32xbf16>
    %c0_38 = arith.constant 0 : index
    %c0_39 = arith.constant 0 : index
    %81 = vector.load %arg9[%c0_38, %c0_39] : memref<32x128xbf16, #tpu.memory_space<vmem>>, vector<32x128xbf16>
    %cst_40 = arith.constant dense<0.000000e+00> : vector<512x128xf32>
    %82 = tpu.matmul %80, %81, %cst_40 {dimension_numbers = #tpu.dot_dimension_numbers<[1], [0], [0], [1], [0, 0, 1, 1], [], []>} : vector<512x32xbf16>, vector<32x128xbf16>, vector<512x128xf32> -> vector<512x128xf32>
    %c0_41 = arith.constant 0 : index
    %c0_42 = arith.constant 0 : index
    %83 = vector.load %arg10[%c0_41, %c0_42] : memref<1x128xf32, #tpu.memory_space<vmem>>, vector<1x128xf32>
    %c0_43 = arith.constant 0 : index
    %c0_44 = arith.constant 0 : index
    %84 = vector.load %arg11[%c0_43, %c0_44] : memref<1x128xf32, #tpu.memory_space<vmem>>, vector<1x128xf32>
    %cst_45 = arith.constant dense<0.000000e+00> : vector<128xf32>
    %85 = vector.multi_reduction <add>, %82, %cst_45 [0] : vector<512x128xf32> to vector<128xf32>
    %86 = vector.shape_cast %85 : vector<128xf32> to vector<1x128xf32>
    %cst_46 = arith.constant 5.120000e+02 : f32
    %87 = vector.broadcast %cst_46 : f32 to vector<1x128xf32>
    %88 = arith.divf %86, %87 : vector<1x128xf32>
    %89 = arith.mulf %82, %82 : vector<512x128xf32>
    %cst_47 = arith.constant dense<0.000000e+00> : vector<128xf32>
    %90 = vector.multi_reduction <add>, %89, %cst_47 [0] : vector<512x128xf32> to vector<128xf32>
    %91 = vector.shape_cast %90 : vector<128xf32> to vector<1x128xf32>
    %cst_48 = arith.constant 5.120000e+02 : f32
    %92 = vector.broadcast %cst_48 : f32 to vector<1x128xf32>
    %93 = arith.divf %91, %92 : vector<1x128xf32>
    %94 = arith.mulf %88, %88 : vector<1x128xf32>
    %95 = arith.subf %93, %94 : vector<1x128xf32>
    %cst_49 = arith.constant 9.99999974E-6 : f32
    %96 = vector.broadcast %cst_49 : f32 to vector<1x128xf32>
    %97 = arith.addf %95, %96 : vector<1x128xf32>
    %98 = math.rsqrt %97 : vector<1x128xf32>
    %99 = arith.mulf %83, %98 : vector<1x128xf32>
    %100 = arith.mulf %88, %99 : vector<1x128xf32>
    %101 = arith.subf %84, %100 : vector<1x128xf32>
    %102 = vector.broadcast %99 : vector<1x128xf32> to vector<512x128xf32>
    %103 = arith.mulf %82, %102 : vector<512x128xf32>
    %104 = vector.broadcast %101 : vector<1x128xf32> to vector<512x128xf32>
    %105 = arith.addf %103, %104 : vector<512x128xf32>
    %c0_50 = arith.constant 0 : index
    %c0_51 = arith.constant 0 : index
    %106 = vector.load %arg1[%c0_50, %c0_51] : memref<512x128xf32, #tpu.memory_space<vmem>>, vector<512x128xf32>
    %107 = arith.addf %105, %106 : vector<512x128xf32>
    %cst_52 = arith.constant 0.000000e+00 : f32
    %108 = vector.broadcast %cst_52 : f32 to vector<512x128xf32>
    %109 = arith.maximumf %107, %108 : vector<512x128xf32>
    %c0_53 = arith.constant 0 : index
    %c0_54 = arith.constant 0 : index
    %110 = vector.load %arg12[%c0_53, %c0_54] : memref<512x128xf32, #tpu.memory_space<vmem>>, vector<512x128xf32>
    tpu.vector_store %arg12[%c0_53, %c0_54], %109 {strides = array<i32>} : memref<512x128xf32, #tpu.memory_space<vmem>>, vector<512x128xf32>,
    return
  }
  func.func @transform_0(%arg0: i32) -> (i32, i32) {
    %c0_i32 = arith.constant 0 : i32
    %c0_i32_0 = arith.constant 0 : i32
    %c0_i32_1 = arith.constant 0 : i32
    return %c0_i32, %c0_i32_0 : i32, i32
  }
  func.func @transform_1(%arg0: i32) -> (i32, i32) {
    %c0_i32 = arith.constant 0 : i32
    %c0_i32_0 = arith.constant 0 : i32
    %c0_i32_1 = arith.constant 0 : i32
    return %c0_i32, %c0_i32_0 : i32, i32
  }
  func.func @transform_2(%arg0: i32) -> (i32, i32) {
    %c0_i32 = arith.constant 0 : i32
    %c0_i32_0 = arith.constant 0 : i32
    %c0_i32_1 = arith.constant 0 : i32
    return %c0_i32, %c0_i32_0 : i32, i32
  }
  func.func @transform_3(%arg0: i32) -> (i32, i32) {
    %c0_i32 = arith.constant 0 : i32
    %c0_i32_0 = arith.constant 0 : i32
    %c0_i32_1 = arith.constant 0 : i32
    return %c0_i32, %c0_i32_0 : i32, i32
  }
  func.func @transform_4(%arg0: i32) -> (i32, i32) {
    %c0_i32 = arith.constant 0 : i32
    %c0_i32_0 = arith.constant 0 : i32
    %c0_i32_1 = arith.constant 0 : i32
    return %c0_i32, %c0_i32_0 : i32, i32
  }
  func.func @transform_5(%arg0: i32) -> (i32, i32) {
    %c0_i32 = arith.constant 0 : i32
    %c0_i32_0 = arith.constant 0 : i32
    %c0_i32_1 = arith.constant 0 : i32
    return %c0_i32, %c0_i32_0 : i32, i32
  }
  func.func @transform_6(%arg0: i32) -> (i32, i32) {
    %c0_i32 = arith.constant 0 : i32
    %c0_i32_0 = arith.constant 0 : i32
    %c0_i32_1 = arith.constant 0 : i32
    return %c0_i32, %c0_i32_0 : i32, i32
  }
  func.func @transform_7(%arg0: i32) -> (i32, i32) {
    %c0_i32 = arith.constant 0 : i32
    %c0_i32_0 = arith.constant 0 : i32
    %c0_i32_1 = arith.constant 0 : i32
    return %c0_i32, %c0_i32_0 : i32, i32
  }
  func.func @transform_8(%arg0: i32) -> (i32, i32) {
    %c0_i32 = arith.constant 0 : i32
    %c0_i32_0 = arith.constant 0 : i32
    %c0_i32_1 = arith.constant 0 : i32
    return %c0_i32, %c0_i32_0 : i32, i32
  }
  func.func @transform_9(%arg0: i32) -> (i32, i32) {
    %c0_i32 = arith.constant 0 : i32
    %c0_i32_0 = arith.constant 0 : i32
    %c0_i32_1 = arith.constant 0 : i32
    return %c0_i32, %c0_i32_0 : i32, i32
  }
  func.func @transform_10(%arg0: i32) -> (i32, i32) {
    %c0_i32 = arith.constant 0 : i32
    %c0_i32_0 = arith.constant 0 : i32
    %c0_i32_1 = arith.constant 0 : i32
    return %c0_i32, %c0_i32_0 : i32, i32
  }
  func.func @transform_11(%arg0: i32) -> (i32, i32) {
    %c0_i32 = arith.constant 0 : i32
    %c0_i32_0 = arith.constant 0 : i32
    %c0_i32_1 = arith.constant 0 : i32
    return %c0_i32, %c0_i32_0 : i32, i32
  }
}

</mosaic_0001>

<bundles_post_ra>
// kernel: bottleneck_forward.1
= control target key start
LH: loop header
LB: loop body
LE: loop exit
PB: predicated region body
PF: predicated region fallthrough
CT: control target
= control target key end

     0   :  { %16 = vsyncpa [#allocation4], 0  ;;  %s15614_s0 = inlined_call_operand.vmem [shape: f32[512,128], index: 0, kind: input, shape index: {}]   ;;  %s15615_s1 = inlined_call_operand.hbm [shape: f32[512,384], index: 1, kind: input, shape index: {}]   ;;  %s15616_s2 = inlined_call_operand.vmem [shape: bf16[128,32], index: 2, kind: input, shape index: {}]   ;;  %s15617_s3 = inlined_call_operand.vmem [shape: f32[1,32], index: 3, kind: input, shape index: {}]   ;;  %s15618_s4 = inlined_call_operand.vmem [shape: f32[1,32], index: 4, kind: input, shape index: {}]   ;;  %s15619_s5 = inlined_call_operand.vmem [shape: bf16[384,32], index: 5, kind: input, shape index: {}]   ;;  %s15620_s6 = inlined_call_operand.vmem [shape: f32[1,32], index: 6, kind: input, shape index: {}]   ;;  %s15621_s7 = inlined_call_operand.vmem [shape: f32[1,32], index: 7, kind: input, shape index: {}]   ;;  %s15622_s8 = inlined_call_operand.vmem [shape: bf16[32,128], index: 8, kind: input, shape index: {}]   ;;  %s15623_s9 = inlined_call_operand.vmem [shape: f32[1,128], index: 9, kind: input, shape index: {}]   ;;  %s15624_s10 = inlined_call_operand.vmem [shape: f32[1,128], index: 10, kind: input, shape index: {}]   ;;  %s15625_s11 = inlined_call_operand.hbm [shape: f32[512,128], index: 11, kind: output, shape index: {}]  }
   0x1   :  { %17 = vsyncpa [#allocation5], 0  ;;  %s8908_s17 = smov [#allocation3]  }
   0x2   :  { %s25_s18 = sshll.u32 %s8908_s17, 4  ;;  %s26_s18 = int_to_ptr.vmem [resolvable:$true] %s25_s18 }
   0x3   :  { %s8872_s19 = scalar_lea.vmem %s26_s18, 24576  ;;  %p8877_p1 = scmp.lt.s32.totalorder %s26_s18, %s26_s18 }
   0x4   :  { %p8873_p0 = scmp.ne.s32.totalorder %s26_s18, %s8872_s19  ;;  %p8878_p2 = scmp.lt.s32.totalorder %s8872_s19, %s8872_s19 }
   0x6   :  { %p8879_p3 = por %p8878_p2, %p8877_p1 }
   0x8   :  { %p8880_p4 = pnand %p8879_p3, %p8873_p0 }
   0xa   :  { %8883 = shalt.err (!%p8880_p4)
}
   0xb   :  { %s8909_s20 = smov 384   ;;  %s8910_s21 = smov 24  }
   0xc   :  { %31 = dma.hbm_to_vmem [thread:$0]  %s15615_s1, 24576, %s26_s18, [#allocation4], %s8909_s20, %s8909_s20, %s8910_s21  }
   0xd   :  { %8904 = dma.done.wait [#allocation4], 24576  }
   0xe   :  { %8905 = vsyncadd [#allocation4], 4294942720  ;;  %v8696_v0 = vld [vmem:[%s15616_s2 + $0x38] sm:$0xff]   ;;  %v8697_v1 = vld [vmem:[%s15616_s2 + $0x30] sm:$0xff]   ;;  %vm505_vm0 = vcmask 261120   ;;  %vm2142_vm3 = vcmask 523264  }
   0xf   :  { %8442 = vmatprep.subr.bf16.mxu0 %v8696_v0  ;;  %8670 = vmatprep.subr.bf16.mxu1 %v8696_v0  ;;  %v8698_v2 = vld [vmem:[%s15616_s2 + $0x28] sm:$0xff]   ;;  %v8699_v3 = vld [vmem:[%s15616_s2 + $0x20] sm:$0xff]   ;;  %v8700_v7 = vld [vmem:[%s15616_s2 + $0x18] sm:$0xff]   ;;  %vm2207_vm4 = vcmask 785408  }
  0x10   :  { %8443 = vmatpush3.bf16.msra.mxu0 %v8696_v0  ;;  %8678 = vmatpush3.bf16.msra.mxu1 %v8696_v0  ;;  %v54_v4 = vld [vmem:[%s15614_s0] sm:$0xff]  ;;  %v55_v5 = vld [vmem:[%s15614_s0 + $0x8] sm:$0xff]  ;;  %v8701_v8 = vld [vmem:[%s15616_s2 + $0x10] sm:$0xff]  }
  0x11   :  { %8444 = vmatprep.subr.bf16.mxu0 %v8697_v1  ;;  %8671 = vmatprep.subr.bf16.mxu1 %v8697_v1  ;;  %v118_v6 = vpack.c.bf16 %v55_v5, %v54_v4  ;;  %v86_v9 = vld [vmem:[%s15614_s0 + $0x100] sm:$0xff]  ;;  %v87_v10 = vld [vmem:[%s15614_s0 + $0x108] sm:$0xff]  ;;  %v56_v14 = vld [vmem:[%s15614_s0 + $0x10] sm:$0xff] }
  0x12   :  { %v8702_v11 = vld [vmem:[%s15616_s2 + $0x8] sm:$0xff]   ;;  %v134_v12 = vpack.c.bf16 %v87_v10, %v86_v9  ;;  %v8703_v13 = vld [vmem:[%s15616_s2] sm:$0xff]   ;;  %v57_v15 = vld [vmem:[%s15614_s0 + $0x18] sm:$0xff]  ;;  %s8914_s2 = smov 64  }
  0x13   :  { %8458 = vmatprep.mubr.bf16.mxu0 %v118_v6  ;;  %v58_v16 = vld [vmem:[%s15614_s0 + $0x20] sm:$0xff]  ;;  %v59_v17 = vld [vmem:[%s15614_s0 + $0x28] sm:$0xff]  ;;  %v88_v18 = vld [vmem:[%s15614_s0 + $0x110] sm:$0xff]  ;;  %v119_v22 = vpack.c.bf16 %v57_v15, %v56_v14 }
  0x14   :  { %8445 = vmatpush3.bf16.msra.mxu0 %v8697_v1  ;;  %8679 = vmatpush3.bf16.msra.mxu1 %v8697_v1  ;;  %v89_v19 = vld [vmem:[%s15614_s0 + $0x118] sm:$0xff]  ;;  %v90_v20 = vld [vmem:[%s15614_s0 + $0x120] sm:$0xff]  ;;  %v91_v21 = vld [vmem:[%s15614_s0 + $0x128] sm:$0xff]  ;;  %v120_v23 = vpack.c.bf16 %v59_v17, %v58_v16 }
  0x15   :  { %8446 = vmatprep.subr.bf16.mxu0 %v8698_v2  ;;  %8672 = vmatprep.subr.bf16.mxu1 %v8698_v2  ;;  %v135_v24 = vpack.c.bf16 %v89_v19, %v88_v18  ;;  %v136_v25 = vpack.c.bf16 %v91_v21, %v90_v20  ;;  %v60_v26 = vld [vmem:[%s15614_s0 + $0x30] sm:$0xff]  ;;  %v61_v27 = vld [vmem:[%s15614_s0 + $0x38] sm:$0xff]  ;;  %v62_v28 = vld [vmem:[%s15614_s0 + $0x40] sm:$0xff] }
  0x16   :  { %8490 = vmatprep.mubr.bf16.mxu1 %v134_v12  ;;  %v63_v29 = vld [vmem:[%s15614_s0 + $0x48] sm:$0xff]  ;;  %v92_v30 = vld [vmem:[%s15614_s0 + $0x130] sm:$0xff]  ;;  %v93_v31 = vld [vmem:[%s15614_s0 + $0x138] sm:$0xff]  ;;  %v121_v34 = vpack.c.bf16 %v61_v27, %v60_v26 }
  0x17   :  { %v94_v32 = vld [vmem:[%s15614_s0 + $0x140] sm:$0xff]  ;;  %v95_v33 = vld [vmem:[%s15614_s0 + $0x148] sm:$0xff]  ;;  %v122_v35 = vpack.c.bf16 %v63_v29, %v62_v28  ;;  %v137_v36 = vpack.c.bf16 %v93_v31, %v92_v30  ;;  %v64_v38 = vld [vmem:[%s15614_s0 + $0x50] sm:$0xff] }
  0x18   :  { %8447 = vmatpush3.bf16.msra.mxu0 %v8698_v2  ;;  %8680 = vmatpush3.bf16.msra.mxu1 %v8698_v2  ;;  %v138_v37 = vpack.c.bf16 %v95_v33, %v94_v32  ;;  %v65_v39 = vld [vmem:[%s15614_s0 + $0x58] sm:$0xff]  ;;  %v66_v40 = vld [vmem:[%s15614_s0 + $0x60] sm:$0xff]  ;;  %v67_v41 = vld [vmem:[%s15614_s0 + $0x68] sm:$0xff] }
  0x19   :  { %8448 = vmatprep.subr.bf16.mxu0 %v8699_v3  ;;  %8673 = vmatprep.subr.bf16.mxu1 %v8699_v3  ;;  %v96_v42 = vld [vmem:[%s15614_s0 + $0x150] sm:$0xff]  ;;  %v97_v43 = vld [vmem:[%s15614_s0 + $0x158] sm:$0xff]  ;;  %v98_v44 = vld [vmem:[%s15614_s0 + $0x160] sm:$0xff]  ;;  %v123_v46 = vpack.c.bf16 %v65_v39, %v64_v38  ;;  %v124_v47 = vpack.c.bf16 %v67_v41, %v66_v40 }
  0x1a   :  { %v99_v45 = vld [vmem:[%s15614_s0 + $0x168] sm:$0xff]  ;;  %v139_v48 = vpack.c.bf16 %v97_v43, %v96_v42  ;;  %v68_v50 = vld [vmem:[%s15614_s0 + $0x70] sm:$0xff]  ;;  %v69_v51 = vld [vmem:[%s15614_s0 + $0x78] sm:$0xff] }
  0x1b   :  { %v140_v49 = vpack.c.bf16 %v99_v45, %v98_v44  ;;  %v70_v52 = vld [vmem:[%s15614_s0 + $0x80] sm:$0xff]  ;;  %v71_v53 = vld [vmem:[%s15614_s0 + $0x88] sm:$0xff]  ;;  %v100_v54 = vld [vmem:[%s15614_s0 + $0x170] sm:$0xff]  ;;  %v125_v58 = vpack.c.bf16 %v69_v51, %v68_v50 }
  0x1c   :  { %8449 = vmatpush3.bf16.msra.mxu0 %v8699_v3  ;;  %8681 = vmatpush3.bf16.msra.mxu1 %v8699_v3  ;;  %v101_v55 = vld [vmem:[%s15614_s0 + $0x178] sm:$0xff]  ;;  %v102_v56 = vld [vmem:[%s15614_s0 + $0x180] sm:$0xff]  ;;  %v103_v57 = vld [vmem:[%s15614_s0 + $0x188] sm:$0xff]  ;;  %v126_v59 = vpack.c.bf16 %v71_v53, %v70_v52 }
  0x1d   :  { %8450 = vmatprep.subr.bf16.mxu0 %v8700_v7  ;;  %8674 = vmatprep.subr.bf16.mxu1 %v8700_v7  ;;  %v141_v60 = vpack.c.bf16 %v101_v55, %v100_v54  ;;  %v142_v61 = vpack.c.bf16 %v103_v57, %v102_v56  ;;  %v72_v62 = vld [vmem:[%s15614_s0 + $0x90] sm:$0xff]  ;;  %v73_v63 = vld [vmem:[%s15614_s0 + $0x98] sm:$0xff]  ;;  %v74_v0 = vld [vmem:[%s15614_s0 + $0xa0] sm:$0xff] }
  0x1e   :  { %v75_v1 = vld [vmem:[%s15614_s0 + $0xa8] sm:$0xff]  ;;  %v104_v2 = vld [vmem:[%s15614_s0 + $0x190] sm:$0xff]  ;;  %v105_v3 = vld [vmem:[%s15614_s0 + $0x198] sm:$0xff]  ;;  %v127_v6 = vpack.c.bf16 %v73_v63, %v72_v62 }
  0x1f   :  { %v106_v4 = vld [vmem:[%s15614_s0 + $0x1a0] sm:$0xff]  ;;  %v107_v5 = vld [vmem:[%s15614_s0 + $0x1a8] sm:$0xff]  ;;  %v76_v10 = vld [vmem:[%s15614_s0 + $0xb0] sm:$0xff] }
  0x20   :  { %8451 = vmatpush3.bf16.msra.mxu0 %v8700_v7  ;;  %8682 = vmatpush3.bf16.msra.mxu1 %v8700_v7  ;;  %v128_v7 = vpack.c.bf16 %v75_v1, %v74_v0  ;;  %v144_v9 = vpack.c.bf16 %v107_v5, %v106_v4  ;;  %v78_v12 = vld [vmem:[%s15614_s0 + $0xc0] sm:$0xff]  ;;  %v108_v14 = vld [vmem:[%s15614_s0 + $0x1b0] sm:$0xff]  ;;  %v109_v15 = vld [vmem:[%s15614_s0 + $0x1b8] sm:$0xff] }
  0x21   :  { %8452 = vmatprep.subr.bf16.mxu0 %v8701_v8  ;;  %8675 = vmatprep.subr.bf16.mxu1 %v8701_v8  ;;  %v110_v16 = vld [vmem:[%s15614_s0 + $0x1c0] sm:$0xff]  ;;  %v111_v17 = vld [vmem:[%s15614_s0 + $0x1c8] sm:$0xff]  ;;  %v145_v20 = vpack.c.bf16 %v109_v15, %v108_v14  ;;  %v112_v26 = vld [vmem:[%s15614_s0 + $0x1d0] sm:$0xff] }
  0x22   :  { %v146_v21 = vpack.c.bf16 %v111_v17, %v110_v16  ;;  %v113_v27 = vld [vmem:[%s15614_s0 + $0x1d8] sm:$0xff]  ;;  %v114_v28 = vld [vmem:[%s15614_s0 + $0x1e0] sm:$0xff]  ;;  %v115_v29 = vld [vmem:[%s15614_s0 + $0x1e8] sm:$0xff] }
  0x23   :  { %v147_v32 = vpack.c.bf16 %v113_v27, %v112_v26  ;;  %v148_v33 = vpack.c.bf16 %v115_v29, %v114_v28 }
  0x24   :  { %8453 = vmatpush3.bf16.msra.mxu0 %v8701_v8  ;;  %8683 = vmatpush3.bf16.msra.mxu1 %v8701_v8  ;;  %v143_v8 = vpack.c.bf16 %v105_v3, %v104_v2 }
  0x25   :  { %8454 = vmatprep.subr.bf16.mxu0 %v8702_v11  ;;  %8676 = vmatprep.subr.bf16.mxu1 %v8702_v11 }
  0x28   :  { %8455 = vmatpush3.bf16.msra.mxu0 %v8702_v11  ;;  %8684 = vmatpush3.bf16.msra.mxu1 %v8702_v11  ;;  %v77_v11 = vld [vmem:[%s15614_s0 + $0xb8] sm:$0xff] }
  0x29   :  { %8456 = vmatprep.subr.bf16.mxu0 %v8703_v13  ;;  %8677 = vmatprep.subr.bf16.mxu1 %v8703_v13  ;;  %v129_v18 = vpack.c.bf16 %v77_v11, %v76_v10 }
  0x2c   :  { %8457 = vmatpush3.bf16.msra.mxu0 %v8703_v13  ;;  %8685 = vmatpush3.bf16.msra.mxu1 %v8703_v13  ;;  %v79_v13 = vld [vmem:[%s15614_s0 + $0xc8] sm:$0xff] }
  0x2d   :  { %v130_v19 = vpack.c.bf16 %v79_v13, %v78_v12 }
  0x2f   :  { %8459 = vmatmul.mubr.bf16.vlgmr.msra.gmra.mxu0 %v119_v22  ;;  %8491 = vmatmul.mubr.bf16.vlgmr.msra.gmra.mxu1 %v135_v24  ;;  %v80_v22 = vld [vmem:[%s15614_s0 + $0xd0] sm:$0xff]  ;;  %v82_v24 = vld [vmem:[%s15614_s0 + $0xe0] sm:$0xff] }
  0x30   :  { %8462 = vmatprep.mubr.bf16.mxu0 %v120_v23  ;;  %8494 = vmatprep.mubr.bf16.mxu1 %v136_v25  ;;  %v81_v23 = vld [vmem:[%s15614_s0 + $0xd8] sm:$0xff]  ;;  %v83_v25 = vld [vmem:[%s15614_s0 + $0xe8] sm:$0xff] }
  0x31   :  { %v131_v30 = vpack.c.bf16 %v81_v23, %v80_v22  ;;  %v132_v31 = vpack.c.bf16 %v83_v25, %v82_v24 }
  0x37   :  { %8463 = vmatmul.mubr.bf16.gmra.mxu0 %v121_v34  ;;  %8495 = vmatmul.mubr.bf16.gmra.mxu1 %v137_v36  ;;  %v84_v34 = vld [vmem:[%s15614_s0 + $0xf0] sm:$0xff] }
  0x38   :  { %8466 = vmatprep.mubr.bf16.mxu0 %v122_v35  ;;  %8498 = vmatprep.mubr.bf16.mxu1 %v138_v37  ;;  %v85_v35 = vld [vmem:[%s15614_s0 + $0xf8] sm:$0xff]  ;;  %v116_v36 = vld [vmem:[%s15614_s0 + $0x1f0] sm:$0xff] }
  0x39   :  { %v117_v37 = vld [vmem:[%s15614_s0 + $0x1f8] sm:$0xff]  ;;  %v133_v38 = vpack.c.bf16 %v85_v35, %v84_v34 }
  0x3a   :  { %v149_v39 = vpack.c.bf16 %v117_v37, %v116_v36 }
  0x3f   :  { %8467 = vmatmul.mubr.bf16.gmra.mxu0 %v123_v46  ;;  %8499 = vmatmul.mubr.bf16.gmra.mxu1 %v139_v48 }
  0x40   :  { %8470 = vmatprep.mubr.bf16.mxu0 %v124_v47  ;;  %8502 = vmatprep.mubr.bf16.mxu1 %v140_v49 }
  0x47   :  { %8471 = vmatmul.mubr.bf16.gmra.mxu0 %v125_v58  ;;  %8503 = vmatmul.mubr.bf16.gmra.mxu1 %v141_v60 }
  0x48   :  { %8474 = vmatprep.mubr.bf16.mxu0 %v126_v59  ;;  %8506 = vmatprep.mubr.bf16.mxu1 %v142_v61 }
  0x4f   :  { %8475 = vmatmul.mubr.bf16.gmra.mxu0 %v127_v6  ;;  %8507 = vmatmul.mubr.bf16.gmra.mxu1 %v143_v8 }
  0x50   :  { %8478 = vmatprep.mubr.bf16.mxu0 %v128_v7  ;;  %8510 = vmatprep.mubr.bf16.mxu1 %v144_v9 }
  0x57   :  { %8479 = vmatmul.mubr.bf16.gmra.mxu0 %v129_v18  ;;  %8511 = vmatmul.mubr.bf16.gmra.mxu1 %v145_v20 }
  0x58   :  { %8482 = vmatprep.mubr.bf16.mxu0 %v130_v19  ;;  %8514 = vmatprep.mubr.bf16.mxu1 %v146_v21 }
  0x5f   :  { %8483 = vmatmul.mubr.bf16.gmra.mxu0 %v131_v30  ;;  %8515 = vmatmul.mubr.bf16.gmra.mxu1 %v147_v32 }
  0x60   :  { %8486 = vmatprep.mubr.bf16.mxu0 %v132_v31  ;;  %8518 = vmatprep.mubr.bf16.mxu1 %v148_v33 }
  0x67   :  { %8487 = vmatmul.mubr.bf16.gmra.mxu0 %v133_v38  ;;  %8519 = vmatmul.mubr.bf16.gmra.mxu1 %v149_v39 }
  0xef   :  { %v9197_v40 = vpop.f32.mrf.mxu0  ;;  %v9199_v41 = vpop.f32.mrf.mxu1 }
  0xf0   :  { %15934 = vst [vmem:[#allocation9_spill] sm:$0xff] %v9197_v40  ;;  %v643_v48 = vmul.f32 %v9197_v40, %v9197_v40  ;;  %v509_v54 = vsel %vm505_vm0, %v9197_v40, 0.0 }
  0xf1   :  { %v9201_v42 = vpop.f32.mrf.mxu0  ;;  %v9203_v43 = vpop.f32.mrf.mxu1 }
  0xf2   :  { %15935 = vst [vmem:[#allocation10_spill] sm:$0xff] %v9201_v42  ;;  %v641_v45 = vmul.f32 %v9201_v42, %v9201_v42  ;;  %v506_v49 = vsel %vm505_vm0, %v9201_v42, 0.0  ;;  %v708_v62 = vsel %vm505_vm0, %v643_v48, 0.0 }
  0xf3   :  { %v9205_v44 = vpop.f32.mrf.mxu0  ;;  %v9211_v47 = vpop.f32.mrf.mxu1 }
  0xf4   :  { %v705_v55 = vsel %vm505_vm0, %v641_v45, 0.0  ;;  %v644_v56 = vmul.f32 %v9205_v44, %v9205_v44  ;;  %v511_v63 = vsel %vm505_vm0, %v9205_v44, 0.0 }
  0xf5   :  { %v9209_v46 = vpop.f32.mrf.mxu0  ;;  %v9231_v61 = vpop.f32.mrf.mxu1 }
  0xf6   :  { %v507_v50 = vsel %vm505_vm0, %v9209_v46, 0.0  ;;  %v642_v51 = vmul.f32 %v9209_v46, %v9209_v46  ;;  %v710_v4 = vsel %vm505_vm0, %v644_v56, 0.0 }
  0xf7   :  { %v508_v52 = vadd.f32 %v507_v50, %v506_v49  ;;  %v9221_v53 = vpop.f32.mrf.mxu0  ;;  %v9245_v9 = vpop.f32.mrf.mxu1 }
  0xf8   :  { %15936 = vst [vmem:[#allocation11_spill] sm:$0xff] %v9221_v53  ;;  %v706_v57 = vsel %vm505_vm0, %v642_v51, 0.0  ;;  %v647_v10 = vmul.f32 %v9221_v53, %v9221_v53  ;;  %v517_v17 = vsel %vm505_vm0, %v9221_v53, 0.0 }
  0xf9   :  { %v707_v58 = vadd.f32 %v706_v57, %v705_v55  ;;  %v9229_v59 = vpop.f32.mrf.mxu0  ;;  %v510_v60 = vadd.f32 %v509_v54, %v508_v52  ;;  %v9263_v23 = vpop.f32.mrf.mxu1 }
  0xfa   :  { %15937 = vst [vmem:[#allocation12_spill] sm:$0xff] %v9229_v59  ;;  %v645_v0 = vmul.f32 %v9229_v59, %v9229_v59  ;;  %v513_v5 = vsel %vm505_vm0, %v9229_v59, 0.0  ;;  %v716_v24 = vsel %vm505_vm0, %v647_v10, 0.0  ;;  %v577_v53 = vsel %vm505_vm0, %v9263_v23, 0.0 }
  0xfb   :  { %v512_v1 = vadd.f32 %v511_v63, %v510_v60  ;;  %v709_v2 = vadd.f32 %v708_v62, %v707_v58  ;;  %v9238_v3 = vpop.f32.mrf.mxu0  ;;  %v9277_v35 = vpop.f32.mrf.mxu1 }
  0xfc   :  { %15938 = vst [vmem:[#allocation13_spill] sm:$0xff] %v9238_v3  ;;  %v712_v11 = vsel %vm505_vm0, %v645_v0, 0.0  ;;  %v648_v18 = vmul.f32 %v9238_v3, %v9238_v3  ;;  %v519_v25 = vsel %vm505_vm0, %v9238_v3, 0.0 }
  0xfd   :  { %v514_v6 = vadd.f32 %v513_v5, %v512_v1  ;;  %v711_v7 = vadd.f32 %v710_v4, %v709_v2  ;;  %v9243_v8 = vpop.f32.mrf.mxu0  ;;  %v9295_v57 = vpop.f32.mrf.mxu1 }
  0xfe   :  { %15939 = vst [vmem:[#allocation14_spill] sm:$0xff] %v9243_v8  ;;  %v515_v12 = vsel %vm505_vm0, %v9243_v8, 0.0  ;;  %v646_v13 = vmul.f32 %v9243_v8, %v9243_v8  ;;  %v718_v30 = vsel %vm505_vm0, %v648_v18, 0.0 }
  0xff   :  { %v713_v14 = vadd.f32 %v712_v11, %v711_v7  ;;  %v516_v15 = vadd.f32 %v515_v12, %v514_v6  ;;  %v9254_v16 = vpop.f32.mrf.mxu0  ;;  %v9309_v10 = vpop.f32.mrf.mxu1 }
 0x100   :  { %v714_v19 = vsel %vm505_vm0, %v646_v13, 0.0  ;;  %v651_v36 = vmul.f32 %v9254_v16, %v9254_v16  ;;  %v525_v50 = vsel %vm505_vm0, %v9254_v16, 0.0 }
 0x101   :  { %v715_v20 = vadd.f32 %v714_v19, %v713_v14  ;;  %v9261_v21 = vpop.f32.mrf.mxu0  ;;  %v518_v22 = vadd.f32 %v517_v17, %v516_v15 }
 0x102   :  { %15940 = vst [vmem:[#allocation15_spill] sm:$0xff] %v9261_v21  ;;  %v649_v26 = vmul.f32 %v9261_v21, %v9261_v21  ;;  %v521_v31 = vsel %vm505_vm0, %v9261_v21, 0.0  ;;  %v724_v58 = vsel %vm505_vm0, %v651_v36, 0.0  ;;  %v569_v21 = vsel %vm505_vm0, %v9203_v43, 0.0 }
 0x103   :  { %v520_v27 = vadd.f32 %v519_v25, %v518_v22  ;;  %v717_v28 = vadd.f32 %v716_v24, %v715_v20  ;;  %v9270_v29 = vpop.f32.mrf.mxu0 }
 0x104   :  { %15941 = vst [vmem:[#allocation16_spill] sm:$0xff] %v9270_v29  ;;  %v720_v37 = vsel %vm505_vm0, %v649_v26, 0.0  ;;  %v652_v51 = vmul.f32 %v9270_v29, %v9270_v29  ;;  %v527_v60 = vsel %vm505_vm0, %v9270_v29, 0.0 }
 0x105   :  { %v522_v32 = vadd.f32 %v521_v31, %v520_v27  ;;  %v719_v33 = vadd.f32 %v718_v30, %v717_v28  ;;  %v9275_v34 = vpop.f32.mrf.mxu0  ;;  %v9327_v27 = vpop.f32.mrf.mxu1 }
 0x106   :  { %15942 = vst [vmem:[#allocation17_spill] sm:$0xff] %v9275_v34  ;;  %v523_v38 = vsel %vm505_vm0, %v9275_v34, 0.0  ;;  %v650_v39 = vmul.f32 %v9275_v34, %v9275_v34  ;;  %v726_v2 = vsel %vm505_vm0, %v652_v51, 0.0  ;;  %v585_v59 = vsel %vm505_vm0, %v9327_v27, 0.0 }
 0x107   :  { %v721_v45 = vadd.f32 %v720_v37, %v719_v33  ;;  %v524_v48 = vadd.f32 %v523_v38, %v522_v32  ;;  %v9286_v49 = vpop.f32.mrf.mxu0 }
 0x108   :  { %v722_v52 = vsel %vm505_vm0, %v650_v39, 0.0  ;;  %v655_v11 = vmul.f32 %v9286_v49, %v9286_v49  ;;  %v533_v19 = vsel %vm505_vm0, %v9286_v49, 0.0 }
 0x109   :  { %v723_v54 = vadd.f32 %v722_v52, %v721_v45  ;;  %v9293_v55 = vpop.f32.mrf.mxu0  ;;  %v526_v56 = vadd.f32 %v525_v50, %v524_v48  ;;  %v9341_v50 = vpop.f32.mrf.mxu1 }
 0x10a   :  { %v653_v62 = vmul.f32 %v9293_v55, %v9293_v55  ;;  %v529_v4 = vsel %vm505_vm0, %v9293_v55, 0.0  ;;  %v732_v28 = vsel %vm505_vm0, %v655_v11, 0.0 }
 0x10b   :  { %v528_v63 = vadd.f32 %v527_v60, %v526_v56  ;;  %v725_v0 = vadd.f32 %v724_v58, %v723_v54  ;;  %v9302_v1 = vpop.f32.mrf.mxu0  ;;  %v9359_v11 = vpop.f32.mrf.mxu1 }
 0x10c   :  { %15943 = vst [vmem:[#allocation18_spill] sm:$0xff] %v9302_v1  ;;  %v728_v12 = vsel %vm505_vm0, %v653_v62, 0.0  ;;  %v656_v20 = vmul.f32 %v9302_v1, %v9302_v1  ;;  %v535_v30 = vsel %vm505_vm0, %v9302_v1, 0.0 }
 0x10d   :  { %v530_v5 = vadd.f32 %v529_v4, %v528_v63  ;;  %v727_v6 = vadd.f32 %v726_v2, %v725_v0  ;;  %v9307_v7 = vpop.f32.mrf.mxu0 }
 0x10e   :  { %15944 = vst [vmem:[#allocation19_spill] sm:$0xff] %v9307_v7  ;;  %v531_v13 = vsel %vm505_vm0, %v9307_v7, 0.0  ;;  %v654_v14 = vmul.f32 %v9307_v7, %v9307_v7  ;;  %v734_v37 = vsel %vm505_vm0, %v656_v20, 0.0 }
 0x10f   :  { %v729_v15 = vadd.f32 %v728_v12, %v727_v6  ;;  %v532_v17 = vadd.f32 %v531_v13, %v530_v5  ;;  %v9318_v18 = vpop.f32.mrf.mxu0 }
 0x110   :  { %v730_v22 = vsel %vm505_vm0, %v654_v14, 0.0  ;;  %v659_v51 = vmul.f32 %v9318_v18, %v9318_v18  ;;  %v541_v63 = vsel %vm505_vm0, %v9318_v18, 0.0 }
 0x111   :  { %v731_v24 = vadd.f32 %v730_v22, %v729_v15  ;;  %v9325_v25 = vpop.f32.mrf.mxu0  ;;  %v534_v26 = vadd.f32 %v533_v19, %v532_v17 }
 0x112   :  { %v657_v31 = vmul.f32 %v9325_v25, %v9325_v25  ;;  %v537_v38 = vsel %vm505_vm0, %v9325_v25, 0.0  ;;  %v740_v12 = vsel %vm505_vm0, %v659_v51, 0.0 }
 0x113   :  { %v536_v32 = vadd.f32 %v535_v30, %v534_v26  ;;  %v733_v33 = vadd.f32 %v732_v28, %v731_v24  ;;  %v9334_v36 = vpop.f32.mrf.mxu0  ;;  %v9373_v30 = vpop.f32.mrf.mxu1 }
 0x114   :  { %v736_v52 = vsel %vm505_vm0, %v657_v31, 0.0  ;;  %v660_v0 = vmul.f32 %v9334_v36, %v9334_v36  ;;  %v543_v13 = vsel %vm505_vm0, %v9334_v36, 0.0 }
 0x115   :  { %v538_v39 = vadd.f32 %v537_v38, %v536_v32  ;;  %v735_v45 = vadd.f32 %v734_v37, %v733_v33  ;;  %v9339_v48 = vpop.f32.mrf.mxu0 }
 0x116   :  { %v539_v54 = vsel %vm505_vm0, %v9339_v48, 0.0  ;;  %v658_v56 = vmul.f32 %v9339_v48, %v9339_v48  ;;  %v742_v20 = vsel %vm505_vm0, %v660_v0, 0.0 }
 0x117   :  { %v737_v58 = vadd.f32 %v736_v52, %v735_v45  ;;  %v540_v60 = vadd.f32 %v539_v54, %v538_v39  ;;  %v9350_v62 = vpop.f32.mrf.mxu0 }
 0x118   :  { %v738_v2 = vsel %vm505_vm0, %v658_v56, 0.0  ;;  %v663_v31 = vmul.f32 %v9350_v62, %v9350_v62  ;;  %v549_v51 = vsel %vm505_vm0, %v9350_v62, 0.0 }
 0x119   :  { %v739_v4 = vadd.f32 %v738_v2, %v737_v58  ;;  %v9357_v5 = vpop.f32.mrf.mxu0  ;;  %v542_v6 = vadd.f32 %v541_v63, %v540_v60  ;;  %v9391_v63 = vpop.f32.mrf.mxu1 }
 0x11a   :  { %v661_v14 = vmul.f32 %v9357_v5, %v9357_v5  ;;  %v545_v22 = vsel %vm505_vm0, %v9357_v5, 0.0  ;;  %v748_v0 = vsel %vm505_vm0, %v663_v31, 0.0  ;;  %v593_v42 = vsel %vm505_vm0, %v9391_v63, 0.0 }
 0x11b   :  { %v544_v15 = vadd.f32 %v543_v13, %v542_v6  ;;  %v741_v17 = vadd.f32 %v740_v12, %v739_v4  ;;  %v9366_v19 = vpop.f32.mrf.mxu0 }
 0x11c   :  { %v744_v32 = vsel %vm505_vm0, %v661_v14, 0.0  ;;  %v664_v52 = vmul.f32 %v9366_v19, %v9366_v19  ;;  %v551_v2 = vsel %vm505_vm0, %v9366_v19, 0.0 }
 0x11d   :  { %v546_v24 = vadd.f32 %v545_v22, %v544_v15  ;;  %v743_v26 = vadd.f32 %v742_v20, %v741_v17  ;;  %v9371_v28 = vpop.f32.mrf.mxu0 }
 0x11e   :  { %v547_v33 = vsel %vm505_vm0, %v9371_v28, 0.0  ;;  %v662_v37 = vmul.f32 %v9371_v28, %v9371_v28  ;;  %v750_v14 = vsel %vm505_vm0, %v664_v52, 0.0 }
 0x11f   :  { %v745_v38 = vadd.f32 %v744_v32, %v743_v26  ;;  %v548_v39 = vadd.f32 %v547_v33, %v546_v24  ;;  %v9382_v45 = vpop.f32.mrf.mxu0  ;;  %v9405_v24 = vpop.f32.mrf.mxu1 }
 0x120   :  { %v746_v54 = vsel %vm505_vm0, %v662_v37, 0.0  ;;  %v667_v26 = vmul.f32 %v9382_v45, %v9382_v45 }
 0x121   :  { %v747_v56 = vadd.f32 %v746_v54, %v745_v38  ;;  %v9389_v58 = vpop.f32.mrf.mxu0  ;;  %v550_v60 = vadd.f32 %v549_v51, %v548_v39  ;;  %v557_v51 = vsel %vm505_vm0, %v9382_v45, 0.0 }
 0x122   :  { %v665_v4 = vmul.f32 %v9389_v58, %v9389_v58  ;;  %v553_v15 = vsel %vm505_vm0, %v9389_v58, 0.0 }
 0x123   :  { %v552_v6 = vadd.f32 %v551_v2, %v550_v60  ;;  %v749_v12 = vadd.f32 %v748_v0, %v747_v56  ;;  %v9398_v13 = vpop.f32.mrf.mxu0  ;;  %v9423_v2 = vpop.f32.mrf.mxu1 }
 0x124   :  { %v752_v31 = vsel %vm505_vm0, %v665_v4, 0.0  ;;  %v668_v52 = vmul.f32 %v9398_v13, %v9398_v13  ;;  %v756_v4 = vsel %vm505_vm0, %v667_v26, 0.0 }
 0x125   :  { %v554_v17 = vadd.f32 %v553_v15, %v552_v6  ;;  %v751_v20 = vadd.f32 %v750_v14, %v749_v12  ;;  %v9403_v22 = vpop.f32.mrf.mxu0  ;;  %v559_v6 = vsel %vm505_vm0, %v9398_v13, 0.0  ;;  %v9437_v26 = vpop.f32.mrf.mxu1 }
 0x126   :  { %v555_v32 = vsel %vm505_vm0, %v9403_v22, 0.0  ;;  %v666_v33 = vmul.f32 %v9403_v22, %v9403_v22  ;;  %15945 = vst [vmem:[#allocation20_spill] sm:$0xff] %v9437_v26 }
 0x127   :  { %v753_v37 = vadd.f32 %v752_v31, %v751_v20  ;;  %v556_v38 = vadd.f32 %v555_v32, %v554_v17  ;;  %v9414_v39 = vpop.f32.mrf.mxu0  ;;  %v758_v20 = vsel %vm505_vm0, %v668_v52, 0.0 }
 0x128   :  { %v754_v54 = vsel %vm505_vm0, %v666_v33, 0.0 }
 0x129   :  { %v755_v56 = vadd.f32 %v754_v54, %v753_v37  ;;  %v9421_v60 = vpop.f32.mrf.mxu0  ;;  %v558_v0 = vadd.f32 %v557_v51, %v556_v38  ;;  %v671_v38 = vmul.f32 %v9414_v39, %v9414_v39 }
 0x12a   :  { %v669_v12 = vmul.f32 %v9421_v60, %v9421_v60  ;;  %v561_v31 = vsel %vm505_vm0, %v9421_v60, 0.0 }
 0x12b   :  { %v560_v14 = vadd.f32 %v559_v6, %v558_v0  ;;  %v757_v15 = vadd.f32 %v756_v4, %v755_v56  ;;  %v9430_v17 = vpop.f32.mrf.mxu0  ;;  %v565_v4 = vsel %vm505_vm0, %v9414_v39, 0.0 }
 0x12c   :  { %v760_v51 = vsel %vm505_vm0, %v669_v12, 0.0  ;;  %v672_v6 = vmul.f32 %v9430_v17, %v9430_v17  ;;  %v764_v12 = vsel %vm505_vm0, %v671_v38, 0.0  ;;  %v567_v1 = vsel %vm505_vm0, %v9430_v17, 0.0 }
 0x12d   :  { %v562_v32 = vadd.f32 %v561_v31, %v560_v14  ;;  %v759_v33 = vadd.f32 %v758_v20, %v757_v15  ;;  %v9435_v37 = vpop.f32.mrf.mxu0  ;;  %v9451_v31 = vpop.f32.mrf.mxu1  ;;  %v675_v38 = vmul.f32 %v9199_v41, %v9199_v41 }
 0x12e   :  { %v563_v54 = vsel %vm505_vm0, %v9435_v37, 0.0  ;;  %v670_v52 = vmul.f32 %v9435_v37, %v9435_v37  ;;  %v601_v3 = vsel %vm505_vm0, %v9451_v31, 0.0 }
 0x12f   :  { %v761_v56 = vadd.f32 %v760_v51, %v759_v33  ;;  %v564_v0 = vadd.f32 %v563_v54, %v562_v32  ;;  %v673_v32 = vmul.f32 %v9203_v43, %v9203_v43  ;;  %v766_v54 = vsel %vm505_vm0, %v672_v6, 0.0 }
 0x130   :  { %v762_v14 = vsel %vm505_vm0, %v670_v52, 0.0  ;;  %v674_v52 = vmul.f32 %v9231_v61, %v9231_v61  ;;  %v772_v7 = vsel %vm505_vm0, %v675_v38, 0.0  ;;  %v679_v38 = vmul.f32 %v9245_v9, %v9245_v9 }
 0x131   :  { %v566_v15 = vadd.f32 %v565_v4, %v564_v0  ;;  %v763_v20 = vadd.f32 %v762_v14, %v761_v56  ;;  %v9463_v4 = vpop.f32.mrf.mxu1  ;;  %v768_v14 = vsel %vm505_vm0, %v673_v32, 0.0  ;;  %v575_v32 = vsel %vm505_vm0, %v9211_v47, 0.0 }
 0x132   :  { %15946 = vst [vmem:[#allocation21_spill] sm:$0xff] %v9463_v4  ;;  %v780_v29 = vsel %vm505_vm0, %v679_v38, 0.0  ;;  %v683_v38 = vmul.f32 %v9309_v10, %v9309_v10 }
 0x133   :  { %v765_v33 = vadd.f32 %v764_v12, %v763_v20  ;;  %v568_v51 = vadd.f32 %v567_v1, %v566_v15  ;;  %v571_v1 = vsel %vm505_vm0, %v9231_v61, 0.0  ;;  %v573_v20 = vsel %vm505_vm0, %v9199_v41, 0.0 }
 0x134   :  { %v676_v12 = vmul.f32 %v9211_v47, %v9211_v47  ;;  %v788_v34 = vsel %vm505_vm0, %v683_v38, 0.0  ;;  %v687_v38 = vmul.f32 %v9373_v30, %v9373_v30 }
 0x135   :  { %v570_v56 = vadd.f32 %v569_v21, %v568_v51  ;;  %v767_v0 = vadd.f32 %v766_v54, %v765_v33  ;;  %v770_v21 = vsel %vm505_vm0, %v674_v52, 0.0  ;;  %v9475_v54 = vpop.f32.mrf.mxu1  ;;  %v678_v52 = vmul.f32 %v9295_v57, %v9295_v57 }
 0x136   :  { %15947 = vst [vmem:[#allocation22_spill] sm:$0xff] %v9475_v54  ;;  %v796_v40 = vsel %vm505_vm0, %v687_v38, 0.0  ;;  %v691_v38 = vmul.f32 %v9437_v26, %v9437_v26 }
 0x137   :  { %v572_v15 = vadd.f32 %v571_v1, %v570_v56  ;;  %v769_v6 = vadd.f32 %v768_v14, %v767_v0  ;;  %v677_v56 = vmul.f32 %v9263_v23, %v9263_v23  ;;  %v774_v1 = vsel %vm505_vm0, %v676_v12, 0.0 }
 0x138   :  { %v804_v8 = vsel %vm505_vm0, %v691_v38, 0.0 }
 0x139   :  { %v771_v33 = vadd.f32 %v770_v21, %v769_v6  ;;  %v574_v51 = vadd.f32 %v573_v20, %v572_v15  ;;  %v9487_v20 = vpop.f32.mrf.mxu1  ;;  %v776_v21 = vsel %vm505_vm0, %v677_v56, 0.0  ;;  %v583_v56 = vsel %vm505_vm0, %v9277_v35, 0.0 }
 0x13a   :  { %15948 = vst [vmem:[#allocation23_spill] sm:$0xff] %v9487_v20  ;;  %v695_v38 = vmul.f32 %v9487_v20, %v9487_v20 }
 0x13b   :  { %v576_v0 = vadd.f32 %v575_v32, %v574_v51  ;;  %v773_v14 = vadd.f32 %v772_v7, %v771_v33  ;;  %v579_v7 = vsel %vm505_vm0, %v9295_v57, 0.0  ;;  %v581_v51 = vsel %vm505_vm0, %v9245_v9, 0.0 }
 0x13c   :  { %v680_v32 = vmul.f32 %v9277_v35, %v9277_v35 }
 0x13d   :  { %v578_v15 = vadd.f32 %v577_v53, %v576_v0  ;;  %v775_v6 = vadd.f32 %v774_v1, %v773_v14  ;;  %v778_v53 = vsel %vm505_vm0, %v678_v52, 0.0  ;;  %v9499_v1 = vpop.f32.mrf.mxu1  ;;  %v682_v52 = vmul.f32 %v9359_v11, %v9359_v11 }
 0x13e   :  { %15949 = vst [vmem:[#allocation24_spill] sm:$0xff] %v9499_v1 }
 0x13f   :  { %v777_v33 = vadd.f32 %v776_v21, %v775_v6  ;;  %v580_v12 = vadd.f32 %v579_v7, %v578_v15  ;;  %v681_v15 = vmul.f32 %v9327_v27, %v9327_v27  ;;  %v782_v7 = vsel %vm505_vm0, %v680_v32, 0.0 }
 0x141   :  { %v779_v0 = vadd.f32 %v778_v53, %v777_v33  ;;  %v582_v14 = vadd.f32 %v581_v51, %v580_v12  ;;  %v9511_v51 = vpop.f32.mrf.mxu1  ;;  %v784_v53 = vsel %vm505_vm0, %v681_v15, 0.0  ;;  %v591_v15 = vsel %vm505_vm0, %v9341_v50, 0.0 }
 0x142   :  { %15950 = vst [vmem:[#allocation25_spill] sm:$0xff] %v9511_v51 }
 0x143   :  { %v584_v6 = vadd.f32 %v583_v56, %v582_v14  ;;  %v781_v21 = vadd.f32 %v780_v29, %v779_v0  ;;  %v587_v29 = vsel %vm505_vm0, %v9359_v11, 0.0  ;;  %v589_v14 = vsel %vm505_vm0, %v9309_v10, 0.0 }
 0x144   :  { %v684_v56 = vmul.f32 %v9341_v50, %v9341_v50 }
 0x145   :  { %v586_v33 = vadd.f32 %v585_v59, %v584_v6  ;;  %v783_v12 = vadd.f32 %v782_v7, %v781_v21  ;;  %v786_v59 = vsel %vm505_vm0, %v682_v52, 0.0  ;;  %v9523_v7 = vpop.f32.mrf.mxu1  ;;  %v686_v52 = vmul.f32 %v9423_v2, %v9423_v2 }
 0x146   :  { %15951 = vst [vmem:[#allocation26_spill] sm:$0xff] %v9523_v7 }
 0x147   :  { %v785_v0 = vadd.f32 %v784_v53, %v783_v12  ;;  %v588_v32 = vadd.f32 %v587_v29, %v586_v33  ;;  %v685_v33 = vmul.f32 %v9391_v63, %v9391_v63  ;;  %v790_v29 = vsel %vm505_vm0, %v684_v56, 0.0 }
 0x149   :  { %v787_v6 = vadd.f32 %v786_v59, %v785_v0  ;;  %v590_v21 = vadd.f32 %v589_v14, %v588_v32  ;;  %v9535_v14 = vpop.f32.mrf.mxu1  ;;  %v792_v59 = vsel %vm505_vm0, %v685_v33, 0.0  ;;  %v599_v33 = vsel %vm505_vm0, %v9405_v24, 0.0 }
 0x14a   :  { %15952 = vst [vmem:[#allocation27_spill] sm:$0xff] %v9535_v14 }
 0x14b   :  { %v592_v12 = vadd.f32 %v591_v15, %v590_v21  ;;  %v789_v53 = vadd.f32 %v788_v34, %v787_v6  ;;  %v595_v34 = vsel %vm505_vm0, %v9423_v2, 0.0  ;;  %v597_v21 = vsel %vm505_vm0, %v9373_v30, 0.0 }
 0x14c   :  { %v688_v15 = vmul.f32 %v9405_v24, %v9405_v24 }
 0x14d   :  { %v594_v0 = vadd.f32 %v593_v42, %v592_v12  ;;  %v791_v32 = vadd.f32 %v790_v29, %v789_v53  ;;  %v794_v42 = vsel %vm505_vm0, %v686_v52, 0.0  ;;  %v9547_v29 = vpop.f32.mrf.mxu1  ;;  %v690_v52 = vmul.f32 %v9475_v54, %v9475_v54 }
 0x14e   :  { %15953 = vst [vmem:[#allocation28_spill] sm:$0xff] %v9547_v29 }
 0x14f   :  { %v793_v6 = vadd.f32 %v792_v59, %v791_v32  ;;  %v596_v56 = vadd.f32 %v595_v34, %v594_v0  ;;  %v689_v0 = vmul.f32 %v9451_v31, %v9451_v31  ;;  %v798_v34 = vsel %vm505_vm0, %v688_v15, 0.0 }
 0x151   :  { %v795_v12 = vadd.f32 %v794_v42, %v793_v6  ;;  %v598_v53 = vadd.f32 %v597_v21, %v596_v56  ;;  %v9559_v21 = vpop.f32.mrf.mxu1  ;;  %v800_v42 = vsel %vm505_vm0, %v689_v0, 0.0  ;;  %v607_v0 = vsel %vm505_vm0, %v9463_v4, 0.0 }
 0x152   :  { %15954 = vst [vmem:[#allocation29_spill] sm:$0xff] %v9559_v21 }
 0x153   :  { %v600_v32 = vadd.f32 %v599_v33, %v598_v53  ;;  %v797_v59 = vadd.f32 %v796_v40, %v795_v12  ;;  %v603_v40 = vsel %vm505_vm0, %v9475_v54, 0.0  ;;  %v605_v53 = vsel %vm505_vm0, %v9437_v26, 0.0 }
 0x154   :  { %v692_v33 = vmul.f32 %v9463_v4, %v9463_v4  ;;  %v609_v26 = vsel %vm505_vm0, %v9499_v1, 0.0 }
 0x155   :  { %v602_v6 = vadd.f32 %v601_v3, %v600_v32  ;;  %v799_v56 = vadd.f32 %v798_v34, %v797_v59  ;;  %v802_v3 = vsel %vm505_vm0, %v690_v52, 0.0  ;;  %v9571_v34 = vpop.f32.mrf.mxu1  ;;  %v694_v52 = vmul.f32 %v9523_v7, %v9523_v7 }
 0x156   :  { %15955 = vst [vmem:[#allocation30_spill] sm:$0xff] %v9571_v34 }
 0x157   :  { %v801_v12 = vadd.f32 %v800_v42, %v799_v56  ;;  %v604_v15 = vadd.f32 %v603_v40, %v602_v6  ;;  %v693_v6 = vmul.f32 %v9499_v1, %v9499_v1  ;;  %v806_v40 = vsel %vm505_vm0, %v692_v33, 0.0 }
 0x158   :  { %v812_v1 = vsel %vm505_vm0, %v695_v38, 0.0  ;;  %v699_v38 = vmul.f32 %v9535_v14, %v9535_v14 }
 0x159   :  { %v803_v32 = vadd.f32 %v802_v3, %v801_v12  ;;  %v606_v59 = vadd.f32 %v605_v53, %v604_v15  ;;  %v9583_v53 = vpop.f32.mrf.mxu1  ;;  %v808_v3 = vsel %vm505_vm0, %v693_v6, 0.0  ;;  %v615_v6 = vsel %vm505_vm0, %v9511_v51, 0.0 }
 0x15b   :  { %v608_v56 = vadd.f32 %v607_v0, %v606_v59  ;;  %v805_v42 = vadd.f32 %v804_v8, %v803_v32  ;;  %v611_v8 = vsel %vm505_vm0, %v9523_v7, 0.0  ;;  %v613_v59 = vsel %vm505_vm0, %v9487_v20, 0.0 }
 0x15c   :  { %v696_v0 = vmul.f32 %v9511_v51, %v9511_v51  ;;  %v617_v20 = vsel %vm505_vm0, %v9547_v29, 0.0 }
 0x15d   :  { %v610_v12 = vadd.f32 %v609_v26, %v608_v56  ;;  %v807_v15 = vadd.f32 %v806_v40, %v805_v42  ;;  %v810_v26 = vsel %vm505_vm0, %v694_v52, 0.0  ;;  %v9595_v40 = vpop.f32.mrf.mxu1  ;;  %v698_v52 = vmul.f32 %v9571_v34, %v9571_v34 }
 0x15e   :  { %15956 = vst [vmem:[#allocation31_spill] sm:$0xff] %v9595_v40 }
 0x15f   :  { %v809_v32 = vadd.f32 %v808_v3, %v807_v15  ;;  %v612_v33 = vadd.f32 %v611_v8, %v610_v12  ;;  %v697_v12 = vmul.f32 %v9547_v29, %v9547_v29  ;;  %v814_v8 = vsel %vm505_vm0, %v696_v0, 0.0 }
 0x160   :  { %v820_v29 = vsel %vm505_vm0, %v699_v38, 0.0 }
 0x161   :  { %v811_v56 = vadd.f32 %v810_v26, %v809_v32  ;;  %v614_v42 = vadd.f32 %v613_v59, %v612_v33  ;;  %v9607_v59 = vpop.f32.mrf.mxu1  ;;  %v816_v26 = vsel %vm505_vm0, %v697_v12, 0.0  ;;  %v623_v12 = vsel %vm505_vm0, %v9559_v21, 0.0 }
 0x162   :  { %15957 = vst [vmem:[#allocation32_spill] sm:$0xff] %v9607_v59 }
 0x163   :  { %v616_v15 = vadd.f32 %v615_v6, %v614_v42  ;;  %v813_v3 = vadd.f32 %v812_v1, %v811_v56  ;;  %v619_v1 = vsel %vm505_vm0, %v9571_v34, 0.0  ;;  %v621_v42 = vsel %vm505_vm0, %v9535_v14, 0.0 }
 0x164   :  { %v700_v6 = vmul.f32 %v9559_v21, %v9559_v21  ;;  %v625_v14 = vsel %vm505_vm0, %v9595_v40, 0.0 }
 0x165   :  { %v618_v32 = vadd.f32 %v617_v20, %v616_v15  ;;  %v815_v33 = vadd.f32 %v814_v8, %v813_v3  ;;  %v818_v20 = vsel %vm505_vm0, %v698_v52, 0.0  ;;  %v491_v8 = vpop.f32.mrf.mxu1 }
 0x166   :  { %v702_v34 = vmul.f32 %v491_v8, %v491_v8 }
 0x167   :  { %v817_v56 = vadd.f32 %v816_v26, %v815_v33  ;;  %v620_v0 = vadd.f32 %v619_v1, %v618_v32  ;;  %v701_v33 = vmul.f32 %v9595_v40, %v9595_v40  ;;  %v822_v1 = vsel %vm505_vm0, %v700_v6, 0.0 }
 0x168   :  { %v704_v6 = vmul.f32 %v9607_v59, %v9607_v59 }
 0x169   :  { %v819_v15 = vadd.f32 %v818_v20, %v817_v56  ;;  %v622_v3 = vadd.f32 %v621_v42, %v620_v0  ;;  %v703_v0 = vmul.f32 %v9583_v53, %v9583_v53  ;;  %v824_v38 = vsel %vm505_vm0, %v701_v33, 0.0 }
 0x16a   :  { %v627_v42 = vsel %vm505_vm0, %v491_v8, 0.0 }
 0x16b   :  { %v624_v32 = vadd.f32 %v623_v12, %v622_v3  ;;  %v821_v26 = vadd.f32 %v820_v29, %v819_v15  ;;  %v629_v29 = vsel %vm505_vm0, %v9583_v53, 0.0  ;;  %v826_v15 = vsel %vm505_vm0, %v702_v34, 0.0 }
 0x16c   :  { %v828_v12 = vsel %vm505_vm0, %v703_v0, 0.0 }
 0x16d   :  { %v626_v52 = vadd.f32 %v625_v14, %v624_v32  ;;  %v823_v56 = vadd.f32 %v822_v1, %v821_v26  ;;  %v631_v32 = vsel %vm505_vm0, %v9607_v59, 0.0  ;;  %v830_v1 = vsel %vm505_vm0, %v704_v6, 0.0 }
 0x16e   :  { %v847_v6 = vlaneseq }
 0x16f   :  { %v825_v20 = vadd.f32 %v824_v38, %v823_v56  ;;  %v628_v21 = vadd.f32 %v627_v42, %v626_v52 }
 0x171   :  { %v630_v3 = vadd.f32 %v629_v29, %v628_v21  ;;  %v827_v14 = vadd.f32 %v826_v15, %v825_v20 }
 0x173   :  { %v632_v33 = vadd.f32 %v631_v32, %v630_v3  ;;  %v829_v26 = vadd.f32 %v828_v12, %v827_v14  ;;  %v9640_v12 = vshrl.u32 %v847_v6, 7  ;;  %v503_v32 = vld [vmem:[%s15617_s3] sm:$0x1]  ;;  %s8911_s3 = smov 32  }
 0x175   :  { %v633_v52 = vrot.slane %v632_v33, 4  ;;  %v831_v56 = vadd.f32 %v830_v1, %v829_v26  ;;  %vm1116_vm1 = vcmp.lt.s32.totalorder %v9640_v12, 1  ;;  %vm1245_vm2 = vcmp.lt.s32.totalorder %v9640_v12, 7 }
 0x177   :  { %v634_v38 = vadd.f32 %v633_v52, %v632_v33  ;;  %v832_v42 = vrot.slane %v831_v56, 4 }
 0x179   :  { %v635_v40 = vrot.slane %v634_v38, 2  ;;  %v833_v51 = vadd.f32 %v832_v42, %v831_v56 }
 0x17b   :  { %v636_v7 = vadd.f32 %v635_v40, %v634_v38  ;;  %v834_v4 = vrot.slane %v833_v51, 2  ;;  %v9646_v40 = vsub.s32 0, %v9640_v12 }
 0x17d   :  { %v637_v34 = vrot.slane %v636_v7, 1  ;;  %v835_v21 = vadd.f32 %v834_v4, %v833_v51  ;;  %15958 = vst [vmem:[#allocation33_spill] sm:$0xff] %v9646_v40 }
 0x17f   :  { %v638_v20 = vadd.f32 %v637_v34, %v636_v7  ;;  %v836_v29 = vrot.slane %v835_v21, 1  ;;  %v504_v7 = vld [vmem:[%s15618_s4] sm:$0x1]  ;;  %s8912_s4 = smov 96  }
 0x181   :  { %v640_v0 = vmul.f32 0.001953125, %v638_v20  ;;  %v837_v15 = vadd.f32 %v836_v29, %v835_v21  ;;  %v15959_v29 = vld [vmem:[#allocation22_spill] sm:$0xff] }
 0x183   :  { %v838_v54 = vmul.f32 0.001953125, %v837_v15  ;;  %v839_v59 = vmul.f32 %v640_v0, %v640_v0 }
 0x185   :  { %v840_v3 = vsub.f32 %v838_v54, %v839_v59 }
 0x187   :  { %v841_v14 = vadd.f32 1e-05, %v840_v3  ;;  %v15962_v3 = vld [vmem:[#allocation24_spill] sm:$0xff] }
 0x189   :  { %8858 = vrsqrt.f32 %v841_v14  ;;  %v15963_v14 = vld [vmem:[#allocation26_spill] sm:$0xff] }
 0x196   :  { %v8859_v4 = vpop.eup %8858 }
 0x197   :  { %v843_v51 = vmul.f32 %v8859_v4, %v503_v32 }
 0x199   :  { %v844_v33 = vmul.f32 %v843_v51, %v640_v0  ;;  %v9652_v54 = vrot.slane %v843_v51, %v9646_v40  ;;  %v15966_v51 = vld [vmem:[#allocation28_spill] sm:$0xff] }
 0x19b   :  { %v845_v59 = vsub.f32 %v504_v7, %v844_v33  ;;  %v913_v26 = vmul.f32 %v9652_v54, %v491_v8  ;;  %v9663_v56 = vmul.f32 %v9652_v54, %v9209_v46  ;;  %v855_v38 = vmul.f32 %v9205_v44, %v9652_v54  ;;  %v15967_v33 = vld [vmem:[#allocation30_spill] sm:$0xff] }
 0x19c   :  { %v862_v42 = vmul.f32 %v9254_v16, %v9652_v54  ;;  %v864_v34 = vmul.f32 %v9652_v54, %v9293_v55  ;;  %v866_v8 = vmul.f32 %v9286_v49, %v9652_v54  ;;  %v868_v21 = vmul.f32 %v9652_v54, %v9325_v25 }
 0x19d   :  { %v9656_v1 = vrot.slane %v845_v59, %v9646_v40  ;;  %v869_v20 = vmul.f32 %v9652_v54, %v9339_v48  ;;  %v870_v46 = vmul.f32 %v9318_v18, %v9652_v54  ;;  %v871_v44 = vmul.f32 %v9334_v36, %v9652_v54 }
 0x19e   :  { %v872_v16 = vmul.f32 %v9652_v54, %v9357_v5  ;;  %v873_v55 = vmul.f32 %v9652_v54, %v9371_v28  ;;  %v874_v49 = vmul.f32 %v9350_v62, %v9652_v54  ;;  %v875_v25 = vmul.f32 %v9366_v19, %v9652_v54 }
 0x19f   :  { %v9659_v52 = vadd.f32 %v9656_v1, %v913_v26  ;;  %v876_v48 = vmul.f32 %v9652_v54, %v9389_v58  ;;  %v877_v18 = vmul.f32 %v9652_v54, %v9403_v22  ;;  %v878_v36 = vmul.f32 %v9382_v45, %v9652_v54  ;;  %v15968_v26 = vld [vmem:[#allocation27_spill] sm:$0xff] }
 0x1a0   :  { %v879_v5 = vmul.f32 %v9398_v13, %v9652_v54  ;;  %v880_v28 = vmul.f32 %v9652_v54, %v9421_v60  ;;  %v881_v62 = vmul.f32 %v9652_v54, %v9435_v37  ;;  %v882_v19 = vmul.f32 %v9414_v39, %v9652_v54 }
 0x1a1   :  { %v883_v58 = vmul.f32 %v9430_v17, %v9652_v54  ;;  %v884_v22 = vmul.f32 %v9652_v54, %v9203_v43  ;;  %v885_v45 = vmul.f32 %v9652_v54, %v9231_v61  ;;  %v886_v13 = vmul.f32 %v9199_v41, %v9652_v54 }
 0x1a2   :  { %v887_v60 = vmul.f32 %v9211_v47, %v9652_v54  ;;  %v888_v37 = vmul.f32 %v9652_v54, %v9263_v23  ;;  %v889_v39 = vmul.f32 %v9652_v54, %v9295_v57  ;;  %v890_v17 = vmul.f32 %v9245_v9, %v9652_v54 }
 0x1a3   :  { %v891_v43 = vmul.f32 %v9277_v35, %v9652_v54  ;;  %v892_v61 = vmul.f32 %v9652_v54, %v9327_v27  ;;  %v893_v41 = vmul.f32 %v9652_v54, %v9359_v11  ;;  %v894_v47 = vmul.f32 %v9309_v10, %v9652_v54 }
 0x1a4   :  { %v895_v23 = vmul.f32 %v9341_v50, %v9652_v54  ;;  %v896_v57 = vmul.f32 %v9652_v54, %v9391_v63  ;;  %v897_v9 = vmul.f32 %v9652_v54, %v9423_v2  ;;  %v898_v35 = vmul.f32 %v9373_v30, %v9652_v54  ;;  %v15960_v63 = vld [vmem:[#allocation20_spill] sm:$0xff]  ;;  %v15961_v2 = vld [vmem:[#allocation21_spill] sm:$0xff] }
 0x1a5   :  { %v899_v27 = vmul.f32 %v9405_v24, %v9652_v54  ;;  %v900_v11 = vmul.f32 %v9652_v54, %v9451_v31  ;;  %v914_v10 = vmul.f32 %v9583_v53, %v9652_v54  ;;  %v901_v50 = vmul.f32 %v9652_v54, %v15959_v29  ;;  %v15964_v31 = vld [vmem:[#allocation23_spill] sm:$0xff]  ;;  %v15965_v53 = vld [vmem:[#allocation25_spill] sm:$0xff] }
 0x1a6   :  { %v902_v0 = vmul.f32 %v15960_v63, %v9652_v54  ;;  %v903_v15 = vmul.f32 %v15961_v2, %v9652_v54  ;;  %v904_v30 = vmul.f32 %v9652_v54, %v15962_v3  ;;  %v905_v24 = vmul.f32 %v9652_v54, %v15963_v14  ;;  %v15969_v2 = vld [vmem:[#allocation29_spill] sm:$0xff]  ;;  %v15970_v14 = vld [vmem:[#allocation31_spill] sm:$0xff] }
 0x1a7   :  { %v906_v6 = vmul.f32 %v15964_v31, %v9652_v54  ;;  %v907_v32 = vmul.f32 %v15965_v53, %v9652_v54  ;;  %v984_v4 = vadd.f32 %v9656_v1, %v914_v10  ;;  %v908_v7 = vmul.f32 %v9652_v54, %v15966_v51 }
 0x1a8   :  { %v909_v59 = vmul.f32 %v9652_v54, %v15967_v33  ;;  %v910_v29 = vmul.f32 %v15968_v26, %v9652_v54  ;;  %v9763_v63 = vadd.f32 %v9656_v1, %v862_v42  ;;  %v911_v3 = vmul.f32 %v15969_v2, %v9652_v54 }
 0x1a9   :  { %v912_v31 = vmul.f32 %v9652_v54, %v15970_v14  ;;  %v9769_v53 = vmax.f32 %v984_v4, 0.0  ;;  %v9772_v10 = vadd.f32 %v9656_v1, %v864_v34  ;;  %v925_v51 = vadd.f32 %v9656_v1, %v855_v38  ;;  %v15996_v14 = vld [vmem:[#allocation14_spill] sm:$0xff] }
 0x1aa   :  { %v9776_v33 = vadd.f32 %v9656_v1, %v866_v8  ;;  %v9779_v26 = vadd.f32 %v9656_v1, %v868_v21  ;;  %v9782_v42 = vadd.f32 %v9656_v1, %v869_v20  ;;  %v9787_v4 = vadd.f32 %v9656_v1, %v870_v46 }
 0x1ab   :  { %15971 = vst [vmem:[#allocation22_spill] sm:$0xff] %v9769_v53  ;;  %1374 = vrot.lane.b32.xlu0 %v9769_v53, %s8911_s3  ;;  %v9790_v34 = vadd.f32 %v9656_v1, %v871_v44  ;;  %v9793_v38 = vadd.f32 %v9656_v1, %v872_v16  ;;  %v9796_v8 = vadd.f32 %v9656_v1, %v873_v55 }
 0x1ac   :  { %v9799_v21 = vadd.f32 %v9656_v1, %v874_v49  ;;  %v9802_v20 = vadd.f32 %v9656_v1, %v875_v25  ;;  %v9805_v2 = vadd.f32 %v9656_v1, %v876_v48  ;;  %v9808_v46 = vadd.f32 %v9656_v1, %v877_v18 }
 0x1ad   :  { %v9811_v44 = vadd.f32 %v9656_v1, %v878_v36  ;;  %v9814_v16 = vadd.f32 %v9656_v1, %v879_v5  ;;  %v9817_v55 = vadd.f32 %v9656_v1, %v880_v28  ;;  %v9820_v49 = vadd.f32 %v9656_v1, %v881_v62 }
 0x1ae   :  { %v9823_v25 = vadd.f32 %v9656_v1, %v882_v19  ;;  %v9826_v48 = vadd.f32 %v9656_v1, %v883_v58  ;;  %v9829_v18 = vadd.f32 %v9656_v1, %v884_v22  ;;  %v9832_v36 = vadd.f32 %v9656_v1, %v885_v45 }
 0x1af   :  { %v9835_v5 = vadd.f32 %v9656_v1, %v886_v13  ;;  %v9838_v28 = vadd.f32 %v9656_v1, %v887_v60  ;;  %v9841_v62 = vadd.f32 %v9656_v1, %v888_v37  ;;  %v9844_v19 = vadd.f32 %v9656_v1, %v889_v39 }
 0x1b0   :  { %v9847_v58 = vadd.f32 %v9656_v1, %v890_v17  ;;  %v9850_v22 = vadd.f32 %v9656_v1, %v891_v43  ;;  %v9853_v45 = vadd.f32 %v9656_v1, %v892_v61  ;;  %v9856_v13 = vadd.f32 %v9656_v1, %v893_v41 }
 0x1b1   :  { %15972 = vst [vmem:[#allocation20_spill] sm:$0xff] %v9841_v62  ;;  %15973 = vst [vmem:[#allocation21_spill] sm:$0xff] %v9844_v19  ;;  %v9859_v60 = vadd.f32 %v9656_v1, %v894_v47  ;;  %v9862_v37 = vadd.f32 %v9656_v1, %v895_v23  ;;  %v9865_v39 = vadd.f32 %v9656_v1, %v896_v57  ;;  %v8717_v19 = vld [vmem:[%s15619_s5 + $0x90] sm:$0xff]  }
 0x1b2   :  { %15974 = vst [vmem:[#allocation24_spill] sm:$0xff] %v9847_v58  ;;  %15975 = vst [vmem:[#allocation26_spill] sm:$0xff] %v9850_v22  ;;  %v9868_v17 = vadd.f32 %v9656_v1, %v897_v9  ;;  %v9871_v43 = vadd.f32 %v9656_v1, %v898_v35  ;;  %v9874_v61 = vadd.f32 %v9656_v1, %v899_v27  ;;  %v8718_v22 = vld [vmem:[%s15619_s5 + $0x78] sm:$0xff]  }
 0x1b3   :  { %15976 = vst [vmem:[#allocation23_spill] sm:$0xff] %v9853_v45  ;;  %15977 = vst [vmem:[#allocation25_spill] sm:$0xff] %v9856_v13  ;;  %v9877_v41 = vadd.f32 %v9656_v1, %v900_v11  ;;  %v9880_v47 = vadd.f32 %v9656_v1, %v901_v50  ;;  %v9883_v23 = vadd.f32 %v9656_v1, %v902_v0 }
 0x1b4   :  { %15978 = vst [vmem:[#allocation28_spill] sm:$0xff] %v9859_v60  ;;  %15979 = vst [vmem:[#allocation30_spill] sm:$0xff] %v9862_v37  ;;  %v9886_v57 = vadd.f32 %v9656_v1, %v903_v15  ;;  %v9889_v9 = vadd.f32 %v9656_v1, %v904_v30  ;;  %v9892_v35 = vadd.f32 %v9656_v1, %v905_v24  ;;  %v8713_v60 = vld [vmem:[%s15619_s5 + $0xa0] sm:$0xff]  }
 0x1b5   :  { %15980 = vst [vmem:[#allocation27_spill] sm:$0xff] %v9865_v39  ;;  %15981 = vst [vmem:[#allocation29_spill] sm:$0xff] %v9868_v17  ;;  %v9895_v27 = vadd.f32 %v9656_v1, %v906_v6  ;;  %v9898_v11 = vadd.f32 %v9656_v1, %v907_v32  ;;  %v9901_v50 = vadd.f32 %v9656_v1, %v908_v7  ;;  %v9917_v32 = vmax.f32 %v925_v51, 0.0  ;;  %v15998_v51 = vld [vmem:[#allocation13_spill] sm:$0xff] }
 0x1b6   :  { %15982 = vst [vmem:[#allocation31_spill] sm:$0xff] %v9871_v43  ;;  %15983 = vst [vmem:[#allocation34_spill] sm:$0xff] %v9874_v61  ;;  %v9904_v0 = vadd.f32 %v9656_v1, %v909_v59  ;;  %v9907_v15 = vadd.f32 %v9656_v1, %v910_v29  ;;  %v9910_v30 = vadd.f32 %v9656_v1, %v911_v3  ;;  %v8711_v61 = vld [vmem:[%s15619_s5 + $0xa8] sm:$0xff]   ;;  %v8712_v43 = vld [vmem:[%s15619_s5 + $0x10] sm:$0xff]   ;;  %v10269_v39 = vmax.f32 %v9838_v28, 0.0 }
 0x1b7   :  { %15984 = vst [vmem:[#allocation35_spill] sm:$0xff] %v9877_v41  ;;  %15985 = vst [vmem:[#allocation36_spill] sm:$0xff] %v9880_v47  ;;  %v9913_v24 = vadd.f32 %v9656_v1, %v912_v31  ;;  %v923_v6 = vadd.f32 %v9656_v1, %v9663_v56  ;;  %v857_v7 = vmul.f32 %v9652_v54, %v15996_v14  ;;  %3106 = vrot.lane.b32.xlu1 %v9917_v32, %s8912_s4  ;;  %v15997_v56 = vld [vmem:[#allocation32_spill] sm:$0xff]  ;;  %v16030_v47 = vmov 0  }
 0x1b8   :  { %15986 = vst [vmem:[#allocation37_spill] sm:$0xff] %v9883_v23  ;;  %15987 = vst [vmem:[#allocation38_spill] sm:$0xff] %v9886_v57  ;;  %v915_v31 = vmul.f32 %v15997_v56, %v9652_v54  ;;  %v859_v40 = vmul.f32 %v15998_v51, %v9652_v54  ;;  %v15652_v56 = vrot.slane %v9769_v53, 7 }
 0x1b9   :  { %15988 = vst [vmem:[#allocation39_spill] sm:$0xff] %v9889_v9  ;;  %15989 = vst [vmem:[#allocation40_spill] sm:$0xff] %v9892_v35  ;;  %v927_v59 = vadd.f32 %v9656_v1, %v857_v7  ;;  %v9924_v29 = vmax.f32 %v923_v6, 0.0  ;;  %v15999_v6 = vld [vmem:[#allocation9_spill] sm:$0xff]  ;;  %v16007_v35 = vld [vmem:[#allocation11_spill] sm:$0xff] }
 0x1ba   :  { %15990 = vst [vmem:[#allocation41_spill] sm:$0xff] %v9895_v27  ;;  %15991 = vst [vmem:[#allocation42_spill] sm:$0xff] %v9898_v11  ;;  %v985_v14 = vadd.f32 %v9656_v1, %v915_v31  ;;  %v929_v7 = vadd.f32 %v9656_v1, %v859_v40  ;;  %v16004_v11 = vld [vmem:[#allocation12_spill] sm:$0xff]  ;;  %v16011_v9 = vld [vmem:[#allocation15_spill] sm:$0xff] }
 0x1bb   :  { %15992 = vst [vmem:[#allocation43_spill] sm:$0xff] %v9901_v50  ;;  %15993 = vst [vmem:[#allocation44_spill] sm:$0xff] %v9904_v0  ;;  %1380 = vrot.lane.b32.xlu1 %v9924_v29, %s8911_s3  ;;  %v9928_v3 = vmax.f32 %v927_v59, 0.0  ;;  %v16001_v0 = vld [vmem:[#allocation10_spill] sm:$0xff]  ;;  %v860_v57 = vmul.f32 %v9652_v54, %v16011_v9  ;;  %v1182_v37 = vrot.slane %v9924_v29, 1 }
 0x1bc   :  { %15994 = vst [vmem:[#allocation45_spill] sm:$0xff] %v9907_v15  ;;  %15995 = vst [vmem:[#allocation46_spill] sm:$0xff] %v9910_v30  ;;  %v854_v30 = vmul.f32 %v15999_v6, %v9652_v54  ;;  %v9943_v15 = vmax.f32 %v985_v14, 0.0  ;;  %v9946_v51 = vmax.f32 %v929_v7, 0.0  ;;  %v852_v31 = vmul.f32 %v9652_v54, %v16001_v0  ;;  %v16002_v6 = vld [vmem:[#allocation17_spill] sm:$0xff] }
 0x1bd   :  { %v861_v50 = vmul.f32 %v9652_v54, %v16002_v6  ;;  %v856_v6 = vmul.f32 %v9652_v54, %v16004_v11  ;;  %16036 = vst [vmem:[#allocation62_spill] sm:$0xff] %v10269_v39 }
 0x1be   :  { %v924_v59 = vadd.f32 %v9656_v1, %v854_v30  ;;  %16000 = vst [vmem:[#allocation14_spill] sm:$0xff] %v9943_v15  ;;  %1376 = vrot.lane.b32.xlu0 %v9943_v15, %s8911_s3  ;;  %v15653_v40 = vrot.slane %v9943_v15, 7  ;;  %v922_v30 = vadd.f32 %v9656_v1, %v852_v31 }
 0x1bf   :  { %3110 = vrot.lane.b32.xlu1 %v9928_v3, %s8912_s4  ;;  %v931_v7 = vadd.f32 %v9656_v1, %v861_v50  ;;  %v16006_v50 = vld [vmem:[#allocation16_spill] sm:$0xff] }
 0x1c0   :  { %v9959_v14 = vmax.f32 %v924_v59, 0.0  ;;  %v9967_v0 = vsel %vm1116_vm1, %v15652_v56, %v15653_v40  ;;  %v926_v59 = vadd.f32 %v9656_v1, %v856_v6  ;;  %v9977_v31 = vmax.f32 %v922_v30, 0.0 }
 0x1c1   :  { %16003 = vst [vmem:[#allocation32_spill] sm:$0xff] %v9967_v0  ;;  %v9979_v27 = vmax.f32 %v931_v7, 0.0  ;;  %v863_v56 = vmul.f32 %v16006_v50, %v9652_v54  ;;  %v858_v6 = vmul.f32 %v16007_v35, %v9652_v54 }
 0x1c2   :  { %3104 = vrot.lane.b32.xlu0 %v9959_v14, %s8912_s4  ;;  %v9987_v11 = vmax.f32 %v926_v59, 0.0  ;;  %v16009_v59 = vld [vmem:[#allocation19_spill] sm:$0xff] }
 0x1c3   :  { %1384 = vrot.lane.b32.xlu1 %v9917_v32, %s8911_s3  ;;  %16005 = vst [vmem:[#allocation13_spill] sm:$0xff] %v9979_v27  ;;  %v933_v40 = vadd.f32 %v9656_v1, %v863_v56  ;;  %v928_v30 = vadd.f32 %v9656_v1, %v858_v6  ;;  %v865_v50 = vmul.f32 %v9652_v54, %v16009_v59 }
 0x1c5   :  { %v9997_v7 = vmax.f32 %v933_v40, 0.0  ;;  %v10005_v35 = vmax.f32 %v928_v30, 0.0  ;;  %v935_v56 = vadd.f32 %v9656_v1, %v865_v50  ;;  %v930_v40 = vadd.f32 %v9656_v1, %v860_v57  ;;  %v16013_v30 = vld [vmem:[#allocation18_spill] sm:$0xff] }
 0x1c6   :  { %1378 = vrot.lane.b32.xlu0 %v9977_v31, %s8911_s3  ;;  %v867_v59 = vmul.f32 %v16013_v30, %v9652_v54  ;;  %v10037_v54 = vmax.f32 %v9763_v63, 0.0  ;;  %v10058_v63 = vmax.f32 %v9790_v34, 0.0  ;;  %v10075_v34 = vmax.f32 %v9796_v8, 0.0 }
 0x1c7   :  { %3114 = vrot.lane.b32.xlu1 %v9946_v51, %s8912_s4  ;;  %16008 = vst [vmem:[#allocation9_spill] sm:$0xff] %v9997_v7  ;;  %16010 = vst [vmem:[#allocation10_spill] sm:$0xff] %v10005_v35  ;;  %v10015_v6 = vmax.f32 %v935_v56, 0.0  ;;  %v10023_v9 = vmax.f32 %v930_v40, 0.0  ;;  %v10051_v56 = vmax.f32 %v9772_v10, 0.0  ;;  %v10072_v10 = vmax.f32 %v9659_v52, 0.0 }
 0x1c8   :  { %v937_v50 = vadd.f32 %v9656_v1, %v867_v59  ;;  %16015 = vst [vmem:[#allocation16_spill] sm:$0xff] %v10037_v54  ;;  %v10044_v1 = vmax.f32 %v9782_v42, 0.0  ;;  %v10065_v42 = vmax.f32 %v9776_v33, 0.0  ;;  %v10078_v40 = vmax.f32 %v9913_v24, 0.0 }
 0x1c9   :  { %16012 = vst [vmem:[#allocation17_spill] sm:$0xff] %v10015_v6  ;;  %16014 = vst [vmem:[#allocation12_spill] sm:$0xff] %v10023_v9  ;;  %v10085_v33 = vmax.f32 %v9779_v26, 0.0  ;;  %v15656_v30 = vrot.slane %v10072_v10, 7  ;;  %v15657_v52 = vrot.slane %v9769_v53, 1  ;;  %v15655_v24 = vrot.slane %v10072_v10, 1 }
 0x1ca   :  { %3108 = vrot.lane.b32.xlu0 %v9987_v11, %s8912_s4  ;;  %v10030_v57 = vmax.f32 %v937_v50, 0.0  ;;  %16016 = vst [vmem:[#allocation11_spill] sm:$0xff] %v10051_v56  ;;  %16017 = vst [vmem:[#allocation19_spill] sm:$0xff] %v10072_v10  ;;  %v15654_v8 = vrot.slane %v10078_v40, 7  ;;  %v10105_v59 = vmax.f32 %v9802_v20, 0.0  ;;  %v10127_v20 = vmax.f32 %v9808_v46, 0.0 }
 0x1cb   :  { %1388 = vrot.lane.b32.xlu1 %v9928_v3, %s8911_s3  ;;  %16018 = vst [vmem:[#allocation15_spill] sm:$0xff] %v10078_v40  ;;  %v10113_v50 = vsel %vm1245_vm2, %v15655_v24, %v15657_v52  ;;  %v10134_v24 = vmax.f32 %v9793_v38, 0.0  ;;  %v10148_v46 = vmax.f32 %v9799_v21, 0.0  ;;  %v10155_v38 = vmax.f32 %v9820_v49, 0.0  ;;  %v8704_v21 = vld [vmem:[%s15619_s5 + $0x38] sm:$0xff]   ;;  %v8708_v40 = vld [vmem:[%s15619_s5 + $0x20] sm:$0xff]  }
 0x1cc   :  { %v10102_v26 = vsel %vm1116_vm1, %v15654_v8, %v15656_v30  ;;  %16020 = vst [vmem:[#allocation47_spill] sm:$0xff] %v10113_v50  ;;  %v10120_v8 = vmax.f32 %v9787_v4, 0.0  ;;  %16021 = vst [vmem:[#allocation48_spill] sm:$0xff] %v10127_v20  ;;  %v10141_v4 = vmax.f32 %v9814_v16, 0.0  ;;  %v10162_v16 = vmax.f32 %v9805_v2, 0.0 }
 0x1cd   :  { %16019 = vst [vmem:[#allocation18_spill] sm:$0xff] %v10102_v26  ;;  %16023 = vst [vmem:[#allocation50_spill] sm:$0xff] %v10155_v38  ;;  %v10172_v49 = vmax.f32 %v9826_v48, 0.0  ;;  %v15662_v30 = vmov 0   ;;  %v10181_v2 = vmax.f32 %v9811_v44, 0.0  ;;  %v8705_v48 = vld [vmem:[%s15619_s5 + $0x30] sm:$0xff]  }
 0x1ce   :  { %1382 = vrot.lane.b32.xlu0 %v9959_v14, %s8911_s3  ;;  %16022 = vst [vmem:[#allocation49_spill] sm:$0xff] %v10141_v4  ;;  %5600 = vmatprep.subr.bf16.mxu1 %v15662_v30  ;;  %v8706_v44 = vld [vmem:[%s15619_s5 + $0x28] sm:$0xff]  }
 0x1cf   :  { %3118 = vrot.lane.b32.xlu1 %v9979_v27, %s8912_s4  ;;  %16024 = vst [vmem:[#allocation51_spill] sm:$0xff] %v10172_v49  ;;  %5601 = vmatpush1.bf16.msra.mxu1 %v8704_v21  ;;  %16025 = vst [vmem:[#allocation52_spill] sm:$0xff] %v10181_v2  ;;  %v10197_v21 = vmax.f32 %v9832_v36, 0.0  ;;  %v8707_v36 = vld [vmem:[%s15619_s5 + $0xb8] sm:$0xff]  }
 0x1d0   :  { %5602 = vmatprep.subr.bf16.mxu1 %v15662_v30  ;;  %8522 = vmatprep.subr.bf16.mxu0 %v8707_v36 }
 0x1d1   :  { %16026 = vst [vmem:[#allocation53_spill] sm:$0xff] %v10197_v21  ;;  %8523 = vmatpush3.bf16.msra.mxu0 %v8707_v36 }
 0x1d2   :  { %3112 = vrot.lane.b32.xlu0 %v10005_v35, %s8912_s4 }
 0x1d3   :  { %1392 = vrot.lane.b32.xlu1 %v9946_v51, %s8911_s3  ;;  %5603 = vmatpush1.bf16.msra.mxu1 %v8705_v48  ;;  %v10206_v48 = vmax.f32 %v9817_v55, 0.0  ;;  %v8709_v55 = vld [vmem:[%s15619_s5 + $0xb0] sm:$0xff]  }
 0x1d4   :  { %5604 = vmatprep.subr.bf16.mxu1 %v15662_v30  ;;  %8524 = vmatprep.subr.bf16.mxu0 %v8709_v55 }
 0x1d5   :  { %16027 = vst [vmem:[#allocation54_spill] sm:$0xff] %v10206_v48  ;;  %8525 = vmatpush3.bf16.msra.mxu0 %v8709_v55 }
 0x1d6   :  { %1386 = vrot.lane.b32.xlu0 %v9987_v11, %s8911_s3  ;;  %8526 = vmatprep.subr.bf16.mxu0 %v8711_v61 }
 0x1d7   :  { %3122 = vrot.lane.b32.xlu1 %v9997_v7, %s8912_s4  ;;  %5605 = vmatpush1.bf16.msra.mxu1 %v8706_v44  ;;  %v8710_v44 = vld [vmem:[%s15619_s5 + $0x18] sm:$0xff]  }
 0x1d8   :  { %5606 = vmatprep.subr.bf16.mxu1 %v15662_v30 }
 0x1d9   :  { %8527 = vmatpush3.bf16.msra.mxu0 %v8711_v61  ;;  %v1181_v61 = vrot.slane %v9977_v31, 1 }
 0x1da   :  { %3116 = vrot.lane.b32.xlu0 %v10023_v9, %s8912_s4  ;;  %8528 = vmatprep.subr.bf16.mxu0 %v8713_v60 }
 0x1db   :  { %1396 = vrot.lane.b32.xlu1 %v9979_v27, %s8911_s3  ;;  %5607 = vmatpush1.bf16.msra.mxu1 %v8708_v40  ;;  %v10237_v40 = vmax.f32 %v9823_v25, 0.0  ;;  %v10294_v45 = vsel %vm1245_vm2, %v1181_v61, %v1182_v37 }
 0x1dc   :  { %5608 = vmatprep.subr.bf16.mxu1 %v16030_v47  ;;  %16040 = vst [vmem:[#allocation66_spill] sm:$0xff] %v10294_v45 }
 0x1dd   :  { %16031 = vst [vmem:[#allocation57_spill] sm:$0xff] %v10237_v40  ;;  %8529 = vmatpush3.bf16.msra.mxu0 %v8713_v60  ;;  %v8716_v60 = vld [vmem:[%s15619_s5] sm:$0xff]  }
 0x1de   :  { %1390 = vrot.lane.b32.xlu0 %v10005_v35, %s8911_s3 }
 0x1df   :  { %3126 = vrot.lane.b32.xlu1 %v10015_v6, %s8912_s4  ;;  %5609 = vmatpush1.bf16.msra.mxu1 %v8710_v44  ;;  %v10264_v44 = vmax.f32 %v9829_v18, 0.0  ;;  %v8714_v18 = vld [vmem:[%s15619_s5 + $0x8] sm:$0xff]  }
 0x1e0   :  { %5610 = vmatprep.subr.bf16.mxu1 %v16030_v47 }
 0x1e1   :  { %16035 = vst [vmem:[#allocation61_spill] sm:$0xff] %v10264_v44 }
 0x1e2   :  { %3120 = vrot.lane.b32.xlu0 %v10037_v54, %s8912_s4 }
 0x1e3   :  { %1400 = vrot.lane.b32.xlu1 %v9997_v7, %s8911_s3  ;;  %5611 = vmatpush1.bf16.msra.mxu1 %v8712_v43 }
 0x1e4   :  { %5612 = vmatprep.subr.bf16.mxu1 %v16030_v47 }
 0x1e6   :  { %1394 = vrot.lane.b32.xlu0 %v10023_v9, %s8911_s3 }
 0x1e7   :  { %3130 = vrot.lane.b32.xlu1 %v10030_v57, %s8912_s4  ;;  %5613 = vmatpush1.bf16.msra.mxu1 %v8714_v18  ;;  %v8715_v18 = vld [vmem:[%s15619_s5 + $0x98] sm:$0xff]  }
 0x1e8   :  { %5614 = vmatprep.subr.bf16.mxu1 %v16030_v47  ;;  %8530 = vmatprep.subr.bf16.mxu0 %v8715_v18 }
 0x1e9   :  { %8531 = vmatpush3.bf16.msra.mxu0 %v8715_v18  ;;  %v1052_v18 = vrot.slane %v9959_v14, 7 }
 0x1ea   :  { %3124 = vrot.lane.b32.xlu0 %v10051_v56, %s8912_s4  ;;  %8532 = vmatprep.subr.bf16.mxu0 %v8717_v19 }
 0x1eb   :  { %1404 = vrot.lane.b32.xlu1 %v10015_v6, %s8911_s3  ;;  %5615 = vmatpush1.bf16.msra.mxu1 %v8716_v60 }
 0x1ec   :  { %5616 = vmatprep.subr.bf16.mxu1 %v16030_v47 }
 0x1ed   :  { %8533 = vmatpush3.bf16.msra.mxu0 %v8717_v19  ;;  %v1051_v19 = vrot.slane %v9924_v29, 7 }
 0x1ee   :  { %1398 = vrot.lane.b32.xlu0 %v10037_v54, %s8911_s3 }
 0x1ef   :  { %3134 = vrot.lane.b32.xlu1 %v10044_v1, %s8912_s4  ;;  %5617 = vmatpush2.bf16.msra.mxu1 %v8718_v22 }
 0x1f0   :  { %5618 = vmatprep.subr.bf16.mxu1 %v16030_v47 }
 0x1f2   :  { %3128 = vrot.lane.b32.xlu0 %v10065_v42, %s8912_s4 }
 0x1f3   :  { %1408 = vrot.lane.b32.xlu1 %v10030_v57, %s8911_s3 }
 0x1f6   :  { %1402 = vrot.lane.b32.xlu0 %v10051_v56, %s8911_s3 }
 0x1f7   :  { %3138 = vrot.lane.b32.xlu1 %v10058_v63, %s8912_s4 }
 0x1fa   :  { %3132 = vrot.lane.b32.xlu0 %v10085_v33, %s8912_s4 }
 0x1fb   :  { %1412 = vrot.lane.b32.xlu1 %v10044_v1, %s8911_s3 }
 0x1fe   :  { %1406 = vrot.lane.b32.xlu0 %v10065_v42, %s8911_s3 }
 0x1ff   :  { %3142 = vrot.lane.b32.xlu1 %v10075_v34, %s8912_s4 }
 0x202   :  { %3136 = vrot.lane.b32.xlu0 %v10120_v8, %s8912_s4 }
 0x203   :  { %1416 = vrot.lane.b32.xlu1 %v10058_v63, %s8911_s3 }
 0x206   :  { %1410 = vrot.lane.b32.xlu0 %v10085_v33, %s8911_s3 }
 0x207   :  { %3146 = vrot.lane.b32.xlu1 %v10105_v59, %s8912_s4 }
 0x20a   :  { %3140 = vrot.lane.b32.xlu0 %v10134_v24, %s8912_s4 }
 0x20b   :  { %1420 = vrot.lane.b32.xlu1 %v10075_v34, %s8911_s3 }
 0x20e   :  { %1414 = vrot.lane.b32.xlu0 %v10120_v8, %s8911_s3 }
 0x20f   :  { %3150 = vrot.lane.b32.xlu1 %v10127_v20, %s8912_s4 }
 0x212   :  { %3144 = vrot.lane.b32.xlu0 %v10148_v46, %s8912_s4 }
 0x213   :  { %1424 = vrot.lane.b32.xlu1 %v10105_v59, %s8911_s3 }
 0x216   :  { %1418 = vrot.lane.b32.xlu0 %v10134_v24, %s8911_s3 }
 0x217   :  { %3154 = vrot.lane.b32.xlu1 %v10141_v4, %s8912_s4 }
 0x21a   :  { %3148 = vrot.lane.b32.xlu0 %v10162_v16, %s8912_s4 }
 0x21b   :  { %1428 = vrot.lane.b32.xlu1 %v10127_v20, %s8911_s3 }
 0x21d   :  { %v10219_v23 = vpop.permute.xlu0 %1374 }
 0x21e   :  { %1422 = vrot.lane.b32.xlu0 %v10148_v46, %s8911_s3  ;;  %16029 = vst [vmem:[#allocation56_spill] sm:$0xff] %v10219_v23 }
 0x21f   :  { %3158 = vrot.lane.b32.xlu1 %v10155_v38, %s8912_s4 }
 0x222   :  { %3152 = vrot.lane.b32.xlu0 %v10181_v2, %s8912_s4 }
 0x223   :  { %1432 = vrot.lane.b32.xlu1 %v10141_v4, %s8911_s3 }
 0x226   :  { %1426 = vrot.lane.b32.xlu0 %v10162_v16, %s8911_s3 }
 0x227   :  { %3162 = vrot.lane.b32.xlu1 %v10172_v49, %s8912_s4 }
 0x229   :  { %v10183_v52 = vpop.permute.xlu1 %3106 }
 0x22a   :  { %3156 = vrot.lane.b32.xlu0 %v10206_v48, %s8912_s4 }
 0x22b   :  { %1436 = vrot.lane.b32.xlu1 %v10155_v38, %s8911_s3 }
 0x22d   :  { %v10199_v50 = vpop.permute.xlu1 %1380 }
 0x22e   :  { %1430 = vrot.lane.b32.xlu0 %v10181_v2, %s8911_s3 }
 0x22f   :  { %3166 = vrot.lane.b32.xlu1 %v10197_v21, %s8912_s4 }
 0x230   :  { %v10239_v36 = vpop.permute.xlu0 %1376 }
 0x231   :  { %v10209_v26 = vpop.permute.xlu1 %3110  ;;  %16032 = vst [vmem:[#allocation58_spill] sm:$0xff] %v10239_v36 }
 0x232   :  { %16028 = vst [vmem:[#allocation55_spill] sm:$0xff] %v10209_v26  ;;  %3160 = vrot.lane.b32.xlu0 %v10237_v40, %s8912_s4 }
 0x233   :  { %3938 = vrot.lane.b32.xlu1 %v9924_v29, %s8914_s2 }
 0x234   :  { %v10254_v25 = vpop.permute.xlu0 %3104 }
 0x235   :  { %v10229_v30 = vpop.permute.xlu1 %1384 }
 0x236   :  { %1434 = vrot.lane.b32.xlu0 %v10206_v48, %s8911_s3  ;;  %v15685_v48 = vrot.slane %v9917_v32, 7 }
 0x237   :  { %3230 = vrot.lane.b32.xlu1 %v9924_v29, %s8912_s4 }
 0x238   :  { %v10266_v17 = vpop.permute.xlu0 %1378 }
 0x239   :  { %v10241_v41 = vpop.permute.xlu1 %3114 }
 0x23a   :  { %16033 = vst [vmem:[#allocation59_spill] sm:$0xff] %v10241_v41  ;;  %3164 = vrot.lane.b32.xlu0 %v10264_v44, %s8912_s4  ;;  %v1244_v44 = vrot.slane %v9943_v15, 1 }
 0x23b   :  { %3942 = vrot.lane.b32.xlu1 %v9917_v32, %s8914_s2 }
 0x23c   :  { %v10285_v28 = vpop.permute.xlu0 %3108 }
 0x23d   :  { %v10256_v55 = vpop.permute.xlu1 %1388  ;;  %16038 = vst [vmem:[#allocation64_spill] sm:$0xff] %v10285_v28 }
 0x23e   :  { %16034 = vst [vmem:[#allocation60_spill] sm:$0xff] %v10256_v55  ;;  %3936 = vrot.lane.b32.xlu0 %v9977_v31, %s8914_s2 }
 0x23f   :  { %1440 = vrot.lane.b32.xlu1 %v10172_v49, %s8911_s3  ;;  %v8719_v49 = vld [vmem:[%s15619_s5 + $0x88] sm:$0xff]  }
 0x240   :  { %v10305_v58 = vpop.permute.xlu0 %1382  ;;  %8534 = vmatprep.subr.bf16.mxu0 %v8719_v49 }
 0x241   :  { %v10271_v43 = vpop.permute.xlu1 %3118  ;;  %8535 = vmatpush3.bf16.msra.mxu0 %v8719_v49 }
 0x242   :  { %16037 = vst [vmem:[#allocation63_spill] sm:$0xff] %v10271_v43  ;;  %3228 = vrot.lane.b32.xlu0 %v9977_v31, %s8912_s4 }
 0x243   :  { %3170 = vrot.lane.b32.xlu1 %v10269_v39, %s8912_s4  ;;  %v16042_v39 = vrot.slane %v9959_v14, 1 }
 0x244   :  { %v10327_v60 = vpop.permute.xlu0 %3112 }
 0x245   :  { %v10287_v13 = vpop.permute.xlu1 %1392  ;;  %v10321_v21 = vsel %vm1245_vm2, %v1182_v37, %v16042_v39  ;;  %16044 = vst [vmem:[#allocation69_spill] sm:$0xff] %v10327_v60  ;;  %v8720_v37 = vld [vmem:[%s15619_s5 + $0x70] sm:$0xff]   ;;  %v10341_v39 = vsel %vm1245_vm2, %v1244_v44, %v1181_v61  ;;  %v8723_v61 = vld [vmem:[%s15619_s5 + $0x68] sm:$0xff]  }
 0x246   :  { %16039 = vst [vmem:[#allocation65_spill] sm:$0xff] %v10287_v13  ;;  %16043 = vst [vmem:[#allocation68_spill] sm:$0xff] %v10321_v21  ;;  %3940 = vrot.lane.b32.xlu0 %v9959_v14, %s8914_s2  ;;  %5619 = vmatpush2.bf16.msra.mxu1 %v8720_v37  ;;  %v1050_v13 = vrot.slane %v9977_v31, 7  ;;  %v10372_v37 = vmax.f32 %v9835_v5, 0.0  ;;  %v8725_v5 = vld [vmem:[%s15619_s5 + $0x60] sm:$0xff]  }
 0x247   :  { %2720 = vrot.lane.b32.xlu1 %v10294_v45, %s8911_s3  ;;  %16046 = vst [vmem:[#allocation71_spill] sm:$0xff] %v10341_v39  ;;  %5620 = vmatprep.subr.bf16.mxu1 %v16030_v47 }
 0x248   :  { %v10348_v22 = vpop.permute.xlu0 %1386  ;;  %16049 = vst [vmem:[#allocation74_spill] sm:$0xff] %v10372_v37  ;;  %v10382_v49 = vsel %vm1116_vm1, %v1050_v13, %v1051_v19 }
 0x249   :  { %v10310_v62 = vpop.permute.xlu1 %3122  ;;  %16047 = vst [vmem:[#allocation72_spill] sm:$0xff] %v10348_v22  ;;  %16052 = vst [vmem:[#allocation77_spill] sm:$0xff] %v10382_v49 }
 0x24a   :  { %16041 = vst [vmem:[#allocation67_spill] sm:$0xff] %v10310_v62  ;;  %1438 = vrot.lane.b32.xlu0 %v10237_v40, %s8911_s3  ;;  %5621 = vmatpush2.bf16.msra.mxu1 %v8723_v61  ;;  %v15693_v62 = vrot.slane %v9987_v11, 1 }
 0x24b   :  { %2722 = vrot.lane.b32.xlu1 %v10321_v21, %s8911_s3  ;;  %5622 = vmatprep.subr.bf16.mxu1 %v16030_v47 }
 0x24c   :  { %v10374_v40 = vpop.permute.xlu0 %3116 }
 0x24d   :  { %v10332_v38 = vpop.permute.xlu1 %1396  ;;  %16050 = vst [vmem:[#allocation75_spill] sm:$0xff] %v10374_v40 }
 0x24e   :  { %16045 = vst [vmem:[#allocation70_spill] sm:$0xff] %v10332_v38  ;;  %v8722_v38 = vld [vmem:[%s15619_s5 + $0x80] sm:$0xff]   ;;  %3168 = vrot.lane.b32.xlu0 %v10372_v37, %s8912_s4  ;;  %v16054_v37 = vrot.slane %v9769_v53, 1  ;;  %5623 = vmatpush2.bf16.msra.mxu1 %v8725_v5 }
 0x24f   :  { %1632 = vrot.lane.b32.xlu1 %v10341_v39, %s8914_s2  ;;  %v10365_v39 = vsel %vm1116_vm1, %v1052_v18, %v15685_v48  ;;  %8536 = vmatprep.subr.bf16.mxu0 %v8722_v38  ;;  %v1184_v48 = vrot.slane %v9917_v32, 1 }
 0x250   :  { %8537 = vmatpush3.bf16.msra.mxu0 %v8722_v38  ;;  %v10392_v61 = vpop.permute.xlu0 %1390  ;;  %5624 = vmatprep.subr.bf16.mxu1 %v16030_v47 }
 0x251   :  { %v10353_v4 = vpop.permute.xlu1 %3126  ;;  %16053 = vst [vmem:[#allocation78_spill] sm:$0xff] %v10392_v61  ;;  %v10408_v38 = vsel %vm1245_vm2, %v1184_v48, %v15693_v62  ;;  %v8726_v61 = vld [vmem:[%s15619_s5 + $0x58] sm:$0xff]   ;;  %v8727_v62 = vld [vmem:[%s15619_s5 + $0x50] sm:$0xff]  }
 0x252   :  { %16048 = vst [vmem:[#allocation73_spill] sm:$0xff] %v10353_v4  ;;  %5625 = vmatpush2.bf16.msra.mxu1 %v8726_v61 }
 0x253   :  { %2914 = vrot.lane.b32.xlu1 %v10365_v39, %s8914_s2  ;;  %5626 = vmatprep.subr.bf16.mxu1 %v16030_v47 }
 0x255   :  { %v10376_v4 = vpop.permute.xlu1 %1400 }
 0x256   :  { %16051 = vst [vmem:[#allocation76_spill] sm:$0xff] %v10376_v4  ;;  %v10398_v4 = vsel %vm1245_vm2, %v16054_v37, %v1244_v44  ;;  %v10416_v44 = vpop.permute.xlu0 %3120  ;;  %v10420_v37 = vsel %vm1116_vm1, %v1051_v19, %v1052_v18  ;;  %v16060_v19 = vrot.slane %v9943_v15, 7  ;;  %5627 = vmatpush2.bf16.msra.mxu1 %v8727_v62  ;;  %v16065_v62 = vrot.slane %v9959_v14, 1 }
 0x257   :  { %1888 = vrot.lane.b32.xlu1 %v10382_v49, %s8912_s4  ;;  %16055 = vst [vmem:[#allocation79_spill] sm:$0xff] %v10398_v4  ;;  %1630 = vrot.lane.b32.xlu0 %v10398_v4, %s8914_s2  ;;  %16057 = vst [vmem:[#allocation81_spill] sm:$0xff] %v10416_v44  ;;  %v1054_v4 = vrot.slane %v9987_v11, 7  ;;  %v8728_v44 = vld [vmem:[%s15619_s5 + $0x48] sm:$0xff]  }
 0x258   :  { %v10440_v61 = vsel %vm1116_vm1, %v16060_v19, %v1050_v13  ;;  %5628 = vmatprep.subr.bf16.mxu1 %v16030_v47  ;;  %v10462_v19 = vsel %vm1245_vm2, %v16065_v62, %v1184_v48  ;;  %v8729_v48 = vld [vmem:[%s15619_s5 + $0x40] sm:$0xff]  }
 0x259   :  { %v10400_v2 = vpop.permute.xlu1 %3130  ;;  %16061 = vst [vmem:[#allocation84_spill] sm:$0xff] %v10440_v61 }
 0x25a   :  { %16056 = vst [vmem:[#allocation80_spill] sm:$0xff] %v10400_v2  ;;  %v1055_v2 = vrot.slane %v9928_v3, 7  ;;  %v10434_v18 = vpop.permute.xlu0 %1394  ;;  %5629 = vmatpush2.bf16.msra.mxu1 %v8728_v44 }
 0x25b   :  { %2726 = vrot.lane.b32.xlu1 %v10408_v38, %s8911_s3  ;;  %2912 = vrot.lane.b32.xlu0 %v10420_v37, %s8914_s2  ;;  %16059 = vst [vmem:[#allocation83_spill] sm:$0xff] %v10434_v18  ;;  %v1186_v18 = vrot.slane %v9928_v3, 1 }
 0x25c   :  { %5630 = vmatprep.subr.bf16.mxu1 %v16030_v47 }
 0x25d   :  { %v10422_v5 = vpop.permute.xlu1 %1404 }
 0x25e   :  { %16058 = vst [vmem:[#allocation82_spill] sm:$0xff] %v10422_v5  ;;  %v10456_v13 = vpop.permute.xlu0 %3124  ;;  %5631 = vmatpush2.bf16.msra.mxu1 %v8729_v48  ;;  %v1057_v48 = vrot.slane %v9946_v51, 7 }
 0x25f   :  { %1636 = vrot.lane.b32.xlu1 %v10321_v21, %s8914_s2  ;;  %1886 = vrot.lane.b32.xlu0 %v10440_v61, %s8912_s4  ;;  %v10451_v21 = vsel %vm1116_vm1, %v1054_v4, %v1055_v2  ;;  %16064 = vst [vmem:[#allocation87_spill] sm:$0xff] %v10456_v13  ;;  %v16070_v13 = vrot.slane %v9917_v32, 7 }
 0x260   :  { %16063 = vst [vmem:[#allocation86_spill] sm:$0xff] %v10451_v21 }
 0x261   :  { %v10442_v5 = vpop.permute.xlu1 %3134 }
 0x262   :  { %16062 = vst [vmem:[#allocation85_spill] sm:$0xff] %v10442_v5  ;;  %v1187_v5 = vrot.slane %v10005_v35, 1  ;;  %v10476_v62 = vpop.permute.xlu0 %1398 }
 0x263   :  { %2918 = vrot.lane.b32.xlu1 %v10451_v21, %s8914_s2  ;;  %2724 = vrot.lane.b32.xlu0 %v10462_v19, %s8911_s3  ;;  %16067 = vst [vmem:[#allocation89_spill] sm:$0xff] %v10476_v62  ;;  %v10494_v62 = vsel %vm1116_vm1, %v16070_v13, %v1054_v4 }
 0x264   :  { %v10484_v44 = vsel %vm1245_vm2, %v1186_v18, %v1187_v5  ;;  %16071 = vst [vmem:[#allocation92_spill] sm:$0xff] %v10494_v62 }
 0x265   :  { %v10464_v15 = vpop.permute.xlu1 %1408 }
 0x266   :  { %16066 = vst [vmem:[#allocation88_spill] sm:$0xff] %v10464_v15  ;;  %v10488_v47 = vpop.permute.xlu0 %3128 }
 0x267   :  { %1892 = vrot.lane.b32.xlu1 %v10365_v39, %s8912_s4  ;;  %1634 = vrot.lane.b32.xlu0 %v10294_v45, %s8914_s2  ;;  %16069 = vst [vmem:[#allocation91_spill] sm:$0xff] %v10488_v47  ;;  %v1056_v45 = vrot.slane %v10005_v35, 7  ;;  %v1189_v35 = vrot.slane %v10023_v9, 1 }
 0x269   :  { %v10478_v15 = vpop.permute.xlu1 %3138  ;;  %v10512_v4 = vsel %vm1116_vm1, %v1056_v45, %v1057_v48 }
 0x26a   :  { %16068 = vst [vmem:[#allocation90_spill] sm:$0xff] %v10478_v15  ;;  %v10504_v22 = vpop.permute.xlu0 %1402  ;;  %16075 = vst [vmem:[#allocation96_spill] sm:$0xff] %v10512_v4 }
 0x26b   :  { %2730 = vrot.lane.b32.xlu1 %v10484_v44, %s8911_s3  ;;  %2916 = vrot.lane.b32.xlu0 %v10494_v62, %s8914_s2  ;;  %16073 = vst [vmem:[#allocation94_spill] sm:$0xff] %v10504_v22 }
 0x26d   :  { %v10496_v15 = vpop.permute.xlu1 %1412 }
 0x26e   :  { %16072 = vst [vmem:[#allocation93_spill] sm:$0xff] %v10496_v15  ;;  %v10516_v13 = vpop.permute.xlu0 %3132  ;;  %v16077_v15 = vrot.slane %v9987_v11, 1 }
 0x26f   :  { %1640 = vrot.lane.b32.xlu1 %v10408_v38, %s8914_s2  ;;  %1890 = vrot.lane.b32.xlu0 %v10420_v37, %s8912_s4  ;;  %16076 = vst [vmem:[#allocation97_spill] sm:$0xff] %v10516_v13 }
 0x270   :  { %v10522_v40 = vsel %vm1245_vm2, %v16077_v15, %v1186_v18 }
 0x271   :  { %v10506_v47 = vpop.permute.xlu1 %3142 }
 0x272   :  { %16074 = vst [vmem:[#allocation95_spill] sm:$0xff] %v10506_v47  ;;  %v1188_v47 = vrot.slane %v9946_v51, 1  ;;  %v10532_v20 = vpop.permute.xlu0 %1406 }
 0x273   :  { %2922 = vrot.lane.b32.xlu1 %v10512_v4, %s8914_s2  ;;  %2728 = vrot.lane.b32.xlu0 %v10522_v40, %s8911_s3  ;;  %16079 = vst [vmem:[#allocation99_spill] sm:$0xff] %v10532_v20  ;;  %v1059_v20 = vrot.slane %v9979_v27, 7 }
 0x274   :  { %v10538_v15 = vsel %vm1245_vm2, %v1188_v47, %v1189_v35 }
 0x275   :  { %v10524_v22 = vpop.permute.xlu1 %1416  ;;  %16081 = vst [vmem:[#allocation101_spill] sm:$0xff] %v10538_v15 }
 0x276   :  { %16078 = vst [vmem:[#allocation98_spill] sm:$0xff] %v10524_v22  ;;  %v10544_v18 = vpop.permute.xlu0 %3136  ;;  %v10548_v22 = vsel %vm1116_vm1, %v1055_v2, %v1056_v45 }
 0x277   :  { %1896 = vrot.lane.b32.xlu1 %v10451_v21, %s8912_s4  ;;  %1638 = vrot.lane.b32.xlu0 %v10462_v19, %s8914_s2  ;;  %16082 = vst [vmem:[#allocation102_spill] sm:$0xff] %v10544_v18 }
 0x279   :  { %v10534_v13 = vpop.permute.xlu1 %3146 }
 0x27a   :  { %16080 = vst [vmem:[#allocation100_spill] sm:$0xff] %v10534_v13  ;;  %v1058_v13 = vrot.slane %v10023_v9, 7  ;;  %v10558_v55 = vpop.permute.xlu0 %1410 }
 0x27b   :  { %2734 = vrot.lane.b32.xlu1 %v10538_v15, %s8911_s3  ;;  %2920 = vrot.lane.b32.xlu0 %v10548_v22, %s8914_s2  ;;  %16084 = vst [vmem:[#allocation104_spill] sm:$0xff] %v10558_v55  ;;  %v1191_v55 = vrot.slane %v10037_v54, 1 }
 0x27c   :  { %v10564_v45 = vsel %vm1116_vm1, %v1058_v13, %v1059_v20 }
 0x27d   :  { %v10550_v21 = vpop.permute.xlu1 %1420  ;;  %16086 = vst [vmem:[#allocation106_spill] sm:$0xff] %v10564_v45 }
 0x27e   :  { %16083 = vst [vmem:[#allocation103_spill] sm:$0xff] %v10550_v21  ;;  %v10570_v2 = vpop.permute.xlu0 %3140  ;;  %v10574_v21 = vsel %vm1245_vm2, %v1187_v5, %v1188_v47 }
 0x27f   :  { %1644 = vrot.lane.b32.xlu1 %v10484_v44, %s8914_s2  ;;  %1894 = vrot.lane.b32.xlu0 %v10494_v62, %s8912_s4  ;;  %16087 = vst [vmem:[#allocation107_spill] sm:$0xff] %v10570_v2  ;;  %16088 = vst [vmem:[#allocation108_spill] sm:$0xff] %v10574_v21 }
 0x281   :  { %v10560_v43 = vpop.permute.xlu1 %3150 }
 0x282   :  { %16085 = vst [vmem:[#allocation105_spill] sm:$0xff] %v10560_v43  ;;  %v1190_v43 = vrot.slane %v9979_v27, 1  ;;  %v10584_v9 = vpop.permute.xlu0 %1414 }
 0x283   :  { %2926 = vrot.lane.b32.xlu1 %v10564_v45, %s8914_s2  ;;  %2732 = vrot.lane.b32.xlu0 %v10574_v21, %s8911_s3  ;;  %16090 = vst [vmem:[#allocation110_spill] sm:$0xff] %v10584_v9  ;;  %v1061_v9 = vrot.slane %v9997_v7, 7 }
 0x284   :  { %v10590_v5 = vsel %vm1245_vm2, %v1190_v43, %v1191_v55 }
 0x285   :  { %v10576_v18 = vpop.permute.xlu1 %1424  ;;  %16092 = vst [vmem:[#allocation112_spill] sm:$0xff] %v10590_v5 }
 0x286   :  { %16089 = vst [vmem:[#allocation109_spill] sm:$0xff] %v10576_v18  ;;  %v10596_v47 = vpop.permute.xlu0 %3144  ;;  %v10600_v18 = vsel %vm1116_vm1, %v1057_v48, %v1058_v13 }
 0x287   :  { %1900 = vrot.lane.b32.xlu1 %v10512_v4, %s8912_s4  ;;  %1642 = vrot.lane.b32.xlu0 %v10522_v40, %s8914_s2  ;;  %16093 = vst [vmem:[#allocation113_spill] sm:$0xff] %v10596_v47  ;;  %16094 = vst [vmem:[#allocation114_spill] sm:$0xff] %v10600_v18 }
 0x289   :  { %v10586_v62 = vpop.permute.xlu1 %3154 }
 0x28a   :  { %16091 = vst [vmem:[#allocation111_spill] sm:$0xff] %v10586_v62  ;;  %v1060_v62 = vrot.slane %v10037_v54, 7  ;;  %v10610_v4 = vpop.permute.xlu0 %1418 }
 0x28b   :  { %2738 = vrot.lane.b32.xlu1 %v10590_v5, %s8911_s3  ;;  %2924 = vrot.lane.b32.xlu0 %v10600_v18, %s8914_s2  ;;  %16096 = vst [vmem:[#allocation116_spill] sm:$0xff] %v10610_v4  ;;  %v1193_v4 = vrot.slane %v10051_v56, 1 }
 0x28c   :  { %v10616_v48 = vsel %vm1116_vm1, %v1060_v62, %v1061_v9 }
 0x28d   :  { %v10602_v2 = vpop.permute.xlu1 %1428  ;;  %16098 = vst [vmem:[#allocation118_spill] sm:$0xff] %v10616_v48 }
 0x28e   :  { %16095 = vst [vmem:[#allocation115_spill] sm:$0xff] %v10602_v2  ;;  %v10622_v13 = vpop.permute.xlu0 %3148  ;;  %v10626_v2 = vsel %vm1245_vm2, %v1189_v35, %v1190_v43 }
 0x28f   :  { %1648 = vrot.lane.b32.xlu1 %v10538_v15, %s8914_s2  ;;  %1898 = vrot.lane.b32.xlu0 %v10548_v22, %s8912_s4  ;;  %16099 = vst [vmem:[#allocation119_spill] sm:$0xff] %v10622_v13  ;;  %16100 = vst [vmem:[#allocation120_spill] sm:$0xff] %v10626_v2 }
 0x291   :  { %v10612_v27 = vpop.permute.xlu1 %3158 }
 0x292   :  { %16097 = vst [vmem:[#allocation117_spill] sm:$0xff] %v10612_v27  ;;  %v1192_v27 = vrot.slane %v9997_v7, 1  ;;  %v10636_v47 = vpop.permute.xlu0 %1422  ;;  %v1064_v7 = vrot.slane %v10065_v42, 7 }
 0x293   :  { %2930 = vrot.lane.b32.xlu1 %v10616_v48, %s8914_s2  ;;  %2736 = vrot.lane.b32.xlu0 %v10626_v2, %s8911_s3  ;;  %16102 = vst [vmem:[#allocation122_spill] sm:$0xff] %v10636_v47  ;;  %v15757_v47 = vrot.slane %v10015_v6, 7 }
 0x294   :  { %v10642_v35 = vsel %vm1245_vm2, %v1192_v27, %v1193_v4 }
 0x295   :  { %v10628_v15 = vpop.permute.xlu1 %1432  ;;  %16104 = vst [vmem:[#allocation124_spill] sm:$0xff] %v10642_v35 }
 0x296   :  { %16101 = vst [vmem:[#allocation121_spill] sm:$0xff] %v10628_v15  ;;  %v10648_v43 = vpop.permute.xlu0 %3152  ;;  %v10652_v15 = vsel %vm1116_vm1, %v1059_v20, %v1060_v62 }
 0x297   :  { %1904 = vrot.lane.b32.xlu1 %v10564_v45, %s8912_s4  ;;  %1646 = vrot.lane.b32.xlu0 %v10574_v21, %s8914_s2  ;;  %16105 = vst [vmem:[#allocation125_spill] sm:$0xff] %v10648_v43 }
 0x299   :  { %v10638_v54 = vpop.permute.xlu1 %3162 }
 0x29a   :  { %16103 = vst [vmem:[#allocation123_spill] sm:$0xff] %v10638_v54  ;;  %v1062_v54 = vrot.slane %v10051_v56, 7  ;;  %v10662_v21 = vpop.permute.xlu0 %1426 }
 0x29b   :  { %2742 = vrot.lane.b32.xlu1 %v10642_v35, %s8911_s3  ;;  %2928 = vrot.lane.b32.xlu0 %v10652_v15, %s8914_s2  ;;  %16107 = vst [vmem:[#allocation127_spill] sm:$0xff] %v10662_v21  ;;  %v15764_v21 = vrot.slane %v10065_v42, 1 }
 0x29c   :  { %v10670_v20 = vsel %vm1116_vm1, %v1062_v54, %v15757_v47 }
 0x29d   :  { %v10654_v13 = vpop.permute.xlu1 %1436 }
 0x29e   :  { %16106 = vst [vmem:[#allocation126_spill] sm:$0xff] %v10654_v13  ;;  %v10676_v62 = vpop.permute.xlu0 %3156 }
 0x29f   :  { %1652 = vrot.lane.b32.xlu1 %v10590_v5, %s8914_s2  ;;  %1902 = vrot.lane.b32.xlu0 %v10600_v18, %s8912_s4  ;;  %16109 = vst [vmem:[#allocation129_spill] sm:$0xff] %v10676_v62  ;;  %v10680_v5 = vsel %vm1245_vm2, %v1191_v55, %v1192_v27  ;;  %v4129_v27 = vsel %vm505_vm0, %v10408_v38, %v10199_v50  ;;  %v4321_v55 = vld [vmem:[#allocation3 + $0x28] sm:$0xff]  ;;  %v4323_v18 = vld [vmem:[#allocation3 + $0x58] sm:$0xff] }
 0x2a0   :  { %16110 = vst [vmem:[#allocation130_spill] sm:$0xff] %v10680_v5 }
 0x2a1   :  { %v10664_v45 = vpop.permute.xlu1 %3166 }
 0x2a2   :  { %16108 = vst [vmem:[#allocation128_spill] sm:$0xff] %v10664_v45  ;;  %v1194_v45 = vrot.slane %v10015_v6, 1  ;;  %v10688_v47 = vpop.permute.xlu0 %1430 }
 0x2a3   :  { %2934 = vrot.lane.b32.xlu1 %v10670_v20, %s8914_s2  ;;  %2740 = vrot.lane.b32.xlu0 %v10680_v5, %s8911_s3  ;;  %16111 = vst [vmem:[#allocation131_spill] sm:$0xff] %v10688_v47 }
 0x2a4   :  { %v10700_v56 = vsel %vm1245_vm2, %v1194_v45, %v15764_v21  ;;  %v4131_v21 = vsel %vm505_vm0, %v10484_v44, %v10229_v30 }
 0x2a5   :  { %v3939_v13 = vpop.permute.xlu1 %3938  ;;  %16113 = vst [vmem:[#allocation133_spill] sm:$0xff] %v10700_v56 }
 0x2a6   :  { %v4193_v62 = vsel %vm2142_vm3, %v4129_v27, %v3939_v13  ;;  %v10708_v38 = vpop.permute.xlu0 %3160  ;;  %v10712_v13 = vsel %vm1116_vm1, %v1061_v9, %v1062_v54 }
 0x2a7   :  { %1908 = vrot.lane.b32.xlu1 %v10616_v48, %s8912_s4  ;;  %1650 = vrot.lane.b32.xlu0 %v10626_v2, %s8914_s2  ;;  %16114 = vst [vmem:[#allocation134_spill] sm:$0xff] %v10708_v38  ;;  %16115 = vst [vmem:[#allocation135_spill] sm:$0xff] %v10712_v13  ;;  %v1198_v38 = vrot.slane %v10044_v1, 1 }
 0x2a9   :  { %v10694_v43 = vpop.permute.xlu1 %3230 }
 0x2aa   :  { %16112 = vst [vmem:[#allocation132_spill] sm:$0xff] %v10694_v43  ;;  %v4257_v47 = vsel %vm2207_vm4, %v4193_v62, %v10694_v43  ;;  %v10726_v54 = vpop.permute.xlu0 %1434 }
 0x2ab   :  { %v4385_v48 = vmul.f32 %v4321_v55, %v4257_v47  ;;  %2746 = vrot.lane.b32.xlu1 %v10700_v56, %s8911_s3  ;;  %v15769_v47 = vrot.slane %v10030_v57, 7  ;;  %2932 = vrot.lane.b32.xlu0 %v10712_v13, %s8914_s2  ;;  %16116 = vst [vmem:[#allocation136_spill] sm:$0xff] %v10726_v54  ;;  %v15779_v54 = vrot.slane %v10044_v1, 7 }
 0x2ad   :  { %v8265_v27 = vpack.c.bf16 %v4385_v48, %v4385_v48  ;;  %v3943_v2 = vpop.permute.xlu1 %3942  ;;  %v10734_v55 = vsel %vm1116_vm1, %v1064_v7, %v15769_v47 }
 0x2ae   :  { %v4195_v62 = vsel %vm2142_vm3, %v4131_v21, %v3943_v2  ;;  %v10740_v2 = vpop.permute.xlu0 %3164 }
 0x2af   :  { %4705 = vst [vmem:[#allocation2 + $0x14] sm:$0xf] %v8265_v27  ;;  %v4259_v9 = vsel %vm2207_vm4, %v4195_v62, %v10183_v52  ;;  %1656 = vrot.lane.b32.xlu1 %v10642_v35, %s8914_s2  ;;  %1906 = vrot.lane.b32.xlu0 %v10652_v15, %s8912_s4  ;;  %16118 = vst [vmem:[#allocation138_spill] sm:$0xff] %v10740_v2  ;;  %v1196_v62 = vrot.slane %v10030_v57, 1 }
 0x2b0   :  { %v4387_v44 = vmul.f32 %v4323_v18, %v4259_v9  ;;  %v10744_v18 = vsel %vm1245_vm2, %v1193_v4, %v1194_v45  ;;  %v15773_v9 = vrot.slane %v10085_v33, 1  ;;  %v4128_v45 = vsel %vm505_vm0, %v10462_v19, %v10266_v17 }
 0x2b1   :  { %v10728_v48 = vpop.permute.xlu1 %1440  ;;  %16119 = vst [vmem:[#allocation139_spill] sm:$0xff] %v10744_v18  ;;  %v1066_v19 = vrot.slane %v10085_v33, 7 }
 0x2b2   :  { %16117 = vst [vmem:[#allocation137_spill] sm:$0xff] %v10728_v48  ;;  %v8267_v21 = vpack.c.bf16 %v4387_v44, %v4387_v44  ;;  %v3937_v44 = vpop.permute.xlu0 %3936  ;;  %v10760_v4 = vsel %vm1245_vm2, %v1196_v62, %v15773_v9  ;;  %v16123_v48 = vrot.slane %v10015_v6, 7 }
 0x2b3   :  { %2938 = vrot.lane.b32.xlu1 %v10734_v55, %s8914_s2  ;;  %2744 = vrot.lane.b32.xlu0 %v10744_v18, %s8911_s3  ;;  %16121 = vst [vmem:[#allocation141_spill] sm:$0xff] %v10760_v4  ;;  %v4192_v43 = vsel %vm2142_vm3, %v4128_v45, %v3937_v44 }
 0x2b4   :  { %4707 = vst [vmem:[#allocation2 + $0x2c] sm:$0xf] %v8267_v21  ;;  %v4320_v21 = vld [vmem:[#allocation3 + $0x10] sm:$0xff]  ;;  %v10776_v9 = vsel %vm1116_vm1, %v16123_v48, %v1064_v7  ;;  %v4130_v7 = vsel %vm505_vm0, %v10522_v40, %v10305_v58  ;;  %v4322_v48 = vld [vmem:[#allocation3 + $0x40] sm:$0xff] }
 0x2b5   :  { %v10746_v27 = vpop.permute.xlu1 %3170 }
 0x2b6   :  { %16120 = vst [vmem:[#allocation140_spill] sm:$0xff] %v10746_v27  ;;  %v10770_v35 = vpop.permute.xlu0 %3228 }
 0x2b7   :  { %1912 = vrot.lane.b32.xlu1 %v10670_v20, %s8912_s4  ;;  %1654 = vrot.lane.b32.xlu0 %v10680_v5, %s8914_s2  ;;  %16122 = vst [vmem:[#allocation142_spill] sm:$0xff] %v10770_v35  ;;  %v4256_v5 = vsel %vm2207_vm4, %v4192_v43, %v10770_v35 }
 0x2b8   :  { %v4384_v2 = vmul.f32 %v4320_v21, %v4256_v5  ;;  %v10794_v5 = vsel %vm1116_vm1, %v1066_v19, %v15779_v54 }
 0x2b9   :  { %v10754_v47 = vpop.permute.xlu1 %2720 }
 0x2ba   :  { %v8264_v44 = vpack.c.bf16 %v4384_v2, %v4384_v2  ;;  %v3941_v45 = vpop.permute.xlu0 %3940 }
 0x2bb   :  { %2750 = vrot.lane.b32.xlu1 %v10760_v4, %s8911_s3  ;;  %2936 = vrot.lane.b32.xlu0 %v10776_v9, %s8914_s2  ;;  %v4194_v43 = vsel %vm2142_vm3, %v4130_v7, %v3941_v45  ;;  %v16125_v7 = vrot.slane %v10065_v42, 1 }
 0x2bc   :  { %4704 = vst [vmem:[#allocation2 + $0x8] sm:$0xf] %v8264_v44  ;;  %v4258_v21 = vsel %vm2207_vm4, %v4194_v43, %v10254_v25  ;;  %v3489_v43 = vld [vmem:[#allocation3 + $0x20] sm:$0xff] }
 0x2bd   :  { %v2723_v27 = vpop.permute.xlu1 %2722  ;;  %v4386_v2 = vmul.f32 %v4322_v48, %v4258_v21  ;;  %v10808_v45 = vsel %vm1245_vm2, %v16125_v7, %v1196_v62  ;;  %v2273_v7 = vld [vmem:[#allocation3 + $0x18] sm:$0xff] }
 0x2be   :  { %v10802_v40 = vpop.permute.xlu0 %1438  ;;  %16126 = vst [vmem:[#allocation144_spill] sm:$0xff] %v10808_v45  ;;  %v3297_v44 = vsel %vm505_vm0, %v9924_v29, %v2723_v27  ;;  %v2079_v29 = vsel %vm505_vm0, %v9967_v0, %v10239_v36  ;;  %v1068_v36 = vrot.slane %v10120_v8, 7 }
 0x2bf   :  { %1660 = vrot.lane.b32.xlu1 %v10700_v56, %s8914_s2  ;;  %1910 = vrot.lane.b32.xlu0 %v10712_v13, %s8912_s4  ;;  %16124 = vst [vmem:[#allocation143_spill] sm:$0xff] %v10802_v40  ;;  %v8266_v54 = vpack.c.bf16 %v4386_v2, %v4386_v2 }
 0x2c1   :  { %v1633_v35 = vpop.permute.xlu1 %1632  ;;  %4706 = vst [vmem:[#allocation2 + $0x20] sm:$0xf] %v8266_v54 }
 0x2c2   :  { %v10824_v27 = vpop.permute.xlu0 %3168  ;;  %v2144_v40 = vsel %vm2142_vm3, %v2079_v29, %v1633_v35  ;;  %v16130_v35 = vrot.slane %v10030_v57, 7 }
 0x2c3   :  { %2942 = vrot.lane.b32.xlu1 %v10794_v5, %s8914_s2  ;;  %2748 = vrot.lane.b32.xlu0 %v10808_v45, %s8911_s3  ;;  %16127 = vst [vmem:[#allocation145_spill] sm:$0xff] %v10824_v27  ;;  %v8721_v48 = vld [vmem:[#allocation2 + $0x8] ss:$12 sps:$4 sm:$0xff]  }
 0x2c4   :  { %8538 = vmatprep.mubr.bf16.mxu0 %v8721_v48 }
 0x2c5   :  { %v2915_v56 = vpop.permute.xlu1 %2914 }
 0x2c6   :  { %v3361_v21 = vsel %vm2142_vm3, %v3297_v44, %v2915_v56  ;;  %v16128_v56 = vrot.slane %v10120_v8, 1 }
 0x2c7   :  { %v3425_v62 = vsel %vm2207_vm4, %v3361_v21, %v10183_v52  ;;  %1916 = vrot.lane.b32.xlu1 %v10734_v55, %s8912_s4  ;;  %1658 = vrot.lane.b32.xlu0 %v10744_v18, %s8914_s2  ;;  %v16158_v18 = vld [vmem:[#allocation52_spill] sm:$0xff] }
 0x2c8   :  { %v3553_v2 = vmul.f32 %v3489_v43, %v3425_v62  ;;  %v10831_v52 = vsel %vm1245_vm2, %v1198_v38, %v16128_v56  ;;  %v10842_v62 = vsel %vm1116_vm1, %v16130_v35, %v1066_v19  ;;  %v3488_v19 = vld [vmem:[#allocation3 + $0x8] sm:$0xff] }
 0x2c9   :  { %v1889_v13 = vpop.permute.xlu1 %1888  ;;  %16129 = vst [vmem:[#allocation146_spill] sm:$0xff] %v10831_v52  ;;  %v1631_v43 = vpop.permute.xlu0 %1630 }
 0x2ca   :  { %v8201_v54 = vpack.c.bf16 %v3553_v2, %v3553_v2  ;;  %v2209_v44 = vsel %vm2207_vm4, %v2144_v40, %v1889_v13  ;;  %v15785_v2 = vrot.slane %v10058_v63, 7  ;;  %v8724_v13 = vld [vmem:[#allocation2 + $0x20] ss:$12 sps:$4 sm:$0xff]   ;;  %v3296_v40 = vsel %vm505_vm0, %v9977_v31, %v10754_v47 }
 0x2cb   :  { %v2337_v21 = vmul.f32 %v2273_v7, %v2209_v44  ;;  %2754 = vrot.lane.b32.xlu1 %v10831_v52, %s8911_s3  ;;  %2940 = vrot.lane.b32.xlu0 %v10842_v62, %s8914_s2  ;;  %v16131_v44 = vrot.slane %v9769_v53, 7  ;;  %v1200_v53 = vrot.slane %v10058_v63, 1 }
 0x2cc   :  { %3873 = vst [vmem:[#allocation2 + $0x10] sm:$0xf] %v8201_v54  ;;  %8539 = vmatmul.mubr.bf16.vlgmr.msra.gmra.mxu0 %v8724_v13 }
 0x2cd   :  { %v8137_v29 = vpack.c.bf16 %v2337_v21, %v2337_v21  ;;  %v2727_v56 = vpop.permute.xlu1 %2726  ;;  %v2913_v48 = vpop.permute.xlu0 %2912  ;;  %v16132_v21 = vrot.slane %v10072_v10, 7 }
 0x2ce   :  { %v3360_v7 = vsel %vm2142_vm3, %v3296_v40, %v2913_v48  ;;  %v2272_v40 = vld [vmem:[#allocation3] sm:$0xff] }
 0x2cf   :  { %2657 = vst [vmem:[#allocation2 + $0xc] sm:$0xf] %v8137_v29  ;;  %1664 = vrot.lane.b32.xlu1 %v10760_v4, %s8914_s2  ;;  %v10860_v35 = vsel %vm1116_vm1, %v16132_v21, %v16131_v44  ;;  %v10866_v29 = vsel %vm1116_vm1, %v1068_v36, %v15785_v2  ;;  %v3424_v31 = vsel %vm2207_vm4, %v3360_v7, %v10254_v25  ;;  %v16134_v21 = vrot.slane %v10085_v33, 1 }
 0x2d0   :  { %16133 = vst [vmem:[#allocation147_spill] sm:$0xff] %v10860_v35  ;;  %1914 = vrot.lane.b32.xlu0 %v10776_v9, %s8912_s4  ;;  %v2078_v47 = vsel %vm505_vm0, %v10860_v35, %v10219_v23  ;;  %v3552_v13 = vmul.f32 %v3488_v19, %v3424_v31  ;;  %v3299_v23 = vsel %vm505_vm0, %v9917_v32, %v2727_v56  ;;  %v3491_v19 = vld [vmem:[#allocation3 + $0x50] sm:$0xff]  ;;  %v15792_v35 = vrot.slane %v10134_v24, 1 }
 0x2d1   :  { %v1637_v54 = vpop.permute.xlu1 %1636  ;;  %v2143_v48 = vsel %vm2142_vm3, %v2078_v47, %v1631_v43  ;;  %v1887_v44 = vpop.permute.xlu0 %1886  ;;  %v10882_v25 = vsel %vm1245_vm2, %v16134_v21, %v1198_v38 }
 0x2d2   :  { %16135 = vst [vmem:[#allocation148_spill] sm:$0xff] %v10882_v25  ;;  %v8200_v7 = vpack.c.bf16 %v3552_v13, %v3552_v13  ;;  %v2208_v2 = vsel %vm2207_vm4, %v2143_v48, %v1887_v44  ;;  %v2081_v13 = vsel %vm505_vm0, %v10382_v49, %v10199_v50 }
 0x2d3   :  { %2946 = vrot.lane.b32.xlu1 %v10866_v29, %s8914_s2  ;;  %v2336_v43 = vmul.f32 %v2272_v40, %v2208_v2  ;;  %v2275_v2 = vld [vmem:[#allocation3 + $0x48] sm:$0xff]  ;;  %v2146_v40 = vsel %vm2142_vm3, %v2081_v13, %v1637_v54  ;;  %v16137_v54 = vrot.slane %v10044_v1, 7 }
 0x2d4   :  { %2752 = vrot.lane.b32.xlu0 %v10882_v25, %s8911_s3  ;;  %3872 = vst [vmem:[#allocation2 + $0x4] sm:$0xf] %v8200_v7 }
 0x2d5   :  { %v2919_v31 = vpop.permute.xlu1 %2918  ;;  %v8136_v32 = vpack.c.bf16 %v2336_v43, %v2336_v43  ;;  %v2725_v56 = vpop.permute.xlu0 %2724 }
 0x2d6   :  { %v3363_v47 = vsel %vm2142_vm3, %v3299_v23, %v2919_v31  ;;  %v10904_v23 = vsel %vm1245_vm2, %v1200_v53, %v15792_v35  ;;  %v3298_v13 = vsel %vm505_vm0, %v9959_v14, %v2725_v56  ;;  %v2080_v14 = vsel %vm505_vm0, %v10440_v61, %v10266_v17 }
 0x2d7   :  { %v3427_v38 = vsel %vm2207_vm4, %v3363_v47, %v10209_v26  ;;  %1920 = vrot.lane.b32.xlu1 %v10794_v5, %s8912_s4  ;;  %16136 = vst [vmem:[#allocation149_spill] sm:$0xff] %v10904_v23  ;;  %2656 = vst [vmem:[#allocation2] sm:$0xf] %v8136_v32  ;;  %v15791_v32 = vrot.slane %v10075_v34, 7 }
 0x2d8   :  { %v3555_v48 = vmul.f32 %v3491_v19, %v3427_v38  ;;  %1662 = vrot.lane.b32.xlu0 %v10808_v45, %s8914_s2  ;;  %v10915_v19 = vsel %vm1116_vm1, %v16137_v54, %v1068_v36  ;;  %v1070_v38 = vrot.slane %v10134_v24, 7  ;;  %v2274_v54 = vld [vmem:[#allocation3 + $0x30] sm:$0xff] }
 0x2d9   :  { %v1893_v44 = vpop.permute.xlu1 %1892  ;;  %v1635_v50 = vpop.permute.xlu0 %1634 }
 0x2da   :  { %v8203_v21 = vpack.c.bf16 %v3555_v48, %v3555_v48  ;;  %v2211_v7 = vsel %vm2207_vm4, %v2146_v40, %v1893_v44  ;;  %v3490_v48 = vld [vmem:[#allocation3 + $0x38] sm:$0xff] }
 0x2db   :  { %v2339_v31 = vmul.f32 %v2275_v2, %v2211_v7  ;;  %2758 = vrot.lane.b32.xlu1 %v10904_v23, %s8911_s3  ;;  %v8732_v44 = vld [vmem:[#allocation2 + $0x4] ss:$12 sps:$4 sm:$0xff]   ;;  %v10930_v7 = vsel %vm1116_vm1, %v1070_v38, %v15791_v32 }
 0x2dc   :  { %3875 = vst [vmem:[#allocation2 + $0x28] sm:$0xf] %v8203_v21  ;;  %2944 = vrot.lane.b32.xlu0 %v10915_v19, %s8914_s2  ;;  %5632 = vmatprep.mubr.bf16.mxu1 %v8732_v44 }
 0x2dd   :  { %v8139_v43 = vpack.c.bf16 %v2339_v31, %v2339_v31  ;;  %v2731_v47 = vpop.permute.xlu1 %2730  ;;  %v2917_v2 = vpop.permute.xlu0 %2916 }
 0x2de   :  { %v3362_v36 = vsel %vm2142_vm3, %v3298_v13, %v2917_v2  ;;  %v8730_v40 = vld [vmem:[#allocation2] ss:$12 sps:$4 sm:$0xff]   ;;  %v16138_v2 = vrot.slane %v10120_v8, 1  ;;  %v3301_v17 = vsel %vm505_vm0, %v9928_v3, %v2731_v47 }
 0x2df   :  { %2659 = vst [vmem:[#allocation2 + $0x24] sm:$0xf] %v8139_v43  ;;  %1668 = vrot.lane.b32.xlu1 %v10831_v52, %s8914_s2  ;;  %v3426_v31 = vsel %vm2207_vm4, %v3362_v36, %v10285_v28  ;;  %v2145_v43 = vsel %vm2142_vm3, %v2080_v14, %v1635_v50  ;;  %5633 = vmatmul.mubr.bf16.vlgmr.msra.gmra.mxu1 %v8730_v40  ;;  %v15794_v50 = vrot.slane %v10148_v46, 1  ;;  %v16171_v28 = vrot.slane %v10162_v16, 1 }
 0x2e0   :  { %1918 = vrot.lane.b32.xlu0 %v10842_v62, %s8912_s4  ;;  %v3554_v56 = vmul.f32 %v3490_v48, %v3426_v31  ;;  %v10946_v36 = vsel %vm1245_vm2, %v16138_v2, %v1200_v53  ;;  %v3493_v48 = vld [vmem:[#allocation3 + $0x80] sm:$0xff]  ;;  %v1202_v31 = vrot.slane %v10075_v34, 1 }
 0x2e1   :  { %v1641_v21 = vpop.permute.xlu1 %1640  ;;  %v1891_v13 = vpop.permute.xlu0 %1890  ;;  %16139 = vst [vmem:[#allocation150_spill] sm:$0xff] %v10946_v36 }
 0x2e2   :  { %v8202_v32 = vpack.c.bf16 %v3554_v56, %v3554_v56  ;;  %v2210_v35 = vsel %vm2207_vm4, %v2145_v43, %v1891_v13  ;;  %v2083_v43 = vsel %vm505_vm0, %v10365_v39, %v10229_v30  ;;  %v16141_v39 = vrot.slane %v10058_v63, 7 }
 0x2e3   :  { %2950 = vrot.lane.b32.xlu1 %v10930_v7, %s8914_s2  ;;  %v2338_v14 = vmul.f32 %v2274_v54, %v2210_v35  ;;  %v2277_v35 = vld [vmem:[#allocation3 + $0x78] sm:$0xff]  ;;  %v2148_v54 = vsel %vm2142_vm3, %v2083_v43, %v1641_v21 }
 0x2e4   :  { %2756 = vrot.lane.b32.xlu0 %v10946_v36, %s8911_s3  ;;  %3874 = vst [vmem:[#allocation2 + $0x1c] sm:$0xf] %v8202_v32  ;;  %v10968_v32 = vsel %vm1245_vm2, %v1202_v31, %v15794_v50  ;;  %v10979_v21 = vsel %vm1116_vm1, %v16141_v39, %v1070_v38 }
 0x2e5   :  { %v2923_v44 = vpop.permute.xlu1 %2922  ;;  %v8138_v47 = vpack.c.bf16 %v2338_v14, %v2338_v14  ;;  %v2729_v56 = vpop.permute.xlu0 %2728  ;;  %16140 = vst [vmem:[#allocation151_spill] sm:$0xff] %v10968_v32 }
 0x2e6   :  { %v3365_v40 = vsel %vm2142_vm3, %v3301_v17, %v2923_v44  ;;  %v3300_v43 = vsel %vm505_vm0, %v9987_v11, %v2729_v56  ;;  %v2082_v56 = vsel %vm505_vm0, %v10420_v37, %v10305_v58  ;;  %v3495_v37 = vld [vmem:[#allocation3 + $0xb0] sm:$0xff] }
 0x2e7   :  { %v3429_v53 = vsel %vm2207_vm4, %v3365_v40, %v10241_v41  ;;  %1924 = vrot.lane.b32.xlu1 %v10866_v29, %s8912_s4  ;;  %2658 = vst [vmem:[#allocation2 + $0x18] sm:$0xf] %v8138_v47  ;;  %v15793_v47 = vrot.slane %v10105_v59, 7  ;;  %v16174_v41 = vld [vmem:[#allocation54_spill] sm:$0xff] }
 0x2e8   :  { %v3557_v13 = vmul.f32 %v3493_v48, %v3429_v53  ;;  %1666 = vrot.lane.b32.xlu0 %v10882_v25, %s8914_s2  ;;  %v1072_v53 = vrot.slane %v10148_v46, 7  ;;  %v16155_v25 = vrot.slane %v10148_v46, 1 }
 0x2e9   :  { %v1897_v2 = vpop.permute.xlu1 %1896  ;;  %v1639_v30 = vpop.permute.xlu0 %1638 }
 0x2ea   :  { %v8205_v17 = vpack.c.bf16 %v3557_v13, %v3557_v13  ;;  %v2213_v44 = vsel %vm2207_vm4, %v2148_v54, %v1897_v2  ;;  %v3492_v13 = vld [vmem:[#allocation3 + $0x68] sm:$0xff] }
 0x2eb   :  { %v2341_v14 = vmul.f32 %v2277_v35, %v2213_v44  ;;  %2762 = vrot.lane.b32.xlu1 %v10968_v32, %s8911_s3  ;;  %v8733_v54 = vld [vmem:[#allocation2 + $0x1c] ss:$12 sps:$4 sm:$0xff]   ;;  %v10994_v44 = vsel %vm1116_vm1, %v1072_v53, %v15793_v47  ;;  %v16142_v47 = vrot.slane %v10134_v24, 1 }
 0x2ec   :  { %3877 = vst [vmem:[#allocation2 + $0x40] sm:$0xf] %v8205_v17  ;;  %2948 = vrot.lane.b32.xlu0 %v10979_v21, %s8914_s2  ;;  %5640 = vmatprep.mubr.bf16.mxu1 %v8733_v54  ;;  %v1204_v54 = vrot.slane %v10105_v59, 1 }
 0x2ed   :  { %v8141_v48 = vpack.c.bf16 %v2341_v14, %v2341_v14  ;;  %v2735_v40 = vpop.permute.xlu1 %2734  ;;  %v2921_v35 = vpop.permute.xlu0 %2920 }
 0x2ee   :  { %v3364_v38 = vsel %vm2142_vm3, %v3300_v43, %v2921_v35  ;;  %v8735_v2 = vld [vmem:[#allocation2 + $0x18] ss:$12 sps:$4 sm:$0xff]   ;;  %v2147_v43 = vsel %vm2142_vm3, %v2082_v56, %v1639_v30  ;;  %v3303_v58 = vsel %vm505_vm0, %v9946_v51, %v2735_v40 }
 0x2ef   :  { %2661 = vst [vmem:[#allocation2 + $0x3c] sm:$0xf] %v8141_v48  ;;  %1672 = vrot.lane.b32.xlu1 %v10904_v23, %s8914_s2  ;;  %v3428_v14 = vsel %vm2207_vm4, %v3364_v38, %v10327_v60  ;;  %v2276_v48 = vld [vmem:[#allocation3 + $0x60] sm:$0xff]  ;;  %5641 = vmatmul.mubr.bf16.gmra.mxu1 %v8735_v2  ;;  %v11010_v38 = vsel %vm1245_vm2, %v16142_v47, %v1202_v31  ;;  %v16144_v31 = vld [vmem:[#allocation63_spill] sm:$0xff] }
 0x2f0   :  { %1922 = vrot.lane.b32.xlu0 %v10915_v19, %s8912_s4  ;;  %v3556_v39 = vmul.f32 %v3492_v13, %v3428_v14  ;;  %16143 = vst [vmem:[#allocation152_spill] sm:$0xff] %v11010_v38 }
 0x2f1   :  { %v1645_v17 = vpop.permute.xlu1 %1644  ;;  %v1895_v35 = vpop.permute.xlu0 %1894 }
 0x2f2   :  { %v8204_v50 = vpack.c.bf16 %v3556_v39, %v3556_v39  ;;  %v2212_v61 = vsel %vm2207_vm4, %v2147_v43, %v1895_v35  ;;  %v16145_v39 = vld [vmem:[#allocation60_spill] sm:$0xff]  ;;  %v16146_v43 = vld [vmem:[#allocation86_spill] sm:$0xff] }
 0x2f3   :  { %2954 = vrot.lane.b32.xlu1 %v10994_v44, %s8914_s2  ;;  %v2340_v14 = vmul.f32 %v2276_v48, %v2212_v61  ;;  %v2085_v35 = vsel %vm505_vm0, %v16146_v43, %v16145_v39  ;;  %v2279_v61 = vld [vmem:[#allocation3 + $0xa8] sm:$0xff]  ;;  %v16188_v39 = vrot.slane %v16158_v18, 1 }
 0x2f4   :  { %2760 = vrot.lane.b32.xlu0 %v11010_v38, %s8911_s3  ;;  %3876 = vst [vmem:[#allocation2 + $0x34] sm:$0xf] %v8204_v50  ;;  %v2150_v48 = vsel %vm2142_vm3, %v2085_v35, %v1645_v17  ;;  %v16149_v17 = vrot.slane %v10075_v34, 7  ;;  %v1074_v35 = vrot.slane %v10162_v16, 7 }
 0x2f5   :  { %v2927_v13 = vpop.permute.xlu1 %2926  ;;  %v8140_v40 = vpack.c.bf16 %v2340_v14, %v2340_v14  ;;  %v2733_v56 = vpop.permute.xlu0 %2732 }
 0x2f6   :  { %v3367_v2 = vsel %vm2142_vm3, %v3303_v58, %v2927_v13  ;;  %v16147_v58 = vrot.slane %v10162_v16, 1 }
 0x2f7   :  { %v3431_v47 = vsel %vm2207_vm4, %v3367_v2, %v16144_v31  ;;  %1928 = vrot.lane.b32.xlu1 %v10930_v7, %s8912_s4  ;;  %2660 = vst [vmem:[#allocation2 + $0x30] sm:$0xf] %v8140_v40 }
 0x2f8   :  { %v3559_v30 = vmul.f32 %v3495_v37, %v3431_v47  ;;  %v11032_v50 = vsel %vm1245_vm2, %v1204_v54, %v16147_v58  ;;  %1670 = vrot.lane.b32.xlu0 %v10946_v36, %s8914_s2  ;;  %v11043_v47 = vsel %vm1116_vm1, %v16149_v17, %v1072_v53  ;;  %v16150_v58 = vld [vmem:[#allocation48_spill] sm:$0xff] }
 0x2f9   :  { %v1901_v49 = vpop.permute.xlu1 %1900  ;;  %16148 = vst [vmem:[#allocation86_spill] sm:$0xff] %v11032_v50  ;;  %v1643_v37 = vpop.permute.xlu0 %1642  ;;  %v16154_v36 = vld [vmem:[#allocation92_spill] sm:$0xff]  ;;  %v1206_v4 = vrot.slane %v16150_v58, 1 }
 0x2fa   :  { %v8207_v13 = vpack.c.bf16 %v3559_v30, %v3559_v30  ;;  %v2215_v14 = vsel %vm2207_vm4, %v2150_v48, %v1901_v49  ;;  %v15804_v30 = vrot.slane %v16150_v58, 7  ;;  %v16151_v49 = vld [vmem:[#allocation10_spill] sm:$0xff]  ;;  %v3494_v48 = vld [vmem:[#allocation3 + $0x98] sm:$0xff] }
 0x2fb   :  { %v2343_v2 = vmul.f32 %v2279_v61, %v2215_v14  ;;  %2766 = vrot.lane.b32.xlu1 %v11032_v50, %s8911_s3  ;;  %v3302_v61 = vsel %vm505_vm0, %v16151_v49, %v2733_v56  ;;  %v8736_v14 = vld [vmem:[#allocation2 + $0x34] ss:$12 sps:$4 sm:$0xff]   ;;  %v16153_v56 = vld [vmem:[#allocation72_spill] sm:$0xff] }
 0x2fc   :  { %3879 = vst [vmem:[#allocation2 + $0x58] sm:$0xf] %v8207_v13  ;;  %2952 = vrot.lane.b32.xlu0 %v11043_v47, %s8914_s2  ;;  %v11058_v0 = vsel %vm1116_vm1, %v1074_v35, %v15804_v30  ;;  %5648 = vmatprep.mubr.bf16.mxu1 %v8736_v14 }
 0x2fd   :  { %v8143_v43 = vpack.c.bf16 %v2343_v2, %v2343_v2  ;;  %v2739_v40 = vpop.permute.xlu1 %2738  ;;  %v2925_v13 = vpop.permute.xlu0 %2924 }
 0x2fe   :  { %v3366_v53 = vsel %vm2142_vm3, %v3302_v61, %v2925_v13  ;;  %v8738_v2 = vld [vmem:[#allocation2 + $0x30] ss:$12 sps:$4 sm:$0xff]  }
 0x2ff   :  { %2663 = vst [vmem:[#allocation2 + $0x54] sm:$0xf] %v8143_v43  ;;  %1676 = vrot.lane.b32.xlu1 %v10968_v32, %s8914_s2  ;;  %v16152_v43 = vld [vmem:[#allocation75_spill] sm:$0xff]  ;;  %v2084_v32 = vsel %vm505_vm0, %v16154_v36, %v16153_v56  ;;  %5649 = vmatmul.mubr.bf16.gmra.mxu1 %v8738_v2  ;;  %v16157_v36 = vld [vmem:[#allocation13_spill] sm:$0xff] }
 0x300   :  { %v3430_v10 = vsel %vm2207_vm4, %v3366_v53, %v16152_v43  ;;  %1926 = vrot.lane.b32.xlu0 %v10979_v21, %s8912_s4  ;;  %v2278_v13 = vld [vmem:[#allocation3 + $0x90] sm:$0xff]  ;;  %v2149_v23 = vsel %vm2142_vm3, %v2084_v32, %v1643_v37  ;;  %v11074_v53 = vsel %vm1245_vm2, %v16155_v25, %v1204_v54 }
 0x301   :  { %v1649_v17 = vpop.permute.xlu1 %1648  ;;  %v3558_v61 = vmul.f32 %v3494_v48, %v3430_v10  ;;  %v1899_v30 = vpop.permute.xlu0 %1898  ;;  %16156 = vst [vmem:[#allocation48_spill] sm:$0xff] %v11074_v53  ;;  %v3305_v10 = vsel %vm505_vm0, %v16157_v36, %v2739_v40  ;;  %v3497_v48 = vld [vmem:[#allocation3 + $0xe0] sm:$0xff]  ;;  %v16159_v25 = vld [vmem:[#allocation67_spill] sm:$0xff] }
 0x302   :  { %v2214_v52 = vsel %vm2207_vm4, %v2149_v23, %v1899_v30  ;;  %v16160_v30 = vld [vmem:[#allocation65_spill] sm:$0xff] }
 0x303   :  { %2958 = vrot.lane.b32.xlu1 %v11058_v0, %s8914_s2  ;;  %v8206_v45 = vpack.c.bf16 %v3558_v61, %v3558_v61  ;;  %v2342_v37 = vmul.f32 %v2278_v13, %v2214_v52  ;;  %v16161_v61 = vld [vmem:[#allocation96_spill] sm:$0xff] }
 0x304   :  { %2764 = vrot.lane.b32.xlu0 %v11074_v53, %s8911_s3  ;;  %v2087_v43 = vsel %vm505_vm0, %v16161_v61, %v16160_v30  ;;  %v2281_v52 = vld [vmem:[#allocation3 + $0xd8] sm:$0xff]  ;;  %v1076_v61 = vrot.slane %v16158_v18, 7 }
 0x305   :  { %v2931_v14 = vpop.permute.xlu1 %2930  ;;  %3878 = vst [vmem:[#allocation2 + $0x4c] sm:$0xf] %v8206_v45  ;;  %v8142_v23 = vpack.c.bf16 %v2342_v37, %v2342_v37  ;;  %v2737_v40 = vpop.permute.xlu0 %2736  ;;  %v2152_v13 = vsel %vm2142_vm3, %v2087_v43, %v1649_v17  ;;  %v16164_v17 = vrot.slane %v10105_v59, 7 }
 0x306   :  { %v3369_v2 = vsel %vm2142_vm3, %v3305_v10, %v2931_v14  ;;  %v16162_v10 = vrot.slane %v16158_v18, 1 }
 0x307   :  { %v3433_v54 = vsel %vm2207_vm4, %v3369_v2, %v16159_v25  ;;  %1932 = vrot.lane.b32.xlu1 %v10994_v44, %s8912_s4  ;;  %2662 = vst [vmem:[#allocation2 + $0x48] sm:$0xf] %v8142_v23  ;;  %v11107_v43 = vsel %vm1116_vm1, %v16164_v17, %v1074_v35 }
 0x308   :  { %v3561_v32 = vmul.f32 %v3497_v48, %v3433_v54  ;;  %v11096_v45 = vsel %vm1245_vm2, %v1206_v4, %v16162_v10  ;;  %1674 = vrot.lane.b32.xlu0 %v11010_v38, %s8914_s2  ;;  %16165 = vst [vmem:[#allocation92_spill] sm:$0xff] %v11107_v43  ;;  %v16166_v10 = vld [vmem:[#allocation49_spill] sm:$0xff] }
 0x309   :  { %v1905_v31 = vpop.permute.xlu1 %1904  ;;  %16163 = vst [vmem:[#allocation10_spill] sm:$0xff] %v11096_v45  ;;  %v1647_v48 = vpop.permute.xlu0 %1646 }
 0x30a   :  { %v8209_v14 = vpack.c.bf16 %v3561_v32, %v3561_v32  ;;  %v2217_v37 = vsel %vm2207_vm4, %v2152_v13, %v1905_v31  ;;  %v15813_v32 = vrot.slane %v16166_v10, 7  ;;  %v16167_v31 = vld [vmem:[#allocation12_spill] sm:$0xff]  ;;  %v3496_v13 = vld [vmem:[#allocation3 + $0xc8] sm:$0xff] }
 0x30b   :  { %v2345_v2 = vmul.f32 %v2281_v52, %v2217_v37  ;;  %2770 = vrot.lane.b32.xlu1 %v11096_v45, %s8911_s3  ;;  %v3304_v52 = vsel %vm505_vm0, %v16167_v31, %v2737_v40  ;;  %v16170_v40 = vld [vmem:[#allocation78_spill] sm:$0xff] }
 0x30c   :  { %3881 = vst [vmem:[#allocation2 + $0x70] sm:$0xf] %v8209_v14  ;;  %2956 = vrot.lane.b32.xlu0 %v11107_v43, %s8914_s2  ;;  %v8739_v37 = vld [vmem:[#allocation2 + $0x4c] ss:$12 sps:$4 sm:$0xff]   ;;  %v11122_v38 = vsel %vm1116_vm1, %v1076_v61, %v15813_v32 }
 0x30d   :  { %v8145_v54 = vpack.c.bf16 %v2345_v2, %v2345_v2  ;;  %v2743_v23 = vpop.permute.xlu1 %2742  ;;  %v2929_v14 = vpop.permute.xlu0 %2928  ;;  %16168 = vst [vmem:[#allocation13_spill] sm:$0xff] %v11122_v38  ;;  %5656 = vmatprep.mubr.bf16.mxu1 %v8739_v37 }
 0x30e   :  { %v3368_v35 = vsel %vm2142_vm3, %v3304_v52, %v2929_v14  ;;  %v8741_v2 = vld [vmem:[#allocation2 + $0x48] ss:$12 sps:$4 sm:$0xff]   ;;  %v2280_v14 = vld [vmem:[#allocation3 + $0xc0] sm:$0xff] }
 0x30f   :  { %2665 = vst [vmem:[#allocation2 + $0x6c] sm:$0xf] %v8145_v54  ;;  %1680 = vrot.lane.b32.xlu1 %v11032_v50, %s8914_s2  ;;  %v16169_v54 = vld [vmem:[#allocation81_spill] sm:$0xff]  ;;  %v2086_v50 = vsel %vm505_vm0, %v10548_v22, %v16170_v40  ;;  %5657 = vmatmul.mubr.bf16.gmra.mxu1 %v8741_v2  ;;  %v1208_v40 = vrot.slane %v16166_v10, 1 }
 0x310   :  { %v3432_v25 = vsel %vm2207_vm4, %v3368_v35, %v16169_v54  ;;  %1930 = vrot.lane.b32.xlu0 %v11043_v47, %s8912_s4  ;;  %v2151_v60 = vsel %vm2142_vm3, %v2086_v50, %v1647_v48  ;;  %v11138_v35 = vsel %vm1245_vm2, %v16171_v28, %v1206_v4  ;;  %v16173_v22 = vld [vmem:[#allocation9_spill] sm:$0xff] }
 0x311   :  { %v1653_v17 = vpop.permute.xlu1 %1652  ;;  %v3560_v52 = vmul.f32 %v3496_v13, %v3432_v25  ;;  %v1903_v32 = vpop.permute.xlu0 %1902  ;;  %16172 = vst [vmem:[#allocation96_spill] sm:$0xff] %v11138_v35  ;;  %v3307_v25 = vsel %vm505_vm0, %v16173_v22, %v2743_v23  ;;  %v3499_v13 = vld [vmem:[#allocation3 + $0x110] sm:$0xff]  ;;  %v16175_v28 = vld [vmem:[#allocation73_spill] sm:$0xff]  ;;  %v16177_v23 = vld [vmem:[#allocation106_spill] sm:$0xff] }
 0x312   :  { %v2216_v56 = vsel %vm2207_vm4, %v2151_v60, %v1903_v32  ;;  %v16176_v60 = vld [vmem:[#allocation70_spill] sm:$0xff] }
 0x313   :  { %2962 = vrot.lane.b32.xlu1 %v11122_v38, %s8914_s2  ;;  %v8208_v54 = vpack.c.bf16 %v3560_v52, %v3560_v52  ;;  %v2344_v48 = vmul.f32 %v2280_v14, %v2216_v56  ;;  %v2089_v32 = vsel %vm505_vm0, %v16177_v23, %v16176_v60  ;;  %v2283_v56 = vld [vmem:[#allocation3 + $0x108] sm:$0xff] }
 0x314   :  { %2768 = vrot.lane.b32.xlu0 %v11138_v35, %s8911_s3  ;;  %v2154_v14 = vsel %vm2142_vm3, %v2089_v32, %v1653_v17  ;;  %v16180_v17 = vrot.slane %v16150_v58, 7 }
 0x315   :  { %v2935_v37 = vpop.permute.xlu1 %2934  ;;  %3880 = vst [vmem:[#allocation2 + $0x64] sm:$0xf] %v8208_v54  ;;  %v8144_v52 = vpack.c.bf16 %v2344_v48, %v2344_v48  ;;  %v2741_v27 = vpop.permute.xlu0 %2740 }
 0x316   :  { %v3371_v2 = vsel %vm2142_vm3, %v3307_v25, %v2935_v37  ;;  %v16178_v25 = vrot.slane %v16174_v41, 1 }
 0x317   :  { %v3435_v4 = vsel %vm2207_vm4, %v3371_v2, %v16175_v28  ;;  %1936 = vrot.lane.b32.xlu1 %v11058_v0, %s8912_s4  ;;  %2664 = vst [vmem:[#allocation2 + $0x60] sm:$0xf] %v8144_v52  ;;  %v1078_v52 = vrot.slane %v16174_v41, 7 }
 0x318   :  { %v3563_v50 = vmul.f32 %v3499_v13, %v3435_v4  ;;  %v11160_v54 = vsel %vm1245_vm2, %v1208_v40, %v16178_v25  ;;  %1678 = vrot.lane.b32.xlu0 %v11074_v53, %s8914_s2  ;;  %v11171_v4 = vsel %vm1116_vm1, %v16180_v17, %v1076_v61  ;;  %v16182_v25 = vld [vmem:[#allocation50_spill] sm:$0xff] }
 0x319   :  { %v1909_v30 = vpop.permute.xlu1 %1908  ;;  %16179 = vst [vmem:[#allocation49_spill] sm:$0xff] %v11160_v54  ;;  %v1651_v13 = vpop.permute.xlu0 %1650  ;;  %16181 = vst [vmem:[#allocation12_spill] sm:$0xff] %v11171_v4 }
 0x31a   :  { %v8211_v37 = vpack.c.bf16 %v3563_v50, %v3563_v50  ;;  %v2219_v2 = vsel %vm2207_vm4, %v2154_v14, %v1909_v30  ;;  %v15820_v50 = vrot.slane %v16182_v25, 7  ;;  %v16183_v30 = vld [vmem:[#allocation16_spill] sm:$0xff] }
 0x31b   :  { %v2347_v48 = vmul.f32 %v2283_v56, %v2219_v2  ;;  %2774 = vrot.lane.b32.xlu1 %v11160_v54, %s8911_s3  ;;  %v3306_v56 = vsel %vm505_vm0, %v16183_v30, %v2741_v27  ;;  %v3498_v14 = vld [vmem:[#allocation3 + $0xf8] sm:$0xff]  ;;  %v16186_v27 = vld [vmem:[#allocation83_spill] sm:$0xff] }
 0x31c   :  { %3883 = vst [vmem:[#allocation2 + $0x88] sm:$0xf] %v8211_v37  ;;  %2960 = vrot.lane.b32.xlu0 %v11171_v4, %s8914_s2  ;;  %v8742_v2 = vld [vmem:[#allocation2 + $0x64] ss:$12 sps:$4 sm:$0xff]   ;;  %v11186_v53 = vsel %vm1116_vm1, %v1078_v52, %v15820_v50 }
 0x31d   :  { %v8147_v23 = vpack.c.bf16 %v2347_v48, %v2347_v48  ;;  %v2747_v32 = vpop.permute.xlu1 %2746  ;;  %v2933_v37 = vpop.permute.xlu0 %2932  ;;  %16184 = vst [vmem:[#allocation9_spill] sm:$0xff] %v11186_v53  ;;  %5664 = vmatprep.mubr.bf16.mxu1 %v8742_v2  ;;  %v1210_v2 = vrot.slane %v16182_v25, 1 }
 0x31e   :  { %v3370_v61 = vsel %vm2142_vm3, %v3306_v56, %v2933_v37  ;;  %v8744_v48 = vld [vmem:[#allocation2 + $0x60] ss:$12 sps:$4 sm:$0xff]   ;;  %v2282_v37 = vld [vmem:[#allocation3 + $0xf0] sm:$0xff] }
 0x31f   :  { %2667 = vst [vmem:[#allocation2 + $0x84] sm:$0xf] %v8147_v23  ;;  %1684 = vrot.lane.b32.xlu1 %v11096_v45, %s8914_s2  ;;  %v16185_v23 = vld [vmem:[#allocation87_spill] sm:$0xff]  ;;  %v16187_v45 = vld [vmem:[#allocation114_spill] sm:$0xff]  ;;  %5665 = vmatmul.mubr.bf16.gmra.mxu1 %v8744_v48 }
 0x320   :  { %v3434_v28 = vsel %vm2207_vm4, %v3370_v61, %v16185_v23  ;;  %1934 = vrot.lane.b32.xlu0 %v11107_v43, %s8912_s4  ;;  %v2088_v60 = vsel %vm505_vm0, %v16187_v45, %v16186_v27  ;;  %v11202_v61 = vsel %vm1245_vm2, %v16188_v39, %v1208_v40  ;;  %v3309_v45 = vsel %vm505_vm0, %v10015_v6, %v2747_v32  ;;  %v16190_v27 = vld [vmem:[#allocation57_spill] sm:$0xff]  ;;  %v16191_v39 = vld [vmem:[#allocation80_spill] sm:$0xff]  ;;  %v16193_v32 = vld [vmem:[#allocation118_spill] sm:$0xff] }
 0x321   :  { %v1657_v17 = vpop.permute.xlu1 %1656  ;;  %v3562_v56 = vmul.f32 %v3498_v14, %v3434_v28  ;;  %v2153_v26 = vsel %vm2142_vm3, %v2088_v60, %v1651_v13  ;;  %v1907_v50 = vpop.permute.xlu0 %1906  ;;  %16189 = vst [vmem:[#allocation106_spill] sm:$0xff] %v11202_v61  ;;  %v3501_v28 = vld [vmem:[#allocation3 + $0x140] sm:$0xff] }
 0x322   :  { %v2218_v43 = vsel %vm2207_vm4, %v2153_v26, %v1907_v50  ;;  %v16192_v26 = vld [vmem:[#allocation76_spill] sm:$0xff] }
 0x323   :  { %2966 = vrot.lane.b32.xlu1 %v11186_v53, %s8914_s2  ;;  %v8210_v23 = vpack.c.bf16 %v3562_v56, %v3562_v56  ;;  %v2346_v13 = vmul.f32 %v2282_v37, %v2218_v43  ;;  %v2091_v50 = vsel %vm505_vm0, %v16193_v32, %v16192_v26  ;;  %v2285_v43 = vld [vmem:[#allocation3 + $0x138] sm:$0xff] }
 0x324   :  { %2772 = vrot.lane.b32.xlu0 %v11202_v61, %s8911_s3  ;;  %v2156_v37 = vsel %vm2142_vm3, %v2091_v50, %v1657_v17  ;;  %v16196_v17 = vrot.slane %v16166_v10, 7 }
 0x325   :  { %v2939_v14 = vpop.permute.xlu1 %2938  ;;  %3882 = vst [vmem:[#allocation2 + $0x7c] sm:$0xf] %v8210_v23  ;;  %v8146_v56 = vpack.c.bf16 %v2346_v13, %v2346_v13  ;;  %v2745_v18 = vpop.permute.xlu0 %2744 }
 0x326   :  { %v3373_v48 = vsel %vm2142_vm3, %v3309_v45, %v2939_v14  ;;  %v16194_v45 = vrot.slane %v16190_v27, 1 }
 0x327   :  { %v3437_v40 = vsel %vm2207_vm4, %v3373_v48, %v16191_v39  ;;  %1940 = vrot.lane.b32.xlu1 %v11122_v38, %s8912_s4  ;;  %2666 = vst [vmem:[#allocation2 + $0x78] sm:$0xf] %v8146_v56  ;;  %v1080_v56 = vrot.slane %v16190_v27, 7  ;;  %v16202_v38 = vrot.slane %v16174_v41, 1 }
 0x328   :  { %v3565_v60 = vmul.f32 %v3501_v28, %v3437_v40  ;;  %v11224_v23 = vsel %vm1245_vm2, %v1210_v2, %v16194_v45  ;;  %1682 = vrot.lane.b32.xlu0 %v11138_v35, %s8914_s2  ;;  %v11235_v40 = vsel %vm1116_vm1, %v16196_v17, %v1078_v52  ;;  %v16198_v45 = vld [vmem:[#allocation51_spill] sm:$0xff] }
 0x329   :  { %v1913_v6 = vpop.permute.xlu1 %1912  ;;  %16195 = vst [vmem:[#allocation50_spill] sm:$0xff] %v11224_v23  ;;  %v1655_v28 = vpop.permute.xlu0 %1654  ;;  %16197 = vst [vmem:[#allocation16_spill] sm:$0xff] %v11235_v40 }
 0x32a   :  { %v8213_v14 = vpack.c.bf16 %v3565_v60, %v3565_v60  ;;  %v2221_v48 = vsel %vm2207_vm4, %v2156_v37, %v1913_v6  ;;  %v15826_v60 = vrot.slane %v16198_v45, 7  ;;  %v16199_v6 = vld [vmem:[#allocation11_spill] sm:$0xff]  ;;  %v3500_v37 = vld [vmem:[#allocation3 + $0x128] sm:$0xff] }
 0x32b   :  { %v2349_v13 = vmul.f32 %v2285_v43, %v2221_v48  ;;  %2778 = vrot.lane.b32.xlu1 %v11224_v23, %s8911_s3  ;;  %v3308_v43 = vsel %vm505_vm0, %v16199_v6, %v2745_v18  ;;  %v16201_v18 = vld [vmem:[#allocation89_spill] sm:$0xff] }
 0x32c   :  { %3885 = vst [vmem:[#allocation2 + $0xa0] sm:$0xf] %v8213_v14  ;;  %2964 = vrot.lane.b32.xlu0 %v11235_v40, %s8914_s2  ;;  %v8745_v48 = vld [vmem:[#allocation2 + $0x7c] ss:$12 sps:$4 sm:$0xff]   ;;  %v11250_v35 = vsel %vm1116_vm1, %v1080_v56, %v15826_v60 }
 0x32d   :  { %v8149_v32 = vpack.c.bf16 %v2349_v13, %v2349_v13  ;;  %v2751_v50 = vpop.permute.xlu1 %2750  ;;  %v2937_v14 = vpop.permute.xlu0 %2936  ;;  %5672 = vmatprep.mubr.bf16.mxu1 %v8745_v48  ;;  %v1212_v48 = vrot.slane %v16198_v45, 1 }
 0x32e   :  { %v3372_v52 = vsel %vm2142_vm3, %v3308_v43, %v2937_v14  ;;  %v8747_v13 = vld [vmem:[#allocation2 + $0x78] ss:$12 sps:$4 sm:$0xff]  }
 0x32f   :  { %2669 = vst [vmem:[#allocation2 + $0x9c] sm:$0xf] %v8149_v32  ;;  %1688 = vrot.lane.b32.xlu1 %v11160_v54, %s8914_s2  ;;  %v16200_v32 = vld [vmem:[#allocation91_spill] sm:$0xff]  ;;  %v2090_v54 = vsel %vm505_vm0, %v10652_v15, %v16201_v18  ;;  %v2284_v14 = vld [vmem:[#allocation3 + $0x120] sm:$0xff]  ;;  %5673 = vmatmul.mubr.bf16.gmra.mxu1 %v8747_v13  ;;  %v3311_v15 = vsel %vm505_vm0, %v10030_v57, %v2751_v50 }
 0x330   :  { %v3436_v39 = vsel %vm2207_vm4, %v3372_v52, %v16200_v32  ;;  %1938 = vrot.lane.b32.xlu0 %v11171_v4, %s8912_s4  ;;  %v2155_v26 = vsel %vm2142_vm3, %v2090_v54, %v1655_v28  ;;  %v11266_v52 = vsel %vm1245_vm2, %v16202_v38, %v1210_v2  ;;  %v16204_v18 = vld [vmem:[#allocation61_spill] sm:$0xff] }
 0x331   :  { %v1661_v17 = vpop.permute.xlu1 %1660  ;;  %v3564_v43 = vmul.f32 %v3500_v37, %v3436_v39  ;;  %v1911_v60 = vpop.permute.xlu0 %1910  ;;  %16203 = vst [vmem:[#allocation114_spill] sm:$0xff] %v11266_v52  ;;  %v3503_v39 = vld [vmem:[#allocation3 + $0x170] sm:$0xff]  ;;  %v16205_v38 = vld [vmem:[#allocation85_spill] sm:$0xff] }
 0x332   :  { %v2220_v4 = vsel %vm2207_vm4, %v2155_v26, %v1911_v60  ;;  %v16206_v26 = vld [vmem:[#allocation82_spill] sm:$0xff] }
 0x333   :  { %2970 = vrot.lane.b32.xlu1 %v11250_v35, %s8914_s2  ;;  %v8212_v32 = vpack.c.bf16 %v3564_v43, %v3564_v43  ;;  %v2348_v28 = vmul.f32 %v2284_v14, %v2220_v4  ;;  %v2093_v50 = vsel %vm505_vm0, %v10670_v20, %v16206_v26  ;;  %v2287_v4 = vld [vmem:[#allocation3 + $0x168] sm:$0xff]  ;;  %v16215_v26 = vrot.slane %v16190_v27, 1 }
 0x334   :  { %2776 = vrot.lane.b32.xlu0 %v11266_v52, %s8911_s3  ;;  %v2158_v14 = vsel %vm2142_vm3, %v2093_v50, %v1661_v17  ;;  %v16209_v17 = vrot.slane %v16182_v25, 7 }
 0x335   :  { %v2943_v37 = vpop.permute.xlu1 %2942  ;;  %3884 = vst [vmem:[#allocation2 + $0x94] sm:$0xf] %v8212_v32  ;;  %v8148_v60 = vpack.c.bf16 %v2348_v28, %v2348_v28  ;;  %v2749_v43 = vpop.permute.xlu0 %2748 }
 0x336   :  { %v3375_v13 = vsel %vm2142_vm3, %v3311_v15, %v2943_v37  ;;  %v16207_v15 = vrot.slane %v16204_v18, 1 }
 0x337   :  { %v3439_v2 = vsel %vm2207_vm4, %v3375_v13, %v16205_v38  ;;  %1944 = vrot.lane.b32.xlu1 %v11186_v53, %s8912_s4  ;;  %2668 = vst [vmem:[#allocation2 + $0x90] sm:$0xf] %v8148_v60  ;;  %v11299_v13 = vsel %vm1116_vm1, %v16209_v17, %v1080_v56  ;;  %v16212_v17 = vld [vmem:[#allocation97_spill] sm:$0xff] }
 0x338   :  { %v3567_v54 = vmul.f32 %v3503_v39, %v3439_v2  ;;  %v11288_v32 = vsel %vm1245_vm2, %v1212_v48, %v16207_v15  ;;  %1686 = vrot.lane.b32.xlu0 %v11202_v61, %s8914_s2  ;;  %16210 = vst [vmem:[#allocation51_spill] sm:$0xff] %v11299_v13 }
 0x339   :  { %v1917_v41 = vpop.permute.xlu1 %1916  ;;  %16208 = vst [vmem:[#allocation118_spill] sm:$0xff] %v11288_v32  ;;  %v1659_v39 = vpop.permute.xlu0 %1658 }
 0x33a   :  { %v8215_v37 = vpack.c.bf16 %v3567_v54, %v3567_v54  ;;  %v2223_v20 = vsel %vm2207_vm4, %v2158_v14, %v1917_v41  ;;  %v1082_v54 = vrot.slane %v16204_v18, 7  ;;  %v16211_v41 = vld [vmem:[#allocation53_spill] sm:$0xff]  ;;  %v3502_v14 = vld [vmem:[#allocation3 + $0x158] sm:$0xff] }
 0x33b   :  { %v2351_v28 = vmul.f32 %v2287_v4, %v2223_v20  ;;  %2782 = vrot.lane.b32.xlu1 %v11288_v32, %s8911_s3  ;;  %v15832_v60 = vrot.slane %v16211_v41, 7  ;;  %v3310_v4 = vsel %vm505_vm0, %v10065_v42, %v2749_v43  ;;  %v16213_v43 = vld [vmem:[#allocation94_spill] sm:$0xff] }
 0x33c   :  { %3887 = vst [vmem:[#allocation2 + $0xb8] sm:$0xf] %v8215_v37  ;;  %2968 = vrot.lane.b32.xlu0 %v11299_v13, %s8914_s2  ;;  %v8748_v37 = vld [vmem:[#allocation2 + $0x94] ss:$12 sps:$4 sm:$0xff]  }
 0x33d   :  { %v8151_v2 = vpack.c.bf16 %v2351_v28, %v2351_v28  ;;  %v2755_v50 = vpop.permute.xlu1 %2754  ;;  %v2941_v15 = vpop.permute.xlu0 %2940  ;;  %5680 = vmatprep.mubr.bf16.mxu1 %v8748_v37  ;;  %v1214_v37 = vrot.slane %v16211_v41, 1 }
 0x33e   :  { %v3374_v56 = vsel %vm2142_vm3, %v3310_v4, %v2941_v15  ;;  %v8750_v20 = vld [vmem:[#allocation2 + $0x90] ss:$12 sps:$4 sm:$0xff]  }
 0x33f   :  { %2671 = vst [vmem:[#allocation2 + $0xb4] sm:$0xf] %v8151_v2  ;;  %1692 = vrot.lane.b32.xlu1 %v11224_v23, %s8914_s2  ;;  %v3438_v61 = vsel %vm2207_vm4, %v3374_v56, %v16212_v17  ;;  %v11318_v2 = vsel %vm1116_vm1, %v1082_v54, %v15832_v60  ;;  %v16214_v23 = vld [vmem:[#allocation135_spill] sm:$0xff]  ;;  %5681 = vmatmul.mubr.bf16.gmra.mxu1 %v8750_v20 }
 0x340   :  { %1942 = vrot.lane.b32.xlu0 %v11235_v40, %s8912_s4  ;;  %v2092_v38 = vsel %vm505_vm0, %v16214_v23, %v16213_v43  ;;  %v3566_v4 = vmul.f32 %v3502_v14, %v3438_v61  ;;  %v2286_v15 = vld [vmem:[#allocation3 + $0x150] sm:$0xff]  ;;  %v11330_v60 = vsel %vm1245_vm2, %v16215_v26, %v1212_v48  ;;  %v3313_v61 = vsel %vm505_vm0, %v10044_v1, %v2755_v50  ;;  %v3505_v23 = vld [vmem:[#allocation3 + $0x1a0] sm:$0xff]  ;;  %v16217_v43 = vld [vmem:[#allocation74_spill] sm:$0xff] }
 0x341   :  { %v1665_v28 = vpop.permute.xlu1 %1664  ;;  %v2157_v56 = vsel %vm2142_vm3, %v2092_v38, %v1659_v39  ;;  %16216 = vst [vmem:[#allocation11_spill] sm:$0xff] %v11330_v60  ;;  %v16218_v48 = vld [vmem:[#allocation90_spill] sm:$0xff]  ;;  %v16219_v50 = vld [vmem:[#allocation88_spill] sm:$0xff] }
 0x342   :  { %v1915_v17 = vpop.permute.xlu0 %1914  ;;  %v8214_v40 = vpack.c.bf16 %v3566_v4, %v3566_v4 }
 0x343   :  { %2974 = vrot.lane.b32.xlu1 %v11318_v2, %s8914_s2  ;;  %v2222_v53 = vsel %vm2207_vm4, %v2157_v56, %v1915_v17  ;;  %v2095_v17 = vsel %vm505_vm0, %v10734_v55, %v16219_v50 }
 0x344   :  { %v2350_v39 = vmul.f32 %v2286_v15, %v2222_v53  ;;  %2780 = vrot.lane.b32.xlu0 %v11330_v60, %s8911_s3  ;;  %3886 = vst [vmem:[#allocation2 + $0xac] sm:$0xf] %v8214_v40  ;;  %v2289_v53 = vld [vmem:[#allocation3 + $0x198] sm:$0xff]  ;;  %v2160_v15 = vsel %vm2142_vm3, %v2095_v17, %v1665_v28  ;;  %v16222_v28 = vrot.slane %v16198_v45, 7 }
 0x345   :  { %v2947_v14 = vpop.permute.xlu1 %2946 }
 0x346   :  { %v3377_v20 = vsel %vm2142_vm3, %v3313_v61, %v2947_v14  ;;  %v8150_v4 = vpack.c.bf16 %v2350_v39, %v2350_v39  ;;  %v2753_v56 = vpop.permute.xlu0 %2752  ;;  %v16220_v61 = vrot.slane %v16217_v43, 1 }
 0x347   :  { %v3441_v26 = vsel %vm2207_vm4, %v3377_v20, %v16218_v48  ;;  %1948 = vrot.lane.b32.xlu1 %v11250_v35, %s8912_s4  ;;  %v11363_v20 = vsel %vm1116_vm1, %v16222_v28, %v1082_v54  ;;  %v16224_v28 = vld [vmem:[#allocation102_spill] sm:$0xff]  ;;  %v16226_v48 = vrot.slane %v16204_v18, 1 }
 0x348   :  { %v3569_v38 = vmul.f32 %v3505_v23, %v3441_v26  ;;  %v11352_v40 = vsel %vm1245_vm2, %v1214_v37, %v16220_v61  ;;  %2670 = vst [vmem:[#allocation2 + $0xa8] sm:$0xf] %v8150_v4  ;;  %1690 = vrot.lane.b32.xlu0 %v11266_v52, %s8914_s2 }
 0x349   :  { %v1921_v27 = vpop.permute.xlu1 %1920  ;;  %16221 = vst [vmem:[#allocation61_spill] sm:$0xff] %v11352_v40 }
 0x34a   :  { %v8217_v14 = vpack.c.bf16 %v3569_v38, %v3569_v38  ;;  %v2225_v55 = vsel %vm2207_vm4, %v2160_v15, %v1921_v27  ;;  %v1663_v23 = vpop.permute.xlu0 %1662  ;;  %v1084_v38 = vrot.slane %v16217_v43, 7  ;;  %v16223_v27 = vld [vmem:[#allocation62_spill] sm:$0xff] }
 0x34b   :  { %v2353_v39 = vmul.f32 %v2289_v53, %v2225_v55  ;;  %2786 = vrot.lane.b32.xlu1 %v11352_v40, %s8911_s3  ;;  %v15838_v4 = vrot.slane %v16223_v27, 7  ;;  %v3312_v53 = vsel %vm505_vm0, %v10085_v33, %v2753_v56  ;;  %v3504_v15 = vld [vmem:[#allocation3 + $0x188] sm:$0xff]  ;;  %v16225_v56 = vld [vmem:[#allocation99_spill] sm:$0xff] }
 0x34c   :  { %3889 = vst [vmem:[#allocation2 + $0xd0] sm:$0xf] %v8217_v14  ;;  %2972 = vrot.lane.b32.xlu0 %v11363_v20, %s8914_s2  ;;  %v8751_v14 = vld [vmem:[#allocation2 + $0xac] ss:$12 sps:$4 sm:$0xff]  }
 0x34d   :  { %v8153_v26 = vpack.c.bf16 %v2353_v39, %v2353_v39  ;;  %v2759_v17 = vpop.permute.xlu1 %2758  ;;  %5688 = vmatprep.mubr.bf16.mxu1 %v8751_v14 }
 0x34e   :  { %v2945_v61 = vpop.permute.xlu0 %2944 }
 0x34f   :  { %2673 = vst [vmem:[#allocation2 + $0xcc] sm:$0xf] %v8153_v26  ;;  %1696 = vrot.lane.b32.xlu1 %v11288_v32, %s8914_s2  ;;  %v3376_v54 = vsel %vm2142_vm3, %v3312_v53, %v2945_v61  ;;  %v8753_v55 = vld [vmem:[#allocation2 + $0xa8] ss:$12 sps:$4 sm:$0xff]   ;;  %v11382_v26 = vsel %vm1116_vm1, %v1084_v38, %v15838_v4  ;;  %v2094_v32 = vsel %vm505_vm0, %v10776_v9, %v16225_v56  ;;  %v2288_v61 = vld [vmem:[#allocation3 + $0x180] sm:$0xff] }
 0x350   :  { %v3440_v52 = vsel %vm2207_vm4, %v3376_v54, %v16224_v28  ;;  %1946 = vrot.lane.b32.xlu0 %v11299_v13, %s8912_s4  ;;  %v2159_v54 = vsel %vm2142_vm3, %v2094_v32, %v1663_v23  ;;  %5689 = vmatmul.mubr.bf16.gmra.mxu1 %v8753_v55  ;;  %v11394_v4 = vsel %vm1245_vm2, %v16226_v48, %v1214_v37  ;;  %v16228_v23 = vld [vmem:[#allocation95_spill] sm:$0xff]  ;;  %v16229_v37 = vld [vmem:[#allocation93_spill] sm:$0xff] }
 0x351   :  { %v1669_v39 = vpop.permute.xlu1 %1668  ;;  %v3568_v53 = vmul.f32 %v3504_v15, %v3440_v52  ;;  %16227 = vst [vmem:[#allocation53_spill] sm:$0xff] %v11394_v4  ;;  %v3315_v9 = vsel %vm505_vm0, %v10058_v63, %v2759_v17  ;;  %v3507_v52 = vld [vmem:[#allocation3 + $0x1d0] sm:$0xff]  ;;  %v2097_v48 = vsel %vm505_vm0, %v10794_v5, %v16229_v37  ;;  %v16230_v5 = vrot.slane %v16211_v41, 7  ;;  %v16234_v37 = vld [vmem:[#allocation21_spill] sm:$0xff] }
 0x352   :  { %v1919_v28 = vpop.permute.xlu0 %1918 }
 0x353   :  { %2978 = vrot.lane.b32.xlu1 %v11382_v26, %s8914_s2  ;;  %v8216_v50 = vpack.c.bf16 %v3568_v53, %v3568_v53  ;;  %v2224_v13 = vsel %vm2207_vm4, %v2159_v54, %v1919_v28 }
 0x354   :  { %v2352_v14 = vmul.f32 %v2288_v61, %v2224_v13  ;;  %2784 = vrot.lane.b32.xlu0 %v11394_v4, %s8911_s3  ;;  %v2291_v13 = vld [vmem:[#allocation3 + $0x1c8] sm:$0xff]  ;;  %v2162_v61 = vsel %vm2142_vm3, %v2097_v48, %v1669_v39 }
 0x355   :  { %v2951_v15 = vpop.permute.xlu1 %2950  ;;  %3888 = vst [vmem:[#allocation2 + $0xc4] sm:$0xf] %v8216_v50 }
 0x356   :  { %v3379_v32 = vsel %vm2142_vm3, %v3315_v9, %v2951_v15  ;;  %v8152_v17 = vpack.c.bf16 %v2352_v14, %v2352_v14  ;;  %v2757_v28 = vpop.permute.xlu0 %2756 }
 0x357   :  { %v3443_v55 = vsel %vm2207_vm4, %v3379_v32, %v16228_v23  ;;  %1952 = vrot.lane.b32.xlu1 %v11318_v2, %s8912_s4 }
 0x358   :  { %v3571_v53 = vmul.f32 %v3507_v52, %v3443_v55  ;;  %2672 = vst [vmem:[#allocation2 + $0xc0] sm:$0xf] %v8152_v17  ;;  %1694 = vrot.lane.b32.xlu0 %v11330_v60, %s8914_s2  ;;  %v11419_v52 = vsel %vm1116_vm1, %v16230_v5, %v1084_v38  ;;  %v16231_v55 = vld [vmem:[#allocation20_spill] sm:$0xff] }
 0x359   :  { %v1925_v54 = vpop.permute.xlu1 %1924  ;;  %v11422_v48 = vmax.f32 %v16231_v55, 0.0  ;;  %v3506_v17 = vld [vmem:[#allocation3 + $0x1b8] sm:$0xff]  ;;  %v2290_v55 = vld [vmem:[#allocation3 + $0x1b0] sm:$0xff] }
 0x35a   :  { %v8219_v50 = vpack.c.bf16 %v3571_v53, %v3571_v53  ;;  %v2227_v9 = vsel %vm2207_vm4, %v2162_v61, %v1925_v54  ;;  %v1667_v32 = vpop.permute.xlu0 %1666  ;;  %v16233_v5 = vld [vmem:[#allocation104_spill] sm:$0xff] }
 0x35b   :  { %v2355_v15 = vmul.f32 %v2291_v13, %v2227_v9  ;;  %3946 = vrot.lane.b32.xlu1 %v9928_v3, %s8914_s2  ;;  %v3314_v3 = vsel %vm505_vm0, %v10120_v8, %v2757_v28  ;;  %v2096_v28 = vsel %vm505_vm0, %v10842_v62, %v16233_v5  ;;  %v11447_v62 = vmax.f32 %v16234_v37, 0.0  ;;  %v16238_v37 = vld [vmem:[#allocation98_spill] sm:$0xff] }
 0x35c   :  { %3891 = vst [vmem:[#allocation2 + $0xe8] sm:$0xf] %v8219_v50  ;;  %2976 = vrot.lane.b32.xlu0 %v11419_v52, %s8914_s2  ;;  %v8754_v13 = vld [vmem:[#allocation2 + $0xc4] ss:$12 sps:$4 sm:$0xff]  }
 0x35d   :  { %v8155_v39 = vpack.c.bf16 %v2355_v15, %v2355_v15  ;;  %v2763_v14 = vpop.permute.xlu1 %2762  ;;  %v16232_v50 = vld [vmem:[#allocation107_spill] sm:$0xff]  ;;  %v1216_v15 = vrot.slane %v16223_v27, 1  ;;  %5696 = vmatprep.mubr.bf16.mxu1 %v8754_v13 }
 0x35e   :  { %v2949_v53 = vpop.permute.xlu0 %2948 }
 0x35f   :  { %2675 = vst [vmem:[#allocation2 + $0xe4] sm:$0xf] %v8155_v39  ;;  %3950 = vrot.lane.b32.xlu1 %v9946_v51, %s8914_s2  ;;  %v3378_v38 = vsel %vm2142_vm3, %v3314_v3, %v2949_v53  ;;  %v8756_v61 = vld [vmem:[#allocation2 + $0xc0] ss:$12 sps:$4 sm:$0xff]   ;;  %v2161_v3 = vsel %vm2142_vm3, %v2096_v28, %v1667_v32  ;;  %v3317_v51 = vsel %vm505_vm0, %v10075_v34, %v2763_v14  ;;  %v16235_v32 = vrot.slane %v11422_v48, 1 }
 0x360   :  { %v3442_v9 = vsel %vm2207_vm4, %v3378_v38, %v16232_v50  ;;  %1950 = vrot.lane.b32.xlu0 %v11363_v20, %s8912_s4  ;;  %5697 = vmatmul.mubr.bf16.gmra.mxu1 %v8756_v61  ;;  %v3509_v50 = vld [vmem:[#allocation3 + $0x200] sm:$0xff] }
 0x361   :  { %v1673_v54 = vpop.permute.xlu1 %1672  ;;  %v3570_v39 = vmul.f32 %v3506_v17, %v3442_v9  ;;  %v11456_v61 = vsel %vm1245_vm2, %v1216_v15, %v16235_v32  ;;  %v16237_v9 = vld [vmem:[#allocation100_spill] sm:$0xff] }
 0x362   :  { %v1923_v53 = vpop.permute.xlu0 %1922  ;;  %16236 = vst [vmem:[#allocation135_spill] sm:$0xff] %v11456_v61 }
 0x363   :  { %1444 = vrot.lane.b32.xlu1 %v16211_v41, %s8911_s3  ;;  %v8218_v38 = vpack.c.bf16 %v3570_v39, %v3570_v39  ;;  %v2226_v60 = vsel %vm2207_vm4, %v2161_v3, %v1923_v53 }
 0x364   :  { %v2354_v17 = vmul.f32 %v2290_v55, %v2226_v60  ;;  %3944 = vrot.lane.b32.xlu0 %v9987_v11, %s8914_s2  ;;  %v2099_v60 = vsel %vm505_vm0, %v10866_v29, %v16238_v37 }
 0x365   :  { %v2955_v23 = vpop.permute.xlu1 %2954  ;;  %3890 = vst [vmem:[#allocation2 + $0xdc] sm:$0xf] %v8218_v38  ;;  %v2164_v39 = vsel %vm2142_vm3, %v2099_v60, %v1673_v54  ;;  %v1086_v38 = vrot.slane %v11422_v48, 7 }
 0x366   :  { %v3381_v13 = vsel %vm2142_vm3, %v3317_v51, %v2955_v23  ;;  %v8154_v11 = vpack.c.bf16 %v2354_v17, %v2354_v17  ;;  %v2761_v28 = vpop.permute.xlu0 %2760  ;;  %v2293_v51 = vld [vmem:[#allocation3 + $0x1f8] sm:$0xff] }
 0x367   :  { %v3445_v14 = vsel %vm2207_vm4, %v3381_v13, %v16237_v9  ;;  %2790 = vrot.lane.b32.xlu1 %v11456_v61, %s8911_s3  ;;  %v15841_v13 = vrot.slane %v11447_v62, 7  ;;  %v3316_v17 = vsel %vm505_vm0, %v10134_v24, %v2761_v28  ;;  %v16242_v28 = vld [vmem:[#allocation110_spill] sm:$0xff] }
 0x368   :  { %v3573_v23 = vmul.f32 %v3509_v50, %v3445_v14  ;;  %2674 = vst [vmem:[#allocation2 + $0xd8] sm:$0xf] %v8154_v11  ;;  %3948 = vrot.lane.b32.xlu0 %v16151_v49, %s8914_s2  ;;  %v3508_v14 = vld [vmem:[#allocation3 + $0x1e8] sm:$0xff] }
 0x369   :  { %v1929_v55 = vpop.permute.xlu1 %1928  ;;  %v11479_v49 = vsel %vm1116_vm1, %v1086_v38, %v15841_v13 }
 0x36a   :  { %v8221_v3 = vpack.c.bf16 %v3573_v23, %v3573_v23  ;;  %v2229_v53 = vsel %vm2207_vm4, %v2164_v39, %v1929_v55  ;;  %v1671_v29 = vpop.permute.xlu0 %1670  ;;  %v16239_v23 = vrot.slane %v16217_v43, 1 }
 0x36b   :  { %v2357_v32 = vmul.f32 %v2293_v51, %v2229_v53  ;;  %1700 = vrot.lane.b32.xlu1 %v11352_v40, %s8914_s2  ;;  %v16241_v53 = vld [vmem:[#allocation113_spill] sm:$0xff] }
 0x36c   :  { %3893 = vst [vmem:[#allocation2 + $0x100] sm:$0xf] %v8221_v3  ;;  %1442 = vrot.lane.b32.xlu0 %v16204_v18, %s8911_s3  ;;  %v11490_v51 = vsel %vm1245_vm2, %v16239_v23, %v1216_v15  ;;  %v8757_v39 = vld [vmem:[#allocation2 + $0xdc] ss:$12 sps:$4 sm:$0xff]  }
 0x36d   :  { %v8157_v50 = vpack.c.bf16 %v2357_v32, %v2357_v32  ;;  %v2767_v54 = vpop.permute.xlu1 %2766  ;;  %16240 = vst [vmem:[#allocation74_spill] sm:$0xff] %v11490_v51  ;;  %5704 = vmatprep.mubr.bf16.mxu1 %v8757_v39  ;;  %v16244_v39 = vld [vmem:[#allocation103_spill] sm:$0xff] }
 0x36e   :  { %v2953_v60 = vpop.permute.xlu0 %2952  ;;  %v3319_v40 = vsel %vm505_vm0, %v10105_v59, %v2767_v54 }
 0x36f   :  { %2677 = vst [vmem:[#allocation2 + $0xfc] sm:$0xf] %v8157_v50  ;;  %2982 = vrot.lane.b32.xlu1 %v11479_v49, %s8914_s2  ;;  %v3380_v11 = vsel %vm2142_vm3, %v3316_v17, %v2953_v60  ;;  %v8759_v55 = vld [vmem:[#allocation2 + $0xd8] ss:$12 sps:$4 sm:$0xff]   ;;  %v2098_v50 = vsel %vm505_vm0, %v10915_v19, %v16242_v28 }
 0x370   :  { %v3444_v32 = vsel %vm2207_vm4, %v3380_v11, %v16241_v53  ;;  %2788 = vrot.lane.b32.xlu0 %v11490_v51, %s8911_s3  ;;  %v2292_v60 = vld [vmem:[#allocation3 + $0x1e0] sm:$0xff]  ;;  %v2163_v15 = vsel %vm2142_vm3, %v2098_v50, %v1671_v29  ;;  %5705 = vmatmul.mubr.bf16.gmra.mxu1 %v8759_v55  ;;  %v3511_v53 = vld [vmem:[#allocation3 + $0x230] sm:$0xff]  ;;  %v2101_v55 = vsel %vm505_vm0, %v10930_v7, %v16244_v39 }
 0x371   :  { %v1677_v3 = vpop.permute.xlu1 %1676  ;;  %v3572_v17 = vmul.f32 %v3508_v14, %v3444_v32  ;;  %v16243_v14 = vld [vmem:[#allocation105_spill] sm:$0xff] }
 0x372   :  { %v1927_v23 = vpop.permute.xlu0 %1926 }
 0x373   :  { %1956 = vrot.lane.b32.xlu1 %v11382_v26, %s8912_s4  ;;  %v8220_v13 = vpack.c.bf16 %v3572_v17, %v3572_v17  ;;  %v2228_v11 = vsel %vm2207_vm4, %v2163_v15, %v1927_v23  ;;  %v2295_v17 = vld [vmem:[#allocation3 + $0x228] sm:$0xff] }
 0x374   :  { %v2356_v5 = vmul.f32 %v2292_v60, %v2228_v11  ;;  %1698 = vrot.lane.b32.xlu0 %v11394_v4, %s8914_s2  ;;  %v16245_v60 = vrot.slane %v16223_v27, 7 }
 0x375   :  { %v2959_v9 = vpop.permute.xlu1 %2958  ;;  %3892 = vst [vmem:[#allocation2 + $0xf4] sm:$0xf] %v8220_v13 }
 0x376   :  { %v3383_v19 = vsel %vm2142_vm3, %v3319_v40, %v2959_v9  ;;  %v8156_v54 = vpack.c.bf16 %v2356_v5, %v2356_v5  ;;  %v2765_v32 = vpop.permute.xlu0 %2764  ;;  %v11519_v40 = vsel %vm1116_vm1, %v16245_v60, %v1086_v38  ;;  %v2166_v9 = vsel %vm2142_vm3, %v2101_v55, %v1677_v3  ;;  %v16246_v38 = vld [vmem:[#allocation24_spill] sm:$0xff]  ;;  %v16247_v60 = vld [vmem:[#allocation119_spill] sm:$0xff] }
 0x377   :  { %v3447_v29 = vsel %vm2207_vm4, %v3383_v19, %v16243_v14  ;;  %3174 = vrot.lane.b32.xlu1 %v11447_v62, %s8912_s4  ;;  %v11528_v19 = vmax.f32 %v16246_v38, 0.0  ;;  %v3318_v3 = vsel %vm505_vm0, %v10148_v46, %v2765_v32 }
 0x378   :  { %v3575_v50 = vmul.f32 %v3511_v53, %v3447_v29  ;;  %2676 = vst [vmem:[#allocation2 + $0xf0] sm:$0xf] %v8156_v54  ;;  %2980 = vrot.lane.b32.xlu0 %v11519_v40, %s8914_s2  ;;  %v3510_v29 = vld [vmem:[#allocation3 + $0x218] sm:$0xff] }
 0x379   :  { %v1933_v13 = vpop.permute.xlu1 %1932 }
 0x37a   :  { %v8223_v15 = vpack.c.bf16 %v3575_v50, %v3575_v50  ;;  %v2231_v7 = vsel %vm2207_vm4, %v2166_v9, %v1933_v13  ;;  %v1675_v53 = vpop.permute.xlu0 %1674  ;;  %v1218_v13 = vrot.slane %v11447_v62, 1 }
 0x37b   :  { %v2359_v5 = vmul.f32 %v2295_v17, %v2231_v7  ;;  %3954 = vrot.lane.b32.xlu1 %v16157_v36, %s8914_s2 }
 0x37c   :  { %3895 = vst [vmem:[#allocation2 + $0x118] sm:$0xf] %v8223_v15  ;;  %1954 = vrot.lane.b32.xlu0 %v11419_v52, %s8912_s4  ;;  %v8760_v54 = vld [vmem:[#allocation2 + $0xf4] ss:$12 sps:$4 sm:$0xff]   ;;  %v16248_v15 = vld [vmem:[#allocation116_spill] sm:$0xff] }
 0x37d   :  { %v8159_v23 = vpack.c.bf16 %v2359_v5, %v2359_v5  ;;  %v2771_v11 = vpop.permute.xlu1 %2770  ;;  %v2100_v32 = vsel %vm505_vm0, %v10979_v21, %v16248_v15  ;;  %v2294_v5 = vld [vmem:[#allocation3 + $0x210] sm:$0xff]  ;;  %5712 = vmatprep.mubr.bf16.mxu1 %v8760_v54 }
 0x37e   :  { %v2957_v55 = vpop.permute.xlu0 %2956  ;;  %v3519_v15 = vld [vmem:[#allocation3 + $0x2f0] sm:$0xff] }
 0x37f   :  { %2679 = vst [vmem:[#allocation2 + $0x114] sm:$0xf] %v8159_v23  ;;  %3958 = vrot.lane.b32.xlu1 %v16173_v22, %s8914_s2  ;;  %v3382_v36 = vsel %vm2142_vm3, %v3318_v3, %v2957_v55  ;;  %v8762_v50 = vld [vmem:[#allocation2 + $0xf0] ss:$12 sps:$4 sm:$0xff]   ;;  %v2165_v23 = vsel %vm2142_vm3, %v2100_v32, %v1675_v53  ;;  %v3513_v22 = vld [vmem:[#allocation3 + $0x260] sm:$0xff]  ;;  %v16250_v53 = vrot.slane %v11528_v19, 1 }
 0x380   :  { %v3446_v9 = vsel %vm2207_vm4, %v3382_v36, %v16247_v60  ;;  %3172 = vrot.lane.b32.xlu0 %v11422_v48, %s8912_s4  ;;  %5713 = vmatmul.mubr.bf16.gmra.mxu1 %v8762_v50  ;;  %v3321_v36 = vsel %vm505_vm0, %v16150_v58, %v2771_v11  ;;  %v16249_v60 = vld [vmem:[#allocation26_spill] sm:$0xff] }
 0x381   :  { %v1681_v17 = vpop.permute.xlu1 %1680  ;;  %v3574_v7 = vmul.f32 %v3510_v29, %v3446_v9  ;;  %v11553_v21 = vmax.f32 %v16249_v60, 0.0  ;;  %v11562_v50 = vsel %vm1245_vm2, %v1218_v13, %v16250_v53  ;;  %v16252_v9 = vld [vmem:[#allocation111_spill] sm:$0xff]  ;;  %v16253_v60 = vld [vmem:[#allocation109_spill] sm:$0xff] }
 0x382   :  { %v1931_v38 = vpop.permute.xlu0 %1930  ;;  %16251 = vst [vmem:[#allocation62_spill] sm:$0xff] %v11562_v50  ;;  %v2103_v32 = vsel %vm505_vm0, %v10994_v44, %v16253_v60  ;;  %v2304_v60 = vld [vmem:[#allocation3 + $0x300] sm:$0xff] }
 0x383   :  { %1448 = vrot.lane.b32.xlu1 %v16223_v27, %s8911_s3  ;;  %v8222_v3 = vpack.c.bf16 %v3574_v7, %v3574_v7  ;;  %v2230_v55 = vsel %vm2207_vm4, %v2165_v23, %v1931_v38  ;;  %v2168_v23 = vsel %vm2142_vm3, %v2103_v32, %v1681_v17 }
 0x384   :  { %v2358_v29 = vmul.f32 %v2294_v5, %v2230_v55  ;;  %3952 = vrot.lane.b32.xlu0 %v16167_v31, %s8914_s2  ;;  %v2297_v5 = vld [vmem:[#allocation3 + $0x258] sm:$0xff] }
 0x385   :  { %v2963_v4 = vpop.permute.xlu1 %2962  ;;  %3894 = vst [vmem:[#allocation2 + $0x10c] sm:$0xf] %v8222_v3 }
 0x386   :  { %v3385_v54 = vsel %vm2142_vm3, %v3321_v36, %v2963_v4  ;;  %v8158_v31 = vpack.c.bf16 %v2358_v29, %v2358_v29  ;;  %v2769_v7 = vpop.permute.xlu0 %2768  ;;  %v1088_v36 = vrot.slane %v11528_v19, 7 }
 0x387   :  { %v3449_v11 = vsel %vm2207_vm4, %v3385_v54, %v16252_v9  ;;  %2794 = vrot.lane.b32.xlu1 %v11562_v50, %s8911_s3  ;;  %v15844_v54 = vrot.slane %v11553_v21, 7  ;;  %v3320_v29 = vsel %vm505_vm0, %v10162_v16, %v2769_v7  ;;  %v16257_v7 = vld [vmem:[#allocation122_spill] sm:$0xff] }
 0x388   :  { %v3577_v4 = vmul.f32 %v3513_v22, %v3449_v11  ;;  %2678 = vst [vmem:[#allocation2 + $0x108] sm:$0xf] %v8158_v31  ;;  %3956 = vrot.lane.b32.xlu0 %v16183_v30, %s8914_s2  ;;  %v3512_v11 = vld [vmem:[#allocation3 + $0x248] sm:$0xff] }
 0x389   :  { %v1937_v38 = vpop.permute.xlu1 %1936  ;;  %v11585_v30 = vsel %vm1116_vm1, %v1088_v36, %v15844_v54 }
 0x38a   :  { %v8225_v3 = vpack.c.bf16 %v3577_v4, %v3577_v4  ;;  %v2233_v55 = vsel %vm2207_vm4, %v2168_v23, %v1937_v38  ;;  %v1679_v44 = vpop.permute.xlu0 %1678  ;;  %v16254_v4 = vrot.slane %v11422_v48, 1 }
 0x38b   :  { %v2361_v53 = vmul.f32 %v2297_v5, %v2233_v55  ;;  %1704 = vrot.lane.b32.xlu1 %v11456_v61, %s8914_s2  ;;  %v16256_v55 = vld [vmem:[#allocation125_spill] sm:$0xff] }
 0x38c   :  { %3897 = vst [vmem:[#allocation2 + $0x130] sm:$0xf] %v8225_v3  ;;  %1446 = vrot.lane.b32.xlu0 %v16217_v43, %s8911_s3  ;;  %v11596_v5 = vsel %vm1245_vm2, %v16254_v4, %v1218_v13  ;;  %v8763_v23 = vld [vmem:[#allocation2 + $0x10c] ss:$12 sps:$4 sm:$0xff]  }
 0x38d   :  { %v8161_v22 = vpack.c.bf16 %v2361_v53, %v2361_v53  ;;  %v2775_v17 = vpop.permute.xlu1 %2774  ;;  %16255 = vst [vmem:[#allocation99_spill] sm:$0xff] %v11596_v5  ;;  %5720 = vmatprep.mubr.bf16.mxu1 %v8763_v23  ;;  %v16259_v23 = vld [vmem:[#allocation115_spill] sm:$0xff] }
 0x38e   :  { %v2961_v32 = vpop.permute.xlu0 %2960  ;;  %v3323_v61 = vsel %vm505_vm0, %v16166_v10, %v2775_v17 }
 0x38f   :  { %2681 = vst [vmem:[#allocation2 + $0x12c] sm:$0xf] %v8161_v22  ;;  %2986 = vrot.lane.b32.xlu1 %v11585_v30, %s8914_s2  ;;  %v3384_v31 = vsel %vm2142_vm3, %v3320_v29, %v2961_v32  ;;  %v8765_v38 = vld [vmem:[#allocation2 + $0x108] ss:$12 sps:$4 sm:$0xff]   ;;  %v2102_v22 = vsel %vm505_vm0, %v11043_v47, %v16257_v7  ;;  %v2296_v32 = vld [vmem:[#allocation3 + $0x240] sm:$0xff] }
 0x390   :  { %v3448_v53 = vsel %vm2207_vm4, %v3384_v31, %v16256_v55  ;;  %2792 = vrot.lane.b32.xlu0 %v11596_v5, %s8911_s3  ;;  %v2167_v13 = vsel %vm2142_vm3, %v2102_v22, %v1679_v44  ;;  %5721 = vmatmul.mubr.bf16.gmra.mxu1 %v8765_v38  ;;  %v3515_v55 = vld [vmem:[#allocation3 + $0x290] sm:$0xff]  ;;  %v2105_v38 = vsel %vm505_vm0, %v11058_v0, %v16259_v23  ;;  %v3517_v23 = vld [vmem:[#allocation3 + $0x2c0] sm:$0xff] }
 0x391   :  { %v1685_v3 = vpop.permute.xlu1 %1684  ;;  %v3576_v29 = vmul.f32 %v3512_v11, %v3448_v53  ;;  %v16258_v11 = vld [vmem:[#allocation117_spill] sm:$0xff] }
 0x392   :  { %v1935_v4 = vpop.permute.xlu0 %1934 }
 0x393   :  { %1960 = vrot.lane.b32.xlu1 %v11479_v49, %s8912_s4  ;;  %v8224_v54 = vpack.c.bf16 %v3576_v29, %v3576_v29  ;;  %v2232_v31 = vsel %vm2207_vm4, %v2167_v13, %v1935_v4  ;;  %v2299_v29 = vld [vmem:[#allocation3 + $0x288] sm:$0xff] }
 0x394   :  { %v2360_v14 = vmul.f32 %v2296_v32, %v2232_v31  ;;  %1702 = vrot.lane.b32.xlu0 %v11490_v51, %s8914_s2  ;;  %v16260_v32 = vrot.slane %v11447_v62, 7  ;;  %v2298_v51 = vld [vmem:[#allocation3 + $0x270] sm:$0xff] }
 0x395   :  { %v2967_v9 = vpop.permute.xlu1 %2966  ;;  %3896 = vst [vmem:[#allocation2 + $0x124] sm:$0xf] %v8224_v54 }
 0x396   :  { %v3387_v47 = vsel %vm2142_vm3, %v3323_v61, %v2967_v9  ;;  %v8160_v17 = vpack.c.bf16 %v2360_v14, %v2360_v14  ;;  %v2773_v53 = vpop.permute.xlu0 %2772  ;;  %v11625_v61 = vsel %vm1116_vm1, %v16260_v32, %v1088_v36  ;;  %v2170_v9 = vsel %vm2142_vm3, %v2105_v38, %v1685_v3  ;;  %v16263_v36 = vld [vmem:[#allocation23_spill] sm:$0xff]  ;;  %v16264_v3 = vld [vmem:[#allocation52_spill] sm:$0xff] }
 0x397   :  { %v3451_v44 = vsel %vm2207_vm4, %v3387_v47, %v16258_v11  ;;  %3178 = vrot.lane.b32.xlu1 %v11553_v21, %s8912_s4  ;;  %16261 = vst [vmem:[#allocation20_spill] sm:$0xff] %v11625_v61  ;;  %v3322_v38 = vsel %vm505_vm0, %v16264_v3, %v2773_v53 }
 0x398   :  { %v3579_v22 = vmul.f32 %v3515_v55, %v3451_v44  ;;  %2680 = vst [vmem:[#allocation2 + $0x120] sm:$0xf] %v8160_v17  ;;  %2984 = vrot.lane.b32.xlu0 %v11625_v61, %s8914_s2  ;;  %v16262_v55 = vld [vmem:[#allocation17_spill] sm:$0xff]  ;;  %v11634_v44 = vmax.f32 %v16263_v36, 0.0  ;;  %v3514_v17 = vld [vmem:[#allocation3 + $0x278] sm:$0xff] }
 0x399   :  { %v1941_v54 = vpop.permute.xlu1 %1940 }
 0x39a   :  { %v8227_v13 = vpack.c.bf16 %v3579_v22, %v3579_v22  ;;  %v2235_v0 = vsel %vm2207_vm4, %v2170_v9, %v1941_v54  ;;  %v1683_v4 = vpop.permute.xlu0 %1682 }
 0x39b   :  { %v2363_v14 = vmul.f32 %v2299_v29, %v2235_v0  ;;  %3962 = vrot.lane.b32.xlu1 %v16262_v55, %s8914_s2  ;;  %v16266_v55 = vld [vmem:[#allocation127_spill] sm:$0xff] }
 0x39c   :  { %3899 = vst [vmem:[#allocation2 + $0x148] sm:$0xf] %v8227_v13  ;;  %1958 = vrot.lane.b32.xlu0 %v11519_v40, %s8912_s4  ;;  %v8766_v32 = vld [vmem:[#allocation2 + $0x124] ss:$12 sps:$4 sm:$0xff]  }
 0x39d   :  { %v8163_v31 = vpack.c.bf16 %v2363_v14, %v2363_v14  ;;  %v2779_v47 = vpop.permute.xlu1 %2778  ;;  %v16265_v13 = vld [vmem:[#allocation129_spill] sm:$0xff]  ;;  %v1220_v14 = vrot.slane %v11553_v21, 1  ;;  %5728 = vmatprep.mubr.bf16.mxu1 %v8766_v32 }
 0x39e   :  { %v2965_v22 = vpop.permute.xlu0 %2964 }
 0x39f   :  { %2683 = vst [vmem:[#allocation2 + $0x144] sm:$0xf] %v8163_v31  ;;  %3966 = vrot.lane.b32.xlu1 %v10030_v57, %s8914_s2  ;;  %v3386_v29 = vsel %vm2142_vm3, %v3322_v38, %v2965_v22  ;;  %v8768_v9 = vld [vmem:[#allocation2 + $0x120] ss:$12 sps:$4 sm:$0xff]   ;;  %v16267_v31 = vld [vmem:[#allocation92_spill] sm:$0xff]  ;;  %v3325_v57 = vsel %vm505_vm0, %v16182_v25, %v2779_v47  ;;  %v16272_v47 = vld [vmem:[#allocation123_spill] sm:$0xff] }
 0x3a0   :  { %v3450_v0 = vsel %vm2207_vm4, %v3386_v29, %v16265_v13  ;;  %3176 = vrot.lane.b32.xlu0 %v11528_v19, %s8912_s4  ;;  %v2104_v53 = vsel %vm505_vm0, %v16267_v31, %v16266_v55  ;;  %v11655_v29 = vpop.f32.mrf.mxu1  ;;  %5729 = vmatmul.mubr.bf16.gmra.mxu1 %v8768_v9  ;;  %v16270_v9 = vrot.slane %v11634_v44, 1  ;;  %v1090_v55 = vrot.slane %v11634_v44, 7 }
 0x3a1   :  { %v1689_v54 = vpop.permute.xlu1 %1688  ;;  %v3578_v36 = vmul.f32 %v3514_v17, %v3450_v0  ;;  %v2169_v38 = vsel %vm2142_vm3, %v2104_v53, %v1683_v4  ;;  %16268 = vst [vmem:[#allocation21_spill] sm:$0xff] %v11655_v29  ;;  %v16269_v17 = vld [vmem:[#allocation25_spill] sm:$0xff] }
 0x3a2   :  { %v1939_v22 = vpop.permute.xlu0 %1938  ;;  %v11661_v0 = vmax.f32 %v16269_v17, 0.0  ;;  %v5636_v4 = vpop.f32.mrf.mxu1 }
 0x3a3   :  { %1452 = vrot.lane.b32.xlu1 %v11447_v62, %s8911_s3  ;;  %v8226_v13 = vpack.c.bf16 %v3578_v36, %v3578_v36  ;;  %v2234_v11 = vsel %vm2207_vm4, %v2169_v38, %v1939_v22  ;;  %v11670_v36 = vsel %vm1245_vm2, %v1220_v14, %v16270_v9  ;;  %v2301_v4 = vld [vmem:[#allocation3 + $0x2b8] sm:$0xff] }
 0x3a4   :  { %v2362_v32 = vmul.f32 %v2298_v51, %v2234_v11  ;;  %3960 = vrot.lane.b32.xlu0 %v16199_v6, %s8914_s2  ;;  %16271 = vst [vmem:[#allocation98_spill] sm:$0xff] %v11670_v36  ;;  %v16273_v51 = vld [vmem:[#allocation121_spill] sm:$0xff] }
 0x3a5   :  { %v2971_v31 = vpop.permute.xlu1 %2970  ;;  %3898 = vst [vmem:[#allocation2 + $0x13c] sm:$0xf] %v8226_v13  ;;  %v16274_v11 = vld [vmem:[#allocation13_spill] sm:$0xff] }
 0x3a6   :  { %v3389_v53 = vsel %vm2142_vm3, %v3325_v57, %v2971_v31  ;;  %v2107_v6 = vsel %vm505_vm0, %v16274_v11, %v16273_v51  ;;  %v8162_v22 = vpack.c.bf16 %v2362_v32, %v2362_v32  ;;  %v2777_v17 = vpop.permute.xlu0 %2776  ;;  %v11679_v57 = vpop.f32.mrf.mxu1  ;;  %v15847_v32 = vrot.slane %v11661_v0, 7 }
 0x3a7   :  { %v3453_v38 = vsel %vm2207_vm4, %v3389_v53, %v16272_v47  ;;  %2798 = vrot.lane.b32.xlu1 %v11670_v36, %s8911_s3  ;;  %16275 = vst [vmem:[#allocation110_spill] sm:$0xff] %v11679_v57  ;;  %v2172_v9 = vsel %vm2142_vm3, %v2107_v6, %v1689_v54  ;;  %v3516_v6 = vld [vmem:[#allocation3 + $0x2a8] sm:$0xff]  ;;  %v16281_v57 = vld [vmem:[#allocation12_spill] sm:$0xff] }
 0x3a8   :  { %v3581_v31 = vmul.f32 %v3517_v23, %v3453_v38  ;;  %2682 = vst [vmem:[#allocation2 + $0x138] sm:$0xf] %v8162_v22  ;;  %3964 = vrot.lane.b32.xlu0 %v10065_v42, %s8914_s2  ;;  %v5639_v13 = vpop.f32.mrf.mxu1  ;;  %v11695_v42 = vsel %vm1116_vm1, %v1090_v55, %v15847_v32 }
 0x3a9   :  { %v1945_v29 = vpop.permute.xlu1 %1944 }
 0x3aa   :  { %v8229_v53 = vpack.c.bf16 %v3581_v31, %v3581_v31  ;;  %v2237_v47 = vsel %vm2207_vm4, %v2172_v9, %v1945_v29  ;;  %v1687_v23 = vpop.permute.xlu0 %1686  ;;  %v16276_v29 = vld [vmem:[#allocation54_spill] sm:$0xff] }
 0x3ab   :  { %v2365_v11 = vmul.f32 %v2301_v4, %v2237_v47  ;;  %1708 = vrot.lane.b32.xlu1 %v11562_v50, %s8914_s2  ;;  %v3324_v47 = vsel %vm505_vm0, %v16276_v29, %v2777_v17  ;;  %v16277_v4 = vrot.slane %v11528_v19, 1  ;;  %v16280_v17 = vld [vmem:[#allocation131_spill] sm:$0xff] }
 0x3ac   :  { %3901 = vst [vmem:[#allocation2 + $0x160] sm:$0xf] %v8229_v53  ;;  %1450 = vrot.lane.b32.xlu0 %v11422_v48, %s8911_s3  ;;  %v8769_v13 = vld [vmem:[#allocation2 + $0x13c] ss:$12 sps:$4 sm:$0xff]   ;;  %v2106_v50 = vsel %vm505_vm0, %v16281_v57, %v16280_v17  ;;  %v3521_v17 = vld [vmem:[#allocation3 + $0x320] sm:$0xff] }
 0x3ad   :  { %v8165_v54 = vpack.c.bf16 %v2365_v11, %v2365_v11  ;;  %v2783_v38 = vpop.permute.xlu1 %2782  ;;  %v11706_v9 = vsel %vm1245_vm2, %v16277_v4, %v1220_v14  ;;  %5736 = vmatprep.mubr.bf16.mxu1 %v8769_v13  ;;  %v2171_v14 = vsel %vm2142_vm3, %v2106_v50, %v1687_v23  ;;  %v16283_v50 = vld [vmem:[#allocation128_spill] sm:$0xff] }
 0x3ae   :  { %v2969_v22 = vpop.permute.xlu0 %2968  ;;  %16278 = vst [vmem:[#allocation103_spill] sm:$0xff] %v11706_v9  ;;  %v3327_v7 = vsel %vm505_vm0, %v16198_v45, %v2783_v38 }
 0x3af   :  { %2685 = vst [vmem:[#allocation2 + $0x15c] sm:$0xf] %v8165_v54  ;;  %2990 = vrot.lane.b32.xlu1 %v11695_v42, %s8914_s2  ;;  %v3388_v31 = vsel %vm2142_vm3, %v3324_v47, %v2969_v22  ;;  %v8771_v53 = vld [vmem:[#allocation2 + $0x138] ss:$12 sps:$4 sm:$0xff]   ;;  %v16279_v54 = vld [vmem:[#allocation134_spill] sm:$0xff]  ;;  %v11718_v51 = vpop.f32.mrf.mxu1 }
 0x3b0   :  { %v3452_v32 = vsel %vm2207_vm4, %v3388_v31, %v16279_v54  ;;  %2796 = vrot.lane.b32.xlu0 %v11706_v9, %s8911_s3  ;;  %v2300_v22 = vld [vmem:[#allocation3 + $0x2a0] sm:$0xff]  ;;  %16282 = vst [vmem:[#allocation24_spill] sm:$0xff] %v11718_v51  ;;  %5737 = vmatmul.mubr.bf16.gmra.mxu1 %v8771_v53  ;;  %v16284_v53 = vld [vmem:[#allocation126_spill] sm:$0xff] }
 0x3b1   :  { %v1693_v11 = vpop.permute.xlu1 %1692  ;;  %v3580_v47 = vmul.f32 %v3516_v6, %v3452_v32  ;;  %v5644_v6 = vpop.f32.mrf.mxu1  ;;  %v2303_v51 = vld [vmem:[#allocation3 + $0x2e8] sm:$0xff] }
 0x3b2   :  { %v1943_v4 = vpop.permute.xlu0 %1942  ;;  %v16287_v6 = vrot.slane %v11553_v21, 7 }
 0x3b3   :  { %1964 = vrot.lane.b32.xlu1 %v11585_v30, %s8912_s4  ;;  %v8228_v31 = vpack.c.bf16 %v3580_v47, %v3580_v47  ;;  %v2236_v54 = vsel %vm2207_vm4, %v2171_v14, %v1943_v4  ;;  %v16285_v47 = vld [vmem:[#allocation9_spill] sm:$0xff] }
 0x3b4   :  { %v2364_v32 = vmul.f32 %v2300_v22, %v2236_v54  ;;  %1706 = vrot.lane.b32.xlu0 %v11596_v5, %s8914_s2  ;;  %v2109_v38 = vsel %vm505_vm0, %v16285_v47, %v16284_v53  ;;  %v11733_v54 = vpop.f32.mrf.mxu1 }
 0x3b5   :  { %v2975_v57 = vpop.permute.xlu1 %2974  ;;  %3900 = vst [vmem:[#allocation2 + $0x154] sm:$0xf] %v8228_v31  ;;  %16286 = vst [vmem:[#allocation26_spill] sm:$0xff] %v11733_v54  ;;  %v2174_v31 = vsel %vm2142_vm3, %v2109_v38, %v1693_v11  ;;  %v16289_v11 = vld [vmem:[#allocation57_spill] sm:$0xff]  ;;  %v3518_v38 = vld [vmem:[#allocation3 + $0x2d8] sm:$0xff] }
 0x3b6   :  { %v3391_v13 = vsel %vm2142_vm3, %v3327_v7, %v2975_v57  ;;  %v8164_v14 = vpack.c.bf16 %v2364_v32, %v2364_v32  ;;  %v2781_v4 = vpop.permute.xlu0 %2780  ;;  %v11739_v7 = vsel %vm1116_vm1, %v16287_v6, %v1090_v55  ;;  %v16288_v6 = vld [vmem:[#allocation28_spill] sm:$0xff] }
 0x3b7   :  { %v3455_v23 = vsel %vm2207_vm4, %v3391_v13, %v16283_v50  ;;  %3182 = vrot.lane.b32.xlu1 %v11661_v0, %s8912_s4  ;;  %v5647_v13 = vpop.f32.mrf.mxu1  ;;  %v11748_v5 = vmax.f32 %v16288_v6, 0.0  ;;  %v2302_v50 = vld [vmem:[#allocation3 + $0x2d0] sm:$0xff] }
 0x3b8   :  { %v3583_v22 = vmul.f32 %v3519_v15, %v3455_v23  ;;  %2684 = vst [vmem:[#allocation2 + $0x150] sm:$0xf] %v8164_v14  ;;  %2988 = vrot.lane.b32.xlu0 %v11739_v7, %s8914_s2 }
 0x3b9   :  { %v1949_v57 = vpop.permute.xlu1 %1948 }
 0x3ba   :  { %v8231_v32 = vpack.c.bf16 %v3583_v22, %v3583_v22  ;;  %v2239_v47 = vsel %vm2207_vm4, %v2174_v31, %v1949_v57  ;;  %v1691_v15 = vpop.permute.xlu0 %1690  ;;  %v16290_v57 = vld [vmem:[#allocation138_spill] sm:$0xff] }
 0x3bb   :  { %v2367_v54 = vmul.f32 %v2303_v51, %v2239_v47  ;;  %3970 = vrot.lane.b32.xlu1 %v10044_v1, %s8914_s2  ;;  %v3326_v51 = vsel %vm505_vm0, %v16289_v11, %v2781_v4  ;;  %v16291_v47 = vld [vmem:[#allocation136_spill] sm:$0xff] }
 0x3bc   :  { %3903 = vst [vmem:[#allocation2 + $0x178] sm:$0xf] %v8231_v32  ;;  %1962 = vrot.lane.b32.xlu0 %v11625_v61, %s8912_s4  ;;  %v8772_v22 = vld [vmem:[#allocation2 + $0x154] ss:$12 sps:$4 sm:$0xff]   ;;  %v1222_v32 = vrot.slane %v11661_v0, 1 }
 0x3bd   :  { %v8167_v23 = vpack.c.bf16 %v2367_v54, %v2367_v54  ;;  %v2787_v55 = vpop.permute.xlu1 %2786  ;;  %5744 = vmatprep.mubr.bf16.mxu1 %v8772_v22 }
 0x3be   :  { %v2973_v14 = vpop.permute.xlu0 %2972 }
 0x3bf   :  { %2687 = vst [vmem:[#allocation2 + $0x174] sm:$0xf] %v8167_v23  ;;  %3974 = vrot.lane.b32.xlu1 %v10058_v63, %s8914_s2  ;;  %v3390_v1 = vsel %vm2142_vm3, %v3326_v51, %v2973_v14  ;;  %v8774_v54 = vld [vmem:[#allocation2 + $0x150] ss:$12 sps:$4 sm:$0xff]   ;;  %v3329_v63 = vsel %vm505_vm0, %v16211_v41, %v2787_v55 }
 0x3c0   :  { %v3454_v13 = vsel %vm2207_vm4, %v3390_v1, %v16290_v57  ;;  %3180 = vrot.lane.b32.xlu0 %v11634_v44, %s8912_s4  ;;  %v16292_v23 = vld [vmem:[#allocation16_spill] sm:$0xff]  ;;  %v11769_v1 = vpop.f32.mrf.mxu1  ;;  %5745 = vmatmul.mubr.bf16.gmra.mxu1 %v8774_v54  ;;  %v16295_v54 = vrot.slane %v11748_v5, 1 }
 0x3c1   :  { %v1697_v31 = vpop.permute.xlu1 %1696  ;;  %v2108_v4 = vsel %vm505_vm0, %v16292_v23, %v16291_v47  ;;  %v3582_v6 = vmul.f32 %v3518_v38, %v3454_v13  ;;  %16293 = vst [vmem:[#allocation17_spill] sm:$0xff] %v11769_v1  ;;  %v16294_v38 = vld [vmem:[#allocation30_spill] sm:$0xff]  ;;  %v16297_v55 = vld [vmem:[#allocation140_spill] sm:$0xff] }
 0x3c2   :  { %v2173_v51 = vsel %vm2142_vm3, %v2108_v4, %v1691_v15  ;;  %v1947_v14 = vpop.permute.xlu0 %1946  ;;  %v11775_v13 = vmax.f32 %v16294_v38, 0.0  ;;  %v5652_v15 = vpop.f32.mrf.mxu1  ;;  %v2305_v38 = vld [vmem:[#allocation3 + $0x318] sm:$0xff] }
 0x3c3   :  { %1456 = vrot.lane.b32.xlu1 %v11553_v21, %s8911_s3  ;;  %v8230_v57 = vpack.c.bf16 %v3582_v6, %v3582_v6  ;;  %v2238_v53 = vsel %vm2207_vm4, %v2173_v51, %v1947_v14  ;;  %v11784_v6 = vsel %vm1245_vm2, %v1222_v32, %v16295_v54 }
 0x3c4   :  { %v2366_v22 = vmul.f32 %v2302_v50, %v2238_v53  ;;  %3968 = vrot.lane.b32.xlu0 %v10085_v33, %s8914_s2  ;;  %16296 = vst [vmem:[#allocation23_spill] sm:$0xff] %v11784_v6  ;;  %v16298_v50 = vld [vmem:[#allocation137_spill] sm:$0xff] }
 0x3c5   :  { %v2979_v23 = vpop.permute.xlu1 %2978  ;;  %3902 = vst [vmem:[#allocation2 + $0x16c] sm:$0xf] %v8230_v57  ;;  %v2111_v33 = vsel %vm505_vm0, %v11250_v35, %v16298_v50  ;;  %v15850_v35 = vrot.slane %v11775_v13, 7 }
 0x3c6   :  { %v3393_v4 = vsel %vm2142_vm3, %v3329_v63, %v2979_v23  ;;  %v8166_v53 = vpack.c.bf16 %v2366_v22, %v2366_v22  ;;  %v2785_v14 = vpop.permute.xlu0 %2784  ;;  %v11793_v63 = vpop.f32.mrf.mxu1  ;;  %v2176_v15 = vsel %vm2142_vm3, %v2111_v33, %v1697_v31  ;;  %v16300_v31 = vld [vmem:[#allocation60_spill] sm:$0xff] }
 0x3c7   :  { %v3457_v51 = vsel %vm2207_vm4, %v3393_v4, %v16297_v55  ;;  %2802 = vrot.lane.b32.xlu1 %v11784_v6, %s8911_s3  ;;  %16299 = vst [vmem:[#allocation52_spill] sm:$0xff] %v11793_v63  ;;  %v1092_v55 = vrot.slane %v11748_v5, 7 }
 0x3c8   :  { %v3585_v23 = vmul.f32 %v3521_v17, %v3457_v51  ;;  %2686 = vst [vmem:[#allocation2 + $0x168] sm:$0xf] %v8166_v53  ;;  %3972 = vrot.lane.b32.xlu0 %v10120_v8, %s8914_s2  ;;  %v5655_v57 = vpop.f32.mrf.mxu1  ;;  %v16301_v51 = vld [vmem:[#allocation101_spill] sm:$0xff]  ;;  %v4325_v8 = vld [vmem:[#allocation3 + $0x88] sm:$0xff] }
 0x3c9   :  { %v1953_v54 = vpop.permute.xlu1 %1952  ;;  %v4133_v33 = vsel %vm505_vm0, %v16301_v51, %v16300_v31  ;;  %v4327_v51 = vld [vmem:[#allocation3 + $0xb8] sm:$0xff] }
 0x3ca   :  { %v8233_v4 = vpack.c.bf16 %v3585_v23, %v3585_v23  ;;  %v2241_v1 = vsel %vm2207_vm4, %v2176_v15, %v1953_v54  ;;  %v1695_v17 = vpop.permute.xlu0 %1694  ;;  %v3328_v54 = vsel %vm505_vm0, %v16204_v18, %v2785_v14  ;;  %v16307_v14 = vld [vmem:[#allocation145_spill] sm:$0xff] }
 0x3cb   :  { %v2369_v22 = vmul.f32 %v2305_v38, %v2241_v1  ;;  %1712 = vrot.lane.b32.xlu1 %v11670_v36, %s8914_s2  ;;  %v11813_v1 = vsel %vm1116_vm1, %v1092_v55, %v15850_v35  ;;  %v16302_v38 = vld [vmem:[#allocation55_spill] sm:$0xff] }
 0x3cc   :  { %3905 = vst [vmem:[#allocation2 + $0x190] sm:$0xf] %v8233_v4  ;;  %1454 = vrot.lane.b32.xlu0 %v11528_v19, %s8911_s3  ;;  %v3520_v4 = vld [vmem:[#allocation3 + $0x308] sm:$0xff] }
 0x3cd   :  { %v8169_v53 = vpack.c.bf16 %v2369_v22, %v2369_v22  ;;  %v3947_v57 = vpop.permute.xlu1 %3946 }
 0x3ce   :  { %v4197_v23 = vsel %vm2142_vm3, %v4133_v33, %v3947_v57  ;;  %v2977_v22 = vpop.permute.xlu0 %2976  ;;  %v16303_v33 = vld [vmem:[#allocation65_spill] sm:$0xff]  ;;  %v16304_v57 = vld [vmem:[#allocation112_spill] sm:$0xff] }
 0x3cf   :  { %2689 = vst [vmem:[#allocation2 + $0x18c] sm:$0xf] %v8169_v53  ;;  %v4261_v15 = vsel %vm2207_vm4, %v4197_v23, %v16302_v38  ;;  %2994 = vrot.lane.b32.xlu1 %v11813_v1, %s8914_s2  ;;  %v4135_v63 = vsel %vm505_vm0, %v16304_v57, %v16303_v33  ;;  %v3392_v35 = vsel %vm2142_vm3, %v3328_v54, %v2977_v22  ;;  %v16305_v53 = vrot.slane %v11634_v44, 1  ;;  %v8775_v38 = vld [vmem:[#allocation2 + $0x16c] ss:$12 sps:$4 sm:$0xff]   ;;  %v16308_v33 = vld [vmem:[#allocation143_spill] sm:$0xff]  ;;  %v11844_v61 = vpop.f32.mrf.mxu1 }
 0x3d0   :  { %v4389_v31 = vmul.f32 %v4325_v8, %v4261_v15  ;;  %v8777_v36 = vld [vmem:[#allocation2 + $0x168] ss:$12 sps:$4 sm:$0xff]   ;;  %v3456_v50 = vsel %vm2207_vm4, %v3392_v35, %v16307_v14  ;;  %5752 = vmatprep.mubr.bf16.mxu1 %v8775_v38  ;;  %16311 = vst [vmem:[#allocation25_spill] sm:$0xff] %v11844_v61  ;;  %v16329_v61 = vld [vmem:[#allocation133_spill] sm:$0xff] }
 0x3d1   :  { %v11829_v23 = vsel %vm1245_vm2, %v16305_v53, %v1222_v32  ;;  %v3951_v47 = vpop.permute.xlu1 %3950  ;;  %v16309_v54 = vld [vmem:[#allocation51_spill] sm:$0xff]  ;;  %v3584_v57 = vmul.f32 %v3520_v4, %v3456_v50  ;;  %5753 = vmatmul.mubr.bf16.gmra.mxu1 %v8777_v36  ;;  %v5660_v38 = vpop.f32.mrf.mxu1 }
 0x3d2   :  { %16306 = vst [vmem:[#allocation92_spill] sm:$0xff] %v11829_v23  ;;  %2800 = vrot.lane.b32.xlu0 %v11829_v23, %s8911_s3  ;;  %v8269_v8 = vpack.c.bf16 %v4389_v31, %v4389_v31  ;;  %v4199_v15 = vsel %vm2142_vm3, %v4135_v63, %v3951_v47  ;;  %v2110_v22 = vsel %vm505_vm0, %v16309_v54, %v16308_v33  ;;  %v16310_v32 = vld [vmem:[#allocation59_spill] sm:$0xff]  ;;  %v1951_v14 = vpop.permute.xlu0 %1950  ;;  %v16313_v54 = vld [vmem:[#allocation108_spill] sm:$0xff] }
 0x3d3   :  { %v4263_v53 = vsel %vm2207_vm4, %v4199_v15, %v16310_v32  ;;  %1968 = vrot.lane.b32.xlu1 %v11695_v42, %s8912_s4  ;;  %v2175_v35 = vsel %vm2142_vm3, %v2110_v22, %v1695_v17  ;;  %v8232_v63 = vpack.c.bf16 %v3584_v57, %v3584_v57  ;;  %v16312_v17 = vld [vmem:[#allocation72_spill] sm:$0xff]  ;;  %v16315_v57 = vrot.slane %v11661_v0, 7 }
 0x3d4   :  { %4709 = vst [vmem:[#allocation2 + $0x44] sm:$0xf] %v8269_v8  ;;  %v4391_v47 = vmul.f32 %v4327_v51, %v4263_v53  ;;  %v2240_v31 = vsel %vm2207_vm4, %v2175_v35, %v1951_v14  ;;  %v4132_v36 = vsel %vm505_vm0, %v16313_v54, %v16312_v17  ;;  %v4324_v8 = vld [vmem:[#allocation3 + $0x70] sm:$0xff]  ;;  %v11856_v14 = vpop.f32.mrf.mxu1  ;;  %v16316_v35 = vld [vmem:[#allocation64_spill] sm:$0xff]  ;;  %v4326_v17 = vld [vmem:[#allocation3 + $0xa0] sm:$0xff] }
 0x3d5   :  { %v11847_v50 = vpop.permute.xlu1 %1444  ;;  %v2368_v4 = vmul.f32 %v2304_v60, %v2240_v31  ;;  %3904 = vst [vmem:[#allocation2 + $0x184] sm:$0xf] %v8232_v63  ;;  %16314 = vst [vmem:[#allocation13_spill] sm:$0xff] %v11856_v14  ;;  %v11863_v32 = vsel %vm1116_vm1, %v16315_v57, %v1092_v55  ;;  %v16318_v38 = vld [vmem:[#allocation120_spill] sm:$0xff]  ;;  %v16320_v57 = vld [vmem:[#allocation69_spill] sm:$0xff] }
 0x3d6   :  { %1710 = vrot.lane.b32.xlu0 %v11706_v9, %s8914_s2  ;;  %v8271_v15 = vpack.c.bf16 %v4391_v47, %v4391_v47  ;;  %v3945_v22 = vpop.permute.xlu0 %3944  ;;  %v5663_v63 = vpop.f32.mrf.mxu1 }
 0x3d7   :  { %3186 = vrot.lane.b32.xlu1 %v11775_v13, %s8912_s4  ;;  %v8168_v51 = vpack.c.bf16 %v2368_v4, %v2368_v4  ;;  %v4196_v60 = vsel %vm2142_vm3, %v4132_v36, %v3945_v22  ;;  %v16317_v4 = vld [vmem:[#allocation78_spill] sm:$0xff]  ;;  %v16319_v22 = vld [vmem:[#allocation27_spill] sm:$0xff] }
 0x3d8   :  { %4711 = vst [vmem:[#allocation2 + $0x5c] sm:$0xf] %v8271_v15  ;;  %v4260_v47 = vsel %vm2207_vm4, %v4196_v60, %v16316_v35  ;;  %v4134_v15 = vsel %vm505_vm0, %v16318_v38, %v16317_v4  ;;  %v11876_v60 = vmax.f32 %v16319_v22, 0.0  ;;  %v1224_v38 = vrot.slane %v11775_v13, 1 }
 0x3d9   :  { %v2791_v53 = vpop.permute.xlu1 %2790  ;;  %2688 = vst [vmem:[#allocation2 + $0x180] sm:$0xf] %v8168_v51  ;;  %v4388_v31 = vmul.f32 %v4324_v8, %v4260_v47 }
 0x3da   :  { %2992 = vrot.lane.b32.xlu0 %v11863_v32, %s8914_s2  ;;  %v3949_v55 = vpop.permute.xlu0 %3948 }
 0x3db   :  { %3978 = vrot.lane.b32.xlu1 %v10075_v34, %s8914_s2  ;;  %v8268_v54 = vpack.c.bf16 %v4388_v31, %v4388_v31  ;;  %v4198_v36 = vsel %vm2142_vm3, %v4134_v15, %v3949_v55  ;;  %v15853_v15 = vrot.slane %v11876_v60, 1 }
 0x3dc   :  { %v4262_v35 = vsel %vm2207_vm4, %v4198_v36, %v16320_v57  ;;  %v8778_v63 = vld [vmem:[#allocation2 + $0x184] ss:$12 sps:$4 sm:$0xff]  }
 0x3dd   :  { %v1701_v51 = vpop.permute.xlu1 %1700  ;;  %4708 = vst [vmem:[#allocation2 + $0x38] sm:$0xf] %v8268_v54  ;;  %v4390_v34 = vmul.f32 %v4326_v17, %v4262_v35  ;;  %5760 = vmatprep.mubr.bf16.mxu1 %v8778_v63  ;;  %v2307_v54 = vld [vmem:[#allocation3 + $0x348] sm:$0xff]  ;;  %v16322_v57 = vld [vmem:[#allocation29_spill] sm:$0xff] }
 0x3de   :  { %1966 = vrot.lane.b32.xlu0 %v11739_v7, %s8912_s4  ;;  %v11884_v8 = vpop.permute.xlu0 %1442  ;;  %v11899_v35 = vmax.f32 %v16322_v57, 0.0 }
 0x3df   :  { %3982 = vrot.lane.b32.xlu1 %v10105_v59, %s8914_s2  ;;  %v8270_v47 = vpack.c.bf16 %v4390_v34, %v4390_v34  ;;  %v2113_v59 = vsel %vm505_vm0, %v11318_v2, %v11847_v50  ;;  %v11895_v55 = vpop.f32.mrf.mxu1  ;;  %v11908_v2 = vsel %vm1245_vm2, %v1224_v38, %v15853_v15 }
 0x3e0   :  { %v8780_v31 = vld [vmem:[#allocation2 + $0x180] ss:$12 sps:$4 sm:$0xff]   ;;  %16321 = vst [vmem:[#allocation54_spill] sm:$0xff] %v11895_v55  ;;  %v2178_v36 = vsel %vm2142_vm3, %v2113_v59, %v1701_v51  ;;  %16323 = vst [vmem:[#allocation12_spill] sm:$0xff] %v11908_v2  ;;  %v3331_v51 = vsel %vm505_vm0, %v16223_v27, %v2791_v53  ;;  %v1094_v53 = vrot.slane %v11876_v60, 7  ;;  %v15854_v55 = vrot.slane %v11899_v35, 7 }
 0x3e1   :  { %v2983_v4 = vpop.permute.xlu1 %2982  ;;  %4710 = vst [vmem:[#allocation2 + $0x50] sm:$0xf] %v8270_v47  ;;  %5761 = vmatmul.mubr.bf16.gmra.mxu1 %v8780_v31  ;;  %v5668_v34 = vpop.f32.mrf.mxu1 }
 0x3e2   :  { %3184 = vrot.lane.b32.xlu0 %v11748_v5, %s8912_s4  ;;  %v2789_v17 = vpop.permute.xlu0 %2788 }
 0x3e3   :  { %1460 = vrot.lane.b32.xlu1 %v11661_v0, %s8911_s3  ;;  %v11914_v57 = vpop.f32.mrf.mxu1 }
 0x3e4   :  { %v8781_v47 = vld [vmem:[#allocation2 + $0x38] ss:$12 sps:$4 sm:$0xff]   ;;  %16324 = vst [vmem:[#allocation9_spill] sm:$0xff] %v11914_v57  ;;  %v4329_v57 = vld [vmem:[#allocation3 + $0xe8] sm:$0xff] }
 0x3e5   :  { %v1957_v22 = vpop.permute.xlu1 %1956  ;;  %8542 = vmatprep.mubr.bf16.mxu0 %v8781_v47 }
 0x3e6   :  { %3976 = vrot.lane.b32.xlu0 %v10134_v24, %s8914_s2  ;;  %v2243_v63 = vsel %vm2207_vm4, %v2178_v36, %v1957_v22  ;;  %v1699_v59 = vpop.permute.xlu0 %1698  ;;  %v3523_v24 = vld [vmem:[#allocation3 + $0x350] sm:$0xff]  ;;  %v3395_v36 = vsel %vm2142_vm3, %v3331_v51, %v2983_v4  ;;  %v16326_v51 = vld [vmem:[#allocation124_spill] sm:$0xff] }
 0x3e7   :  { %v2371_v31 = vmul.f32 %v2307_v54, %v2243_v63  ;;  %2806 = vrot.lane.b32.xlu1 %v11908_v2, %s8911_s3  ;;  %v5671_v54 = vpop.f32.mrf.mxu1 }
 0x3e8   :  { %v8782_v63 = vld [vmem:[#allocation2 + $0x50] ss:$12 sps:$4 sm:$0xff]  }
 0x3e9   :  { %v8171_v22 = vpack.c.bf16 %v2371_v31, %v2371_v31  ;;  %v11917_v34 = vpop.permute.xlu1 %3174  ;;  %8543 = vmatmul.mubr.bf16.gmra.mxu0 %v8782_v63  ;;  %v16325_v31 = vld [vmem:[#allocation70_spill] sm:$0xff]  ;;  %v16327_v63 = vld [vmem:[#allocation63_spill] sm:$0xff] }
 0x3ea   :  { %3980 = vrot.lane.b32.xlu0 %v10148_v46, %s8914_s2  ;;  %v3459_v15 = vsel %vm2207_vm4, %v3395_v36, %v11917_v34  ;;  %v2981_v4 = vpop.permute.xlu0 %2980  ;;  %v4137_v46 = vsel %vm505_vm0, %v16326_v51, %v16325_v31 }
 0x3eb   :  { %2691 = vst [vmem:[#allocation2 + $0x1a4] sm:$0xf] %v8171_v22  ;;  %v3587_v47 = vmul.f32 %v3523_v24, %v3459_v15  ;;  %1716 = vrot.lane.b32.xlu1 %v11784_v6, %s8914_s2  ;;  %v11937_v15 = vsel %vm1116_vm1, %v1094_v53, %v15854_v55  ;;  %v2112_v24 = vsel %vm505_vm0, %v11363_v20, %v11884_v8  ;;  %v2306_v22 = vld [vmem:[#allocation3 + $0x330] sm:$0xff]  ;;  %v16330_v20 = vrot.slane %v11748_v5, 1 }
 0x3ed   :  { %v8235_v54 = vpack.c.bf16 %v3587_v47, %v3587_v47  ;;  %v3955_v14 = vpop.permute.xlu1 %3954 }
 0x3ee   :  { %1458 = vrot.lane.b32.xlu0 %v11634_v44, %s8911_s3  ;;  %v4201_v36 = vsel %vm2142_vm3, %v4137_v46, %v3955_v14  ;;  %v2177_v14 = vsel %vm2142_vm3, %v2112_v24, %v1699_v59  ;;  %v1955_v31 = vpop.permute.xlu0 %1954  ;;  %v16328_v46 = vld [vmem:[#allocation76_spill] sm:$0xff] }
 0x3ef   :  { %3907 = vst [vmem:[#allocation2 + $0x1a8] sm:$0xf] %v8235_v54  ;;  %v4265_v47 = vsel %vm2207_vm4, %v4201_v36, %v16327_v63  ;;  %2998 = vrot.lane.b32.xlu1 %v11937_v15, %s8914_s2  ;;  %v4139_v55 = vsel %vm505_vm0, %v16329_v61, %v16328_v46  ;;  %v2242_v9 = vsel %vm2207_vm4, %v2177_v14, %v1955_v31  ;;  %v4331_v36 = vld [vmem:[#allocation3 + $0x118] sm:$0xff] }
 0x3f0   :  { %v4393_v51 = vmul.f32 %v4329_v57, %v4265_v47  ;;  %v11955_v54 = vsel %vm1245_vm2, %v16330_v20, %v1224_v38  ;;  %v2370_v6 = vmul.f32 %v2306_v22, %v2242_v9  ;;  %v3330_v61 = vsel %vm505_vm0, %v16217_v43, %v2789_v17  ;;  %v3522_v24 = vld [vmem:[#allocation3 + $0x338] sm:$0xff]  ;;  %v16332_v47 = vld [vmem:[#allocation67_spill] sm:$0xff]  ;;  %v11969_v22 = vpop.f32.mrf.mxu1 }
 0x3f1   :  { %16331 = vst [vmem:[#allocation28_spill] sm:$0xff] %v11955_v54  ;;  %v3959_v63 = vpop.permute.xlu1 %3958  ;;  %v3394_v38 = vsel %vm2142_vm3, %v3330_v61, %v2981_v4  ;;  %16334 = vst [vmem:[#allocation16_spill] sm:$0xff] %v11969_v22  ;;  %v16336_v4 = vld [vmem:[#allocation130_spill] sm:$0xff] }
 0x3f2   :  { %2804 = vrot.lane.b32.xlu0 %v11955_v54, %s8911_s3  ;;  %v8273_v59 = vpack.c.bf16 %v4393_v51, %v4393_v51  ;;  %v4203_v57 = vsel %vm2142_vm3, %v4139_v55, %v3959_v63  ;;  %v8170_v31 = vpack.c.bf16 %v2370_v6, %v2370_v6  ;;  %v11967_v9 = vpop.permute.xlu0 %3172  ;;  %v5676_v20 = vpop.f32.mrf.mxu1  ;;  %v16335_v6 = vld [vmem:[#allocation83_spill] sm:$0xff] }
 0x3f3   :  { %v4267_v14 = vsel %vm2207_vm4, %v4203_v57, %v16332_v47  ;;  %1972 = vrot.lane.b32.xlu1 %v11813_v1, %s8912_s4  ;;  %16333 = vst [vmem:[#allocation57_spill] sm:$0xff] %v11967_v9  ;;  %v3458_v55 = vsel %vm2207_vm4, %v3394_v38, %v11967_v9  ;;  %v4328_v57 = vld [vmem:[#allocation3 + $0xd0] sm:$0xff] }
 0x3f4   :  { %4713 = vst [vmem:[#allocation2 + $0x74] sm:$0xf] %v8273_v59  ;;  %v4395_v51 = vmul.f32 %v4331_v36, %v4267_v14  ;;  %2690 = vst [vmem:[#allocation2 + $0x198] sm:$0xf] %v8170_v31  ;;  %v3586_v46 = vmul.f32 %v3522_v24, %v3458_v55  ;;  %v4136_v59 = vsel %vm505_vm0, %v16336_v4, %v16335_v6  ;;  %v11982_v47 = vpop.f32.mrf.mxu1  ;;  %v16338_v14 = vrot.slane %v11775_v13, 7  ;;  %v16341_v6 = vld [vmem:[#allocation139_spill] sm:$0xff] }
 0x3f5   :  { %v11973_v17 = vpop.permute.xlu1 %1448  ;;  %16337 = vst [vmem:[#allocation30_spill] sm:$0xff] %v11982_v47  ;;  %v16342_v47 = vld [vmem:[#allocation31_spill] sm:$0xff] }
 0x3f6   :  { %1714 = vrot.lane.b32.xlu0 %v11829_v23, %s8914_s2  ;;  %v8275_v63 = vpack.c.bf16 %v4395_v51, %v4395_v51  ;;  %v8234_v36 = vpack.c.bf16 %v3586_v46, %v3586_v46  ;;  %v3953_v61 = vpop.permute.xlu0 %3952  ;;  %v11989_v38 = vsel %vm1116_vm1, %v16338_v14, %v1094_v53  ;;  %v16339_v51 = vld [vmem:[#allocation75_spill] sm:$0xff]  ;;  %v5679_v46 = vpop.f32.mrf.mxu1 }
 0x3f7   :  { %3190 = vrot.lane.b32.xlu1 %v11899_v35, %s8912_s4  ;;  %v4200_v24 = vsel %vm2142_vm3, %v4136_v59, %v3953_v61  ;;  %v4330_v59 = vld [vmem:[#allocation3 + $0x100] sm:$0xff] }
 0x3f8   :  { %4715 = vst [vmem:[#allocation2 + $0x8c] sm:$0xf] %v8275_v63  ;;  %3906 = vst [vmem:[#allocation2 + $0x19c] sm:$0xf] %v8234_v36  ;;  %v4264_v55 = vsel %vm2207_vm4, %v4200_v24, %v16339_v51  ;;  %v16340_v63 = vld [vmem:[#allocation89_spill] sm:$0xff]  ;;  %v12002_v24 = vmax.f32 %v16342_v47, 0.0 }
 0x3f9   :  { %v2795_v31 = vpop.permute.xlu1 %2794  ;;  %v4392_v20 = vmul.f32 %v4328_v57, %v4264_v55  ;;  %v4138_v4 = vsel %vm505_vm0, %v16341_v6, %v16340_v63  ;;  %v16343_v51 = vld [vmem:[#allocation81_spill] sm:$0xff]  ;;  %v1226_v47 = vrot.slane %v11899_v35, 1 }
 0x3fa   :  { %2996 = vrot.lane.b32.xlu0 %v11989_v38, %s8914_s2  ;;  %v3957_v53 = vpop.permute.xlu0 %3956 }
 0x3fb   :  { %3986 = vrot.lane.b32.xlu1 %v16150_v58, %s8914_s2  ;;  %v8272_v61 = vpack.c.bf16 %v4392_v20, %v4392_v20  ;;  %v4202_v36 = vsel %vm2142_vm3, %v4138_v4, %v3957_v53  ;;  %v8785_v63 = vld [vmem:[#allocation2 + $0x198] ss:$12 sps:$4 sm:$0xff]  }
 0x3fc   :  { %v4266_v46 = vsel %vm2207_vm4, %v4202_v36, %v16343_v51 }
 0x3fd   :  { %v1705_v14 = vpop.permute.xlu1 %1704  ;;  %4712 = vst [vmem:[#allocation2 + $0x68] sm:$0xf] %v8272_v61  ;;  %v4394_v58 = vmul.f32 %v4330_v59, %v4266_v46  ;;  %v2309_v61 = vld [vmem:[#allocation3 + $0x378] sm:$0xff]  ;;  %v16345_v46 = vld [vmem:[#allocation34_spill] sm:$0xff] }
 0x3fe   :  { %1970 = vrot.lane.b32.xlu0 %v11863_v32, %s8912_s4  ;;  %v12010_v57 = vpop.permute.xlu0 %1446 }
 0x3ff   :  { %3990 = vrot.lane.b32.xlu1 %v16166_v10, %s8914_s2  ;;  %v8274_v55 = vpack.c.bf16 %v4394_v58, %v4394_v58  ;;  %v8783_v20 = vld [vmem:[#allocation2 + $0x19c] ss:$12 sps:$4 sm:$0xff]   ;;  %v2115_v10 = vsel %vm505_vm0, %v11382_v26, %v11973_v17  ;;  %v12021_v53 = vpop.f32.mrf.mxu1  ;;  %v12025_v58 = vmax.f32 %v16345_v46, 0.0  ;;  %v16346_v26 = vrot.slane %v12002_v24, 1 }
 0x400   :  { %5768 = vmatprep.mubr.bf16.mxu1 %v8783_v20  ;;  %16344 = vst [vmem:[#allocation60_spill] sm:$0xff] %v12021_v53  ;;  %v2180_v36 = vsel %vm2142_vm3, %v2115_v10, %v1705_v14  ;;  %v3333_v14 = vsel %vm505_vm0, %v11447_v62, %v2795_v31  ;;  %v1096_v31 = vrot.slane %v12002_v24, 7 }
 0x401   :  { %v2987_v6 = vpop.permute.xlu1 %2986  ;;  %4714 = vst [vmem:[#allocation2 + $0x80] sm:$0xf] %v8274_v55  ;;  %5769 = vmatmul.mubr.bf16.gmra.mxu1 %v8785_v63  ;;  %v5684_v55 = vpop.f32.mrf.mxu1  ;;  %v12034_v53 = vsel %vm1245_vm2, %v1226_v47, %v16346_v26  ;;  %v15859_v22 = vrot.slane %v12025_v58, 7 }
 0x402   :  { %3188 = vrot.lane.b32.xlu0 %v11876_v60, %s8912_s4  ;;  %v2793_v59 = vpop.permute.xlu0 %2792  ;;  %16347 = vst [vmem:[#allocation101_spill] sm:$0xff] %v12034_v53 }
 0x403   :  { %1464 = vrot.lane.b32.xlu1 %v11775_v13, %s8911_s3  ;;  %v12040_v46 = vpop.f32.mrf.mxu1 }
 0x404   :  { %v8786_v20 = vld [vmem:[#allocation2 + $0x68] ss:$12 sps:$4 sm:$0xff]   ;;  %16348 = vst [vmem:[#allocation55_spill] sm:$0xff] %v12040_v46 }
 0x405   :  { %v1961_v51 = vpop.permute.xlu1 %1960  ;;  %8546 = vmatprep.mubr.bf16.mxu0 %v8786_v20  ;;  %v4333_v46 = vld [vmem:[#allocation3 + $0x148] sm:$0xff] }
 0x406   :  { %3984 = vrot.lane.b32.xlu0 %v10162_v16, %s8914_s2  ;;  %v2245_v4 = vsel %vm2207_vm4, %v2180_v36, %v1961_v51  ;;  %v1703_v10 = vpop.permute.xlu0 %1702  ;;  %v3525_v16 = vld [vmem:[#allocation3 + $0x380] sm:$0xff]  ;;  %v3397_v36 = vsel %vm2142_vm3, %v3333_v14, %v2987_v6 }
 0x407   :  { %v2373_v63 = vmul.f32 %v2309_v61, %v2245_v4  ;;  %2810 = vrot.lane.b32.xlu1 %v12034_v53, %s8911_s3  ;;  %v5687_v4 = vpop.f32.mrf.mxu1  ;;  %v16351_v14 = vld [vmem:[#allocation141_spill] sm:$0xff] }
 0x408   :  { %v8787_v61 = vld [vmem:[#allocation2 + $0x80] ss:$12 sps:$4 sm:$0xff]  }
 0x409   :  { %v8173_v51 = vpack.c.bf16 %v2373_v63, %v2373_v63  ;;  %v12043_v55 = vpop.permute.xlu1 %3178  ;;  %8547 = vmatmul.mubr.bf16.gmra.mxu0 %v8787_v61  ;;  %v16350_v63 = vld [vmem:[#allocation82_spill] sm:$0xff]  ;;  %v2308_v61 = vld [vmem:[#allocation3 + $0x360] sm:$0xff] }
 0x40a   :  { %16349 = vst [vmem:[#allocation65_spill] sm:$0xff] %v12043_v55  ;;  %3988 = vrot.lane.b32.xlu0 %v16264_v3, %s8914_s2  ;;  %v3461_v26 = vsel %vm2207_vm4, %v3397_v36, %v12043_v55  ;;  %v2985_v6 = vpop.permute.xlu0 %2984  ;;  %v4141_v3 = vsel %vm505_vm0, %v16351_v14, %v16350_v63 }
 0x40b   :  { %2693 = vst [vmem:[#allocation2 + $0x1bc] sm:$0xf] %v8173_v51  ;;  %v3589_v20 = vmul.f32 %v3525_v16, %v3461_v26  ;;  %1720 = vrot.lane.b32.xlu1 %v11908_v2, %s8914_s2  ;;  %v12063_v16 = vsel %vm1116_vm1, %v1096_v31, %v15859_v22  ;;  %v2114_v51 = vsel %vm505_vm0, %v11419_v52, %v12010_v57  ;;  %v16352_v26 = vld [vmem:[#allocation73_spill] sm:$0xff]  ;;  %v16354_v2 = vld [vmem:[#allocation146_spill] sm:$0xff]  ;;  %v16355_v52 = vrot.slane %v11876_v60, 1 }
 0x40d   :  { %v8237_v4 = vpack.c.bf16 %v3589_v20, %v3589_v20  ;;  %v3963_v23 = vpop.permute.xlu1 %3962 }
 0x40e   :  { %1462 = vrot.lane.b32.xlu0 %v11748_v5, %s8911_s3  ;;  %v4205_v36 = vsel %vm2142_vm3, %v4141_v3, %v3963_v23  ;;  %v2179_v23 = vsel %vm2142_vm3, %v2114_v51, %v1703_v10  ;;  %v1959_v63 = vpop.permute.xlu0 %1958  ;;  %v16353_v3 = vld [vmem:[#allocation88_spill] sm:$0xff]  ;;  %v3524_v51 = vld [vmem:[#allocation3 + $0x368] sm:$0xff] }
 0x40f   :  { %3909 = vst [vmem:[#allocation2 + $0x1c0] sm:$0xf] %v8237_v4  ;;  %v4269_v20 = vsel %vm2207_vm4, %v4205_v36, %v16352_v26  ;;  %3002 = vrot.lane.b32.xlu1 %v12063_v16, %s8914_s2  ;;  %v4143_v22 = vsel %vm505_vm0, %v16354_v2, %v16353_v3  ;;  %v2244_v9 = vsel %vm2207_vm4, %v2179_v23, %v1959_v63  ;;  %v4335_v36 = vld [vmem:[#allocation3 + $0x178] sm:$0xff] }
 0x410   :  { %v4397_v14 = vmul.f32 %v4333_v46, %v4269_v20  ;;  %v12081_v4 = vsel %vm1245_vm2, %v16355_v52, %v1226_v47  ;;  %v2372_v55 = vmul.f32 %v2308_v61, %v2244_v9  ;;  %v3332_v2 = vsel %vm505_vm0, %v11422_v48, %v2793_v59  ;;  %v16357_v20 = vld [vmem:[#allocation80_spill] sm:$0xff]  ;;  %v12095_v61 = vpop.f32.mrf.mxu1 }
 0x411   :  { %16356 = vst [vmem:[#allocation112_spill] sm:$0xff] %v12081_v4  ;;  %v3967_v26 = vpop.permute.xlu1 %3966  ;;  %v3396_v47 = vsel %vm2142_vm3, %v3332_v2, %v2985_v6  ;;  %16358 = vst [vmem:[#allocation143_spill] sm:$0xff] %v12095_v61  ;;  %v16360_v6 = vld [vmem:[#allocation144_spill] sm:$0xff] }
 0x412   :  { %2808 = vrot.lane.b32.xlu0 %v12081_v4, %s8911_s3  ;;  %v8277_v10 = vpack.c.bf16 %v4397_v14, %v4397_v14  ;;  %v4207_v46 = vsel %vm2142_vm3, %v4143_v22, %v3967_v26  ;;  %v8172_v63 = vpack.c.bf16 %v2372_v55, %v2372_v55  ;;  %v12093_v9 = vpop.permute.xlu0 %3176  ;;  %v5692_v52 = vpop.f32.mrf.mxu1  ;;  %v16359_v55 = vld [vmem:[#allocation94_spill] sm:$0xff] }
 0x413   :  { %v4271_v23 = vsel %vm2207_vm4, %v4207_v46, %v16357_v20  ;;  %1976 = vrot.lane.b32.xlu1 %v11937_v15, %s8912_s4  ;;  %v3460_v22 = vsel %vm2207_vm4, %v3396_v47, %v12093_v9  ;;  %v4332_v46 = vld [vmem:[#allocation3 + $0x130] sm:$0xff] }
 0x414   :  { %4717 = vst [vmem:[#allocation2 + $0xa4] sm:$0xf] %v8277_v10  ;;  %v4399_v14 = vmul.f32 %v4335_v36, %v4271_v23  ;;  %2692 = vst [vmem:[#allocation2 + $0x1b0] sm:$0xf] %v8172_v63  ;;  %v3588_v3 = vmul.f32 %v3524_v51, %v3460_v22  ;;  %v4140_v10 = vsel %vm505_vm0, %v16360_v6, %v16359_v55  ;;  %v12108_v20 = vpop.f32.mrf.mxu1  ;;  %v16362_v23 = vrot.slane %v11899_v35, 7  ;;  %v4334_v6 = vld [vmem:[#allocation3 + $0x160] sm:$0xff] }
 0x415   :  { %v12099_v59 = vpop.permute.xlu1 %1452  ;;  %16361 = vst [vmem:[#allocation51_spill] sm:$0xff] %v12108_v20 }
 0x416   :  { %1718 = vrot.lane.b32.xlu0 %v11955_v54, %s8914_s2  ;;  %v8279_v26 = vpack.c.bf16 %v4399_v14, %v4399_v14  ;;  %v8236_v36 = vpack.c.bf16 %v3588_v3, %v3588_v3  ;;  %v3961_v2 = vpop.permute.xlu0 %3960  ;;  %v12115_v47 = vsel %vm1116_vm1, %v16362_v23, %v1096_v31  ;;  %v16363_v14 = vld [vmem:[#allocation87_spill] sm:$0xff]  ;;  %v5695_v3 = vpop.f32.mrf.mxu1 }
 0x417   :  { %3194 = vrot.lane.b32.xlu1 %v12025_v58, %s8912_s4  ;;  %v4204_v51 = vsel %vm2142_vm3, %v4140_v10, %v3961_v2  ;;  %v16365_v23 = vld [vmem:[#allocation35_spill] sm:$0xff] }
 0x418   :  { %4719 = vst [vmem:[#allocation2 + $0xbc] sm:$0xf] %v8279_v26  ;;  %3908 = vst [vmem:[#allocation2 + $0x1b4] sm:$0xf] %v8236_v36  ;;  %v4268_v22 = vsel %vm2207_vm4, %v4204_v51, %v16363_v14  ;;  %v16364_v26 = vld [vmem:[#allocation148_spill] sm:$0xff]  ;;  %v12128_v51 = vmax.f32 %v16365_v23, 0.0 }
 0x419   :  { %v2799_v63 = vpop.permute.xlu1 %2798  ;;  %v4396_v52 = vmul.f32 %v4332_v46, %v4268_v22  ;;  %v4142_v55 = vsel %vm505_vm0, %v16364_v26, %v16225_v56  ;;  %v16366_v14 = vld [vmem:[#allocation91_spill] sm:$0xff] }
 0x41a   :  { %3000 = vrot.lane.b32.xlu0 %v12115_v47, %s8914_s2  ;;  %v3965_v31 = vpop.permute.xlu0 %3964 }
 0x41b   :  { %3994 = vrot.lane.b32.xlu1 %v16182_v25, %s8914_s2  ;;  %v8276_v10 = vpack.c.bf16 %v4396_v52, %v4396_v52  ;;  %v4206_v36 = vsel %vm2142_vm3, %v4142_v55, %v3965_v31  ;;  %v8790_v52 = vld [vmem:[#allocation2 + $0x1b0] ss:$12 sps:$4 sm:$0xff]   ;;  %v1228_v55 = vrot.slane %v12025_v58, 1 }
 0x41c   :  { %v4270_v3 = vsel %vm2207_vm4, %v4206_v36, %v16366_v14  ;;  %v2311_v36 = vld [vmem:[#allocation3 + $0x3a8] sm:$0xff] }
 0x41d   :  { %v1709_v2 = vpop.permute.xlu1 %1708  ;;  %4716 = vst [vmem:[#allocation2 + $0x98] sm:$0xf] %v8276_v10  ;;  %v4398_v25 = vmul.f32 %v4334_v6, %v4270_v3  ;;  %v16368_v3 = vld [vmem:[#allocation36_spill] sm:$0xff] }
 0x41e   :  { %1974 = vrot.lane.b32.xlu0 %v11989_v38, %s8912_s4  ;;  %v12136_v56 = vpop.permute.xlu0 %1450 }
 0x41f   :  { %3998 = vrot.lane.b32.xlu1 %v16198_v45, %s8914_s2  ;;  %v8278_v46 = vpack.c.bf16 %v4398_v25, %v4398_v25  ;;  %v8788_v22 = vld [vmem:[#allocation2 + $0x1b4] ss:$12 sps:$4 sm:$0xff]   ;;  %v2117_v45 = vsel %vm505_vm0, %v11479_v49, %v12099_v59  ;;  %v12151_v25 = vmax.f32 %v16368_v3, 0.0  ;;  %v16369_v49 = vrot.slane %v12128_v51, 1 }
 0x420   :  { %5776 = vmatprep.mubr.bf16.mxu1 %v8788_v22  ;;  %v12147_v10 = vpop.f32.mrf.mxu1  ;;  %v2182_v23 = vsel %vm2142_vm3, %v2117_v45, %v1709_v2  ;;  %v3335_v2 = vsel %vm505_vm0, %v11553_v21, %v2799_v63  ;;  %v1098_v63 = vrot.slane %v12128_v51, 7 }
 0x421   :  { %v2991_v26 = vpop.permute.xlu1 %2990  ;;  %4718 = vst [vmem:[#allocation2 + $0xb0] sm:$0xf] %v8278_v46  ;;  %16367 = vst [vmem:[#allocation59_spill] sm:$0xff] %v12147_v10  ;;  %5777 = vmatmul.mubr.bf16.gmra.mxu1 %v8790_v52  ;;  %v12160_v10 = vsel %vm1245_vm2, %v1228_v55, %v16369_v49  ;;  %v15862_v20 = vrot.slane %v12151_v25, 7 }
 0x422   :  { %3192 = vrot.lane.b32.xlu0 %v12002_v24, %s8912_s4  ;;  %v2797_v6 = vpop.permute.xlu0 %2796  ;;  %v5700_v46 = vpop.f32.mrf.mxu1  ;;  %16370 = vst [vmem:[#allocation72_spill] sm:$0xff] %v12160_v10 }
 0x423   :  { %1468 = vrot.lane.b32.xlu1 %v11899_v35, %s8911_s3 }
 0x424   :  { %v8791_v22 = vld [vmem:[#allocation2 + $0x98] ss:$12 sps:$4 sm:$0xff]   ;;  %v12166_v3 = vpop.f32.mrf.mxu1 }
 0x425   :  { %v1965_v14 = vpop.permute.xlu1 %1964  ;;  %16371 = vst [vmem:[#allocation108_spill] sm:$0xff] %v12166_v3  ;;  %8550 = vmatprep.mubr.bf16.mxu0 %v8791_v22  ;;  %v4337_v3 = vld [vmem:[#allocation3 + $0x1a8] sm:$0xff] }
 0x426   :  { %3992 = vrot.lane.b32.xlu0 %v16276_v29, %s8914_s2  ;;  %v2247_v31 = vsel %vm2207_vm4, %v2182_v23, %v1965_v14  ;;  %v1707_v45 = vpop.permute.xlu0 %1706  ;;  %v3527_v29 = vld [vmem:[#allocation3 + $0x3b0] sm:$0xff]  ;;  %v3399_v23 = vsel %vm2142_vm3, %v3335_v2, %v2991_v26  ;;  %v16373_v2 = vld [vmem:[#allocation149_spill] sm:$0xff] }
 0x427   :  { %v2375_v52 = vmul.f32 %v2311_v36, %v2247_v31  ;;  %2814 = vrot.lane.b32.xlu1 %v12160_v10, %s8911_s3  ;;  %v5703_v31 = vpop.f32.mrf.mxu1 }
 0x428   :  { %v8792_v36 = vld [vmem:[#allocation2 + $0xb0] ss:$12 sps:$4 sm:$0xff]  }
 0x429   :  { %v8175_v14 = vpack.c.bf16 %v2375_v52, %v2375_v52  ;;  %v12169_v46 = vpop.permute.xlu1 %3182  ;;  %8551 = vmatmul.mubr.bf16.gmra.mxu0 %v8792_v36  ;;  %v16372_v52 = vld [vmem:[#allocation93_spill] sm:$0xff]  ;;  %v2310_v36 = vld [vmem:[#allocation3 + $0x390] sm:$0xff] }
 0x42a   :  { %3996 = vrot.lane.b32.xlu0 %v16289_v11, %s8914_s2  ;;  %v3463_v49 = vsel %vm2207_vm4, %v3399_v23, %v12169_v46  ;;  %v2989_v26 = vpop.permute.xlu0 %2988  ;;  %v4145_v11 = vsel %vm505_vm0, %v16373_v2, %v16372_v52 }
 0x42b   :  { %2695 = vst [vmem:[#allocation2 + $0x1d4] sm:$0xf] %v8175_v14  ;;  %v3591_v22 = vmul.f32 %v3527_v29, %v3463_v49  ;;  %1724 = vrot.lane.b32.xlu1 %v12034_v53, %s8914_s2  ;;  %v12189_v29 = vsel %vm1116_vm1, %v1098_v63, %v15862_v20  ;;  %v2116_v14 = vsel %vm505_vm0, %v11519_v40, %v12136_v56  ;;  %v16374_v49 = vld [vmem:[#allocation85_spill] sm:$0xff]  ;;  %v16376_v40 = vrot.slane %v12002_v24, 1 }
 0x42d   :  { %v8239_v31 = vpack.c.bf16 %v3591_v22, %v3591_v22  ;;  %v3971_v61 = vpop.permute.xlu1 %3970 }
 0x42e   :  { %1466 = vrot.lane.b32.xlu0 %v11876_v60, %s8911_s3  ;;  %v4209_v23 = vsel %vm2142_vm3, %v4145_v11, %v3971_v61  ;;  %v2181_v61 = vsel %vm2142_vm3, %v2116_v14, %v1707_v45  ;;  %v1963_v52 = vpop.permute.xlu0 %1962  ;;  %v16375_v11 = vld [vmem:[#allocation151_spill] sm:$0xff]  ;;  %v3526_v14 = vld [vmem:[#allocation3 + $0x398] sm:$0xff] }
 0x42f   :  { %3911 = vst [vmem:[#allocation2 + $0x1d8] sm:$0xf] %v8239_v31  ;;  %v4273_v22 = vsel %vm2207_vm4, %v4209_v23, %v16374_v49  ;;  %3006 = vrot.lane.b32.xlu1 %v12189_v29, %s8914_s2  ;;  %v4147_v20 = vsel %vm505_vm0, %v16375_v11, %v16238_v37  ;;  %v2246_v54 = vsel %vm2207_vm4, %v2181_v61, %v1963_v52  ;;  %v4339_v23 = vld [vmem:[#allocation3 + $0x1d8] sm:$0xff] }
 0x430   :  { %v4401_v2 = vmul.f32 %v4337_v3, %v4273_v22  ;;  %v12207_v31 = vsel %vm1245_vm2, %v16376_v40, %v1228_v55  ;;  %v2374_v53 = vmul.f32 %v2310_v36, %v2246_v54  ;;  %v3334_v37 = vsel %vm505_vm0, %v11528_v19, %v2797_v6  ;;  %v16378_v22 = vld [vmem:[#allocation90_spill] sm:$0xff]  ;;  %v12221_v36 = vpop.f32.mrf.mxu1 }
 0x431   :  { %16377 = vst [vmem:[#allocation64_spill] sm:$0xff] %v12207_v31  ;;  %v3975_v49 = vpop.permute.xlu1 %3974  ;;  %v3398_v55 = vsel %vm2142_vm3, %v3334_v37, %v2989_v26  ;;  %16380 = vst [vmem:[#allocation120_spill] sm:$0xff] %v12221_v36  ;;  %v16382_v26 = vld [vmem:[#allocation150_spill] sm:$0xff]  ;;  %v16397_v36 = vld [vmem:[#allocation109_spill] sm:$0xff] }
 0x432   :  { %2812 = vrot.lane.b32.xlu0 %v12207_v31, %s8911_s3  ;;  %v8281_v45 = vpack.c.bf16 %v4401_v2, %v4401_v2  ;;  %v4211_v3 = vsel %vm2142_vm3, %v4147_v20, %v3975_v49  ;;  %v8174_v52 = vpack.c.bf16 %v2374_v53, %v2374_v53  ;;  %v12219_v54 = vpop.permute.xlu0 %3180  ;;  %v5708_v40 = vpop.f32.mrf.mxu1  ;;  %v16381_v53 = vld [vmem:[#allocation104_spill] sm:$0xff] }
 0x433   :  { %v4275_v61 = vsel %vm2207_vm4, %v4211_v3, %v16378_v22  ;;  %1980 = vrot.lane.b32.xlu1 %v12063_v16, %s8912_s4  ;;  %16379 = vst [vmem:[#allocation78_spill] sm:$0xff] %v12219_v54  ;;  %v3462_v20 = vsel %vm2207_vm4, %v3398_v55, %v12219_v54  ;;  %v4336_v3 = vld [vmem:[#allocation3 + $0x190] sm:$0xff] }
 0x434   :  { %4721 = vst [vmem:[#allocation2 + $0xd4] sm:$0xf] %v8281_v45  ;;  %v4403_v2 = vmul.f32 %v4339_v23, %v4275_v61  ;;  %2694 = vst [vmem:[#allocation2 + $0x1c8] sm:$0xf] %v8174_v52  ;;  %v3590_v11 = vmul.f32 %v3526_v14, %v3462_v20  ;;  %v4144_v45 = vsel %vm505_vm0, %v16382_v26, %v16381_v53  ;;  %v12234_v22 = vpop.f32.mrf.mxu1  ;;  %v16384_v61 = vrot.slane %v12025_v58, 7  ;;  %v4338_v26 = vld [vmem:[#allocation3 + $0x1c0] sm:$0xff] }
 0x435   :  { %v12225_v6 = vpop.permute.xlu1 %1456  ;;  %16383 = vst [vmem:[#allocation27_spill] sm:$0xff] %v12234_v22 }
 0x436   :  { %1722 = vrot.lane.b32.xlu0 %v12081_v4, %s8914_s2  ;;  %v8283_v49 = vpack.c.bf16 %v4403_v2, %v4403_v2  ;;  %v8238_v23 = vpack.c.bf16 %v3590_v11, %v3590_v11  ;;  %v3969_v37 = vpop.permute.xlu0 %3968  ;;  %v12241_v55 = vsel %vm1116_vm1, %v16384_v61, %v1098_v63  ;;  %v16385_v2 = vld [vmem:[#allocation97_spill] sm:$0xff]  ;;  %v5711_v11 = vpop.f32.mrf.mxu1 }
 0x437   :  { %3198 = vrot.lane.b32.xlu1 %v12151_v25, %s8912_s4  ;;  %v4208_v14 = vsel %vm2142_vm3, %v4144_v45, %v3969_v37  ;;  %v16387_v61 = vld [vmem:[#allocation37_spill] sm:$0xff] }
 0x438   :  { %4723 = vst [vmem:[#allocation2 + $0xec] sm:$0xf] %v8283_v49  ;;  %3910 = vst [vmem:[#allocation2 + $0x1cc] sm:$0xf] %v8238_v23  ;;  %v4272_v20 = vsel %vm2207_vm4, %v4208_v14, %v16385_v2  ;;  %v16386_v49 = vld [vmem:[#allocation152_spill] sm:$0xff]  ;;  %v12254_v14 = vmax.f32 %v16387_v61, 0.0 }
 0x439   :  { %v2803_v52 = vpop.permute.xlu1 %2802  ;;  %v4400_v40 = vmul.f32 %v4336_v3, %v4272_v20  ;;  %v4146_v53 = vsel %vm505_vm0, %v16386_v49, %v16242_v28  ;;  %v16388_v2 = vld [vmem:[#allocation102_spill] sm:$0xff] }
 0x43a   :  { %3004 = vrot.lane.b32.xlu0 %v12241_v55, %s8914_s2  ;;  %v3973_v63 = vpop.permute.xlu0 %3972 }
 0x43b   :  { %4002 = vrot.lane.b32.xlu1 %v16211_v41, %s8914_s2  ;;  %v8280_v45 = vpack.c.bf16 %v4400_v40, %v4400_v40  ;;  %v4210_v23 = vsel %vm2142_vm3, %v4146_v53, %v3973_v63  ;;  %v8795_v40 = vld [vmem:[#allocation2 + $0x1c8] ss:$12 sps:$4 sm:$0xff]   ;;  %v1230_v53 = vrot.slane %v12151_v25, 1 }
 0x43c   :  { %v4274_v11 = vsel %vm2207_vm4, %v4210_v23, %v16388_v2  ;;  %v2313_v23 = vld [vmem:[#allocation3 + $0x3d8] sm:$0xff] }
 0x43d   :  { %v1713_v37 = vpop.permute.xlu1 %1712  ;;  %4720 = vst [vmem:[#allocation2 + $0xc8] sm:$0xf] %v8280_v45  ;;  %v4402_v41 = vmul.f32 %v4338_v26, %v4274_v11  ;;  %v16390_v11 = vld [vmem:[#allocation38_spill] sm:$0xff] }
 0x43e   :  { %1978 = vrot.lane.b32.xlu0 %v12115_v47, %s8912_s4  ;;  %v12262_v28 = vpop.permute.xlu0 %1454 }
 0x43f   :  { %4006 = vrot.lane.b32.xlu1 %v16223_v27, %s8914_s2  ;;  %v8282_v3 = vpack.c.bf16 %v4402_v41, %v4402_v41  ;;  %v8793_v20 = vld [vmem:[#allocation2 + $0x1cc] ss:$12 sps:$4 sm:$0xff]   ;;  %v2119_v27 = vsel %vm505_vm0, %v11585_v30, %v12225_v6  ;;  %v12277_v41 = vmax.f32 %v16390_v11, 0.0  ;;  %v16391_v30 = vrot.slane %v12254_v14, 1 }
 0x440   :  { %5784 = vmatprep.mubr.bf16.mxu1 %v8793_v20  ;;  %v12273_v45 = vpop.f32.mrf.mxu1  ;;  %v2184_v61 = vsel %vm2142_vm3, %v2119_v27, %v1713_v37  ;;  %v3337_v37 = vsel %vm505_vm0, %v11661_v0, %v2803_v52  ;;  %v1100_v52 = vrot.slane %v12254_v14, 7 }
 0x441   :  { %v2995_v49 = vpop.permute.xlu1 %2994  ;;  %4722 = vst [vmem:[#allocation2 + $0xe0] sm:$0xf] %v8282_v3  ;;  %16389 = vst [vmem:[#allocation69_spill] sm:$0xff] %v12273_v45  ;;  %5785 = vmatmul.mubr.bf16.gmra.mxu1 %v8795_v40  ;;  %v12286_v45 = vsel %vm1245_vm2, %v1230_v53, %v16391_v30  ;;  %v15866_v22 = vrot.slane %v12277_v41, 7 }
 0x442   :  { %3196 = vrot.lane.b32.xlu0 %v12128_v51, %s8912_s4  ;;  %v5716_v3 = vpop.f32.mrf.mxu1  ;;  %16392 = vst [vmem:[#allocation29_spill] sm:$0xff] %v12286_v45 }
 0x443   :  { %1472 = vrot.lane.b32.xlu1 %v12025_v58, %s8911_s3 }
 0x444   :  { %v2801_v26 = vpop.permute.xlu0 %2800  ;;  %v8796_v20 = vld [vmem:[#allocation2 + $0xc8] ss:$12 sps:$4 sm:$0xff]   ;;  %v12292_v11 = vpop.f32.mrf.mxu1 }
 0x445   :  { %v1969_v2 = vpop.permute.xlu1 %1968  ;;  %16393 = vst [vmem:[#allocation70_spill] sm:$0xff] %v12292_v11  ;;  %8554 = vmatprep.mubr.bf16.mxu0 %v8796_v20 }
 0x446   :  { %4000 = vrot.lane.b32.xlu0 %v16204_v18, %s8914_s2  ;;  %v2249_v63 = vsel %vm2207_vm4, %v2184_v61, %v1969_v2  ;;  %v3529_v18 = vld [vmem:[#allocation3 + $0x3e0] sm:$0xff]  ;;  %v3401_v61 = vsel %vm2142_vm3, %v3337_v37, %v2995_v49 }
 0x447   :  { %v2377_v40 = vmul.f32 %v2313_v23, %v2249_v63  ;;  %2818 = vrot.lane.b32.xlu1 %v12286_v45, %s8911_s3  ;;  %v5719_v63 = vpop.f32.mrf.mxu1 }
 0x448   :  { %v1711_v27 = vpop.permute.xlu0 %1710  ;;  %v8797_v23 = vld [vmem:[#allocation2 + $0xe0] ss:$12 sps:$4 sm:$0xff]  }
 0x449   :  { %v8177_v2 = vpack.c.bf16 %v2377_v40, %v2377_v40  ;;  %v12295_v3 = vpop.permute.xlu1 %3186  ;;  %8555 = vmatmul.mubr.bf16.gmra.mxu0 %v8797_v23  ;;  %v16394_v40 = vld [vmem:[#allocation86_spill] sm:$0xff] }
 0x44a   :  { %4004 = vrot.lane.b32.xlu0 %v16217_v43, %s8914_s2  ;;  %v3465_v30 = vsel %vm2207_vm4, %v3401_v61, %v12295_v3  ;;  %v4149_v43 = vsel %vm505_vm0, %v16394_v40, %v16244_v39  ;;  %v4341_v63 = vld [vmem:[#allocation3 + $0x208] sm:$0xff]  ;;  %v16396_v39 = vld [vmem:[#allocation95_spill] sm:$0xff] }
 0x44b   :  { %2697 = vst [vmem:[#allocation2 + $0x1ec] sm:$0xf] %v8177_v2  ;;  %v3593_v20 = vmul.f32 %v3529_v18, %v3465_v30  ;;  %1728 = vrot.lane.b32.xlu1 %v12160_v10, %s8914_s2  ;;  %v12315_v18 = vsel %vm1116_vm1, %v1100_v52, %v15866_v22  ;;  %v16395_v2 = vld [vmem:[#allocation20_spill] sm:$0xff]  ;;  %v2312_v30 = vld [vmem:[#allocation3 + $0x3c0] sm:$0xff]  ;;  %v16398_v10 = vld [vmem:[#allocation10_spill] sm:$0xff] }
 0x44c   :  { %v2993_v49 = vpop.permute.xlu0 %2992  ;;  %v2118_v23 = vsel %vm505_vm0, %v16395_v2, %v12262_v28  ;;  %v4151_v22 = vsel %vm505_vm0, %v16398_v10, %v16397_v36  ;;  %v16399_v2 = vrot.slane %v12128_v51, 1  ;;  %v3336_v10 = vsel %vm505_vm0, %v11634_v44, %v2801_v26  ;;  %v3528_v36 = vld [vmem:[#allocation3 + $0x3c8] sm:$0xff] }
 0x44d   :  { %v8241_v37 = vpack.c.bf16 %v3593_v20, %v3593_v20  ;;  %v3979_v11 = vpop.permute.xlu1 %3978 }
 0x44e   :  { %1470 = vrot.lane.b32.xlu0 %v12002_v24, %s8911_s3  ;;  %v4213_v61 = vsel %vm2142_vm3, %v4149_v43, %v3979_v11  ;;  %v2183_v11 = vsel %vm2142_vm3, %v2118_v23, %v1711_v27  ;;  %v16401_v23 = vld [vmem:[#allocation100_spill] sm:$0xff] }
 0x44f   :  { %3913 = vst [vmem:[#allocation2 + $0x1f0] sm:$0xf] %v8241_v37  ;;  %v4277_v20 = vsel %vm2207_vm4, %v4213_v61, %v16396_v39  ;;  %3010 = vrot.lane.b32.xlu1 %v12315_v18, %s8914_s2  ;;  %v12333_v37 = vsel %vm1245_vm2, %v16399_v2, %v1230_v53  ;;  %v4343_v61 = vld [vmem:[#allocation3 + $0x238] sm:$0xff]  ;;  %v3400_v53 = vsel %vm2142_vm3, %v3336_v10, %v2993_v49 }
 0x450   :  { %v1967_v40 = vpop.permute.xlu0 %1966  ;;  %v4405_v43 = vmul.f32 %v4341_v63, %v4277_v20  ;;  %16400 = vst [vmem:[#allocation124_spill] sm:$0xff] %v12333_v37  ;;  %v16405_v49 = vld [vmem:[#allocation48_spill] sm:$0xff] }
 0x451   :  { %v2248_v4 = vsel %vm2207_vm4, %v2183_v11, %v1967_v40  ;;  %v3983_v39 = vpop.permute.xlu1 %3982 }
 0x452   :  { %v2376_v54 = vmul.f32 %v2312_v30, %v2248_v4  ;;  %2816 = vrot.lane.b32.xlu0 %v12333_v37, %s8911_s3  ;;  %v8285_v27 = vpack.c.bf16 %v4405_v43, %v4405_v43  ;;  %v4215_v63 = vsel %vm2142_vm3, %v4151_v22, %v3983_v39  ;;  %v12347_v30 = vpop.f32.mrf.mxu1 }
 0x453   :  { %v4279_v20 = vsel %vm2207_vm4, %v4215_v63, %v16401_v23  ;;  %1984 = vrot.lane.b32.xlu1 %v12189_v29, %s8912_s4  ;;  %16403 = vst [vmem:[#allocation76_spill] sm:$0xff] %v12347_v30  ;;  %v4340_v63 = vld [vmem:[#allocation3 + $0x1f0] sm:$0xff] }
 0x454   :  { %v8176_v11 = vpack.c.bf16 %v2376_v54, %v2376_v54  ;;  %v12345_v4 = vpop.permute.xlu0 %3184  ;;  %4725 = vst [vmem:[#allocation2 + $0x104] sm:$0xf] %v8285_v27  ;;  %v4407_v40 = vmul.f32 %v4343_v61, %v4279_v20  ;;  %v5724_v2 = vpop.f32.mrf.mxu1  ;;  %v16404_v54 = vld [vmem:[#allocation116_spill] sm:$0xff]  ;;  %v16407_v20 = vrot.slane %v12151_v25, 7 }
 0x455   :  { %16402 = vst [vmem:[#allocation63_spill] sm:$0xff] %v12345_v4  ;;  %v3464_v22 = vsel %vm2207_vm4, %v3400_v53, %v12345_v4  ;;  %v12351_v26 = vpop.permute.xlu1 %1460  ;;  %v4148_v27 = vsel %vm505_vm0, %v16405_v49, %v16404_v54  ;;  %v16410_v54 = vld [vmem:[#allocation96_spill] sm:$0xff] }
 0x456   :  { %2696 = vst [vmem:[#allocation2 + $0x1e0] sm:$0xf] %v8176_v11  ;;  %v3592_v43 = vmul.f32 %v3528_v36, %v3464_v22  ;;  %1726 = vrot.lane.b32.xlu0 %v12207_v31, %s8914_s2  ;;  %v8287_v39 = vpack.c.bf16 %v4407_v40, %v4407_v40  ;;  %v12360_v23 = vpop.f32.mrf.mxu1  ;;  %v12367_v53 = vsel %vm1116_vm1, %v16407_v20, %v1100_v52  ;;  %v16408_v40 = vld [vmem:[#allocation107_spill] sm:$0xff] }
 0x457   :  { %3202 = vrot.lane.b32.xlu1 %v12277_v41, %s8912_s4  ;;  %16406 = vst [vmem:[#allocation133_spill] sm:$0xff] %v12360_v23  ;;  %v16411_v23 = vld [vmem:[#allocation39_spill] sm:$0xff] }
 0x458   :  { %v8240_v61 = vpack.c.bf16 %v3592_v43, %v3592_v43  ;;  %v3977_v10 = vpop.permute.xlu0 %3976  ;;  %4727 = vst [vmem:[#allocation2 + $0x11c] sm:$0xf] %v8287_v39  ;;  %v5727_v43 = vpop.f32.mrf.mxu1  ;;  %v16409_v39 = vld [vmem:[#allocation122_spill] sm:$0xff] }
 0x459   :  { %v4212_v36 = vsel %vm2142_vm3, %v4148_v27, %v3977_v10  ;;  %v2807_v11 = vpop.permute.xlu1 %2806  ;;  %v4150_v49 = vsel %vm505_vm0, %v16410_v54, %v16409_v39  ;;  %v4342_v27 = vld [vmem:[#allocation3 + $0x220] sm:$0xff] }
 0x45a   :  { %3912 = vst [vmem:[#allocation2 + $0x1e4] sm:$0xf] %v8240_v61  ;;  %v4276_v22 = vsel %vm2207_vm4, %v4212_v36, %v16408_v40  ;;  %3008 = vrot.lane.b32.xlu0 %v12367_v53, %s8914_s2  ;;  %v12380_v36 = vmax.f32 %v16411_v23, 0.0  ;;  %v16412_v40 = vld [vmem:[#allocation113_spill] sm:$0xff]  ;;  %v1232_v23 = vrot.slane %v12277_v41, 1 }
 0x45b   :  { %v4404_v2 = vmul.f32 %v4340_v63, %v4276_v22  ;;  %4010 = vrot.lane.b32.xlu1 %v11447_v62, %s8914_s2 }
 0x45c   :  { %v3981_v52 = vpop.permute.xlu0 %3980 }
 0x45d   :  { %v8284_v10 = vpack.c.bf16 %v4404_v2, %v4404_v2  ;;  %v4214_v61 = vsel %vm2142_vm3, %v4150_v49, %v3981_v52  ;;  %v1717_v20 = vpop.permute.xlu1 %1716  ;;  %v8798_v2 = vld [vmem:[#allocation2 + $0x1e0] ss:$12 sps:$4 sm:$0xff]  }
 0x45e   :  { %v4278_v43 = vsel %vm2207_vm4, %v4214_v61, %v16412_v40  ;;  %1982 = vrot.lane.b32.xlu0 %v12241_v55, %s8912_s4 }
 0x45f   :  { %4724 = vst [vmem:[#allocation2 + $0xf8] sm:$0xf] %v8284_v10  ;;  %v4406_v62 = vmul.f32 %v4342_v27, %v4278_v43  ;;  %4014 = vrot.lane.b32.xlu1 %v11553_v21, %s8914_s2  ;;  %v2121_v21 = vsel %vm505_vm0, %v11695_v42, %v12351_v26  ;;  %v2315_v10 = vld [vmem:[#allocation3 + $0x408] sm:$0xff]  ;;  %v16414_v43 = vld [vmem:[#allocation40_spill] sm:$0xff]  ;;  %v16415_v42 = vrot.slane %v12380_v36, 1 }
 0x460   :  { %v12388_v63 = vpop.permute.xlu0 %1458  ;;  %v12399_v52 = vpop.f32.mrf.mxu1  ;;  %v2186_v61 = vsel %vm2142_vm3, %v2121_v21, %v1717_v20  ;;  %v3339_v20 = vsel %vm505_vm0, %v11775_v13, %v2807_v11  ;;  %v1102_v11 = vrot.slane %v12380_v36, 7 }
 0x461   :  { %v8286_v22 = vpack.c.bf16 %v4406_v62, %v4406_v62  ;;  %v8800_v39 = vld [vmem:[#allocation2 + $0x1e4] ss:$12 sps:$4 sm:$0xff]   ;;  %v2999_v54 = vpop.permute.xlu1 %2998  ;;  %16413 = vst [vmem:[#allocation67_spill] sm:$0xff] %v12399_v52  ;;  %v12403_v62 = vmax.f32 %v16414_v43, 0.0  ;;  %v12412_v52 = vsel %vm1245_vm2, %v1232_v23, %v16415_v42 }
 0x462   :  { %3200 = vrot.lane.b32.xlu0 %v12254_v14, %s8912_s4  ;;  %5792 = vmatprep.mubr.bf16.mxu1 %v8800_v39  ;;  %16416 = vst [vmem:[#allocation83_spill] sm:$0xff] %v12412_v52 }
 0x463   :  { %4726 = vst [vmem:[#allocation2 + $0x110] sm:$0xf] %v8286_v22  ;;  %1476 = vrot.lane.b32.xlu1 %v12151_v25, %s8911_s3  ;;  %5793 = vmatmul.mubr.bf16.gmra.mxu1 %v8798_v2  ;;  %v5732_v22 = vpop.f32.mrf.mxu1  ;;  %v15871_v30 = vrot.slane %v12403_v62, 7 }
 0x464   :  { %v2805_v27 = vpop.permute.xlu0 %2804 }
 0x465   :  { %v1973_v40 = vpop.permute.xlu1 %1972  ;;  %v12418_v43 = vpop.f32.mrf.mxu1 }
 0x466   :  { %4008 = vrot.lane.b32.xlu0 %v11422_v48, %s8914_s2  ;;  %v8801_v39 = vld [vmem:[#allocation2 + $0xf8] ss:$12 sps:$4 sm:$0xff]   ;;  %v2251_v49 = vsel %vm2207_vm4, %v2186_v61, %v1973_v40  ;;  %16417 = vst [vmem:[#allocation130_spill] sm:$0xff] %v12418_v43  ;;  %v3531_v48 = vld [vmem:[#allocation3 + $0x410] sm:$0xff]  ;;  %v3403_v61 = vsel %vm2142_vm3, %v3339_v20, %v2999_v54  ;;  %v4345_v43 = vld [vmem:[#allocation3 + $0x268] sm:$0xff] }
 0x467   :  { %v2379_v2 = vmul.f32 %v2315_v10, %v2251_v49  ;;  %2822 = vrot.lane.b32.xlu1 %v12412_v52, %s8911_s3  ;;  %8558 = vmatprep.mubr.bf16.mxu0 %v8801_v39  ;;  %v5735_v49 = vpop.f32.mrf.mxu1  ;;  %v16420_v20 = vld [vmem:[#allocation49_spill] sm:$0xff] }
 0x468   :  { %v1715_v21 = vpop.permute.xlu0 %1714 }
 0x469   :  { %v8179_v40 = vpack.c.bf16 %v2379_v2, %v2379_v2  ;;  %v12421_v22 = vpop.permute.xlu1 %3190  ;;  %v16419_v2 = vld [vmem:[#allocation115_spill] sm:$0xff] }
 0x46a   :  { %16418 = vst [vmem:[#allocation75_spill] sm:$0xff] %v12421_v22  ;;  %4012 = vrot.lane.b32.xlu0 %v11528_v19, %s8914_s2  ;;  %v8802_v10 = vld [vmem:[#allocation2 + $0x110] ss:$12 sps:$4 sm:$0xff]   ;;  %v3467_v42 = vsel %vm2207_vm4, %v3403_v61, %v12421_v22  ;;  %v4153_v19 = vsel %vm505_vm0, %v16420_v20, %v16419_v2 }
 0x46b   :  { %2699 = vst [vmem:[#allocation2 + $0x204] sm:$0xf] %v8179_v40  ;;  %v3595_v39 = vmul.f32 %v3531_v48, %v3467_v42  ;;  %1732 = vrot.lane.b32.xlu1 %v12286_v45, %s8914_s2  ;;  %8559 = vmatmul.mubr.bf16.gmra.mxu0 %v8802_v10  ;;  %v12441_v48 = vsel %vm1116_vm1, %v1102_v11, %v15871_v30  ;;  %v2314_v10 = vld [vmem:[#allocation3 + $0x3f0] sm:$0xff]  ;;  %v16421_v42 = vld [vmem:[#allocation105_spill] sm:$0xff]  ;;  %v16423_v45 = vld [vmem:[#allocation50_spill] sm:$0xff] }
 0x46c   :  { %v2997_v54 = vpop.permute.xlu0 %2996  ;;  %v2120_v40 = vsel %vm505_vm0, %v11739_v7, %v12388_v63  ;;  %v16424_v7 = vrot.slane %v12254_v14, 1 }
 0x46d   :  { %v8243_v49 = vpack.c.bf16 %v3595_v39, %v3595_v39  ;;  %v3987_v31 = vpop.permute.xlu1 %3986 }
 0x46e   :  { %1474 = vrot.lane.b32.xlu0 %v12128_v51, %s8911_s3  ;;  %v4217_v61 = vsel %vm2142_vm3, %v4153_v19, %v3987_v31  ;;  %v2185_v31 = vsel %vm2142_vm3, %v2120_v40, %v1715_v21  ;;  %v16422_v19 = vld [vmem:[#allocation121_spill] sm:$0xff]  ;;  %v3530_v40 = vld [vmem:[#allocation3 + $0x3f8] sm:$0xff] }
 0x46f   :  { %3915 = vst [vmem:[#allocation2 + $0x208] sm:$0xf] %v8243_v49  ;;  %v4281_v39 = vsel %vm2207_vm4, %v4217_v61, %v16421_v42  ;;  %3014 = vrot.lane.b32.xlu1 %v12441_v48, %s8914_s2  ;;  %v4155_v30 = vsel %vm505_vm0, %v16423_v45, %v16422_v19  ;;  %v12459_v49 = vsel %vm1245_vm2, %v16424_v7, %v1232_v23  ;;  %v4347_v61 = vld [vmem:[#allocation3 + $0x298] sm:$0xff] }
 0x470   :  { %v1971_v2 = vpop.permute.xlu0 %1970  ;;  %v4409_v20 = vmul.f32 %v4345_v43, %v4281_v39  ;;  %16425 = vst [vmem:[#allocation89_spill] sm:$0xff] %v12459_v49  ;;  %v3338_v45 = vsel %vm505_vm0, %v11748_v5, %v2805_v27  ;;  %v16426_v39 = vld [vmem:[#allocation111_spill] sm:$0xff] }
 0x471   :  { %v2250_v22 = vsel %vm2207_vm4, %v2185_v31, %v1971_v2  ;;  %v3991_v42 = vpop.permute.xlu1 %3990  ;;  %v3402_v23 = vsel %vm2142_vm3, %v3338_v45, %v2997_v54  ;;  %v16430_v54 = vld [vmem:[#allocation106_spill] sm:$0xff] }
 0x472   :  { %v2378_v4 = vmul.f32 %v2314_v10, %v2250_v22  ;;  %2820 = vrot.lane.b32.xlu0 %v12459_v49, %s8911_s3  ;;  %v8289_v21 = vpack.c.bf16 %v4409_v20, %v4409_v20  ;;  %v4219_v43 = vsel %vm2142_vm3, %v4155_v30, %v3991_v42  ;;  %v12473_v10 = vpop.f32.mrf.mxu1 }
 0x473   :  { %v4283_v31 = vsel %vm2207_vm4, %v4219_v43, %v16426_v39  ;;  %1988 = vrot.lane.b32.xlu1 %v12315_v18, %s8912_s4  ;;  %16428 = vst [vmem:[#allocation31_spill] sm:$0xff] %v12473_v10  ;;  %v4344_v43 = vld [vmem:[#allocation3 + $0x250] sm:$0xff] }
 0x474   :  { %v8178_v2 = vpack.c.bf16 %v2378_v4, %v2378_v4  ;;  %v12471_v22 = vpop.permute.xlu0 %3188  ;;  %4729 = vst [vmem:[#allocation2 + $0x134] sm:$0xf] %v8289_v21  ;;  %v4411_v20 = vmul.f32 %v4347_v61, %v4283_v31  ;;  %v5740_v7 = vpop.f32.mrf.mxu1  ;;  %v16429_v4 = vld [vmem:[#allocation127_spill] sm:$0xff]  ;;  %v16432_v31 = vrot.slane %v12277_v41, 7 }
 0x475   :  { %16427 = vst [vmem:[#allocation139_spill] sm:$0xff] %v12471_v22  ;;  %v3466_v30 = vsel %vm2207_vm4, %v3402_v23, %v12471_v22  ;;  %v12477_v27 = vpop.permute.xlu1 %1464  ;;  %v4152_v21 = vsel %vm505_vm0, %v16430_v54, %v16429_v4  ;;  %v16435_v4 = vld [vmem:[#allocation114_spill] sm:$0xff] }
 0x476   :  { %2698 = vst [vmem:[#allocation2 + $0x1f8] sm:$0xf] %v8178_v2  ;;  %v3594_v19 = vmul.f32 %v3530_v40, %v3466_v30  ;;  %1730 = vrot.lane.b32.xlu0 %v12333_v37, %s8914_s2  ;;  %v8291_v42 = vpack.c.bf16 %v4411_v20, %v4411_v20  ;;  %v12486_v39 = vpop.f32.mrf.mxu1  ;;  %v12493_v23 = vsel %vm1116_vm1, %v16432_v31, %v1102_v11  ;;  %v16433_v20 = vld [vmem:[#allocation119_spill] sm:$0xff] }
 0x477   :  { %3206 = vrot.lane.b32.xlu1 %v12403_v62, %s8912_s4  ;;  %16431 = vst [vmem:[#allocation81_spill] sm:$0xff] %v12486_v39  ;;  %v16436_v39 = vld [vmem:[#allocation41_spill] sm:$0xff] }
 0x478   :  { %v8242_v61 = vpack.c.bf16 %v3594_v19, %v3594_v19  ;;  %v3985_v45 = vpop.permute.xlu0 %3984  ;;  %4731 = vst [vmem:[#allocation2 + $0x14c] sm:$0xf] %v8291_v42  ;;  %v5743_v19 = vpop.f32.mrf.mxu1  ;;  %v16434_v42 = vld [vmem:[#allocation131_spill] sm:$0xff] }
 0x479   :  { %v4216_v40 = vsel %vm2142_vm3, %v4152_v21, %v3985_v45  ;;  %v2811_v2 = vpop.permute.xlu1 %2810  ;;  %v4154_v54 = vsel %vm505_vm0, %v16435_v4, %v16434_v42  ;;  %v4346_v21 = vld [vmem:[#allocation3 + $0x280] sm:$0xff] }
 0x47a   :  { %3914 = vst [vmem:[#allocation2 + $0x1fc] sm:$0xf] %v8242_v61  ;;  %v4280_v30 = vsel %vm2207_vm4, %v4216_v40, %v16433_v20  ;;  %3012 = vrot.lane.b32.xlu0 %v12493_v23, %s8914_s2  ;;  %v12506_v40 = vmax.f32 %v16436_v39, 0.0  ;;  %v16437_v20 = vld [vmem:[#allocation125_spill] sm:$0xff]  ;;  %v1234_v39 = vrot.slane %v12403_v62, 1 }
 0x47b   :  { %v4408_v7 = vmul.f32 %v4344_v43, %v4280_v30  ;;  %4018 = vrot.lane.b32.xlu1 %v11661_v0, %s8914_s2 }
 0x47c   :  { %v3989_v11 = vpop.permute.xlu0 %3988 }
 0x47d   :  { %v8288_v45 = vpack.c.bf16 %v4408_v7, %v4408_v7  ;;  %v4218_v61 = vsel %vm2142_vm3, %v4154_v54, %v3989_v11  ;;  %v1721_v31 = vpop.permute.xlu1 %1720  ;;  %v8803_v7 = vld [vmem:[#allocation2 + $0x1f8] ss:$12 sps:$4 sm:$0xff]  }
 0x47e   :  { %v4282_v19 = vsel %vm2207_vm4, %v4218_v61, %v16437_v20  ;;  %1986 = vrot.lane.b32.xlu0 %v12367_v53, %s8912_s4 }
 0x47f   :  { %4728 = vst [vmem:[#allocation2 + $0x128] sm:$0xf] %v8288_v45  ;;  %v4410_v0 = vmul.f32 %v4346_v21, %v4282_v19  ;;  %4022 = vrot.lane.b32.xlu1 %v11775_v13, %s8914_s2  ;;  %v2123_v13 = vsel %vm505_vm0, %v11813_v1, %v12477_v27  ;;  %v2317_v45 = vld [vmem:[#allocation3 + $0x438] sm:$0xff]  ;;  %v16439_v19 = vld [vmem:[#allocation42_spill] sm:$0xff]  ;;  %v16440_v1 = vrot.slane %v12506_v40, 1 }
 0x480   :  { %v12514_v43 = vpop.permute.xlu0 %1462  ;;  %v12525_v11 = vpop.f32.mrf.mxu1  ;;  %v2188_v61 = vsel %vm2142_vm3, %v2123_v13, %v1721_v31  ;;  %v3341_v31 = vsel %vm505_vm0, %v11899_v35, %v2811_v2  ;;  %v1104_v2 = vrot.slane %v12506_v40, 7 }
 0x481   :  { %v8290_v30 = vpack.c.bf16 %v4410_v0, %v4410_v0  ;;  %v8805_v42 = vld [vmem:[#allocation2 + $0x1fc] ss:$12 sps:$4 sm:$0xff]   ;;  %v3003_v4 = vpop.permute.xlu1 %3002  ;;  %16438 = vst [vmem:[#allocation34_spill] sm:$0xff] %v12525_v11  ;;  %v12529_v0 = vmax.f32 %v16439_v19, 0.0  ;;  %v12538_v11 = vsel %vm1245_vm2, %v1234_v39, %v16440_v1 }
 0x482   :  { %3204 = vrot.lane.b32.xlu0 %v12380_v36, %s8912_s4  ;;  %5800 = vmatprep.mubr.bf16.mxu1 %v8805_v42 }
 0x483   :  { %4730 = vst [vmem:[#allocation2 + $0x140] sm:$0xf] %v8290_v30  ;;  %1480 = vrot.lane.b32.xlu1 %v12277_v41, %s8911_s3  ;;  %5801 = vmatmul.mubr.bf16.gmra.mxu1 %v8803_v7  ;;  %v5748_v30 = vpop.f32.mrf.mxu1  ;;  %v15876_v10 = vrot.slane %v12529_v0, 7 }
 0x484   :  { %v2809_v21 = vpop.permute.xlu0 %2808 }
 0x485   :  { %v1977_v20 = vpop.permute.xlu1 %1976  ;;  %v12544_v19 = vpop.f32.mrf.mxu1 }
 0x486   :  { %4016 = vrot.lane.b32.xlu0 %v11634_v44, %s8914_s2  ;;  %v8806_v42 = vld [vmem:[#allocation2 + $0x128] ss:$12 sps:$4 sm:$0xff]   ;;  %v2253_v54 = vsel %vm2207_vm4, %v2188_v61, %v1977_v20  ;;  %16441 = vst [vmem:[#allocation82_spill] sm:$0xff] %v12544_v19  ;;  %v3533_v44 = vld [vmem:[#allocation3 + $0x440] sm:$0xff]  ;;  %v3405_v61 = vsel %vm2142_vm3, %v3341_v31, %v3003_v4 }
 0x487   :  { %v2381_v7 = vmul.f32 %v2317_v45, %v2253_v54  ;;  %2826 = vrot.lane.b32.xlu1 %v12538_v11, %s8911_s3  ;;  %8562 = vmatprep.mubr.bf16.mxu0 %v8806_v42  ;;  %v5751_v54 = vpop.f32.mrf.mxu1  ;;  %v16444_v31 = vld [vmem:[#allocation118_spill] sm:$0xff] }
 0x488   :  { %v1719_v13 = vpop.permute.xlu0 %1718  ;;  %v4349_v19 = vld [vmem:[#allocation3 + $0x2c8] sm:$0xff] }
 0x489   :  { %v8181_v20 = vpack.c.bf16 %v2381_v7, %v2381_v7  ;;  %v12547_v30 = vpop.permute.xlu1 %3194  ;;  %v16443_v7 = vld [vmem:[#allocation126_spill] sm:$0xff] }
 0x48a   :  { %16442 = vst [vmem:[#allocation141_spill] sm:$0xff] %v12547_v30  ;;  %4020 = vrot.lane.b32.xlu0 %v11748_v5, %s8914_s2  ;;  %v8807_v45 = vld [vmem:[#allocation2 + $0x140] ss:$12 sps:$4 sm:$0xff]   ;;  %v3469_v1 = vsel %vm2207_vm4, %v3405_v61, %v12547_v30  ;;  %v4157_v5 = vsel %vm505_vm0, %v16444_v31, %v16443_v7 }
 0x48b   :  { %2701 = vst [vmem:[#allocation2 + $0x21c] sm:$0xf] %v8181_v20  ;;  %v3597_v42 = vmul.f32 %v3533_v44, %v3469_v1  ;;  %1736 = vrot.lane.b32.xlu1 %v12412_v52, %s8914_s2  ;;  %8563 = vmatmul.mubr.bf16.gmra.mxu0 %v8807_v45  ;;  %v12567_v44 = vsel %vm1116_vm1, %v1104_v2, %v15876_v10  ;;  %v2316_v45 = vld [vmem:[#allocation3 + $0x420] sm:$0xff] }
 0x48c   :  { %v3001_v4 = vpop.permute.xlu0 %3000  ;;  %v2122_v20 = vsel %vm505_vm0, %v11863_v32, %v12514_v43  ;;  %v16445_v1 = vld [vmem:[#allocation117_spill] sm:$0xff]  ;;  %v16448_v32 = vrot.slane %v12380_v36, 1 }
 0x48d   :  { %v8245_v54 = vpack.c.bf16 %v3597_v42, %v3597_v42  ;;  %v3995_v37 = vpop.permute.xlu1 %3994  ;;  %v16447_v52 = vld [vmem:[#allocation61_spill] sm:$0xff] }
 0x48e   :  { %1478 = vrot.lane.b32.xlu0 %v12254_v14, %s8911_s3  ;;  %v4221_v61 = vsel %vm2142_vm3, %v4157_v5, %v3995_v37  ;;  %v2187_v37 = vsel %vm2142_vm3, %v2122_v20, %v1719_v13  ;;  %v16446_v5 = vld [vmem:[#allocation137_spill] sm:$0xff]  ;;  %v3532_v20 = vld [vmem:[#allocation3 + $0x428] sm:$0xff] }
 0x48f   :  { %3917 = vst [vmem:[#allocation2 + $0x220] sm:$0xf] %v8245_v54  ;;  %v4285_v42 = vsel %vm2207_vm4, %v4221_v61, %v16445_v1  ;;  %3018 = vrot.lane.b32.xlu1 %v12567_v44, %s8914_s2  ;;  %v4159_v10 = vsel %vm505_vm0, %v16447_v52, %v16446_v5  ;;  %v12585_v54 = vsel %vm1245_vm2, %v16448_v32, %v1234_v39  ;;  %v4351_v61 = vld [vmem:[#allocation3 + $0x2f8] sm:$0xff] }
 0x490   :  { %v1975_v7 = vpop.permute.xlu0 %1974  ;;  %v4413_v31 = vmul.f32 %v4349_v19, %v4285_v42  ;;  %v3340_v52 = vsel %vm505_vm0, %v11876_v60, %v2809_v21  ;;  %v16449_v42 = vld [vmem:[#allocation123_spill] sm:$0xff] }
 0x491   :  { %v2252_v22 = vsel %vm2207_vm4, %v2187_v37, %v1975_v7  ;;  %v3999_v1 = vpop.permute.xlu1 %3998  ;;  %v3404_v39 = vsel %vm2142_vm3, %v3340_v52, %v3001_v4  ;;  %v16452_v4 = vld [vmem:[#allocation11_spill] sm:$0xff] }
 0x492   :  { %v2380_v30 = vmul.f32 %v2316_v45, %v2252_v22  ;;  %2824 = vrot.lane.b32.xlu0 %v12585_v54, %s8911_s3  ;;  %v8293_v13 = vpack.c.bf16 %v4413_v31, %v4413_v31  ;;  %v4223_v19 = vsel %vm2142_vm3, %v4159_v10, %v3999_v1  ;;  %v12599_v45 = vpop.f32.mrf.mxu1 }
 0x493   :  { %v4287_v37 = vsel %vm2207_vm4, %v4223_v19, %v16449_v42  ;;  %1992 = vrot.lane.b32.xlu1 %v12441_v48, %s8912_s4  ;;  %16450 = vst [vmem:[#allocation73_spill] sm:$0xff] %v12599_v45  ;;  %v4348_v19 = vld [vmem:[#allocation3 + $0x2b0] sm:$0xff] }
 0x494   :  { %v8180_v7 = vpack.c.bf16 %v2380_v30, %v2380_v30  ;;  %v12597_v22 = vpop.permute.xlu0 %3192  ;;  %4733 = vst [vmem:[#allocation2 + $0x164] sm:$0xf] %v8293_v13  ;;  %v4415_v31 = vmul.f32 %v4351_v61, %v4287_v37  ;;  %v5756_v32 = vpop.f32.mrf.mxu1  ;;  %v16451_v30 = vld [vmem:[#allocation136_spill] sm:$0xff]  ;;  %v16454_v37 = vrot.slane %v12403_v62, 7 }
 0x495   :  { %v3468_v10 = vsel %vm2207_vm4, %v3404_v39, %v12597_v22  ;;  %v12603_v21 = vpop.permute.xlu1 %1468  ;;  %v4156_v13 = vsel %vm505_vm0, %v16452_v4, %v16451_v30  ;;  %v4350_v4 = vld [vmem:[#allocation3 + $0x2e0] sm:$0xff] }
 0x496   :  { %2700 = vst [vmem:[#allocation2 + $0x210] sm:$0xf] %v8180_v7  ;;  %v3596_v5 = vmul.f32 %v3532_v20, %v3468_v10  ;;  %1734 = vrot.lane.b32.xlu0 %v12459_v49, %s8914_s2  ;;  %v8295_v1 = vpack.c.bf16 %v4415_v31, %v4415_v31  ;;  %v12612_v42 = vpop.f32.mrf.mxu1  ;;  %v12619_v39 = vsel %vm1116_vm1, %v16454_v37, %v1104_v2  ;;  %v16456_v31 = vld [vmem:[#allocation129_spill] sm:$0xff]  ;;  %v16458_v37 = vld [vmem:[#allocation43_spill] sm:$0xff] }
 0x497   :  { %3210 = vrot.lane.b32.xlu1 %v12529_v0, %s8912_s4  ;;  %16453 = vst [vmem:[#allocation88_spill] sm:$0xff] %v12612_v42  ;;  %16455 = vst [vmem:[#allocation146_spill] sm:$0xff] %v12619_v39 }
 0x498   :  { %v8244_v61 = vpack.c.bf16 %v3596_v5, %v3596_v5  ;;  %v3993_v52 = vpop.permute.xlu0 %3992  ;;  %4735 = vst [vmem:[#allocation2 + $0x17c] sm:$0xf] %v8295_v1  ;;  %v5759_v5 = vpop.f32.mrf.mxu1  ;;  %v16457_v1 = vld [vmem:[#allocation53_spill] sm:$0xff] }
 0x499   :  { %v4220_v20 = vsel %vm2142_vm3, %v4156_v13, %v3993_v52  ;;  %v2815_v7 = vpop.permute.xlu1 %2814  ;;  %v4158_v30 = vsel %vm505_vm0, %v16457_v1, %v16308_v33 }
 0x49a   :  { %3916 = vst [vmem:[#allocation2 + $0x214] sm:$0xf] %v8244_v61  ;;  %v4284_v10 = vsel %vm2207_vm4, %v4220_v20, %v16456_v31  ;;  %3016 = vrot.lane.b32.xlu0 %v12619_v39, %s8914_s2  ;;  %v12632_v20 = vmax.f32 %v16458_v37, 0.0  ;;  %v16459_v31 = vld [vmem:[#allocation134_spill] sm:$0xff] }
 0x49b   :  { %v4412_v32 = vmul.f32 %v4348_v19, %v4284_v10  ;;  %4026 = vrot.lane.b32.xlu1 %v11899_v35, %s8914_s2  ;;  %v2319_v37 = vld [vmem:[#allocation3 + $0x468] sm:$0xff] }
 0x49c   :  { %v3997_v2 = vpop.permute.xlu0 %3996 }
 0x49d   :  { %v8292_v13 = vpack.c.bf16 %v4412_v32, %v4412_v32  ;;  %v4222_v61 = vsel %vm2142_vm3, %v4158_v30, %v3997_v2  ;;  %v1725_v52 = vpop.permute.xlu1 %1724  ;;  %v8808_v10 = vld [vmem:[#allocation2 + $0x210] ss:$12 sps:$4 sm:$0xff]   ;;  %v1236_v30 = vrot.slane %v12529_v0, 1 }
 0x49e   :  { %v4286_v5 = vsel %vm2207_vm4, %v4222_v61, %v16459_v31  ;;  %1990 = vrot.lane.b32.xlu0 %v12493_v23, %s8912_s4 }
 0x49f   :  { %4732 = vst [vmem:[#allocation2 + $0x158] sm:$0xf] %v8292_v13  ;;  %v4414_v35 = vmul.f32 %v4350_v4, %v4286_v5  ;;  %4030 = vrot.lane.b32.xlu1 %v12025_v58, %s8914_s2  ;;  %v2125_v4 = vsel %vm505_vm0, %v11937_v15, %v12603_v21  ;;  %v16462_v15 = vrot.slane %v12632_v20, 1 }
 0x4a0   :  { %v12640_v33 = vpop.permute.xlu0 %1466  ;;  %v2190_v31 = vsel %vm2142_vm3, %v2125_v4, %v1725_v52  ;;  %v3343_v52 = vsel %vm505_vm0, %v12025_v58, %v2815_v7  ;;  %v1106_v58 = vrot.slane %v12632_v20, 7 }
 0x4a1   :  { %v8294_v19 = vpack.c.bf16 %v4414_v35, %v4414_v35  ;;  %v8810_v32 = vld [vmem:[#allocation2 + $0x214] ss:$12 sps:$4 sm:$0xff]   ;;  %v3007_v1 = vpop.permute.xlu1 %3006  ;;  %v12651_v61 = vpop.f32.mrf.mxu1  ;;  %v16461_v35 = vld [vmem:[#allocation44_spill] sm:$0xff] }
 0x4a2   :  { %3208 = vrot.lane.b32.xlu0 %v12506_v40, %s8912_s4  ;;  %5808 = vmatprep.mubr.bf16.mxu1 %v8810_v32  ;;  %16460 = vst [vmem:[#allocation80_spill] sm:$0xff] %v12651_v61  ;;  %v12655_v42 = vmax.f32 %v16461_v35, 0.0  ;;  %v12664_v61 = vsel %vm1245_vm2, %v1236_v30, %v16462_v15 }
 0x4a3   :  { %4734 = vst [vmem:[#allocation2 + $0x170] sm:$0xf] %v8294_v19  ;;  %1484 = vrot.lane.b32.xlu1 %v12403_v62, %s8911_s3  ;;  %5809 = vmatmul.mubr.bf16.gmra.mxu1 %v8808_v10  ;;  %v5764_v19 = vpop.f32.mrf.mxu1 }
 0x4a4   :  { %v2813_v13 = vpop.permute.xlu0 %2812  ;;  %v15879_v7 = vrot.slane %v12655_v42, 7 }
 0x4a5   :  { %v1981_v5 = vpop.permute.xlu1 %1980  ;;  %v12670_v35 = vpop.f32.mrf.mxu1 }
 0x4a6   :  { %4024 = vrot.lane.b32.xlu0 %v11876_v60, %s8914_s2  ;;  %v8811_v32 = vld [vmem:[#allocation2 + $0x158] ss:$12 sps:$4 sm:$0xff]   ;;  %v2255_v2 = vsel %vm2207_vm4, %v2190_v31, %v1981_v5  ;;  %16463 = vst [vmem:[#allocation94_spill] sm:$0xff] %v12670_v35  ;;  %v3535_v60 = vld [vmem:[#allocation3 + $0x470] sm:$0xff]  ;;  %v3407_v31 = vsel %vm2142_vm3, %v3343_v52, %v3007_v1  ;;  %v4353_v35 = vld [vmem:[#allocation3 + $0x328] sm:$0xff] }
 0x4a7   :  { %v2383_v10 = vmul.f32 %v2319_v37, %v2255_v2  ;;  %2830 = vrot.lane.b32.xlu1 %v12664_v61, %s8911_s3  ;;  %8566 = vmatprep.mubr.bf16.mxu0 %v8811_v32  ;;  %v5767_v2 = vpop.f32.mrf.mxu1 }
 0x4a8   :  { %v1723_v4 = vpop.permute.xlu0 %1722 }
 0x4a9   :  { %v8183_v5 = vpack.c.bf16 %v2383_v10, %v2383_v10  ;;  %v12673_v19 = vpop.permute.xlu1 %3198  ;;  %v16464_v10 = vld [vmem:[#allocation135_spill] sm:$0xff] }
 0x4aa   :  { %4028 = vrot.lane.b32.xlu0 %v12002_v24, %s8914_s2  ;;  %v8812_v37 = vld [vmem:[#allocation2 + $0x170] ss:$12 sps:$4 sm:$0xff]   ;;  %v3471_v15 = vsel %vm2207_vm4, %v3407_v31, %v12673_v19  ;;  %v4161_v52 = vsel %vm505_vm0, %v16464_v10, %v11847_v50 }
 0x4ab   :  { %2703 = vst [vmem:[#allocation2 + $0x234] sm:$0xf] %v8183_v5  ;;  %v3599_v32 = vmul.f32 %v3535_v60, %v3471_v15  ;;  %1740 = vrot.lane.b32.xlu1 %v12538_v11, %s8914_s2  ;;  %8567 = vmatmul.mubr.bf16.gmra.mxu0 %v8812_v37  ;;  %v12693_v60 = vsel %vm1116_vm1, %v1106_v58, %v15879_v7  ;;  %v2318_v37 = vld [vmem:[#allocation3 + $0x450] sm:$0xff]  ;;  %v16465_v50 = vld [vmem:[#allocation128_spill] sm:$0xff]  ;;  %v16466_v7 = vrot.slane %v12506_v40, 1 }
 0x4ac   :  { %v3005_v1 = vpop.permute.xlu0 %3004  ;;  %v2124_v5 = vsel %vm505_vm0, %v11989_v38, %v12640_v33 }
 0x4ad   :  { %v8247_v2 = vpack.c.bf16 %v3599_v32, %v3599_v32  ;;  %v4003_v45 = vpop.permute.xlu1 %4002  ;;  %v12708_v49 = vsel %vm1245_vm2, %v16466_v7, %v1236_v30 }
 0x4ae   :  { %1482 = vrot.lane.b32.xlu0 %v12380_v36, %s8911_s3  ;;  %v4225_v31 = vsel %vm2142_vm3, %v4161_v52, %v4003_v45  ;;  %v2189_v45 = vsel %vm2142_vm3, %v2124_v5, %v1723_v4  ;;  %v3534_v5 = vld [vmem:[#allocation3 + $0x458] sm:$0xff] }
 0x4af   :  { %3919 = vst [vmem:[#allocation2 + $0x238] sm:$0xf] %v8247_v2  ;;  %v4289_v15 = vsel %vm2207_vm4, %v4225_v31, %v16465_v50  ;;  %3022 = vrot.lane.b32.xlu1 %v12693_v60, %s8914_s2  ;;  %v16467_v2 = vld [vmem:[#allocation62_spill] sm:$0xff] }
 0x4b0   :  { %v1979_v32 = vpop.permute.xlu0 %1978  ;;  %v4417_v10 = vmul.f32 %v4353_v35, %v4289_v15  ;;  %v4163_v31 = vsel %vm505_vm0, %v16467_v2, %v11973_v17  ;;  %v3342_v35 = vsel %vm505_vm0, %v12002_v24, %v2813_v13  ;;  %v4355_v15 = vld [vmem:[#allocation3 + $0x358] sm:$0xff] }
 0x4b1   :  { %v2254_v52 = vsel %vm2207_vm4, %v2189_v45, %v1979_v32  ;;  %v4007_v38 = vpop.permute.xlu1 %4006  ;;  %v3406_v30 = vsel %vm2142_vm3, %v3342_v35, %v3005_v1  ;;  %v16469_v1 = vld [vmem:[#allocation74_spill] sm:$0xff] }
 0x4b2   :  { %v2382_v50 = vmul.f32 %v2318_v37, %v2254_v52  ;;  %2828 = vrot.lane.b32.xlu0 %v12708_v49, %s8911_s3  ;;  %v8297_v4 = vpack.c.bf16 %v4417_v10, %v4417_v10  ;;  %v4227_v45 = vsel %vm2142_vm3, %v4163_v31, %v4007_v38  ;;  %v16468_v37 = vld [vmem:[#allocation140_spill] sm:$0xff]  ;;  %v4160_v38 = vsel %vm505_vm0, %v16469_v1, %v11884_v8  ;;  %v4352_v31 = vld [vmem:[#allocation3 + $0x310] sm:$0xff] }
 0x4b3   :  { %1996 = vrot.lane.b32.xlu1 %v12567_v44, %s8912_s4  ;;  %v4291_v10 = vsel %vm2207_vm4, %v4227_v45, %v16468_v37  ;;  %v16470_v45 = vrot.slane %v12529_v0, 7 }
 0x4b4   :  { %v8182_v7 = vpack.c.bf16 %v2382_v50, %v2382_v50  ;;  %v12721_v32 = vpop.permute.xlu0 %3196  ;;  %4737 = vst [vmem:[#allocation2 + $0x194] sm:$0xf] %v8297_v4  ;;  %v4419_v52 = vmul.f32 %v4355_v15, %v4291_v10  ;;  %v4354_v10 = vld [vmem:[#allocation3 + $0x340] sm:$0xff] }
 0x4b5   :  { %v3470_v17 = vsel %vm2207_vm4, %v3406_v30, %v12721_v32  ;;  %v12727_v24 = vpop.permute.xlu1 %1472  ;;  %v16471_v30 = vld [vmem:[#allocation138_spill] sm:$0xff] }
 0x4b6   :  { %2702 = vst [vmem:[#allocation2 + $0x228] sm:$0xf] %v8182_v7  ;;  %v3598_v13 = vmul.f32 %v3534_v5, %v3470_v17  ;;  %1738 = vrot.lane.b32.xlu0 %v12585_v54, %s8914_s2  ;;  %v8299_v4 = vpack.c.bf16 %v4419_v52, %v4419_v52  ;;  %v12741_v5 = vsel %vm1116_vm1, %v16470_v45, %v1106_v58  ;;  %v16472_v17 = vld [vmem:[#allocation99_spill] sm:$0xff] }
 0x4b7   :  { %3214 = vrot.lane.b32.xlu1 %v12655_v42, %s8912_s4  ;;  %v4162_v37 = vsel %vm505_vm0, %v16472_v17, %v12010_v57 }
 0x4b8   :  { %v8246_v2 = vpack.c.bf16 %v3598_v13, %v3598_v13  ;;  %v4001_v50 = vpop.permute.xlu0 %4000  ;;  %4739 = vst [vmem:[#allocation2 + $0x1ac] sm:$0xf] %v8299_v4 }
 0x4b9   :  { %v4224_v35 = vsel %vm2142_vm3, %v4160_v38, %v4001_v50  ;;  %v2819_v15 = vpop.permute.xlu1 %2818  ;;  %v16473_v38 = vld [vmem:[#allocation45_spill] sm:$0xff] }
 0x4ba   :  { %3918 = vst [vmem:[#allocation2 + $0x22c] sm:$0xf] %v8246_v2  ;;  %v4288_v7 = vsel %vm2207_vm4, %v4224_v35, %v16471_v30  ;;  %3020 = vrot.lane.b32.xlu0 %v12741_v5, %s8914_s2  ;;  %v12754_v2 = vmax.f32 %v16473_v38, 0.0  ;;  %v16474_v50 = vld [vmem:[#allocation145_spill] sm:$0xff] }
 0x4bb   :  { %v4416_v8 = vmul.f32 %v4352_v31, %v4288_v7  ;;  %4034 = vrot.lane.b32.xlu1 %v12151_v25, %s8914_s2 }
 0x4bc   :  { %v4005_v58 = vpop.permute.xlu0 %4004  ;;  %v15881_v17 = vrot.slane %v12754_v2, 1 }
 0x4bd   :  { %v8296_v13 = vpack.c.bf16 %v4416_v8, %v4416_v8  ;;  %v4226_v52 = vsel %vm2142_vm3, %v4162_v37, %v4005_v58  ;;  %v1729_v1 = vpop.permute.xlu1 %1728  ;;  %v8813_v45 = vld [vmem:[#allocation2 + $0x228] ss:$12 sps:$4 sm:$0xff]   ;;  %v1238_v8 = vrot.slane %v12655_v42, 1  ;;  %v2127_v37 = vsel %vm505_vm0, %v12063_v16, %v12727_v24 }
 0x4be   :  { %v4290_v4 = vsel %vm2207_vm4, %v4226_v52, %v16474_v50  ;;  %1994 = vrot.lane.b32.xlu0 %v12619_v39, %s8912_s4  ;;  %v2192_v52 = vsel %vm2142_vm3, %v2127_v37, %v1729_v1  ;;  %v16476_v50 = vld [vmem:[#allocation46_spill] sm:$0xff]  ;;  %v3345_v1 = vsel %vm505_vm0, %v12151_v25, %v2819_v15  ;;  %v1108_v25 = vrot.slane %v12754_v2, 7 }
 0x4bf   :  { %4736 = vst [vmem:[#allocation2 + $0x188] sm:$0xf] %v8296_v13  ;;  %v4418_v31 = vmul.f32 %v4354_v10, %v4290_v4  ;;  %4038 = vrot.lane.b32.xlu1 %v12277_v41, %s8914_s2  ;;  %v2321_v13 = vld [vmem:[#allocation3 + $0x498] sm:$0xff]  ;;  %v12777_v4 = vmax.f32 %v16476_v50, 0.0  ;;  %v12786_v16 = vsel %vm1245_vm2, %v1238_v8, %v15881_v17 }
 0x4c0   :  { %v12762_v57 = vpop.permute.xlu0 %1470 }
 0x4c1   :  { %v8298_v35 = vpack.c.bf16 %v4418_v31, %v4418_v31  ;;  %v8815_v30 = vld [vmem:[#allocation2 + $0x22c] ss:$12 sps:$4 sm:$0xff]   ;;  %v3011_v7 = vpop.permute.xlu1 %3010  ;;  %v12773_v58 = vpop.f32.mrf.mxu1  ;;  %v15883_v15 = vrot.slane %v12777_v4, 7 }
 0x4c2   :  { %3212 = vrot.lane.b32.xlu0 %v12632_v20, %s8912_s4  ;;  %5816 = vmatprep.mubr.bf16.mxu1 %v8815_v30  ;;  %16475 = vst [vmem:[#allocation144_spill] sm:$0xff] %v12773_v58 }
 0x4c3   :  { %4738 = vst [vmem:[#allocation2 + $0x1a0] sm:$0xf] %v8298_v35  ;;  %1488 = vrot.lane.b32.xlu1 %v12529_v0, %s8911_s3  ;;  %5817 = vmatmul.mubr.bf16.gmra.mxu1 %v8813_v45  ;;  %v5772_v31 = vpop.f32.mrf.mxu1 }
 0x4c4   :  { %v2817_v10 = vpop.permute.xlu0 %2816  ;;  %v3537_v31 = vld [vmem:[#allocation3 + $0x4a0] sm:$0xff] }
 0x4c5   :  { %v1985_v38 = vpop.permute.xlu1 %1984  ;;  %v12792_v50 = vpop.f32.mrf.mxu1 }
 0x4c6   :  { %4032 = vrot.lane.b32.xlu0 %v12128_v51, %s8914_s2  ;;  %v8816_v35 = vld [vmem:[#allocation2 + $0x188] ss:$12 sps:$4 sm:$0xff]   ;;  %v2257_v30 = vsel %vm2207_vm4, %v2192_v52, %v1985_v38  ;;  %16477 = vst [vmem:[#allocation87_spill] sm:$0xff] %v12792_v50  ;;  %v3409_v52 = vsel %vm2142_vm3, %v3345_v1, %v3011_v7 }
 0x4c7   :  { %v2385_v45 = vmul.f32 %v2321_v13, %v2257_v30  ;;  %2834 = vrot.lane.b32.xlu1 %v12786_v16, %s8911_s3  ;;  %8570 = vmatprep.mubr.bf16.mxu0 %v8816_v35  ;;  %v5775_v13 = vpop.f32.mrf.mxu1  ;;  %v4357_v50 = vld [vmem:[#allocation3 + $0x388] sm:$0xff] }
 0x4c8   :  { %v1727_v37 = vpop.permute.xlu0 %1726 }
 0x4c9   :  { %v8185_v38 = vpack.c.bf16 %v2385_v45, %v2385_v45  ;;  %v12795_v58 = vpop.permute.xlu1 %3202  ;;  %v16478_v45 = vld [vmem:[#allocation98_spill] sm:$0xff] }
 0x4ca   :  { %4036 = vrot.lane.b32.xlu0 %v12254_v14, %s8914_s2  ;;  %v8817_v30 = vld [vmem:[#allocation2 + $0x1a0] ss:$12 sps:$4 sm:$0xff]   ;;  %v3473_v17 = vsel %vm2207_vm4, %v3409_v52, %v12795_v58  ;;  %v4165_v1 = vsel %vm505_vm0, %v16478_v45, %v12099_v59 }
 0x4cb   :  { %2705 = vst [vmem:[#allocation2 + $0x24c] sm:$0xf] %v8185_v38  ;;  %v3601_v35 = vmul.f32 %v3537_v31, %v3473_v17  ;;  %1744 = vrot.lane.b32.xlu1 %v12664_v61, %s8914_s2  ;;  %8571 = vmatmul.mubr.bf16.gmra.mxu0 %v8817_v30  ;;  %v12815_v17 = vsel %vm1116_vm1, %v1108_v25, %v15883_v15  ;;  %v2320_v38 = vld [vmem:[#allocation3 + $0x480] sm:$0xff] }
 0x4cc   :  { %v3009_v7 = vpop.permute.xlu0 %3008  ;;  %v2126_v31 = vsel %vm505_vm0, %v12115_v47, %v12762_v57 }
 0x4cd   :  { %v8249_v13 = vpack.c.bf16 %v3601_v35, %v3601_v35  ;;  %v4011_v39 = vpop.permute.xlu1 %4010 }
 0x4ce   :  { %1486 = vrot.lane.b32.xlu0 %v12506_v40, %s8911_s3  ;;  %v4229_v52 = vsel %vm2142_vm3, %v4165_v1, %v4011_v39  ;;  %v2191_v39 = vsel %vm2142_vm3, %v2126_v31, %v1727_v37  ;;  %v16479_v1 = vrot.slane %v12632_v20, 1  ;;  %v3536_v31 = vld [vmem:[#allocation3 + $0x488] sm:$0xff] }
 0x4cf   :  { %3921 = vst [vmem:[#allocation2 + $0x250] sm:$0xf] %v8249_v13  ;;  %v4293_v59 = vsel %vm2207_vm4, %v4229_v52, %v11917_v34  ;;  %3026 = vrot.lane.b32.xlu1 %v12815_v17, %s8914_s2  ;;  %v16480_v13 = vld [vmem:[#allocation23_spill] sm:$0xff] }
 0x4d0   :  { %v1983_v30 = vpop.permute.xlu0 %1982  ;;  %v4421_v35 = vmul.f32 %v4357_v50, %v4293_v59  ;;  %v12830_v15 = vsel %vm1245_vm2, %v16479_v1, %v1238_v8  ;;  %v4167_v34 = vsel %vm505_vm0, %v16480_v13, %v12225_v6  ;;  %v3344_v50 = vsel %vm505_vm0, %v12128_v51, %v2817_v10  ;;  %v4359_v59 = vld [vmem:[#allocation3 + $0x3b8] sm:$0xff] }
 0x4d1   :  { %v2256_v45 = vsel %vm2207_vm4, %v2191_v39, %v1983_v30  ;;  %v4015_v47 = vpop.permute.xlu1 %4014  ;;  %v3408_v8 = vsel %vm2142_vm3, %v3344_v50, %v3009_v7  ;;  %v16482_v7 = vld [vmem:[#allocation103_spill] sm:$0xff] }
 0x4d2   :  { %v2384_v52 = vmul.f32 %v2320_v38, %v2256_v45  ;;  %2832 = vrot.lane.b32.xlu0 %v12830_v15, %s8911_s3  ;;  %v8301_v37 = vpack.c.bf16 %v4421_v35, %v4421_v35  ;;  %v4231_v39 = vsel %vm2142_vm3, %v4167_v34, %v4015_v47  ;;  %v16481_v38 = vld [vmem:[#allocation65_spill] sm:$0xff]  ;;  %v4164_v47 = vsel %vm505_vm0, %v16482_v7, %v12136_v56  ;;  %v4356_v34 = vld [vmem:[#allocation3 + $0x370] sm:$0xff] }
 0x4d3   :  { %2000 = vrot.lane.b32.xlu1 %v12693_v60, %s8912_s4  ;;  %v4295_v35 = vsel %vm2207_vm4, %v4231_v39, %v16481_v38  ;;  %v16483_v39 = vrot.slane %v12655_v42, 7 }
 0x4d4   :  { %v8184_v30 = vpack.c.bf16 %v2384_v52, %v2384_v52  ;;  %v12843_v1 = vpop.permute.xlu0 %3200  ;;  %4741 = vst [vmem:[#allocation2 + $0x1c4] sm:$0xf] %v8301_v37  ;;  %v4423_v45 = vmul.f32 %v4359_v59, %v4295_v35  ;;  %v4358_v35 = vld [vmem:[#allocation3 + $0x3a0] sm:$0xff] }
 0x4d5   :  { %v3472_v6 = vsel %vm2207_vm4, %v3408_v8, %v12843_v1  ;;  %v12849_v51 = vpop.permute.xlu1 %1476  ;;  %v16484_v8 = vld [vmem:[#allocation57_spill] sm:$0xff] }
 0x4d6   :  { %2704 = vst [vmem:[#allocation2 + $0x240] sm:$0xf] %v8184_v30  ;;  %v3600_v10 = vmul.f32 %v3536_v31, %v3472_v6  ;;  %1742 = vrot.lane.b32.xlu0 %v12708_v49, %s8914_s2  ;;  %v8303_v37 = vpack.c.bf16 %v4423_v45, %v4423_v45  ;;  %v12863_v31 = vsel %vm1116_vm1, %v16483_v39, %v1108_v25  ;;  %v16485_v6 = vld [vmem:[#allocation92_spill] sm:$0xff]  ;;  %v1240_v39 = vrot.slane %v12777_v4, 1 }
 0x4d7   :  { %3218 = vrot.lane.b32.xlu1 %v12777_v4, %s8912_s4  ;;  %v4166_v38 = vsel %vm505_vm0, %v16485_v6, %v12262_v28 }
 0x4d8   :  { %v8248_v13 = vpack.c.bf16 %v3600_v10, %v3600_v10  ;;  %v4009_v52 = vpop.permute.xlu0 %4008  ;;  %4743 = vst [vmem:[#allocation2 + $0x1dc] sm:$0xf] %v8303_v37 }
 0x4d9   :  { %v4228_v50 = vsel %vm2142_vm3, %v4164_v47, %v4009_v52  ;;  %v2823_v59 = vpop.permute.xlu1 %2822 }
 0x4da   :  { %3920 = vst [vmem:[#allocation2 + $0x244] sm:$0xf] %v8248_v13  ;;  %v4292_v30 = vsel %vm2207_vm4, %v4228_v50, %v16484_v8  ;;  %3024 = vrot.lane.b32.xlu0 %v12863_v31, %s8914_s2 }
 0x4db   :  { %v4420_v56 = vmul.f32 %v4356_v34, %v4292_v30  ;;  %4042 = vrot.lane.b32.xlu1 %v12403_v62, %s8914_s2  ;;  %v2129_v30 = vsel %vm505_vm0, %v12189_v29, %v12849_v51 }
 0x4dc   :  { %v4013_v25 = vpop.permute.xlu0 %4012 }
 0x4dd   :  { %v8300_v10 = vpack.c.bf16 %v4420_v56, %v4420_v56  ;;  %v4230_v45 = vsel %vm2142_vm3, %v4166_v38, %v4013_v25  ;;  %v1733_v7 = vpop.permute.xlu1 %1732  ;;  %v8818_v52 = vld [vmem:[#allocation2 + $0x240] ss:$12 sps:$4 sm:$0xff]  }
 0x4de   :  { %v4294_v47 = vsel %vm2207_vm4, %v4230_v45, %v12093_v9  ;;  %1998 = vrot.lane.b32.xlu0 %v12741_v5, %s8912_s4  ;;  %v16486_v9 = vld [vmem:[#allocation15_spill] sm:$0xff]  ;;  %v2323_v38 = vld [vmem:[#allocation3 + $0x4c8] sm:$0xff] }
 0x4df   :  { %4740 = vst [vmem:[#allocation2 + $0x1b8] sm:$0xf] %v8300_v10  ;;  %v4422_v13 = vmul.f32 %v4358_v35, %v4294_v47  ;;  %4046 = vrot.lane.b32.xlu1 %v12529_v0, %s8914_s2  ;;  %v15884_v8 = vrot.slane %v16486_v9, 1  ;;  %v2194_v35 = vsel %vm2142_vm3, %v2129_v30, %v1733_v7  ;;  %v3347_v7 = vsel %vm505_vm0, %v12277_v41, %v2823_v59 }
 0x4e0   :  { %v12881_v34 = vpop.permute.xlu0 %1474 }
 0x4e1   :  { %v8302_v28 = vpack.c.bf16 %v4422_v13, %v4422_v13  ;;  %v8820_v37 = vld [vmem:[#allocation2 + $0x244] ss:$12 sps:$4 sm:$0xff]   ;;  %v3015_v50 = vpop.permute.xlu1 %3014  ;;  %v12892_v6 = vpop.f32.mrf.mxu1  ;;  %v12902_v29 = vsel %vm1245_vm2, %v1240_v39, %v15884_v8 }
 0x4e2   :  { %3216 = vrot.lane.b32.xlu0 %v12754_v2, %s8912_s4  ;;  %5824 = vmatprep.mubr.bf16.mxu1 %v8820_v37  ;;  %v3539_v37 = vld [vmem:[#allocation3 + $0x4d0] sm:$0xff]  ;;  %v3411_v30 = vsel %vm2142_vm3, %v3347_v7, %v3015_v50  ;;  %v16487_v50 = vld [vmem:[#allocation12_spill] sm:$0xff]  ;;  %v4361_v7 = vld [vmem:[#allocation3 + $0x3e8] sm:$0xff] }
 0x4e3   :  { %4742 = vst [vmem:[#allocation2 + $0x1d0] sm:$0xf] %v8302_v28  ;;  %1492 = vrot.lane.b32.xlu1 %v12655_v42, %s8911_s3  ;;  %5825 = vmatmul.mubr.bf16.gmra.mxu1 %v8818_v52  ;;  %v5780_v10 = vpop.f32.mrf.mxu1 }
 0x4e4   :  { %v2821_v56 = vpop.permute.xlu0 %2820 }
 0x4e5   :  { %v1989_v25 = vpop.permute.xlu1 %1988  ;;  %v12908_v52 = vpop.f32.mrf.mxu1 }
 0x4e6   :  { %4040 = vrot.lane.b32.xlu0 %v12380_v36, %s8914_s2  ;;  %v8821_v45 = vld [vmem:[#allocation2 + $0x1b8] ss:$12 sps:$4 sm:$0xff]   ;;  %v2259_v47 = vsel %vm2207_vm4, %v2194_v35, %v1989_v25 }
 0x4e7   :  { %v2387_v13 = vmul.f32 %v2323_v38, %v2259_v47  ;;  %2838 = vrot.lane.b32.xlu1 %v12902_v29, %s8911_s3  ;;  %8574 = vmatprep.mubr.bf16.mxu0 %v8821_v45  ;;  %v5783_v38 = vpop.f32.mrf.mxu1  ;;  %v4169_v45 = vsel %vm505_vm0, %v16487_v50, %v12351_v26 }
 0x4e8   :  { %v1731_v28 = vpop.permute.xlu0 %1730 }
 0x4e9   :  { %v8187_v35 = vpack.c.bf16 %v2387_v13, %v2387_v13  ;;  %v12911_v25 = vpop.permute.xlu1 %3206 }
 0x4ea   :  { %4044 = vrot.lane.b32.xlu0 %v12506_v40, %s8914_s2  ;;  %v8822_v10 = vld [vmem:[#allocation2 + $0x1d0] ss:$12 sps:$4 sm:$0xff]   ;;  %v3475_v47 = vsel %vm2207_vm4, %v3411_v30, %v12911_v25 }
 0x4eb   :  { %2707 = vst [vmem:[#allocation2 + $0x264] sm:$0xf] %v8187_v35  ;;  %v3603_v41 = vmul.f32 %v3539_v37, %v3475_v47  ;;  %1748 = vrot.lane.b32.xlu1 %v12786_v16, %s8914_s2  ;;  %8575 = vmatmul.mubr.bf16.gmra.mxu0 %v8822_v10  ;;  %v2128_v37 = vsel %vm505_vm0, %v12241_v55, %v12881_v34  ;;  %v2322_v30 = vld [vmem:[#allocation3 + $0x4b0] sm:$0xff]  ;;  %v16488_v10 = vld [vmem:[#allocation18_spill] sm:$0xff] }
 0x4ec   :  { %v3013_v59 = vpop.permute.xlu0 %3012  ;;  %v2193_v26 = vsel %vm2142_vm3, %v2128_v37, %v1731_v28  ;;  %v3538_v37 = vld [vmem:[#allocation3 + $0x4b8] sm:$0xff] }
 0x4ed   :  { %v8251_v13 = vpack.c.bf16 %v3603_v41, %v3603_v41  ;;  %v4019_v8 = vpop.permute.xlu1 %4018 }
 0x4ee   :  { %1490 = vrot.lane.b32.xlu0 %v12632_v20, %s8911_s3  ;;  %v4233_v38 = vsel %vm2142_vm3, %v4169_v45, %v4019_v8  ;;  %v16489_v8 = vrot.slane %v12754_v2, 1 }
 0x4ef   :  { %3923 = vst [vmem:[#allocation2 + $0x268] sm:$0xf] %v8251_v13  ;;  %v4297_v35 = vsel %vm2207_vm4, %v4233_v38, %v12169_v46  ;;  %3030 = vrot.lane.b32.xlu1 %v16488_v10, %s8914_s2  ;;  %v16490_v13 = vld [vmem:[#allocation101_spill] sm:$0xff] }
 0x4f0   :  { %v1987_v47 = vpop.permute.xlu0 %1986  ;;  %v4425_v41 = vmul.f32 %v4361_v7, %v4297_v35  ;;  %v12938_v45 = vsel %vm1245_vm2, %v16489_v8, %v1240_v39  ;;  %v4171_v46 = vsel %vm505_vm0, %v16490_v13, %v12477_v27  ;;  %v3346_v7 = vsel %vm505_vm0, %v12254_v14, %v2821_v56  ;;  %v4363_v35 = vld [vmem:[#allocation3 + $0x418] sm:$0xff] }
 0x4f1   :  { %v2258_v50 = vsel %vm2207_vm4, %v2193_v26, %v1987_v47  ;;  %v4023_v55 = vpop.permute.xlu1 %4022  ;;  %v3410_v39 = vsel %vm2142_vm3, %v3346_v7, %v3013_v59  ;;  %v16491_v59 = vld [vmem:[#allocation19_spill] sm:$0xff]  ;;  %v16493_v7 = vrot.slane %v16486_v9, 7 }
 0x4f2   :  { %v2386_v38 = vmul.f32 %v2322_v30, %v2258_v50  ;;  %2836 = vrot.lane.b32.xlu0 %v12938_v45, %s8911_s3  ;;  %v8305_v28 = vpack.c.bf16 %v4425_v41, %v4425_v41  ;;  %v4235_v26 = vsel %vm2142_vm3, %v4171_v46, %v4023_v55  ;;  %v16492_v50 = vld [vmem:[#allocation28_spill] sm:$0xff]  ;;  %v4360_v46 = vld [vmem:[#allocation3 + $0x3d0] sm:$0xff] }
 0x4f3   :  { %2004 = vrot.lane.b32.xlu1 %v12815_v17, %s8912_s4  ;;  %v4299_v30 = vsel %vm2207_vm4, %v4235_v26, %v12295_v3  ;;  %v4168_v55 = vsel %vm505_vm0, %v16492_v50, %v12388_v63 }
 0x4f4   :  { %v8186_v47 = vpack.c.bf16 %v2386_v38, %v2386_v38  ;;  %v12951_v8 = vpop.permute.xlu0 %3204  ;;  %4745 = vst [vmem:[#allocation2 + $0x1f4] sm:$0xf] %v8305_v28  ;;  %v4427_v41 = vmul.f32 %v4363_v35, %v4299_v30 }
 0x4f5   :  { %v3474_v27 = vsel %vm2207_vm4, %v3410_v39, %v12951_v8  ;;  %v12957_v14 = vpop.permute.xlu1 %1480  ;;  %v16495_v39 = vld [vmem:[#allocation78_spill] sm:$0xff] }
 0x4f6   :  { %2706 = vst [vmem:[#allocation2 + $0x258] sm:$0xf] %v8186_v47  ;;  %v3602_v56 = vmul.f32 %v3538_v37, %v3474_v27  ;;  %1746 = vrot.lane.b32.xlu0 %v12830_v15, %s8914_s2  ;;  %v8307_v28 = vpack.c.bf16 %v4427_v41, %v4427_v41  ;;  %v16494_v37 = vrot.slane %v12777_v4, 7  ;;  %v16496_v27 = vld [vmem:[#allocation112_spill] sm:$0xff] }
 0x4f7   :  { %3222 = vrot.lane.b32.xlu1 %v16491_v59, %s8912_s4  ;;  %v4170_v30 = vsel %vm505_vm0, %v16496_v27, %v12514_v43 }
 0x4f8   :  { %v8250_v13 = vpack.c.bf16 %v3602_v56, %v3602_v56  ;;  %v4017_v38 = vpop.permute.xlu0 %4016  ;;  %v12973_v35 = vsel %vm1116_vm1, %v16494_v37, %v16493_v7  ;;  %4747 = vst [vmem:[#allocation2 + $0x20c] sm:$0xf] %v8307_v28  ;;  %v4362_v56 = vld [vmem:[#allocation3 + $0x400] sm:$0xff] }
 0x4f9   :  { %v4232_v3 = vsel %vm2142_vm3, %v4168_v55, %v4017_v38  ;;  %v2827_v26 = vpop.permute.xlu1 %2826  ;;  %v16497_v38 = vld [vmem:[#allocation63_spill] sm:$0xff] }
 0x4fa   :  { %3922 = vst [vmem:[#allocation2 + $0x25c] sm:$0xf] %v8250_v13  ;;  %v4296_v47 = vsel %vm2207_vm4, %v4232_v3, %v16495_v39  ;;  %3028 = vrot.lane.b32.xlu0 %v12973_v35, %s8914_s2 }
 0x4fb   :  { %v4424_v63 = vmul.f32 %v4360_v46, %v4296_v47  ;;  %1496 = vrot.lane.b32.xlu1 %v12777_v4, %s8911_s3  ;;  %v2131_v47 = vsel %vm505_vm0, %v12315_v18, %v12957_v14  ;;  %v3349_v18 = vsel %vm505_vm0, %v12403_v62, %v2827_v26 }
 0x4fc   :  { %v4021_v41 = vpop.permute.xlu0 %4020 }
 0x4fd   :  { %v8304_v50 = vpack.c.bf16 %v4424_v63, %v4424_v63  ;;  %v4234_v55 = vsel %vm2142_vm3, %v4170_v30, %v4021_v41  ;;  %v1737_v13 = vpop.permute.xlu1 %1736  ;;  %v8823_v7 = vld [vmem:[#allocation2 + $0x258] ss:$12 sps:$4 sm:$0xff]  }
 0x4fe   :  { %v4298_v3 = vsel %vm2207_vm4, %v4234_v55, %v16497_v38  ;;  %2002 = vrot.lane.b32.xlu0 %v12863_v31, %s8912_s4  ;;  %v2325_v30 = vld [vmem:[#allocation3 + $0x4f8] sm:$0xff] }
 0x4ff   :  { %4744 = vst [vmem:[#allocation2 + $0x1e8] sm:$0xf] %v8304_v50  ;;  %v4426_v46 = vmul.f32 %v4362_v56, %v4298_v3  ;;  %4050 = vrot.lane.b32.xlu1 %v12655_v42, %s8914_s2  ;;  %v2196_v56 = vsel %vm2142_vm3, %v2131_v47, %v1737_v13  ;;  %v3541_v13 = vld [vmem:[#allocation3 + $0x500] sm:$0xff] }
 0x500   :  { %v12991_v28 = vpop.permute.xlu0 %1478 }
 0x501   :  { %v8306_v43 = vpack.c.bf16 %v4426_v46, %v4426_v46  ;;  %v8825_v37 = vld [vmem:[#allocation2 + $0x25c] ss:$12 sps:$4 sm:$0xff]   ;;  %v3019_v39 = vpop.permute.xlu1 %3018  ;;  %v13000_v27 = vpop.f32.mrf.mxu1  ;;  %v16499_v46 = vld [vmem:[#allocation47_spill] sm:$0xff] }
 0x502   :  { %3220 = vrot.lane.b32.xlu0 %v16486_v9, %s8912_s4  ;;  %5832 = vmatprep.mubr.bf16.mxu1 %v8825_v37  ;;  %16498 = vst [vmem:[#allocation148_spill] sm:$0xff] %v13000_v27  ;;  %v3413_v37 = vsel %vm2142_vm3, %v3349_v18, %v3019_v39  ;;  %v16501_v39 = vld [vmem:[#allocation72_spill] sm:$0xff] }
 0x503   :  { %4746 = vst [vmem:[#allocation2 + $0x200] sm:$0xf] %v8306_v43  ;;  %4054 = vrot.lane.b32.xlu1 %v12777_v4, %s8914_s2  ;;  %5833 = vmatmul.mubr.bf16.gmra.mxu1 %v8823_v7  ;;  %v5788_v50 = vpop.f32.mrf.mxu1 }
 0x504   :  { %v2825_v63 = vpop.permute.xlu0 %2824  ;;  %v4173_v50 = vsel %vm505_vm0, %v16501_v39, %v12603_v21 }
 0x505   :  { %v1993_v41 = vpop.permute.xlu1 %1992  ;;  %v13010_v7 = vpop.f32.mrf.mxu1 }
 0x506   :  { %1494 = vrot.lane.b32.xlu0 %v12754_v2, %s8911_s3  ;;  %v8826_v55 = vld [vmem:[#allocation2 + $0x1e8] ss:$12 sps:$4 sm:$0xff]   ;;  %v2261_v38 = vsel %vm2207_vm4, %v2196_v56, %v1993_v41  ;;  %16500 = vst [vmem:[#allocation35_spill] sm:$0xff] %v13010_v7 }
 0x507   :  { %v2389_v3 = vmul.f32 %v2325_v30, %v2261_v38  ;;  %2842 = vrot.lane.b32.xlu1 %v16499_v46, %s8911_s3  ;;  %8578 = vmatprep.mubr.bf16.mxu0 %v8826_v55  ;;  %v5791_v30 = vpop.f32.mrf.mxu1  ;;  %v4365_v38 = vld [vmem:[#allocation3 + $0x448] sm:$0xff] }
 0x508   :  { %v1735_v43 = vpop.permute.xlu0 %1734 }
 0x509   :  { %v8189_v47 = vpack.c.bf16 %v2389_v3, %v2389_v3  ;;  %v13013_v27 = vpop.permute.xlu1 %3210 }
 0x50a   :  { %4048 = vrot.lane.b32.xlu0 %v12632_v20, %s8914_s2  ;;  %v8827_v56 = vld [vmem:[#allocation2 + $0x200] ss:$12 sps:$4 sm:$0xff]   ;;  %v3477_v41 = vsel %vm2207_vm4, %v3413_v37, %v13013_v27 }
 0x50b   :  { %2709 = vst [vmem:[#allocation2 + $0x27c] sm:$0xf] %v8189_v47  ;;  %v3605_v62 = vmul.f32 %v3541_v13, %v3477_v41  ;;  %1752 = vrot.lane.b32.xlu1 %v12902_v29, %s8914_s2  ;;  %8579 = vmatmul.mubr.bf16.gmra.mxu0 %v8827_v56  ;;  %v2130_v13 = vsel %vm505_vm0, %v12367_v53, %v12991_v28  ;;  %v2324_v37 = vld [vmem:[#allocation3 + $0x4e0] sm:$0xff]  ;;  %v16502_v47 = vld [vmem:[#allocation75_spill] sm:$0xff]  ;;  %v16503_v56 = vld [vmem:[#allocation32_spill] sm:$0xff] }
 0x50c   :  { %v3017_v26 = vpop.permute.xlu0 %3016  ;;  %v2195_v21 = vsel %vm2142_vm3, %v2130_v13, %v1735_v43  ;;  %v3540_v13 = vld [vmem:[#allocation3 + $0x4e8] sm:$0xff] }
 0x50d   :  { %v8253_v55 = vpack.c.bf16 %v3605_v62, %v3605_v62  ;;  %v4027_v3 = vpop.permute.xlu1 %4026 }
 0x50e   :  { %4052 = vrot.lane.b32.xlu0 %v12754_v2, %s8914_s2  ;;  %v4237_v18 = vsel %vm2142_vm3, %v4173_v50, %v4027_v3  ;;  %v16504_v50 = vrot.slane %v16491_v59, 1  ;;  %v16505_v3 = vrot.slane %v16486_v9, 1 }
 0x50f   :  { %3925 = vst [vmem:[#allocation2 + $0x280] sm:$0xf] %v8253_v55  ;;  %v4301_v30 = vsel %vm2207_vm4, %v4237_v18, %v16502_v47  ;;  %3034 = vrot.lane.b32.xlu1 %v16503_v56, %s8914_s2  ;;  %v16506_v18 = vld [vmem:[#allocation29_spill] sm:$0xff] }
 0x510   :  { %v1991_v41 = vpop.permute.xlu0 %1990  ;;  %v4429_v62 = vmul.f32 %v4365_v38, %v4301_v30  ;;  %v13042_v53 = vsel %vm1245_vm2, %v16505_v3, %v16504_v50  ;;  %v4175_v47 = vsel %vm505_vm0, %v16506_v18, %v12727_v24  ;;  %v3348_v38 = vsel %vm505_vm0, %v12380_v36, %v2825_v63  ;;  %v4367_v30 = vld [vmem:[#allocation3 + $0x478] sm:$0xff] }
 0x511   :  { %v2260_v39 = vsel %vm2207_vm4, %v2195_v21, %v1991_v41  ;;  %v4031_v55 = vpop.permute.xlu1 %4030  ;;  %v3412_v12 = vsel %vm2142_vm3, %v3348_v38, %v3017_v26 }
 0x512   :  { %v2388_v7 = vmul.f32 %v2324_v37, %v2260_v39  ;;  %2840 = vrot.lane.b32.xlu0 %v13042_v53, %s8911_s3  ;;  %v8309_v43 = vpack.c.bf16 %v4429_v62, %v4429_v62  ;;  %v4239_v21 = vsel %vm2142_vm3, %v4175_v47, %v4031_v55  ;;  %v16507_v37 = vld [vmem:[#allocation141_spill] sm:$0xff]  ;;  %v4364_v55 = vld [vmem:[#allocation3 + $0x430] sm:$0xff] }
 0x513   :  { %1500 = vrot.lane.b32.xlu1 %v16491_v59, %s8911_s3  ;;  %v4303_v62 = vsel %vm2207_vm4, %v4239_v21, %v16507_v37  ;;  %v4366_v37 = vld [vmem:[#allocation3 + $0x460] sm:$0xff] }
 0x514   :  { %v8188_v41 = vpack.c.bf16 %v2388_v7, %v2388_v7  ;;  %v13055_v50 = vpop.permute.xlu0 %3208  ;;  %4749 = vst [vmem:[#allocation2 + $0x224] sm:$0xf] %v8309_v43  ;;  %v4431_v39 = vmul.f32 %v4367_v30, %v4303_v62  ;;  %v16508_v7 = vld [vmem:[#allocation64_spill] sm:$0xff]  ;;  %v16510_v30 = vld [vmem:[#allocation147_spill] sm:$0xff] }
 0x515   :  { %v3476_v24 = vsel %vm2207_vm4, %v3412_v12, %v13055_v50  ;;  %v13061_v36 = vpop.permute.xlu1 %1484  ;;  %v4172_v26 = vsel %vm505_vm0, %v16508_v7, %v12640_v33  ;;  %v16512_v33 = vld [vmem:[#allocation124_spill] sm:$0xff] }
 0x516   :  { %2708 = vst [vmem:[#allocation2 + $0x270] sm:$0xf] %v8188_v41  ;;  %v3604_v63 = vmul.f32 %v3540_v13, %v3476_v24  ;;  %1750 = vrot.lane.b32.xlu0 %v12938_v45, %s8914_s2  ;;  %v8311_v47 = vpack.c.bf16 %v4431_v39, %v4431_v39  ;;  %v16509_v13 = vld [vmem:[#allocation139_spill] sm:$0xff]  ;;  %v16511_v41 = vld [vmem:[#allocation14_spill] sm:$0xff]  ;;  %v4174_v24 = vsel %vm505_vm0, %v16512_v33, %v12762_v57 }
 0x517   :  { %2008 = vrot.lane.b32.xlu1 %v16488_v10, %s8912_s4 }
 0x518   :  { %v8252_v3 = vpack.c.bf16 %v3604_v63, %v3604_v63  ;;  %v4025_v18 = vpop.permute.xlu0 %4024  ;;  %4751 = vst [vmem:[#allocation2 + $0x23c] sm:$0xf] %v8311_v47 }
 0x519   :  { %v4236_v43 = vsel %vm2142_vm3, %v4172_v26, %v4025_v18  ;;  %v2831_v38 = vpop.permute.xlu1 %2830 }
 0x51a   :  { %3924 = vst [vmem:[#allocation2 + $0x274] sm:$0xf] %v8252_v3  ;;  %v4300_v21 = vsel %vm2207_vm4, %v4236_v43, %v16509_v13  ;;  %3032 = vrot.lane.b32.xlu0 %v16510_v30, %s8914_s2 }
 0x51b   :  { %v4428_v12 = vmul.f32 %v4364_v55, %v4300_v21  ;;  %3226 = vrot.lane.b32.xlu1 %v16511_v41, %s8912_s4 }
 0x51c   :  { %v4029_v62 = vpop.permute.xlu0 %4028 }
 0x51d   :  { %v8308_v63 = vpack.c.bf16 %v4428_v12, %v4428_v12  ;;  %v4238_v39 = vsel %vm2142_vm3, %v4174_v24, %v4029_v62  ;;  %v1741_v7 = vpop.permute.xlu1 %1740  ;;  %v8828_v18 = vld [vmem:[#allocation2 + $0x270] ss:$12 sps:$4 sm:$0xff]   ;;  %v2327_v12 = vld [vmem:[#allocation3 + $0x528] sm:$0xff] }
 0x51e   :  { %v4302_v26 = vsel %vm2207_vm4, %v4238_v39, %v12597_v22  ;;  %1498 = vrot.lane.b32.xlu0 %v16486_v9, %s8911_s3  ;;  %v2133_v22 = vsel %vm505_vm0, %v12441_v48, %v13061_v36  ;;  %v3351_v48 = vsel %vm505_vm0, %v12529_v0, %v2831_v38 }
 0x51f   :  { %4748 = vst [vmem:[#allocation2 + $0x218] sm:$0xf] %v8308_v63  ;;  %v4430_v3 = vmul.f32 %v4366_v37, %v4302_v26  ;;  %4058 = vrot.lane.b32.xlu1 %v16491_v59, %s8914_s2  ;;  %v2198_v33 = vsel %vm2142_vm3, %v2133_v22, %v1741_v7  ;;  %v16514_v37 = vld [vmem:[#allocation22_spill] sm:$0xff]  ;;  %v3543_v7 = vld [vmem:[#allocation3 + $0x530] sm:$0xff] }
 0x520   :  { %v13087_v55 = vpop.permute.xlu0 %1482 }
 0x521   :  { %v8310_v57 = vpack.c.bf16 %v4430_v3, %v4430_v3  ;;  %v8830_v47 = vld [vmem:[#allocation2 + $0x274] ss:$12 sps:$4 sm:$0xff]   ;;  %v3023_v43 = vpop.permute.xlu1 %3022 }
 0x522   :  { %2006 = vrot.lane.b32.xlu0 %v12973_v35, %s8912_s4  ;;  %5840 = vmatprep.mubr.bf16.mxu1 %v8830_v47  ;;  %v16515_v3 = vld [vmem:[#allocation71_spill] sm:$0xff]  ;;  %v3415_v47 = vsel %vm2142_vm3, %v3351_v48, %v3023_v43 }
 0x523   :  { %4750 = vst [vmem:[#allocation2 + $0x230] sm:$0xf] %v8310_v57  ;;  %4062 = vrot.lane.b32.xlu1 %v16511_v41, %s8914_s2  ;;  %v13096_v21 = vpop.f32.mrf.mxu1  ;;  %5841 = vmatmul.mubr.bf16.gmra.mxu1 %v8828_v18  ;;  %v16516_v43 = vld [vmem:[#allocation83_spill] sm:$0xff] }
 0x524   :  { %v2829_v13 = vpop.permute.xlu0 %2828  ;;  %16513 = vst [vmem:[#allocation91_spill] sm:$0xff] %v13096_v21 }
 0x525   :  { %v1997_v24 = vpop.permute.xlu1 %1996  ;;  %v5796_v62 = vpop.f32.mrf.mxu1 }
 0x526   :  { %3224 = vrot.lane.b32.xlu0 %v16514_v37, %s8912_s4  ;;  %v8831_v63 = vld [vmem:[#allocation2 + $0x218] ss:$12 sps:$4 sm:$0xff]   ;;  %v2263_v39 = vsel %vm2207_vm4, %v2198_v33, %v1997_v24  ;;  %v4177_v62 = vsel %vm505_vm0, %v16516_v43, %v12849_v51 }
 0x527   :  { %v2391_v26 = vmul.f32 %v2327_v12, %v2263_v39  ;;  %2846 = vrot.lane.b32.xlu1 %v16515_v3, %s8911_s3  ;;  %v13106_v18 = vpop.f32.mrf.mxu1  ;;  %8582 = vmatprep.mubr.bf16.mxu0 %v8831_v63  ;;  %v4369_v39 = vld [vmem:[#allocation3 + $0x4a8] sm:$0xff] }
 0x528   :  { %v1739_v57 = vpop.permute.xlu0 %1738 }
 0x529   :  { %v8191_v22 = vpack.c.bf16 %v2391_v26, %v2391_v26  ;;  %v13109_v21 = vpop.permute.xlu1 %3214  ;;  %v5799_v12 = vpop.f32.mrf.mxu1 }
 0x52a   :  { %4056 = vrot.lane.b32.xlu0 %v16486_v9, %s8914_s2  ;;  %v8832_v33 = vld [vmem:[#allocation2 + $0x230] ss:$12 sps:$4 sm:$0xff]   ;;  %v3479_v24 = vsel %vm2207_vm4, %v3415_v47, %v13109_v21  ;;  %v16517_v12 = vld [vmem:[#allocation77_spill] sm:$0xff] }
 0x52b   :  { %2711 = vst [vmem:[#allocation2 + $0x294] sm:$0xf] %v8191_v22  ;;  %v3607_v0 = vmul.f32 %v3543_v7, %v3479_v24  ;;  %1756 = vrot.lane.b32.xlu1 %v16499_v46, %s8914_s2  ;;  %8583 = vmatmul.mubr.bf16.gmra.mxu0 %v8832_v33  ;;  %v2132_v7 = vsel %vm505_vm0, %v12493_v23, %v13087_v55  ;;  %v2326_v47 = vld [vmem:[#allocation3 + $0x510] sm:$0xff] }
 0x52c   :  { %v3021_v38 = vpop.permute.xlu0 %3020  ;;  %v2197_v51 = vsel %vm2142_vm3, %v2132_v7, %v1739_v57 }
 0x52d   :  { %v8255_v63 = vpack.c.bf16 %v3607_v0, %v3607_v0  ;;  %v4035_v26 = vpop.permute.xlu1 %4034 }
 0x52e   :  { %4060 = vrot.lane.b32.xlu0 %v16514_v37, %s8914_s2  ;;  %v4241_v48 = vsel %vm2142_vm3, %v4177_v62, %v4035_v26  ;;  %v4179_v62 = vsel %vm505_vm0, %v12538_v11, %v12957_v14 }
 0x52f   :  { %3927 = vst [vmem:[#allocation2 + $0x298] sm:$0xf] %v8255_v63  ;;  %v4305_v22 = vsel %vm2207_vm4, %v4241_v48, %v12673_v19  ;;  %3038 = vrot.lane.b32.xlu1 %v16517_v12, %s8914_s2  ;;  %v16518_v63 = vld [vmem:[#allocation79_spill] sm:$0xff]  ;;  %v3350_v19 = vsel %vm505_vm0, %v12506_v40, %v2829_v13  ;;  %v3542_v48 = vld [vmem:[#allocation3 + $0x518] sm:$0xff] }
 0x530   :  { %v1995_v33 = vpop.permute.xlu0 %1994  ;;  %v4433_v24 = vmul.f32 %v4369_v39, %v4305_v22  ;;  %v4371_v12 = vld [vmem:[#allocation3 + $0x4d8] sm:$0xff]  ;;  %v3414_v39 = vsel %vm2142_vm3, %v3350_v19, %v3021_v38  ;;  %v16519_v38 = vld [vmem:[#allocation89_spill] sm:$0xff] }
 0x531   :  { %v2262_v0 = vsel %vm2207_vm4, %v2197_v51, %v1995_v33  ;;  %v4039_v43 = vpop.permute.xlu1 %4038  ;;  %v4368_v33 = vld [vmem:[#allocation3 + $0x490] sm:$0xff]  ;;  %v4370_v19 = vld [vmem:[#allocation3 + $0x4c0] sm:$0xff] }
 0x532   :  { %v2390_v23 = vmul.f32 %v2326_v47, %v2262_v0  ;;  %2844 = vrot.lane.b32.xlu0 %v16518_v63, %s8911_s3  ;;  %v8313_v26 = vpack.c.bf16 %v4433_v24, %v4433_v24  ;;  %v4243_v57 = vsel %vm2142_vm3, %v4179_v62, %v4039_v43  ;;  %v4176_v47 = vsel %vm505_vm0, %v16519_v38, %v12881_v34 }
 0x533   :  { %2012 = vrot.lane.b32.xlu1 %v16503_v56, %s8912_s4  ;;  %v4307_v14 = vsel %vm2207_vm4, %v4243_v57, %v12795_v58  ;;  %v4178_v34 = vsel %vm505_vm0, %v12585_v54, %v12991_v28 }
 0x534   :  { %v8190_v7 = vpack.c.bf16 %v2390_v23, %v2390_v23  ;;  %v13143_v22 = vpop.permute.xlu0 %3212  ;;  %4753 = vst [vmem:[#allocation2 + $0x254] sm:$0xf] %v8313_v26  ;;  %v4435_v56 = vmul.f32 %v4371_v12, %v4307_v14  ;;  %v16520_v23 = vld [vmem:[#allocation84_spill] sm:$0xff] }
 0x535   :  { %v3478_v11 = vsel %vm2207_vm4, %v3414_v39, %v13143_v22  ;;  %v13149_v40 = vpop.permute.xlu1 %1488 }
 0x536   :  { %2710 = vst [vmem:[#allocation2 + $0x288] sm:$0xf] %v8190_v7  ;;  %v3606_v13 = vmul.f32 %v3542_v48, %v3478_v11  ;;  %1754 = vrot.lane.b32.xlu0 %v13042_v53, %s8914_s2  ;;  %v8315_v0 = vpack.c.bf16 %v4435_v56, %v4435_v56  ;;  %v2135_v28 = vsel %vm505_vm0, %v12567_v44, %v13149_v40  ;;  %v3545_v44 = vld [vmem:[#allocation3 + $0x560] sm:$0xff] }
 0x538   :  { %v8254_v51 = vpack.c.bf16 %v3606_v13, %v3606_v13  ;;  %v4033_v24 = vpop.permute.xlu0 %4032  ;;  %4755 = vst [vmem:[#allocation2 + $0x26c] sm:$0xf] %v8315_v0 }
 0x539   :  { %v4240_v43 = vsel %vm2142_vm3, %v4176_v47, %v4033_v24  ;;  %v2835_v62 = vpop.permute.xlu1 %2834 }
 0x53a   :  { %3926 = vst [vmem:[#allocation2 + $0x28c] sm:$0xf] %v8254_v51  ;;  %v4304_v58 = vsel %vm2207_vm4, %v4240_v43, %v12721_v32  ;;  %3036 = vrot.lane.b32.xlu0 %v16520_v23, %s8914_s2 }
 0x53b   :  { %v4432_v26 = vmul.f32 %v4368_v33, %v4304_v58  ;;  %v3353_v58 = vsel %vm505_vm0, %v12655_v42, %v2835_v62  ;;  %v4181_v42 = vsel %vm505_vm0, %v12664_v61, %v13061_v36 }
 0x53c   :  { %v4037_v48 = vpop.permute.xlu0 %4036 }
 0x53d   :  { %v8312_v12 = vpack.c.bf16 %v4432_v26, %v4432_v26  ;;  %v4242_v57 = vsel %vm2142_vm3, %v4178_v34, %v4037_v48  ;;  %v1745_v39 = vpop.permute.xlu1 %1744  ;;  %v8833_v13 = vld [vmem:[#allocation2 + $0x288] ss:$12 sps:$4 sm:$0xff]  }
 0x53e   :  { %v4306_v7 = vsel %vm2207_vm4, %v4242_v57, %v12843_v1  ;;  %2010 = vrot.lane.b32.xlu0 %v16510_v30, %s8912_s4  ;;  %v2329_v1 = vld [vmem:[#allocation3 + $0x558] sm:$0xff]  ;;  %v2200_v30 = vsel %vm2142_vm3, %v2135_v28, %v1745_v39 }
 0x53f   :  { %4752 = vst [vmem:[#allocation2 + $0x248] sm:$0xf] %v8312_v12  ;;  %v4434_v32 = vmul.f32 %v4370_v19, %v4306_v7 }
 0x540   :  { %v13169_v11 = vpop.permute.xlu0 %1486 }
 0x541   :  { %v8314_v14 = vpack.c.bf16 %v4434_v32, %v4434_v32  ;;  %v8835_v56 = vld [vmem:[#allocation2 + $0x28c] ss:$12 sps:$4 sm:$0xff]   ;;  %v3027_v54 = vpop.permute.xlu1 %3026 }
 0x542   :  { %5848 = vmatprep.mubr.bf16.mxu1 %v8835_v56  ;;  %v3417_v34 = vsel %vm2142_vm3, %v3353_v58, %v3027_v54  ;;  %v16521_v54 = vld [vmem:[#allocation146_spill] sm:$0xff] }
 0x543   :  { %4754 = vst [vmem:[#allocation2 + $0x260] sm:$0xf] %v8314_v14  ;;  %v13174_v47 = vpop.f32.mrf.mxu1  ;;  %5849 = vmatmul.mubr.bf16.gmra.mxu1 %v8833_v13  ;;  %v4373_v14 = vld [vmem:[#allocation3 + $0x508] sm:$0xff]  ;;  %v2134_v28 = vsel %vm505_vm0, %v16521_v54, %v13169_v11 }
 0x544   :  { %v2833_v38 = vpop.permute.xlu0 %2832 }
 0x545   :  { %v2001_v51 = vpop.permute.xlu1 %2000  ;;  %v5804_v33 = vpop.f32.mrf.mxu1 }
 0x546   :  { %v8836_v24 = vld [vmem:[#allocation2 + $0x248] ss:$12 sps:$4 sm:$0xff]   ;;  %v2265_v0 = vsel %vm2207_vm4, %v2200_v30, %v2001_v51 }
 0x547   :  { %v2393_v43 = vmul.f32 %v2329_v1, %v2265_v0  ;;  %v13180_v26 = vpop.f32.mrf.mxu1  ;;  %8586 = vmatprep.mubr.bf16.mxu0 %v8836_v24  ;;  %v2328_v1 = vld [vmem:[#allocation3 + $0x540] sm:$0xff]  ;;  %v4183_v0 = vsel %vm505_vm0, %v12786_v16, %v13149_v40 }
 0x548   :  { %v1743_v23 = vpop.permute.xlu0 %1742 }
 0x549   :  { %v8193_v19 = vpack.c.bf16 %v2393_v43, %v2393_v43  ;;  %v13183_v48 = vpop.permute.xlu1 %3218  ;;  %v5807_v12 = vpop.f32.mrf.mxu1  ;;  %v2199_v51 = vsel %vm2142_vm3, %v2134_v28, %v1743_v23  ;;  %v4182_v28 = vsel %vm505_vm0, %v12830_v15, %v13169_v11 }
 0x54a   :  { %v8837_v57 = vld [vmem:[#allocation2 + $0x260] ss:$12 sps:$4 sm:$0xff]   ;;  %v3481_v39 = vsel %vm2207_vm4, %v3417_v34, %v13183_v48 }
 0x54b   :  { %2713 = vst [vmem:[#allocation2 + $0x2ac] sm:$0xf] %v8193_v19  ;;  %v3609_v7 = vmul.f32 %v3545_v44, %v3481_v39  ;;  %8587 = vmatmul.mubr.bf16.gmra.mxu0 %v8837_v57  ;;  %v3352_v44 = vsel %vm505_vm0, %v12632_v20, %v2833_v38  ;;  %v3544_v34 = vld [vmem:[#allocation3 + $0x548] sm:$0xff]  ;;  %v4375_v19 = vld [vmem:[#allocation3 + $0x538] sm:$0xff] }
 0x54c   :  { %v3025_v32 = vpop.permute.xlu0 %3024 }
 0x54d   :  { %v8257_v62 = vpack.c.bf16 %v3609_v7, %v3609_v7  ;;  %v4043_v13 = vpop.permute.xlu1 %4042  ;;  %v3416_v23 = vsel %vm2142_vm3, %v3352_v44, %v3025_v32  ;;  %v4180_v7 = vsel %vm505_vm0, %v12708_v49, %v13087_v55  ;;  %v2331_v44 = vld [vmem:[#allocation3 + $0x588] sm:$0xff] }
 0x54e   :  { %v4245_v56 = vsel %vm2142_vm3, %v4181_v42, %v4043_v13  ;;  %v4372_v42 = vld [vmem:[#allocation3 + $0x4f0] sm:$0xff] }
 0x54f   :  { %3929 = vst [vmem:[#allocation2 + $0x2b0] sm:$0xf] %v8257_v62  ;;  %v4309_v30 = vsel %vm2207_vm4, %v4245_v56, %v12911_v25 }
 0x550   :  { %v1999_v33 = vpop.permute.xlu0 %1998  ;;  %v4437_v24 = vmul.f32 %v4373_v14, %v4309_v30 }
 0x551   :  { %v2264_v61 = vsel %vm2207_vm4, %v2199_v51, %v1999_v33  ;;  %v4047_v36 = vpop.permute.xlu1 %4046 }
 0x552   :  { %v2392_v43 = vmul.f32 %v2328_v1, %v2264_v61  ;;  %v8317_v58 = vpack.c.bf16 %v4437_v24, %v4437_v24  ;;  %v4247_v25 = vsel %vm2142_vm3, %v4183_v0, %v4047_v36  ;;  %v4374_v1 = vld [vmem:[#allocation3 + $0x520] sm:$0xff] }
 0x553   :  { %v4311_v16 = vsel %vm2207_vm4, %v4247_v25, %v13013_v27 }
 0x554   :  { %v8192_v12 = vpack.c.bf16 %v2392_v43, %v2392_v43  ;;  %v13205_v57 = vpop.permute.xlu0 %3216  ;;  %4757 = vst [vmem:[#allocation2 + $0x284] sm:$0xf] %v8317_v58  ;;  %v4439_v38 = vmul.f32 %v4375_v19, %v4311_v16 }
 0x555   :  { %v3480_v39 = vsel %vm2207_vm4, %v3416_v23, %v13205_v57  ;;  %v13211_v40 = vpop.permute.xlu1 %1492 }
 0x556   :  { %2712 = vst [vmem:[#allocation2 + $0x2a0] sm:$0xf] %v8192_v12  ;;  %v3608_v20 = vmul.f32 %v3544_v34, %v3480_v39  ;;  %v8319_v14 = vpack.c.bf16 %v4439_v38, %v4439_v38  ;;  %v2137_v15 = vsel %vm505_vm0, %v12693_v60, %v13211_v40  ;;  %v3547_v60 = vld [vmem:[#allocation3 + $0x590] sm:$0xff] }
 0x558   :  { %v8256_v32 = vpack.c.bf16 %v3608_v20, %v3608_v20  ;;  %v4041_v62 = vpop.permute.xlu0 %4040  ;;  %4759 = vst [vmem:[#allocation2 + $0x29c] sm:$0xf] %v8319_v14 }
 0x559   :  { %v4244_v13 = vsel %vm2142_vm3, %v4180_v7, %v4041_v62  ;;  %v2839_v56 = vpop.permute.xlu1 %2838 }
 0x55a   :  { %3928 = vst [vmem:[#allocation2 + $0x2a4] sm:$0xf] %v8256_v32  ;;  %v4308_v27 = vsel %vm2207_vm4, %v4244_v13, %v12951_v8  ;;  %v3355_v39 = vsel %vm505_vm0, %v12777_v4, %v2839_v56 }
 0x55b   :  { %v4436_v54 = vmul.f32 %v4372_v42, %v4308_v27 }
 0x55c   :  { %v4045_v30 = vpop.permute.xlu0 %4044 }
 0x55d   :  { %v8316_v49 = vpack.c.bf16 %v4436_v54, %v4436_v54  ;;  %v4246_v55 = vsel %vm2142_vm3, %v4182_v28, %v4045_v30  ;;  %v1749_v51 = vpop.permute.xlu1 %1748  ;;  %v8838_v36 = vld [vmem:[#allocation2 + $0x2a0] ss:$12 sps:$4 sm:$0xff]   ;;  %v2330_v28 = vld [vmem:[#allocation3 + $0x570] sm:$0xff] }
 0x55e   :  { %v4310_v33 = vsel %vm2207_vm4, %v4246_v55, %v13055_v50  ;;  %v2202_v50 = vsel %vm2142_vm3, %v2137_v15, %v1749_v51 }
 0x55f   :  { %4756 = vst [vmem:[#allocation2 + $0x278] sm:$0xf] %v8316_v49  ;;  %v4438_v24 = vmul.f32 %v4374_v1, %v4310_v33  ;;  %v4185_v49 = vsel %vm505_vm0, %v12902_v29, %v13211_v40 }
 0x560   :  { %v13225_v61 = vpop.permute.xlu0 %1490 }
 0x561   :  { %v8318_v8 = vpack.c.bf16 %v4438_v24, %v4438_v24  ;;  %v8840_v0 = vld [vmem:[#allocation2 + $0x2a4] ss:$12 sps:$4 sm:$0xff]   ;;  %v3031_v43 = vpop.permute.xlu1 %3030  ;;  %v2136_v54 = vsel %vm505_vm0, %v12741_v5, %v13225_v61  ;;  %v4377_v24 = vld [vmem:[#allocation3 + $0x568] sm:$0xff]  ;;  %v3546_v5 = vld [vmem:[#allocation3 + $0x578] sm:$0xff] }
 0x562   :  { %5856 = vmatprep.mubr.bf16.mxu1 %v8840_v0  ;;  %v3419_v38 = vsel %vm2142_vm3, %v3355_v39, %v3031_v43 }
 0x563   :  { %4758 = vst [vmem:[#allocation2 + $0x290] sm:$0xf] %v8318_v8  ;;  %v13230_v58 = vpop.f32.mrf.mxu1  ;;  %5857 = vmatmul.mubr.bf16.gmra.mxu1 %v8838_v36 }
 0x564   :  { %v2837_v11 = vpop.permute.xlu0 %2836 }
 0x565   :  { %v2005_v34 = vpop.permute.xlu1 %2004  ;;  %v5812_v19 = vpop.f32.mrf.mxu1  ;;  %v3354_v36 = vsel %vm505_vm0, %v12754_v2, %v2837_v11 }
 0x566   :  { %v8841_v25 = vld [vmem:[#allocation2 + $0x278] ss:$12 sps:$4 sm:$0xff]   ;;  %v2267_v23 = vsel %vm2207_vm4, %v2202_v50, %v2005_v34 }
 0x567   :  { %v2395_v12 = vmul.f32 %v2331_v44, %v2267_v23  ;;  %v13236_v20 = vpop.f32.mrf.mxu1  ;;  %8590 = vmatprep.mubr.bf16.mxu0 %v8841_v25  ;;  %v4379_v34 = vld [vmem:[#allocation3 + $0x598] sm:$0xff] }
 0x568   :  { %v1747_v16 = vpop.permute.xlu0 %1746 }
 0x569   :  { %v8195_v7 = vpack.c.bf16 %v2395_v12, %v2395_v12  ;;  %v13239_v32 = vpop.permute.xlu1 %3222  ;;  %v5815_v42 = vpop.f32.mrf.mxu1  ;;  %v2201_v1 = vsel %vm2142_vm3, %v2136_v54, %v1747_v16 }
 0x56a   :  { %v8842_v62 = vld [vmem:[#allocation2 + $0x290] ss:$12 sps:$4 sm:$0xff]   ;;  %v3483_v14 = vsel %vm2207_vm4, %v3419_v38, %v13239_v32 }
 0x56b   :  { %2715 = vst [vmem:[#allocation2 + $0x2c4] sm:$0xf] %v8195_v7  ;;  %v3611_v13 = vmul.f32 %v3547_v60, %v3483_v14  ;;  %8591 = vmatmul.mubr.bf16.gmra.mxu0 %v8842_v62  ;;  %v4376_v38 = vld [vmem:[#allocation3 + $0x550] sm:$0xff] }
 0x56c   :  { %v3029_v27 = vpop.permute.xlu0 %3028 }
 0x56d   :  { %v8259_v4 = vpack.c.bf16 %v3611_v13, %v3611_v13  ;;  %v13243_v56 = vpop.permute.xlu1 %1496  ;;  %v3418_v43 = vsel %vm2142_vm3, %v3354_v36, %v3029_v27  ;;  %v4378_v27 = vld [vmem:[#allocation3 + $0x580] sm:$0xff] }
 0x56e   :  { %v4187_v40 = vsel %vm505_vm0, %v16499_v46, %v13243_v56  ;;  %v4184_v46 = vsel %vm505_vm0, %v12938_v45, %v13225_v61 }
 0x56f   :  { %3931 = vst [vmem:[#allocation2 + $0x2c8] sm:$0xf] %v8259_v4 }
 0x570   :  { %v2003_v30 = vpop.permute.xlu0 %2002 }
 0x571   :  { %v2266_v55 = vsel %vm2207_vm4, %v2201_v1, %v2003_v30  ;;  %v4051_v51 = vpop.permute.xlu1 %4050 }
 0x572   :  { %v2394_v33 = vmul.f32 %v2330_v28, %v2266_v55  ;;  %v4249_v8 = vsel %vm2142_vm3, %v4185_v49, %v4051_v51 }
 0x573   :  { %v4313_v0 = vsel %vm2207_vm4, %v4249_v8, %v13109_v21 }
 0x574   :  { %v8194_v15 = vpack.c.bf16 %v2394_v33, %v2394_v33  ;;  %v13259_v44 = vpop.permute.xlu0 %3220  ;;  %v4441_v50 = vmul.f32 %v4377_v24, %v4313_v0  ;;  %v2139_v24 = vsel %vm505_vm0, %v12815_v17, %v13243_v56 }
 0x575   :  { %v3482_v29 = vsel %vm2207_vm4, %v3418_v43, %v13259_v44  ;;  %v4055_v19 = vpop.permute.xlu1 %4054 }
 0x576   :  { %2714 = vst [vmem:[#allocation2 + $0x2b8] sm:$0xf] %v8194_v15  ;;  %v3610_v2 = vmul.f32 %v3546_v5, %v3482_v29  ;;  %v4251_v11 = vsel %vm2142_vm3, %v4187_v40, %v4055_v19  ;;  %v8321_v21 = vpack.c.bf16 %v4441_v50, %v4441_v50  ;;  %v3549_v19 = vld [vmem:[#allocation3 + $0x5c0] sm:$0xff] }
 0x577   :  { %v4315_v25 = vsel %vm2207_vm4, %v4251_v11, %v13183_v48 }
 0x578   :  { %v8258_v23 = vpack.c.bf16 %v3610_v2, %v3610_v2  ;;  %v1495_v12 = vpop.permute.xlu0 %1494  ;;  %v4443_v39 = vmul.f32 %v4379_v34, %v4315_v25  ;;  %4761 = vst [vmem:[#allocation2 + $0x2b4] sm:$0xf] %v8321_v21 }
 0x579   :  { %v2843_v16 = vpop.permute.xlu1 %2842  ;;  %v4186_v13 = vsel %vm505_vm0, %v13042_v53, %v1495_v12 }
 0x57a   :  { %3930 = vst [vmem:[#allocation2 + $0x2bc] sm:$0xf] %v8258_v23  ;;  %v8323_v60 = vpack.c.bf16 %v4443_v39, %v4443_v39  ;;  %v3357_v50 = vsel %vm505_vm0, %v16491_v59, %v2843_v16 }
 0x57c   :  { %v4049_v7 = vpop.permute.xlu0 %4048  ;;  %4763 = vst [vmem:[#allocation2 + $0x2cc] sm:$0xf] %v8323_v60  ;;  %v4381_v60 = vld [vmem:[#allocation3 + $0x5c8] sm:$0xff] }
 0x57d   :  { %v4248_v42 = vsel %vm2142_vm3, %v4184_v46, %v4049_v7  ;;  %v1753_v62 = vpop.permute.xlu1 %1752  ;;  %v8843_v1 = vld [vmem:[#allocation2 + $0x2b8] ss:$12 sps:$4 sm:$0xff]   ;;  %v2138_v46 = vsel %vm505_vm0, %v12863_v31, %v1495_v12 }
 0x57e   :  { %v4312_v48 = vsel %vm2207_vm4, %v4248_v42, %v13143_v22  ;;  %v2204_v5 = vsel %vm2142_vm3, %v2139_v24, %v1753_v62 }
 0x57f   :  { %v4440_v14 = vmul.f32 %v4376_v38, %v4312_v48  ;;  %v2332_v38 = vld [vmem:[#allocation3 + $0x5a0] sm:$0xff] }
 0x580   :  { %v4053_v4 = vpop.permute.xlu0 %4052 }
 0x581   :  { %v8320_v54 = vpack.c.bf16 %v4440_v14, %v4440_v14  ;;  %v4250_v28 = vsel %vm2142_vm3, %v4186_v13, %v4053_v4  ;;  %v8845_v45 = vld [vmem:[#allocation2 + $0x2bc] ss:$12 sps:$4 sm:$0xff]   ;;  %v3035_v61 = vpop.permute.xlu1 %3034 }
 0x582   :  { %v4314_v30 = vsel %vm2207_vm4, %v4250_v28, %v13205_v57  ;;  %5864 = vmatprep.mubr.bf16.mxu1 %v8845_v45  ;;  %v2333_v57 = vld [vmem:[#allocation3 + $0x5b8] sm:$0xff]  ;;  %v3421_v17 = vsel %vm2142_vm3, %v3357_v50, %v3035_v61  ;;  %v3548_v45 = vld [vmem:[#allocation3 + $0x5a8] sm:$0xff] }
 0x583   :  { %4760 = vst [vmem:[#allocation2 + $0x2a8] sm:$0xf] %v8320_v54  ;;  %v4442_v49 = vmul.f32 %v4378_v27, %v4314_v30  ;;  %v13280_v22 = vpop.f32.mrf.mxu1  ;;  %5865 = vmatmul.mubr.bf16.gmra.mxu1 %v8843_v1  ;;  %v16522_v27 = vld [vmem:[#allocation58_spill] sm:$0xff]  ;;  %v4383_v54 = vld [vmem:[#allocation3 + $0x5f8] sm:$0xff] }
 0x584   :  { %v2841_v55 = vpop.permute.xlu0 %2840 }
 0x585   :  { %v8322_v51 = vpack.c.bf16 %v4442_v49, %v4442_v49  ;;  %v13282_v53 = vpop.permute.xlu1 %1500  ;;  %v5820_v33 = vpop.f32.mrf.mxu1  ;;  %v3356_v1 = vsel %vm505_vm0, %v16486_v9, %v2841_v55 }
 0x586   :  { %v4189_v59 = vsel %vm505_vm0, %v16515_v3, %v13282_v53  ;;  %v16523_v3 = vld [vmem:[#allocation68_spill] sm:$0xff] }
 0x587   :  { %4762 = vst [vmem:[#allocation2 + $0x2c0] sm:$0xf] %v8322_v51  ;;  %v13287_v36 = vpop.f32.mrf.mxu1  ;;  %v4191_v4 = vsel %vm505_vm0, %v16523_v3, %v16522_v27 }
 0x588   :  { %v1751_v8 = vpop.permute.xlu0 %1750 }
 0x589   :  { %v2009_v0 = vpop.permute.xlu1 %2008  ;;  %v5823_v43 = vpop.f32.mrf.mxu1  ;;  %v2203_v42 = vsel %vm2142_vm3, %v2138_v46, %v1751_v8 }
 0x58a   :  { %v8846_v15 = vld [vmem:[#allocation2 + $0x2a8] ss:$12 sps:$4 sm:$0xff]   ;;  %v2269_v29 = vsel %vm2207_vm4, %v2204_v5, %v2009_v0 }
 0x58b   :  { %v2397_v40 = vmul.f32 %v2333_v57, %v2269_v29  ;;  %8594 = vmatprep.mubr.bf16.mxu0 %v8846_v15  ;;  %v4380_v0 = vld [vmem:[#allocation3 + $0x5b0] sm:$0xff]  ;;  %v13319_v15 = vpop.f32.mrf.mxu0 }
 0x58c   :  { %v3033_v34 = vpop.permute.xlu0 %3032 }
 0x58d   :  { %v8197_v56 = vpack.c.bf16 %v2397_v40, %v2397_v40  ;;  %v3227_v2 = vpop.permute.xlu1 %3226 }
 0x58e   :  { %v8847_v11 = vld [vmem:[#allocation2 + $0x2c0] ss:$12 sps:$4 sm:$0xff]   ;;  %v3485_v21 = vsel %vm2207_vm4, %v3421_v17, %v3227_v2 }
 0x58f   :  { %2717 = vst [vmem:[#allocation2 + $0x2dc] sm:$0xf] %v8197_v56  ;;  %v3613_v25 = vmul.f32 %v3549_v19, %v3485_v21  ;;  %8595 = vmatmul.mubr.bf16.gmra.mxu0 %v8847_v11  ;;  %v16524_v19 = vld [vmem:[#allocation56_spill] sm:$0xff]  ;;  %v16525_v17 = vld [vmem:[#allocation66_spill] sm:$0xff]  ;;  %v13327_v11 = vpop.f32.mrf.mxu0 }
 0x590   :  { %v13295_v23 = vpop.permute.xlu0 %1498  ;;  %v4190_v56 = vsel %vm505_vm0, %v16525_v17, %v16524_v19 }
 0x591   :  { %v4059_v39 = vpop.permute.xlu1 %4058  ;;  %v8261_v16 = vpack.c.bf16 %v3613_v25, %v3613_v25  ;;  %v4188_v9 = vsel %vm505_vm0, %v16518_v63, %v13295_v23 }
 0x592   :  { %v4253_v7 = vsel %vm2142_vm3, %v4189_v59, %v4059_v39  ;;  %v3551_v59 = vld [vmem:[#allocation3 + $0x5f0] sm:$0xff] }
 0x593   :  { %3933 = vst [vmem:[#allocation2 + $0x2e0] sm:$0xf] %v8261_v16  ;;  %v4317_v48 = vsel %vm2207_vm4, %v4253_v7, %v13239_v32  ;;  %v3420_v32 = vsel %vm2142_vm3, %v3356_v1, %v3033_v34 }
 0x594   :  { %v2007_v62 = vpop.permute.xlu0 %2006  ;;  %v4445_v13 = vmul.f32 %v4381_v60, %v4317_v48 }
 0x595   :  { %v2268_v14 = vsel %vm2207_vm4, %v2203_v42, %v2007_v62  ;;  %v4063_v28 = vpop.permute.xlu1 %4062  ;;  %v2141_v42 = vsel %vm505_vm0, %v16488_v10, %v13282_v53 }
 0x596   :  { %v2396_v31 = vmul.f32 %v2332_v38, %v2268_v14  ;;  %v4255_v12 = vsel %vm2142_vm3, %v4191_v4, %v4063_v28  ;;  %v8325_v61 = vpack.c.bf16 %v4445_v13, %v4445_v13  ;;  %v16526_v38 = vld [vmem:[#allocation132_spill] sm:$0xff]  ;;  %v13341_v13 = vpop.f32.mrf.mxu0 }
 0x597   :  { %v4319_v30 = vsel %vm2207_vm4, %v4255_v12, %v3227_v2  ;;  %v4382_v2 = vld [vmem:[#allocation3 + $0x5e0] sm:$0xff] }
 0x598   :  { %v8196_v49 = vpack.c.bf16 %v2396_v31, %v2396_v31  ;;  %v3225_v51 = vpop.permute.xlu0 %3224  ;;  %v4447_v33 = vmul.f32 %v4383_v54, %v4319_v30  ;;  %4765 = vst [vmem:[#allocation2 + $0x2e4] sm:$0xf] %v8325_v61  ;;  %v5926_v61 = vpop.f32.mrf.mxu0 }
 0x599   :  { %v3484_v24 = vsel %vm2207_vm4, %v3420_v32, %v3225_v51  ;;  %v2847_v8 = vpop.permute.xlu1 %2846 }
 0x59a   :  { %2716 = vst [vmem:[#allocation2 + $0x2d0] sm:$0xf] %v8196_v49  ;;  %v3612_v57 = vmul.f32 %v3548_v45, %v3484_v24  ;;  %v8327_v5 = vpack.c.bf16 %v4447_v33, %v4447_v33  ;;  %v3359_v39 = vsel %vm505_vm0, %v16511_v41, %v2847_v8  ;;  %v2335_v41 = vld [vmem:[#allocation3 + $0x5e8] sm:$0xff]  ;;  %v3550_v24 = vld [vmem:[#allocation3 + $0x5d8] sm:$0xff] }
 0x59c   :  { %v8260_v55 = vpack.c.bf16 %v3612_v57, %v3612_v57  ;;  %v4057_v43 = vpop.permute.xlu0 %4056  ;;  %4767 = vst [vmem:[#allocation2 + $0x2fc] sm:$0xf] %v8327_v5  ;;  %v16527_v5 = vld [vmem:[#allocation142_spill] sm:$0xff] }
 0x59d   :  { %v4252_v29 = vsel %vm2142_vm3, %v4188_v9, %v4057_v43  ;;  %v1757_v40 = vpop.permute.xlu1 %1756 }
 0x59e   :  { %3932 = vst [vmem:[#allocation2 + $0x2d4] sm:$0xf] %v8260_v55  ;;  %v4316_v50 = vsel %vm2207_vm4, %v4252_v29, %v13259_v44  ;;  %v2206_v3 = vsel %vm2142_vm3, %v2141_v42, %v1757_v40  ;;  %v2140_v29 = vsel %vm505_vm0, %v12973_v35, %v13295_v23  ;;  %v2334_v40 = vld [vmem:[#allocation3 + $0x5d0] sm:$0xff]  ;;  %v8856_v35 = vld [vmem:[%s15622_s8 + $0x8] sm:$0xff]  }
 0x59f   :  { %v4444_v34 = vmul.f32 %v4380_v0, %v4316_v50  ;;  %8602 = vmatprep.subr.bf16.mxu0 %v8856_v35 }
 0x5a0   :  { %v4061_v63 = vpop.permute.xlu0 %4060  ;;  %8603 = vmatpush3.bf16.msra.mxu0 %v8856_v35 }
 0x5a1   :  { %v8324_v21 = vpack.c.bf16 %v4444_v34, %v4444_v34  ;;  %v4254_v25 = vsel %vm2142_vm3, %v4190_v56, %v4061_v63  ;;  %v3039_v16 = vpop.permute.xlu1 %3038  ;;  %v8848_v4 = vld [vmem:[#allocation2 + $0x2d0] ss:$12 sps:$4 sm:$0xff]  }
 0x5a2   :  { %v4318_v60 = vsel %vm2207_vm4, %v4254_v25, %v3225_v51  ;;  %v3423_v44 = vsel %vm2142_vm3, %v3359_v39, %v3039_v16  ;;  %v13347_v51 = vpop.f32.mrf.mxu0 }
 0x5a3   :  { %4764 = vst [vmem:[#allocation2 + $0x2d8] sm:$0xf] %v8324_v21  ;;  %v4446_v46 = vmul.f32 %v4382_v2, %v4318_v60  ;;  %v3487_v7 = vsel %vm2207_vm4, %v3423_v44, %v16526_v38  ;;  %v13339_v48 = vpop.f32.mrf.mxu1 }
 0x5a4   :  { %v2845_v62 = vpop.permute.xlu0 %2844  ;;  %v3615_v14 = vmul.f32 %v3551_v59, %v3487_v7  ;;  %v5939_v0 = vpop.f32.mrf.mxu0 }
 0x5a5   :  { %v8326_v27 = vpack.c.bf16 %v4446_v46, %v4446_v46  ;;  %v8850_v54 = vld [vmem:[#allocation2 + $0x2d4] ss:$12 sps:$4 sm:$0xff]   ;;  %v2013_v28 = vpop.permute.xlu1 %2012  ;;  %v5828_v31 = vpop.f32.mrf.mxu1  ;;  %v3358_v33 = vsel %vm505_vm0, %v16514_v37, %v2845_v62  ;;  %v16528_v62 = vld [vmem:[#allocation110_spill] sm:$0xff] }
 0x5a6   :  { %v8263_v12 = vpack.c.bf16 %v3615_v14, %v3615_v14  ;;  %v2271_v1 = vsel %vm2207_vm4, %v2206_v3, %v2013_v28  ;;  %5872 = vmatprep.mubr.bf16.mxu1 %v8850_v54  ;;  %v13359_v17 = vpop.f32.mrf.mxu0  ;;  %v13377_v14 = vadd.f32 %v5926_v61, %v16528_v62  ;;  %v16530_v3 = vld [vmem:[#allocation24_spill] sm:$0xff]  ;;  %v16531_v31 = vld [vmem:[#allocation26_spill] sm:$0xff] }
 0x5a7   :  { %4766 = vst [vmem:[#allocation2 + $0x2f0] sm:$0xf] %v8326_v27  ;;  %v2399_v10 = vmul.f32 %v2335_v41, %v2271_v1  ;;  %v13345_v45 = vpop.f32.mrf.mxu1  ;;  %5873 = vmatmul.mubr.bf16.gmra.mxu1 %v8848_v4  ;;  %v16529_v41 = vld [vmem:[#allocation21_spill] sm:$0xff]  ;;  %v13385_v4 = vadd.f32 %v13319_v15, %v16530_v3 }
 0x5a8   :  { %v1755_v53 = vpop.permute.xlu0 %1754  ;;  %3935 = vst [vmem:[#allocation2 + $0x2f8] sm:$0xf] %v8263_v12  ;;  %v5942_v63 = vpop.f32.mrf.mxu0  ;;  %v13381_v27 = vadd.f32 %v13327_v11, %v16529_v41  ;;  %v6315_v28 = vmul.f32 %v13377_v14, %v13377_v14  ;;  %v13393_v12 = vadd.f32 %v13341_v13, %v16531_v31  ;;  %v6181_v11 = vsel %vm505_vm0, %v13377_v14, 0.0  ;;  %v16532_v15 = vld [vmem:[#allocation17_spill] sm:$0xff] }
 0x5a9   :  { %v8199_v30 = vpack.c.bf16 %v2399_v10, %v2399_v10  ;;  %v5831_v32 = vpop.f32.mrf.mxu1  ;;  %v2205_v37 = vsel %vm2142_vm3, %v2140_v29, %v1755_v53  ;;  %v6316_v10 = vmul.f32 %v13385_v4, %v13385_v4  ;;  %v13402_v53 = vadd.f32 %v5939_v0, %v16532_v15  ;;  %v16535_v31 = vld [vmem:[#allocation13_spill] sm:$0xff] }
 0x5aa   :  { %v8851_v49 = vld [vmem:[#allocation2 + $0x2d8] ss:$12 sps:$4 sm:$0xff]   ;;  %v13361_v21 = vpop.f32.mrf.mxu0  ;;  %v6314_v1 = vmul.f32 %v13381_v27, %v13381_v27  ;;  %v6180_v61 = vsel %vm505_vm0, %v13381_v27, 0.0  ;;  %v6379_v13 = vsel %vm505_vm0, %v6315_v28, 0.0  ;;  %v6183_v32 = vsel %vm505_vm0, %v13385_v4, 0.0 }
 0x5ab   :  { %2719 = vst [vmem:[#allocation2 + $0x2f4] sm:$0xf] %v8199_v30  ;;  %8598 = vmatprep.mubr.bf16.mxu0 %v8851_v49  ;;  %v6317_v49 = vmul.f32 %v13393_v12, %v13393_v12  ;;  %v6318_v0 = vmul.f32 %v13402_v53, %v13402_v53 }
 0x5ac   :  { %v3037_v8 = vpop.permute.xlu0 %3036  ;;  %v5955_v23 = vpop.f32.mrf.mxu0 }
 0x5ad   :  { %v3422_v57 = vsel %vm2142_vm3, %v3358_v33, %v3037_v8  ;;  %v16533_v33 = vld [vmem:[#allocation52_spill] sm:$0xff]  ;;  %v6182_v8 = vadd.f32 %v6181_v11, %v6180_v61  ;;  %v6385_v35 = vsel %vm505_vm0, %v6318_v0, 0.0  ;;  %v16537_v61 = vld [vmem:[#allocation9_spill] sm:$0xff] }
 0x5ae   :  { %v3486_v9 = vsel %vm2207_vm4, %v3422_v57, %v16527_v5  ;;  %v8852_v55 = vld [vmem:[#allocation2 + $0x2f0] ss:$12 sps:$4 sm:$0xff]   ;;  %v13366_v59 = vpop.f32.mrf.mxu0  ;;  %v6378_v5 = vsel %vm505_vm0, %v6314_v1, 0.0  ;;  %v16536_v1 = vld [vmem:[#allocation54_spill] sm:$0xff] }
 0x5af   :  { %v3614_v43 = vmul.f32 %v3550_v24, %v3486_v9  ;;  %8599 = vmatmul.mubr.bf16.gmra.mxu0 %v8852_v55  ;;  %v13414_v24 = vadd.f32 %v5942_v63, %v16533_v33  ;;  %v6381_v9 = vsel %vm505_vm0, %v6316_v10, 0.0  ;;  %v6185_v55 = vsel %vm505_vm0, %v13393_v12, 0.0 }
 0x5b0   :  { %v2011_v50 = vpop.permute.xlu0 %2010  ;;  %v5958_v60 = vpop.f32.mrf.mxu0  ;;  %v6184_v29 = vadd.f32 %v6183_v32, %v6182_v8  ;;  %v13448_v11 = vadd.f32 %v5955_v23, %v16536_v1 }
 0x5b1   :  { %v8262_v34 = vpack.c.bf16 %v3614_v43, %v3614_v43  ;;  %v2270_v19 = vsel %vm2207_vm4, %v2205_v37, %v2011_v50  ;;  %v6380_v43 = vadd.f32 %v6379_v13, %v6378_v5  ;;  %v6187_v50 = vsel %vm505_vm0, %v13402_v53, 0.0 }
 0x5b2   :  { %v2398_v56 = vmul.f32 %v2334_v40, %v2270_v19  ;;  %v13370_v46 = vpop.f32.mrf.mxu0  ;;  %v6383_v40 = vsel %vm505_vm0, %v6317_v49, 0.0  ;;  %v6319_v37 = vmul.f32 %v13414_v24, %v13414_v24  ;;  %v6186_v19 = vadd.f32 %v6185_v55, %v6184_v29 }
 0x5b3   :  { %3934 = vst [vmem:[#allocation2 + $0x2ec] sm:$0xf] %v8262_v34  ;;  %v6382_v34 = vadd.f32 %v6381_v9, %v6380_v43  ;;  %v13453_v13 = vadd.f32 %v5958_v60, %v16537_v61  ;;  %v6195_v60 = vsel %vm505_vm0, %v13448_v11, 0.0 }
 0x5b4   :  { %v8198_v2 = vpack.c.bf16 %v2398_v56, %v2398_v56  ;;  %v13374_v42 = vpop.f32.mrf.mxu0 }
 0x5b5   :  { %v6323_v55 = vmul.f32 %v13453_v13, %v13453_v13 }
 0x5b6   :  { %2718 = vst [vmem:[#allocation2 + $0x2e8] sm:$0xf] %v8198_v2  ;;  %v13387_v54 = vpop.f32.mrf.mxu0  ;;  %v16534_v2 = vld [vmem:[#allocation25_spill] sm:$0xff] }
 0x5b7   :  { %v13433_v63 = vadd.f32 %v13347_v51, %v16534_v2  ;;  %v13445_v51 = vadd.f32 %v13359_v17, %v16535_v31  ;;  %v6322_v17 = vmul.f32 %v13448_v11, %v13448_v11  ;;  %v16542_v31 = vld [vmem:[#allocation60_spill] sm:$0xff] }
 0x5b8   :  { %v13406_v30 = vpop.f32.mrf.mxu0  ;;  %v13491_v1 = vadd.f32 %v13374_v42, %v16542_v31 }
 0x5b9   :  { %v6320_v28 = vmul.f32 %v13433_v63, %v13433_v63  ;;  %v6191_v15 = vsel %vm505_vm0, %v13433_v63, 0.0  ;;  %v6321_v8 = vmul.f32 %v13445_v51, %v13445_v51  ;;  %v6193_v9 = vsel %vm505_vm0, %v13445_v51, 0.0 }
 0x5ba   :  { %v8855_v39 = vld [vmem:[#allocation2 + $0x2ec] ss:$12 sps:$4 sm:$0xff]   ;;  %v13416_v57 = vpop.f32.mrf.mxu0  ;;  %16543 = vst [vmem:[#allocation149_spill] sm:$0xff] %v13491_v1  ;;  %v6326_v42 = vmul.f32 %v13491_v1, %v13491_v1 }
 0x5bb   :  { %5880 = vmatprep.mubr.bf16.mxu1 %v8855_v39  ;;  %v6384_v39 = vadd.f32 %v6383_v40, %v6382_v34  ;;  %v6389_v33 = vsel %vm505_vm0, %v6320_v28, 0.0  ;;  %v6391_v29 = vsel %vm505_vm0, %v6321_v8, 0.0  ;;  %v16538_v40 = vld [vmem:[#allocation16_spill] sm:$0xff]  ;;  %v6197_v34 = vsel %vm505_vm0, %v13453_v13, 0.0 }
 0x5bc   :  { %v13429_v56 = vpop.f32.mrf.mxu0 }
 0x5bd   :  { %v8853_v25 = vld [vmem:[#allocation2 + $0x2e8] ss:$12 sps:$4 sm:$0xff]   ;;  %v6386_v62 = vadd.f32 %v6385_v35, %v6384_v39  ;;  %v6395_v39 = vsel %vm505_vm0, %v6323_v55, 0.0 }
 0x5be   :  { %5881 = vmatmul.mubr.bf16.gmra.mxu1 %v8853_v25  ;;  %v6189_v25 = vsel %vm505_vm0, %v13414_v24, 0.0  ;;  %v13439_v3 = vpop.f32.mrf.mxu0 }
 0x5c0   :  { %v5990_v49 = vpop.f32.mrf.mxu0 }
 0x5c2   :  { %v13460_v23 = vpop.f32.mrf.mxu0 }
 0x5c3   :  { %v13368_v16 = vpop.f32.mrf.mxu1 }
 0x5c5   :  { %v5836_v44 = vpop.f32.mrf.mxu1 }
 0x5c6   :  { %v6188_v44 = vadd.f32 %v6187_v50, %v6186_v19  ;;  %v13473_v50 = vadd.f32 %v13361_v21, %v16538_v40 }
 0x5c7   :  { %v13372_v38 = vpop.f32.mrf.mxu1 }
 0x5c8   :  { %v6190_v41 = vadd.f32 %v6189_v25, %v6188_v44  ;;  %16539 = vst [vmem:[#allocation36_spill] sm:$0xff] %v13473_v50  ;;  %v13478_v25 = vpop.f32.mrf.mxu0  ;;  %v6324_v21 = vmul.f32 %v13473_v50, %v13473_v50 }
 0x5c9   :  { %v5839_v7 = vpop.f32.mrf.mxu1 }
 0x5ca   :  { %v6387_v7 = vsel %vm505_vm0, %v6319_v37, 0.0  ;;  %v6192_v32 = vadd.f32 %v6191_v15, %v6190_v41  ;;  %v6393_v37 = vsel %vm505_vm0, %v6322_v17, 0.0  ;;  %v16540_v41 = vld [vmem:[#allocation30_spill] sm:$0xff]  ;;  %v13493_v61 = vpop.f32.mrf.mxu0 }
 0x5cb   :  { %v6388_v10 = vadd.f32 %v6387_v7, %v6386_v62  ;;  %v13487_v28 = vadd.f32 %v13366_v59, %v16540_v41 }
 0x5cc   :  { %v6194_v43 = vadd.f32 %v6193_v9, %v6192_v32  ;;  %v6199_v32 = vsel %vm505_vm0, %v13473_v50, 0.0 }
 0x5cd   :  { %v6390_v5 = vadd.f32 %v6389_v33, %v6388_v10  ;;  %16541 = vst [vmem:[#allocation93_spill] sm:$0xff] %v13487_v28  ;;  %v16544_v33 = vld [vmem:[#allocation55_spill] sm:$0xff]  ;;  %v6325_v59 = vmul.f32 %v13487_v28, %v13487_v28  ;;  %v6201_v55 = vsel %vm505_vm0, %v13487_v28, 0.0 }
 0x5ce   :  { %v6196_v2 = vadd.f32 %v6195_v60, %v6194_v43  ;;  %v13499_v8 = vadd.f32 %v13406_v30, %v16544_v33  ;;  %v6006_v60 = vpop.f32.mrf.mxu0  ;;  %v6203_v43 = vsel %vm505_vm0, %v13491_v1, 0.0 }
 0x5cf   :  { %v6392_v35 = vadd.f32 %v6391_v29, %v6390_v5  ;;  %v6397_v5 = vsel %vm505_vm0, %v6324_v21, 0.0 }
 0x5d0   :  { %v6198_v62 = vadd.f32 %v6197_v34, %v6196_v2  ;;  %16545 = vst [vmem:[#allocation85_spill] sm:$0xff] %v13499_v8  ;;  %v6327_v30 = vmul.f32 %v13499_v8, %v13499_v8  ;;  %v13512_v40 = vpop.f32.mrf.mxu0  ;;  %v16546_v34 = vld [vmem:[#allocation143_spill] sm:$0xff]  ;;  %v6401_v2 = vsel %vm505_vm0, %v6326_v42, 0.0 }
 0x5d1   :  { %v6394_v7 = vadd.f32 %v6393_v37, %v6392_v35  ;;  %v6399_v37 = vsel %vm505_vm0, %v6325_v59, 0.0  ;;  %v6205_v35 = vsel %vm505_vm0, %v13499_v8, 0.0  ;;  %v16552_v59 = vld [vmem:[#allocation108_spill] sm:$0xff] }
 0x5d2   :  { %v6200_v17 = vadd.f32 %v6199_v32, %v6198_v62  ;;  %v6403_v62 = vsel %vm505_vm0, %v6327_v30, 0.0  ;;  %v13523_v31 = vpop.f32.mrf.mxu0  ;;  %v16550_v32 = vld [vmem:[#allocation59_spill] sm:$0xff]  ;;  %v13538_v42 = vadd.f32 %v5990_v49, %v16552_v59 }
 0x5d3   :  { %v6396_v15 = vadd.f32 %v6395_v39, %v6394_v7  ;;  %v13533_v33 = vadd.f32 %v13429_v56, %v16550_v32 }
 0x5d4   :  { %v6202_v29 = vadd.f32 %v6201_v55, %v6200_v17  ;;  %16553 = vst [vmem:[#allocation150_spill] sm:$0xff] %v13538_v42  ;;  %v13540_v55 = vpop.f32.mrf.mxu0  ;;  %v6331_v49 = vmul.f32 %v13538_v42, %v13538_v42 }
 0x5d5   :  { %v6398_v9 = vadd.f32 %v6397_v5, %v6396_v15  ;;  %v16548_v15 = vld [vmem:[#allocation51_spill] sm:$0xff]  ;;  %16551 = vst [vmem:[#allocation104_spill] sm:$0xff] %v13533_v33  ;;  %v6330_v30 = vmul.f32 %v13533_v33, %v13533_v33 }
 0x5d6   :  { %v6204_v39 = vadd.f32 %v6203_v43, %v6202_v29 }
 0x5d7   :  { %v6400_v7 = vadd.f32 %v6399_v37, %v6398_v9  ;;  %v6211_v37 = vsel %vm505_vm0, %v13533_v33, 0.0 }
 0x5d8   :  { %v6206_v41 = vadd.f32 %v6205_v35, %v6204_v39  ;;  %v6022_v35 = vpop.f32.mrf.mxu0 }
 0x5d9   :  { %v6402_v21 = vadd.f32 %v6401_v2, %v6400_v7  ;;  %v16554_v7 = vld [vmem:[#allocation120_spill] sm:$0xff] }
 0x5da   :  { %v13564_v32 = vpop.f32.mrf.mxu0 }
 0x5db   :  { %v6404_v17 = vadd.f32 %v6403_v62, %v6402_v21  ;;  %v13559_v62 = vadd.f32 %v13416_v57, %v16554_v7  ;;  %v6409_v21 = vsel %vm505_vm0, %v6330_v30, 0.0  ;;  %v16556_v57 = vld [vmem:[#allocation27_spill] sm:$0xff] }
 0x5dd   :  { %16555 = vst [vmem:[#allocation97_spill] sm:$0xff] %v13559_v62 }
 0x5e3   :  { %v13468_v0 = vpop.f32.mrf.mxu1 }
 0x5e5   :  { %v5844_v19 = vpop.f32.mrf.mxu1 }
 0x5e6   :  { %v13517_v19 = vadd.f32 %v13370_v46, %v16546_v34  ;;  %v13529_v46 = vadd.f32 %v13387_v54, %v16548_v15  ;;  %v8857_v34 = vld [vmem:[%s15622_s8] sm:$0xff]  }
 0x5e7   :  { %v13481_v44 = vpop.f32.mrf.mxu1  ;;  %8604 = vmatprep.subr.bf16.mxu0 %v8857_v34 }
 0x5e8   :  { %16547 = vst [vmem:[#allocation151_spill] sm:$0xff] %v13517_v19  ;;  %16549 = vst [vmem:[#allocation90_spill] sm:$0xff] %v13529_v46  ;;  %v6207_v5 = vsel %vm505_vm0, %v13517_v19, 0.0  ;;  %v6329_v54 = vmul.f32 %v13529_v46, %v13529_v46  ;;  %v6209_v29 = vsel %vm505_vm0, %v13529_v46, 0.0  ;;  %8605 = vmatpush3.bf16.msra.mxu0 %v8857_v34  ;;  %v16560_v34 = vld [vmem:[#allocation70_spill] sm:$0xff] }
 0x5e9   :  { %v5847_v10 = vpop.f32.mrf.mxu1  ;;  %v6208_v9 = vadd.f32 %v6207_v5, %v6206_v41  ;;  %v6213_v41 = vsel %vm505_vm0, %v13538_v42, 0.0 }
 0x5ea   :  { %v6328_v10 = vmul.f32 %v13517_v19, %v13517_v19  ;;  %v6407_v39 = vsel %vm505_vm0, %v6329_v54, 0.0  ;;  %v16558_v54 = vld [vmem:[#allocation69_spill] sm:$0xff] }
 0x5eb   :  { %v6210_v2 = vadd.f32 %v6209_v29, %v6208_v9  ;;  %v6332_v9 = vmul.f32 %v13559_v62, %v13559_v62  ;;  %v13575_v30 = vadd.f32 %v13478_v25, %v16558_v54 }
 0x5ec   :  { %v6405_v43 = vsel %vm505_vm0, %v6328_v10, 0.0 }
 0x5ed   :  { %v6406_v56 = vadd.f32 %v6405_v43, %v6404_v17  ;;  %v6212_v10 = vadd.f32 %v6211_v37, %v6210_v2  ;;  %v6411_v17 = vsel %vm505_vm0, %v6331_v49, 0.0  ;;  %v13571_v43 = vadd.f32 %v13439_v3, %v16556_v57  ;;  %16559 = vst [vmem:[#allocation37_spill] sm:$0xff] %v13575_v30  ;;  %v16562_v57 = vld [vmem:[#allocation76_spill] sm:$0xff] }
 0x5ee   :  { %v6215_v37 = vsel %vm505_vm0, %v13559_v62, 0.0  ;;  %v13580_v49 = vadd.f32 %v6006_v60, %v16560_v34  ;;  %v6413_v7 = vsel %vm505_vm0, %v6332_v9, 0.0  ;;  %v6334_v25 = vmul.f32 %v13575_v30, %v13575_v30 }
 0x5ef   :  { %v6408_v15 = vadd.f32 %v6407_v39, %v6406_v56  ;;  %v6214_v59 = vadd.f32 %v6213_v41, %v6212_v10  ;;  %16557 = vst [vmem:[#allocation152_spill] sm:$0xff] %v13571_v43  ;;  %v6035_v56 = vpop.f32.mrf.mxu0  ;;  %v6333_v3 = vmul.f32 %v13571_v43, %v13571_v43  ;;  %v6219_v60 = vsel %vm505_vm0, %v13575_v30, 0.0 }
 0x5f0   :  { %16561 = vst [vmem:[#allocation102_spill] sm:$0xff] %v13580_v49  ;;  %v13602_v54 = vadd.f32 %v13460_v23, %v16562_v57  ;;  %v16564_v23 = vld [vmem:[#allocation133_spill] sm:$0xff] }
 0x5f1   :  { %v6410_v5 = vadd.f32 %v6409_v21, %v6408_v15  ;;  %v6216_v39 = vadd.f32 %v6215_v37, %v6214_v59  ;;  %v13589_v10 = vpop.f32.mrf.mxu0  ;;  %v6217_v15 = vsel %vm505_vm0, %v13571_v43, 0.0  ;;  %v6415_v9 = vsel %vm505_vm0, %v6333_v3, 0.0 }
 0x5f2   :  { %16563 = vst [vmem:[#allocation38_spill] sm:$0xff] %v13602_v54  ;;  %v6221_v37 = vsel %vm505_vm0, %v13580_v49, 0.0  ;;  %v6336_v3 = vmul.f32 %v13602_v54, %v13602_v54 }
 0x5f3   :  { %v6412_v29 = vadd.f32 %v6411_v17, %v6410_v5  ;;  %v6335_v17 = vmul.f32 %v13580_v49, %v13580_v49  ;;  %v6218_v59 = vadd.f32 %v6217_v15, %v6216_v39  ;;  %v6038_v30 = vpop.f32.mrf.mxu0  ;;  %v13614_v15 = vadd.f32 %v13493_v61, %v16564_v23 }
 0x5f5   :  { %v6414_v41 = vadd.f32 %v6413_v7, %v6412_v29  ;;  %v6417_v29 = vsel %vm505_vm0, %v6334_v25, 0.0  ;;  %v6220_v7 = vadd.f32 %v6219_v60, %v6218_v59  ;;  %v6419_v43 = vsel %vm505_vm0, %v6335_v17, 0.0  ;;  %v13608_v39 = vpop.f32.mrf.mxu0  ;;  %16565 = vst [vmem:[#allocation86_spill] sm:$0xff] %v13614_v15  ;;  %v16566_v25 = vld [vmem:[#allocation67_spill] sm:$0xff]  ;;  %v16568_v17 = vld [vmem:[#allocation130_spill] sm:$0xff] }
 0x5f6   :  { %v13618_v57 = vadd.f32 %v13523_v31, %v16566_v25  ;;  %v13623_v59 = vadd.f32 %v6022_v35, %v16568_v17  ;;  %v6225_v31 = vsel %vm505_vm0, %v13614_v15, 0.0 }
 0x5f7   :  { %v6222_v42 = vadd.f32 %v6221_v37, %v6220_v7  ;;  %v6421_v37 = vsel %vm505_vm0, %v6336_v3, 0.0  ;;  %v16570_v3 = vld [vmem:[#allocation31_spill] sm:$0xff] }
 0x5f8   :  { %16567 = vst [vmem:[#allocation20_spill] sm:$0xff] %v13618_v57  ;;  %16569 = vst [vmem:[#allocation95_spill] sm:$0xff] %v13623_v59  ;;  %v6338_v61 = vmul.f32 %v13618_v57, %v13618_v57  ;;  %v6339_v35 = vmul.f32 %v13623_v59, %v13623_v59  ;;  %v13641_v23 = vadd.f32 %v13512_v40, %v16570_v3  ;;  %v16574_v40 = vld [vmem:[#allocation34_spill] sm:$0xff] }
 0x5f9   :  { %v13654_v3 = vadd.f32 %v6035_v56, %v16574_v40 }
 0x5fa   :  { %16571 = vst [vmem:[#allocation109_spill] sm:$0xff] %v13641_v23  ;;  %v6425_v25 = vsel %vm505_vm0, %v6338_v61, 0.0 }
 0x5fb   :  { %16575 = vst [vmem:[#allocation100_spill] sm:$0xff] %v13654_v3 }
 0x603   :  { %v13582_v2 = vpop.f32.mrf.mxu1 }
 0x605   :  { %v5852_v21 = vpop.f32.mrf.mxu1 }
 0x606   :  { %v6416_v21 = vadd.f32 %v6415_v9, %v6414_v41  ;;  %v6223_v41 = vsel %vm505_vm0, %v13602_v54, 0.0 }
 0x607   :  { %v13597_v5 = vpop.f32.mrf.mxu1  ;;  %v6224_v9 = vadd.f32 %v6223_v41, %v6222_v42 }
 0x608   :  { %v6418_v62 = vadd.f32 %v6417_v29, %v6416_v21  ;;  %v6051_v29 = vpop.f32.mrf.mxu0 }
 0x609   :  { %v5855_v34 = vpop.f32.mrf.mxu1  ;;  %v6226_v42 = vadd.f32 %v6225_v31, %v6224_v9  ;;  %v6340_v31 = vmul.f32 %v13641_v23, %v13641_v23 }
 0x60a   :  { %v6420_v60 = vadd.f32 %v6419_v43, %v6418_v62  ;;  %v6337_v34 = vmul.f32 %v13614_v15, %v13614_v15  ;;  %v6227_v62 = vsel %vm505_vm0, %v13618_v57, 0.0  ;;  %v13636_v43 = vpop.f32.mrf.mxu0 }
 0x60b   :  { %v6228_v41 = vadd.f32 %v6227_v62, %v6226_v42  ;;  %v16576_v62 = vld [vmem:[#allocation82_spill] sm:$0xff] }
 0x60c   :  { %v6422_v7 = vadd.f32 %v6421_v37, %v6420_v60  ;;  %v6423_v21 = vsel %vm505_vm0, %v6337_v34, 0.0  ;;  %v6229_v60 = vsel %vm505_vm0, %v13623_v59, 0.0  ;;  %v6427_v37 = vsel %vm505_vm0, %v6339_v35, 0.0  ;;  %v6054_v9 = vpop.f32.mrf.mxu0  ;;  %v16572_v34 = vld [vmem:[#allocation81_spill] sm:$0xff] }
 0x60d   :  { %v6230_v15 = vadd.f32 %v6229_v60, %v6228_v41  ;;  %v13651_v54 = vadd.f32 %v13540_v55, %v16572_v34  ;;  %v13661_v35 = vadd.f32 %v6038_v30, %v16576_v62  ;;  %v6342_v55 = vmul.f32 %v13654_v3, %v13654_v3 }
 0x60e   :  { %v6424_v17 = vadd.f32 %v6423_v21, %v6422_v7  ;;  %v13656_v49 = vpop.f32.mrf.mxu0  ;;  %v6231_v7 = vsel %vm505_vm0, %v13641_v23, 0.0  ;;  %v6429_v21 = vsel %vm505_vm0, %v6340_v31, 0.0  ;;  %v6235_v41 = vsel %vm505_vm0, %v13654_v3, 0.0 }
 0x60f   :  { %16573 = vst [vmem:[#allocation10_spill] sm:$0xff] %v13651_v54  ;;  %16577 = vst [vmem:[#allocation116_spill] sm:$0xff] %v13661_v35  ;;  %v6232_v42 = vadd.f32 %v6231_v7, %v6230_v15  ;;  %v6343_v30 = vmul.f32 %v13661_v35, %v13661_v35  ;;  %v6433_v34 = vsel %vm505_vm0, %v6342_v55, 0.0  ;;  %v6237_v40 = vsel %vm505_vm0, %v13661_v35, 0.0  ;;  %v16582_v55 = vld [vmem:[#allocation80_spill] sm:$0xff] }
 0x610   :  { %v6426_v57 = vadd.f32 %v6425_v25, %v6424_v17  ;;  %v6341_v25 = vmul.f32 %v13651_v54, %v13651_v54  ;;  %v6067_v60 = vpop.f32.mrf.mxu0 }
 0x612   :  { %v6428_v61 = vadd.f32 %v6427_v37, %v6426_v57  ;;  %v6233_v57 = vsel %vm505_vm0, %v13651_v54, 0.0  ;;  %v6431_v17 = vsel %vm505_vm0, %v6341_v25, 0.0  ;;  %v16578_v37 = vld [vmem:[#allocation73_spill] sm:$0xff]  ;;  %v13682_v62 = vpop.f32.mrf.mxu0  ;;  %v13694_v54 = vadd.f32 %v6051_v29, %v16582_v55 }
 0x613   :  { %v6234_v15 = vadd.f32 %v6233_v57, %v6232_v42  ;;  %v13677_v31 = vadd.f32 %v13564_v32, %v16578_v37  ;;  %v16580_v32 = vld [vmem:[#allocation88_spill] sm:$0xff] }
 0x614   :  { %v6430_v56 = vadd.f32 %v6429_v21, %v6428_v61  ;;  %v6435_v21 = vsel %vm505_vm0, %v6343_v30, 0.0  ;;  %v13691_v37 = vadd.f32 %v13589_v10, %v16580_v32  ;;  %16583 = vst [vmem:[#allocation122_spill] sm:$0xff] %v13694_v54 }
 0x615   :  { %16579 = vst [vmem:[#allocation48_spill] sm:$0xff] %v13677_v31  ;;  %v6236_v61 = vadd.f32 %v6235_v41, %v6234_v15  ;;  %v6344_v25 = vmul.f32 %v13677_v31, %v13677_v31  ;;  %v6070_v15 = vpop.f32.mrf.mxu0  ;;  %v6239_v30 = vsel %vm505_vm0, %v13677_v31, 0.0 }
 0x616   :  { %v6432_v7 = vadd.f32 %v6431_v17, %v6430_v56  ;;  %16581 = vst [vmem:[#allocation107_spill] sm:$0xff] %v13691_v37  ;;  %v16584_v17 = vld [vmem:[#allocation94_spill] sm:$0xff]  ;;  %v6345_v29 = vmul.f32 %v13691_v37, %v13691_v37  ;;  %v6241_v32 = vsel %vm505_vm0, %v13691_v37, 0.0 }
 0x617   :  { %v6238_v57 = vadd.f32 %v6237_v40, %v6236_v61  ;;  %v13699_v35 = vadd.f32 %v6054_v9, %v16584_v17  ;;  %v13703_v61 = vpop.f32.mrf.mxu0  ;;  %v6437_v10 = vsel %vm505_vm0, %v6344_v25, 0.0  ;;  %v6243_v9 = vsel %vm505_vm0, %v13694_v54, 0.0 }
 0x618   :  { %v6434_v42 = vadd.f32 %v6433_v34, %v6432_v7  ;;  %v6346_v7 = vmul.f32 %v13694_v54, %v13694_v54  ;;  %v6439_v25 = vsel %vm505_vm0, %v6345_v29, 0.0  ;;  %v16587_v29 = vld [vmem:[#allocation87_spill] sm:$0xff] }
 0x619   :  { %16585 = vst [vmem:[#allocation96_spill] sm:$0xff] %v13699_v35  ;;  %v6240_v40 = vadd.f32 %v6239_v30, %v6238_v57  ;;  %v6347_v57 = vmul.f32 %v13699_v35, %v13699_v35  ;;  %v16586_v30 = vld [vmem:[#allocation144_spill] sm:$0xff] }
 0x61a   :  { %v6436_v56 = vadd.f32 %v6435_v21, %v6434_v42  ;;  %v13719_v17 = vadd.f32 %v13608_v39, %v16586_v30  ;;  %v13732_v39 = vadd.f32 %v6067_v60, %v12892_v6 }
 0x61b   :  { %v6242_v55 = vadd.f32 %v6241_v32, %v6240_v40  ;;  %v6443_v54 = vsel %vm505_vm0, %v6347_v57, 0.0  ;;  %v13729_v32 = vadd.f32 %v13636_v43, %v16587_v29 }
 0x61c   :  { %v6438_v42 = vadd.f32 %v6437_v10, %v6436_v56  ;;  %v6245_v56 = vsel %vm505_vm0, %v13699_v35, 0.0  ;;  %v6348_v40 = vmul.f32 %v13719_v17, %v13719_v17  ;;  %v6350_v43 = vmul.f32 %v13732_v39, %v13732_v39 }
 0x61d   :  { %v6244_v10 = vadd.f32 %v6243_v9, %v6242_v55  ;;  %v6247_v9 = vsel %vm505_vm0, %v13719_v17, 0.0 }
 0x61e   :  { %v6440_v37 = vadd.f32 %v6439_v25, %v6438_v42  ;;  %v13737_v42 = vadd.f32 %v6070_v15, %v12908_v52  ;;  %v6445_v55 = vsel %vm505_vm0, %v6348_v40, 0.0  ;;  %v6349_v25 = vmul.f32 %v13729_v32, %v13729_v32  ;;  %v16588_v15 = vld [vmem:[#allocation148_spill] sm:$0xff] }
 0x61f   :  { %v6246_v23 = vadd.f32 %v6245_v56, %v6244_v10  ;;  %v6251_v52 = vsel %vm505_vm0, %v13732_v39, 0.0  ;;  %v6449_v56 = vsel %vm505_vm0, %v6350_v43, 0.0 }
 0x620   :  { %v6253_v10 = vsel %vm505_vm0, %v13737_v42, 0.0 }
 0x623   :  { %v13685_v3 = vpop.f32.mrf.mxu1 }
 0x625   :  { %v5860_v41 = vpop.f32.mrf.mxu1 }
 0x626   :  { %v6083_v41 = vpop.f32.mrf.mxu0 }
 0x627   :  { %v13701_v34 = vpop.f32.mrf.mxu1 }
 0x628   :  { %v8581_v59 = vpop.f32.mrf.mxu0 }
 0x629   :  { %v5863_v21 = vpop.f32.mrf.mxu1 }
 0x62a   :  { %v6441_v21 = vsel %vm505_vm0, %v6346_v7, 0.0  ;;  %v6086_v57 = vpop.f32.mrf.mxu0 }
 0x62b   :  { %v6442_v31 = vadd.f32 %v6441_v21, %v6440_v37  ;;  %v6248_v37 = vadd.f32 %v6247_v9, %v6246_v23  ;;  %v6351_v23 = vmul.f32 %v13737_v42, %v13737_v42  ;;  %v13755_v21 = vadd.f32 %v13656_v49, %v16588_v15  ;;  %v16590_v49 = vld [vmem:[#allocation91_spill] sm:$0xff] }
 0x62c   :  { %v13744_v6 = vpop.f32.mrf.mxu0  ;;  %v13768_v15 = vadd.f32 %v6083_v41, %v16590_v49 }
 0x62d   :  { %v6444_v7 = vadd.f32 %v6443_v54, %v6442_v31  ;;  %v6249_v54 = vsel %vm505_vm0, %v13729_v32, 0.0  ;;  %v6447_v31 = vsel %vm505_vm0, %v6349_v25, 0.0  ;;  %v6451_v9 = vsel %vm505_vm0, %v6351_v23, 0.0  ;;  %v16589_v25 = vld [vmem:[#allocation35_spill] sm:$0xff] }
 0x62e   :  { %v6250_v60 = vadd.f32 %v6249_v54, %v6248_v37  ;;  %v6352_v37 = vmul.f32 %v13755_v21, %v13755_v21  ;;  %v13765_v54 = vadd.f32 %v13682_v62, %v16589_v25  ;;  %v6354_v62 = vmul.f32 %v13768_v15, %v13768_v15 }
 0x62f   :  { %v6446_v30 = vadd.f32 %v6445_v55, %v6444_v7  ;;  %v6099_v7 = vpop.f32.mrf.mxu0 }
 0x630   :  { %v6252_v40 = vadd.f32 %v6251_v52, %v6250_v60  ;;  %v13773_v52 = vadd.f32 %v6086_v57, %v13106_v18  ;;  %v6453_v60 = vsel %vm505_vm0, %v6352_v37, 0.0  ;;  %v6457_v37 = vsel %vm505_vm0, %v6354_v62, 0.0 }
 0x631   :  { %v6448_v29 = vadd.f32 %v6447_v31, %v6446_v30  ;;  %v8585_v33 = vpop.f32.mrf.mxu0  ;;  %v6255_v30 = vsel %vm505_vm0, %v13755_v21, 0.0  ;;  %v6353_v31 = vmul.f32 %v13765_v54, %v13765_v54 }
 0x632   :  { %v6254_v35 = vadd.f32 %v6253_v10, %v6252_v40  ;;  %v6257_v10 = vsel %vm505_vm0, %v13765_v54, 0.0  ;;  %v6259_v40 = vsel %vm505_vm0, %v13768_v15, 0.0  ;;  %v6355_v18 = vmul.f32 %v13773_v52, %v13773_v52 }
 0x633   :  { %v6450_v55 = vadd.f32 %v6449_v56, %v6448_v29  ;;  %v6102_v41 = vpop.f32.mrf.mxu0  ;;  %v6261_v25 = vsel %vm505_vm0, %v13773_v52, 0.0 }
 0x634   :  { %v6256_v23 = vadd.f32 %v6255_v30, %v6254_v35 }
 0x635   :  { %v6452_v43 = vadd.f32 %v6451_v9, %v6450_v55  ;;  %v8588_v29 = vpop.f32.mrf.mxu0  ;;  %v6455_v9 = vsel %vm505_vm0, %v6353_v31, 0.0  ;;  %v13791_v55 = vadd.f32 %v13703_v61, %v13174_v47  ;;  %v13802_v47 = vadd.f32 %v8581_v59, %v13180_v26 }
 0x636   :  { %v6258_v57 = vadd.f32 %v6257_v10, %v6256_v23  ;;  %v13805_v61 = vadd.f32 %v6099_v7, %v13230_v58 }
 0x637   :  { %v6454_v56 = vadd.f32 %v6453_v60, %v6452_v43  ;;  %v6459_v60 = vsel %vm505_vm0, %v6355_v18, 0.0  ;;  %v6115_v19 = vpop.f32.mrf.mxu0  ;;  %v6356_v31 = vmul.f32 %v13791_v55, %v13791_v55  ;;  %v6265_v59 = vsel %vm505_vm0, %v13802_v47, 0.0 }
 0x638   :  { %v6260_v43 = vadd.f32 %v6259_v40, %v6258_v57  ;;  %v13810_v40 = vadd.f32 %v6102_v41, %v13236_v20  ;;  %v6358_v26 = vmul.f32 %v13805_v61, %v13805_v61  ;;  %v6267_v7 = vsel %vm505_vm0, %v13805_v61, 0.0 }
 0x639   :  { %v6456_v30 = vadd.f32 %v6455_v9, %v6454_v56  ;;  %v6263_v56 = vsel %vm505_vm0, %v13791_v55, 0.0  ;;  %v8589_v57 = vpop.f32.mrf.mxu0  ;;  %v6461_v9 = vsel %vm505_vm0, %v6356_v31, 0.0 }
 0x63a   :  { %v6262_v10 = vadd.f32 %v6261_v25, %v6260_v43  ;;  %v6359_v20 = vmul.f32 %v13810_v40, %v13810_v40 }
 0x63b   :  { %v6458_v23 = vadd.f32 %v6457_v37, %v6456_v30  ;;  %v6357_v37 = vmul.f32 %v13802_v47, %v13802_v47  ;;  %v6118_v25 = vpop.f32.mrf.mxu0  ;;  %v13826_v30 = vadd.f32 %v13744_v6, %v13280_v22  ;;  %v13838_v22 = vadd.f32 %v6115_v19, %v13339_v48 }
 0x63c   :  { %v6264_v18 = vadd.f32 %v6263_v56, %v6262_v10 }
 0x63d   :  { %v6463_v43 = vsel %vm505_vm0, %v6357_v37, 0.0  ;;  %v13835_v37 = vadd.f32 %v8585_v33, %v13287_v36  ;;  %v6362_v36 = vmul.f32 %v13838_v22, %v13838_v22 }
 0x63e   :  { %v6266_v41 = vadd.f32 %v6265_v59, %v6264_v18  ;;  %v6360_v18 = vmul.f32 %v13826_v30, %v13826_v30  ;;  %v6271_v59 = vsel %vm505_vm0, %v13826_v30, 0.0 }
 0x63f   :  { %v6273_v19 = vsel %vm505_vm0, %v13835_v37, 0.0 }
 0x640   :  { %v6268_v10 = vadd.f32 %v6267_v7, %v6266_v41  ;;  %v6361_v41 = vmul.f32 %v13835_v37, %v13835_v37 }
 0x643   :  { %v13786_v35 = vpop.f32.mrf.mxu1 }
 0x645   :  { %v5868_v49 = vpop.f32.mrf.mxu1 }
 0x646   :  { %v6460_v49 = vadd.f32 %v6459_v60, %v6458_v23  ;;  %v6465_v60 = vsel %vm505_vm0, %v6358_v26, 0.0  ;;  %v6269_v23 = vsel %vm505_vm0, %v13810_v40, 0.0 }
 0x647   :  { %v13797_v46 = vpop.f32.mrf.mxu1 }
 0x648   :  { %v6462_v58 = vadd.f32 %v6461_v9, %v6460_v49  ;;  %v6467_v49 = vsel %vm505_vm0, %v6359_v20, 0.0  ;;  %v6270_v9 = vadd.f32 %v6269_v23, %v6268_v10  ;;  %v6469_v20 = vsel %vm505_vm0, %v6360_v18, 0.0 }
 0x649   :  { %v5871_v62 = vpop.f32.mrf.mxu1  ;;  %v13858_v23 = vadd.f32 %v8588_v29, %v13368_v16  ;;  %v6473_v10 = vsel %vm505_vm0, %v6362_v36, 0.0 }
 0x64a   :  { %v6464_v31 = vadd.f32 %v6463_v43, %v6462_v58  ;;  %v8592_v62 = vpop.f32.mrf.mxu0  ;;  %v13843_v58 = vadd.f32 %v6118_v25, %v13345_v45  ;;  %v6272_v7 = vadd.f32 %v6271_v59, %v6270_v9  ;;  %v6275_v43 = vsel %vm505_vm0, %v13838_v22, 0.0 }
 0x64b   :  { %v6279_v36 = vsel %vm505_vm0, %v13858_v23, 0.0 }
 0x64c   :  { %v6466_v56 = vadd.f32 %v6465_v60, %v6464_v31  ;;  %v6131_v26 = vpop.f32.mrf.mxu0  ;;  %v6363_v45 = vmul.f32 %v13843_v58, %v13843_v58  ;;  %v6274_v25 = vadd.f32 %v6273_v19, %v6272_v7  ;;  %v6471_v60 = vsel %vm505_vm0, %v6361_v41, 0.0 }
 0x64d   :  { %v6277_v31 = vsel %vm505_vm0, %v13843_v58, 0.0  ;;  %v6364_v7 = vmul.f32 %v13858_v23, %v13858_v23  ;;  %v13867_v41 = vadd.f32 %v8589_v57, %v13372_v38  ;;  %v13870_v16 = vadd.f32 %v6131_v26, %v13468_v0 }
 0x64e   :  { %v6468_v6 = vadd.f32 %v6467_v49, %v6466_v56  ;;  %v8593_v48 = vpop.f32.mrf.mxu0  ;;  %v6276_v49 = vadd.f32 %v6275_v43, %v6274_v25  ;;  %v6475_v18 = vsel %vm505_vm0, %v6363_v45, 0.0 }
 0x64f   :  { %v6477_v45 = vsel %vm505_vm0, %v6364_v7, 0.0  ;;  %v6365_v25 = vmul.f32 %v13867_v41, %v13867_v41  ;;  %v6366_v38 = vmul.f32 %v13870_v16, %v13870_v16  ;;  %v6281_v0 = vsel %vm505_vm0, %v13867_v41, 0.0 }
 0x650   :  { %v6470_v33 = vadd.f32 %v6469_v20, %v6468_v6  ;;  %v6134_v9 = vpop.f32.mrf.mxu0  ;;  %v6278_v59 = vadd.f32 %v6277_v31, %v6276_v49  ;;  %v6283_v26 = vsel %vm505_vm0, %v13870_v16, 0.0 }
 0x651   :  { %v6479_v49 = vsel %vm505_vm0, %v6365_v25, 0.0 }
 0x652   :  { %v6472_v56 = vadd.f32 %v6471_v60, %v6470_v33  ;;  %v8596_v20 = vpop.f32.mrf.mxu0  ;;  %v13875_v33 = vadd.f32 %v6134_v9, %v13481_v44  ;;  %v6280_v19 = vadd.f32 %v6279_v36, %v6278_v59  ;;  %v6481_v9 = vsel %vm505_vm0, %v6366_v38, 0.0 }
 0x654   :  { %v6474_v6 = vadd.f32 %v6473_v10, %v6472_v56  ;;  %v6147_v43 = vpop.f32.mrf.mxu0  ;;  %v6367_v44 = vmul.f32 %v13875_v33, %v13875_v33  ;;  %v6282_v10 = vadd.f32 %v6281_v0, %v6280_v19  ;;  %v13890_v56 = vadd.f32 %v8592_v62, %v13582_v2 }
 0x655   :  { %v13899_v2 = vadd.f32 %v8593_v48, %v13597_v5  ;;  %v13902_v62 = vadd.f32 %v6147_v43, %v13685_v3 }
 0x656   :  { %v6476_v29 = vadd.f32 %v6475_v18, %v6474_v6  ;;  %v8597_v31 = vpop.f32.mrf.mxu0  ;;  %v6285_v18 = vsel %vm505_vm0, %v13875_v33, 0.0  ;;  %v6284_v59 = vadd.f32 %v6283_v26, %v6282_v10  ;;  %v6368_v25 = vmul.f32 %v13890_v56, %v13890_v56 }
 0x657   :  { %v6370_v5 = vmul.f32 %v13902_v62, %v13902_v62  ;;  %v6289_v43 = vsel %vm505_vm0, %v13899_v2, 0.0 }
 0x658   :  { %v6478_v57 = vadd.f32 %v6477_v45, %v6476_v29  ;;  %v6483_v29 = vsel %vm505_vm0, %v6367_v44, 0.0  ;;  %v6286_v8 = vadd.f32 %v6285_v18, %v6284_v59  ;;  %v6150_v19 = vpop.f32.mrf.mxu0  ;;  %v6291_v18 = vsel %vm505_vm0, %v13902_v62, 0.0 }
 0x659   :  { %v13907_v26 = vadd.f32 %v6150_v19, %v13701_v34 }
 0x65a   :  { %v6480_v7 = vadd.f32 %v6479_v49, %v6478_v57  ;;  %v6287_v57 = vsel %vm505_vm0, %v13890_v56, 0.0  ;;  %v6485_v49 = vsel %vm505_vm0, %v6368_v25, 0.0 }
 0x65b   :  { %v6288_v10 = vadd.f32 %v6287_v57, %v6286_v8  ;;  %v6371_v34 = vmul.f32 %v13907_v26, %v13907_v26 }
 0x65c   :  { %v6482_v45 = vadd.f32 %v6481_v9, %v6480_v7  ;;  %v6369_v9 = vmul.f32 %v13899_v2, %v13899_v2  ;;  %v13922_v7 = vadd.f32 %v8596_v20, %v13786_v35 }
 0x65d   :  { %v6290_v8 = vadd.f32 %v6289_v43, %v6288_v10 }
 0x65e   :  { %v6484_v0 = vadd.f32 %v6483_v29, %v6482_v45  ;;  %v6487_v59 = vsel %vm505_vm0, %v6369_v9, 0.0  ;;  %v6489_v29 = vsel %vm505_vm0, %v6370_v5, 0.0  ;;  %v6293_v45 = vsel %vm505_vm0, %v13907_v26, 0.0 }
 0x65f   :  { %v6292_v19 = vadd.f32 %v6291_v18, %v6290_v8  ;;  %v6372_v10 = vmul.f32 %v13922_v7, %v13922_v7  ;;  %v13931_v9 = vadd.f32 %v8597_v31, %v13797_v46  ;;  %v6295_v5 = vsel %vm505_vm0, %v13922_v7, 0.0 }
 0x660   :  { %v6486_v48 = vadd.f32 %v6485_v49, %v6484_v0 }
 0x661   :  { %v6294_v57 = vadd.f32 %v6293_v45, %v6292_v19  ;;  %v6493_v18 = vsel %vm505_vm0, %v6372_v10, 0.0  ;;  %v6297_v46 = vsel %vm505_vm0, %v13931_v9, 0.0 }
 0x662   :  { %v6488_v25 = vadd.f32 %v6487_v59, %v6486_v48 }
 0x663   :  { %v6296_v48 = vadd.f32 %v6295_v5, %v6294_v57 }
 0x664   :  { %v6490_v0 = vadd.f32 %v6489_v29, %v6488_v25 }
 0x667   :  { %v5874_v60 = vpop.f32.mrf.mxu1 }
 0x669   :  { %v5876_v6 = vpop.f32.mrf.mxu1 }
 0x66b   :  { %v5877_v36 = vpop.f32.mrf.mxu1 }
 0x66d   :  { %v5879_v38 = vpop.f32.mrf.mxu1 }
 0x66e   :  { %v6491_v38 = vsel %vm505_vm0, %v6371_v34, 0.0  ;;  %v6373_v34 = vmul.f32 %v13931_v9, %v13931_v9 }
 0x66f   :  { %v8600_v44 = vpop.f32.mrf.mxu0  ;;  %v6492_v20 = vadd.f32 %v6491_v38, %v6490_v0 }
 0x670   :  { %v6495_v29 = vsel %vm505_vm0, %v6373_v34, 0.0 }
 0x671   :  { %v6163_v3 = vpop.f32.mrf.mxu0  ;;  %v6494_v59 = vadd.f32 %v6493_v18, %v6492_v20 }
 0x672   :  { %v13933_v35 = vadd.f32 %v6163_v3, %v5874_v60 }
 0x673   :  { %v8601_v6 = vpop.f32.mrf.mxu0  ;;  %v6496_v0 = vadd.f32 %v6495_v29, %v6494_v59 }
 0x674   :  { %v6374_v8 = vmul.f32 %v13933_v35, %v13933_v35  ;;  %v6299_v60 = vsel %vm505_vm0, %v13933_v35, 0.0 }
 0x675   :  { %v6166_v49 = vpop.f32.mrf.mxu0 }
 0x676   :  { %v13937_v43 = vadd.f32 %v6166_v49, %v5877_v36  ;;  %v6298_v36 = vadd.f32 %v6297_v46, %v6296_v48  ;;  %v6497_v45 = vsel %vm505_vm0, %v6374_v8, 0.0 }
 0x677   :  { %v6498_v5 = vadd.f32 %v6497_v45, %v6496_v0 }
 0x678   :  { %v6375_v31 = vmul.f32 %v13937_v43, %v13937_v43  ;;  %v6301_v19 = vsel %vm505_vm0, %v13937_v43, 0.0  ;;  %v6300_v38 = vadd.f32 %v6299_v60, %v6298_v36 }
 0x67a   :  { %v6499_v49 = vsel %vm505_vm0, %v6375_v31, 0.0  ;;  %v6302_v18 = vadd.f32 %v6301_v19, %v6300_v38 }
 0x67b   :  { %v6500_v1 = vadd.f32 %v6499_v49, %v6498_v5 }
 0x67e   :  { %v5882_v3 = vpop.f32.mrf.mxu1 }
 0x67f   :  { %v6172_v25 = vadd.f32 %v8600_v44, %v5882_v3 }
 0x680   :  { %v5884_v57 = vpop.f32.mrf.mxu1 }
 0x681   :  { %v6303_v10 = vsel %vm505_vm0, %v6172_v25, 0.0  ;;  %v6376_v20 = vmul.f32 %v6172_v25, %v6172_v25 }
 0x682   :  { %v5885_v48 = vpop.f32.mrf.mxu1  ;;  %v6304_v8 = vadd.f32 %v6303_v10, %v6302_v18 }
 0x683   :  { %v6501_v46 = vsel %vm505_vm0, %v6376_v20, 0.0  ;;  %v6175_v34 = vadd.f32 %v8601_v6, %v5885_v48 }
 0x684   :  { %v5887_v28 = vpop.f32.mrf.mxu1  ;;  %v6502_v60 = vadd.f32 %v6501_v46, %v6500_v1  ;;  %v6178_v46 = vld [vmem:[%s15620_s6] sm:$0x1] }
 0x685   :  { %v6305_v50 = vsel %vm505_vm0, %v6175_v34, 0.0  ;;  %v6377_v44 = vmul.f32 %v6175_v34, %v6175_v34 }
 0x686   :  { %v6306_v59 = vadd.f32 %v6305_v50, %v6304_v8 }
 0x687   :  { %v6503_v36 = vsel %vm505_vm0, %v6377_v44, 0.0 }
 0x688   :  { %v6307_v31 = vrot.slane %v6306_v59, 4  ;;  %v6504_v3 = vadd.f32 %v6503_v36, %v6502_v60  ;;  %v6179_v60 = vld [vmem:[%s15621_s7] sm:$0x1] }
 0x689   :  { %v16591_v36 = vld [vmem:[#allocation33_spill] sm:$0xff] }
 0x68a   :  { %v6308_v29 = vadd.f32 %v6307_v31, %v6306_v59  ;;  %v6505_v57 = vrot.slane %v6504_v3, 4 }
 0x68c   :  { %v6309_v45 = vrot.slane %v6308_v29, 2  ;;  %v6506_v19 = vadd.f32 %v6505_v57, %v6504_v3 }
 0x68e   :  { %v6310_v38 = vadd.f32 %v6309_v45, %v6308_v29  ;;  %v6507_v0 = vrot.slane %v6506_v19, 2 }
 0x690   :  { %v6311_v20 = vrot.slane %v6310_v38, 1  ;;  %v6508_v6 = vadd.f32 %v6507_v0, %v6506_v19 }
 0x692   :  { %v6312_v49 = vadd.f32 %v6311_v20, %v6310_v38  ;;  %v6509_v10 = vrot.slane %v6508_v6, 1 }
 0x694   :  { %v6313_v28 = vmul.f32 0.001953125, %v6312_v49  ;;  %v6510_v5 = vadd.f32 %v6509_v10, %v6508_v6 }
 0x696   :  { %v6511_v18 = vmul.f32 0.001953125, %v6510_v5  ;;  %v6512_v48 = vmul.f32 %v6313_v28, %v6313_v28 }
 0x698   :  { %v6513_v1 = vsub.f32 %v6511_v18, %v6512_v48 }
 0x69a   :  { %v6514_v50 = vadd.f32 1e-05, %v6513_v1 }
 0x69c   :  { %8860 = vrsqrt.f32 %v6514_v50 }
 0x6a9   :  { %v8861_v8 = vpop.eup %8860 }
 0x6aa   :  { %v6516_v44 = vmul.f32 %v8861_v8, %v6178_v46 }
 0x6ac   :  { %v6517_v59 = vmul.f32 %v6516_v44, %v6313_v28  ;;  %v13966_v31 = vrot.slane %v6516_v44, %v16591_v36 }
 0x6ae   :  { %v6518_v3 = vsub.f32 %v6179_v60, %v6517_v59  ;;  %v6587_v29 = vmul.f32 %v13966_v31, %v6172_v25  ;;  %v6588_v57 = vmul.f32 %v13966_v31, %v6175_v34  ;;  %v6559_v49 = vmul.f32 %v13966_v31, %v13719_v17 }
 0x6af   :  { %v6560_v10 = vmul.f32 %v13966_v31, %v13729_v32  ;;  %v6561_v25 = vmul.f32 %v13966_v31, %v13732_v39  ;;  %v6562_v34 = vmul.f32 %v13966_v31, %v13737_v42  ;;  %v6563_v28 = vmul.f32 %v13966_v31, %v13755_v21 }
 0x6b0   :  { %v13971_v45 = vrot.slane %v6518_v3, %v16591_v36  ;;  %v6564_v5 = vmul.f32 %v13966_v31, %v13765_v54  ;;  %v6565_v18 = vmul.f32 %v13966_v31, %v13768_v15  ;;  %v6566_v17 = vmul.f32 %v13966_v31, %v13773_v52 }
 0x6b1   :  { %v6567_v32 = vmul.f32 %v13966_v31, %v13791_v55  ;;  %v6568_v39 = vmul.f32 %v13966_v31, %v13802_v47  ;;  %v6569_v42 = vmul.f32 %v13966_v31, %v13805_v61  ;;  %v6570_v21 = vmul.f32 %v13966_v31, %v13810_v40 }
 0x6b2   :  { %v6657_v19 = vadd.f32 %v13971_v45, %v6587_v29  ;;  %v6658_v38 = vadd.f32 %v13971_v45, %v6588_v57  ;;  %v6571_v54 = vmul.f32 %v13966_v31, %v13826_v30  ;;  %v6572_v15 = vmul.f32 %v13966_v31, %v13835_v37 }
 0x6b3   :  { %v6573_v52 = vmul.f32 %v13966_v31, %v13838_v22  ;;  %v6574_v55 = vmul.f32 %v13966_v31, %v13843_v58  ;;  %v6575_v47 = vmul.f32 %v13966_v31, %v13858_v23  ;;  %v6576_v61 = vmul.f32 %v13966_v31, %v13867_v41 }
 0x6b4   :  { %v6721_v0 = vmax.f32 %v6657_v19, 0.0  ;;  %v6722_v20 = vmax.f32 %v6658_v38, 0.0  ;;  %v6577_v40 = vmul.f32 %v13966_v31, %v13870_v16  ;;  %v6578_v30 = vmul.f32 %v13966_v31, %v13875_v33 }
 0x6b5   :  { %v6579_v37 = vmul.f32 %v13966_v31, %v13890_v56  ;;  %v6580_v22 = vmul.f32 %v13966_v31, %v13899_v2  ;;  %v6581_v58 = vmul.f32 %v13966_v31, %v13902_v62  ;;  %v6582_v23 = vmul.f32 %v13966_v31, %v13907_v26 }
 0x6b6   :  { %v13975_v6 = vpack.c.bf16 %v6722_v20, %v6721_v0  ;;  %v6583_v41 = vmul.f32 %v13966_v31, %v13922_v7  ;;  %v6584_v16 = vmul.f32 %v13966_v31, %v13931_v9  ;;  %v6585_v33 = vmul.f32 %v13966_v31, %v13933_v35 }
 0x6b7   :  { %v6586_v56 = vmul.f32 %v13966_v31, %v13937_v43  ;;  %v14034_v2 = vadd.f32 %v13971_v45, %v6559_v49  ;;  %v14037_v62 = vadd.f32 %v13971_v45, %v6560_v10  ;;  %v14040_v26 = vadd.f32 %v13971_v45, %v6561_v25 }
 0x6b8   :  { %v14043_v7 = vadd.f32 %v13971_v45, %v6562_v34  ;;  %v14046_v9 = vadd.f32 %v13971_v45, %v6563_v28  ;;  %v14049_v35 = vadd.f32 %v13971_v45, %v6564_v5  ;;  %v14052_v43 = vadd.f32 %v13971_v45, %v6565_v18 }
 0x6b9   :  { %v14055_v48 = vadd.f32 %v13971_v45, %v6566_v17  ;;  %v14058_v1 = vadd.f32 %v13971_v45, %v6567_v32  ;;  %v14061_v50 = vadd.f32 %v13971_v45, %v6568_v39  ;;  %v14064_v46 = vadd.f32 %v13971_v45, %v6569_v42 }
 0x6ba   :  { %v14067_v8 = vadd.f32 %v13971_v45, %v6570_v21  ;;  %v14070_v44 = vadd.f32 %v13971_v45, %v6571_v54  ;;  %v14073_v60 = vadd.f32 %v13971_v45, %v6572_v15  ;;  %v14076_v59 = vadd.f32 %v13971_v45, %v6573_v52 }
 0x6bb   :  { %v14079_v3 = vadd.f32 %v13971_v45, %v6574_v55  ;;  %v14082_v29 = vadd.f32 %v13971_v45, %v6575_v47  ;;  %v14085_v57 = vadd.f32 %v13971_v45, %v6576_v61  ;;  %v14088_v19 = vadd.f32 %v13971_v45, %v6577_v40 }
 0x6bc   :  { %v14091_v38 = vadd.f32 %v13971_v45, %v6578_v30  ;;  %v14094_v0 = vadd.f32 %v13971_v45, %v6579_v37  ;;  %v14097_v20 = vadd.f32 %v13971_v45, %v6580_v22  ;;  %v14100_v49 = vadd.f32 %v13971_v45, %v6581_v58 }
 0x6bd   :  { %v14103_v10 = vadd.f32 %v13971_v45, %v6582_v23  ;;  %v14106_v25 = vadd.f32 %v13971_v45, %v6583_v41  ;;  %v14109_v34 = vadd.f32 %v13971_v45, %v6584_v16  ;;  %v14112_v28 = vadd.f32 %v13971_v45, %v6585_v33 }
 0x6be   :  { %v14115_v5 = vadd.f32 %v13971_v45, %v6586_v56  ;;  %v6525_v18 = vmul.f32 %v13966_v31, %v13381_v27  ;;  %v6526_v17 = vmul.f32 %v13966_v31, %v13377_v14  ;;  %v6527_v32 = vmul.f32 %v13966_v31, %v13385_v4 }
 0x6bf   :  { %v6528_v39 = vmul.f32 %v13966_v31, %v13393_v12  ;;  %v6529_v42 = vmul.f32 %v13966_v31, %v13402_v53  ;;  %v6530_v21 = vmul.f32 %v13966_v31, %v13414_v24  ;;  %v6531_v54 = vmul.f32 %v13966_v31, %v13433_v63 }
 0x6c0   :  { %v6532_v27 = vmul.f32 %v13966_v31, %v13445_v51  ;;  %v6595_v14 = vadd.f32 %v13971_v45, %v6525_v18  ;;  %v6596_v15 = vadd.f32 %v13971_v45, %v6526_v17  ;;  %v6597_v4 = vadd.f32 %v13971_v45, %v6527_v32 }
 0x6c1   :  { %v6598_v12 = vadd.f32 %v13971_v45, %v6528_v39  ;;  %v6533_v53 = vmul.f32 %v13966_v31, %v13448_v11  ;;  %v6534_v24 = vmul.f32 %v13966_v31, %v13453_v13  ;;  %v6599_v52 = vadd.f32 %v13971_v45, %v6529_v42 }
 0x6c2   :  { %v6600_v63 = vadd.f32 %v13971_v45, %v6530_v21  ;;  %v14144_v51 = vadd.f32 %v13971_v45, %v6531_v54  ;;  %v14147_v55 = vadd.f32 %v13971_v45, %v6532_v27  ;;  %v6659_v11 = vmax.f32 %v6595_v14, 0.0  ;;  %v16592_v27 = vld [vmem:[#allocation36_spill] sm:$0xff] }
 0x6c3   :  { %v14150_v47 = vadd.f32 %v13971_v45, %v6533_v53  ;;  %v14153_v61 = vadd.f32 %v13971_v45, %v6534_v24  ;;  %v6660_v40 = vmax.f32 %v6596_v15, 0.0  ;;  %v6661_v30 = vmax.f32 %v6597_v4, 0.0 }
 0x6c4   :  { %v6662_v13 = vmax.f32 %v6598_v12, 0.0  ;;  %v6663_v37 = vmax.f32 %v6599_v52, 0.0  ;;  %v6664_v22 = vmax.f32 %v6600_v63, 0.0  ;;  %v6693_v58 = vmax.f32 %v14034_v2, 0.0  ;;  %v16593_v12 = vld [vmem:[#allocation93_spill] sm:$0xff] }
 0x6c5   :  { %v6694_v23 = vmax.f32 %v14037_v62, 0.0  ;;  %v6695_v41 = vmax.f32 %v14040_v26, 0.0  ;;  %v6696_v16 = vmax.f32 %v14043_v7, 0.0  ;;  %v6697_v33 = vmax.f32 %v14046_v9, 0.0 }
 0x6c6   :  { %v6698_v56 = vmax.f32 %v14049_v35, 0.0  ;;  %v6699_v18 = vmax.f32 %v14052_v43, 0.0  ;;  %v6700_v17 = vmax.f32 %v14055_v48, 0.0  ;;  %v6701_v32 = vmax.f32 %v14058_v1, 0.0 }
 0x6c7   :  { %v6702_v39 = vmax.f32 %v14061_v50, 0.0  ;;  %v6703_v2 = vmax.f32 %v14064_v46, 0.0  ;;  %v6705_v62 = vmax.f32 %v14070_v44, 0.0  ;;  %v6706_v26 = vmax.f32 %v14073_v60, 0.0 }
 0x6c8   :  { %v6709_v7 = vmax.f32 %v14082_v29, 0.0  ;;  %v6710_v9 = vmax.f32 %v14085_v57, 0.0  ;;  %v6713_v35 = vmax.f32 %v14094_v0, 0.0  ;;  %v6714_v43 = vmax.f32 %v14097_v20, 0.0 }
 0x6c9   :  { %v6717_v48 = vmax.f32 %v14106_v25, 0.0  ;;  %v6704_v1 = vmax.f32 %v14067_v8, 0.0  ;;  %v6707_v50 = vmax.f32 %v14076_v59, 0.0  ;;  %v6718_v46 = vmax.f32 %v14109_v34, 0.0 }
 0x6ca   :  { %v6723_v42 = vpack.c.bf16 %v6660_v40, %v6659_v11  ;;  %v6708_v44 = vmax.f32 %v14079_v3, 0.0  ;;  %v6711_v60 = vmax.f32 %v14088_v19, 0.0  ;;  %v6712_v29 = vmax.f32 %v14091_v38, 0.0  ;;  %v16595_v40 = vld [vmem:[#allocation85_spill] sm:$0xff] }
 0x6cb   :  { %v6724_v57 = vpack.c.bf16 %v6662_v13, %v6661_v30  ;;  %v6715_v0 = vmax.f32 %v14100_v49, 0.0  ;;  %v14180_v21 = vpack.c.bf16 %v6694_v23, %v6693_v58  ;;  %v14182_v20 = vpack.c.bf16 %v6698_v56, %v6697_v33 }
 0x6cc   :  { %v14184_v25 = vpack.c.bf16 %v6702_v39, %v6701_v32  ;;  %8606 = vmatprep.mubr.msk.bf16.mxu0 %vm505_vm0, %v6723_v42  ;;  %v14187_v8 = vpack.c.bf16 %v6706_v26, %v6705_v62  ;;  %v14189_v59 = vpack.c.bf16 %v6710_v9, %v6709_v7  ;;  %v14191_v3 = vpack.c.bf16 %v6714_v43, %v6713_v35  ;;  %v16597_v39 = vld [vmem:[#allocation90_spill] sm:$0xff]  ;;  %v16598_v62 = vld [vmem:[#allocation104_spill] sm:$0xff] }
 0x6cd   :  { %v14193_v19 = vpack.c.bf16 %v6718_v46, %v6717_v48  ;;  %8607 = vmatmul.mubr.msk.bf16.vlgmr.msra.gmra.mxu0 %vm505_vm0, %v6724_v57  ;;  %v6716_v38 = vmax.f32 %v14103_v10, 0.0  ;;  %v6719_v49 = vmax.f32 %v14112_v28, 0.0  ;;  %v6720_v34 = vmax.f32 %v14115_v5, 0.0  ;;  %v16599_v7 = vld [vmem:[#allocation150_spill] sm:$0xff]  ;;  %v16600_v57 = vld [vmem:[#allocation97_spill] sm:$0xff] }
 0x6ce   :  { %v6725_v54 = vpack.c.bf16 %v6664_v22, %v6663_v37  ;;  %v6535_v14 = vmul.f32 %v13966_v31, %v16592_v27  ;;  %v6665_v15 = vmax.f32 %v14144_v51, 0.0  ;;  %v6666_v4 = vmax.f32 %v14147_v55, 0.0  ;;  %v16594_v55 = vld [vmem:[#allocation149_spill] sm:$0xff]  ;;  %v16603_v27 = vld [vmem:[#allocation102_spill] sm:$0xff] }
 0x6cf   :  { %v6536_v53 = vmul.f32 %v13966_v31, %v16593_v12  ;;  %v6667_v24 = vmax.f32 %v14150_v47, 0.0  ;;  %v6668_v52 = vmax.f32 %v14153_v61, 0.0  ;;  %v14208_v10 = vpack.c.bf16 %v6696_v16, %v6695_v41 }
 0x6d0   :  { %8610 = vmatprep.mubr.msk.bf16.mxu0 %vm505_vm0, %v6725_v54  ;;  %v14210_v28 = vpack.c.bf16 %v6700_v17, %v6699_v18  ;;  %v14212_v5 = vpack.c.bf16 %v6704_v1, %v6703_v2  ;;  %v14214_v63 = vpack.c.bf16 %v6708_v44, %v6707_v50  ;;  %v14216_v51 = vpack.c.bf16 %v6712_v29, %v6711_v60  ;;  %v16596_v17 = vld [vmem:[#allocation151_spill] sm:$0xff] }
 0x6d1   :  { %v6537_v11 = vmul.f32 %v13966_v31, %v16594_v55  ;;  %v6538_v47 = vmul.f32 %v13966_v31, %v16595_v40  ;;  %v14222_v30 = vpack.c.bf16 %v6716_v38, %v6715_v0  ;;  %v14224_v61 = vpack.c.bf16 %v6720_v34, %v6719_v49  ;;  %v16601_v38 = vld [vmem:[#allocation152_spill] sm:$0xff]  ;;  %v16602_v34 = vld [vmem:[#allocation37_spill] sm:$0xff] }
 0x6d2   :  { %v6605_v13 = vadd.f32 %v13971_v45, %v6535_v14  ;;  %v6606_v37 = vadd.f32 %v13971_v45, %v6536_v53  ;;  %v6726_v22 = vpack.c.bf16 %v6666_v4, %v6665_v15  ;;  %v6727_v41 = vpack.c.bf16 %v6668_v52, %v6667_v24 }
 0x6d3   :  { %v6607_v58 = vadd.f32 %v13971_v45, %v6537_v11  ;;  %v6608_v23 = vadd.f32 %v13971_v45, %v6538_v47  ;;  %v6539_v32 = vmul.f32 %v13966_v31, %v16596_v17  ;;  %v6540_v2 = vmul.f32 %v13966_v31, %v16597_v39 }
 0x6d4   :  { %v6669_v16 = vmax.f32 %v6605_v13, 0.0  ;;  %v6670_v33 = vmax.f32 %v6606_v37, 0.0  ;;  %v6541_v26 = vmul.f32 %v13966_v31, %v16598_v62  ;;  %v6542_v9 = vmul.f32 %v13966_v31, %v16599_v7  ;;  %v16604_v13 = vld [vmem:[#allocation38_spill] sm:$0xff] }
 0x6d5   :  { %8611 = vmatmul.mubr.msk.bf16.gmra.mxu0 %vm505_vm0, %v6726_v22  ;;  %v6671_v56 = vmax.f32 %v6607_v58, 0.0  ;;  %v6672_v18 = vmax.f32 %v6608_v23, 0.0  ;;  %v6609_v35 = vadd.f32 %v13971_v45, %v6539_v32  ;;  %v6610_v43 = vadd.f32 %v13971_v45, %v6540_v2  ;;  %v16605_v22 = vld [vmem:[#allocation86_spill] sm:$0xff]  ;;  %v16606_v23 = vld [vmem:[#allocation20_spill] sm:$0xff] }
 0x6d6   :  { %8614 = vmatprep.mubr.msk.bf16.mxu0 %vm505_vm0, %v6727_v41  ;;  %v6728_v48 = vpack.c.bf16 %v6670_v33, %v6669_v16  ;;  %v6611_v1 = vadd.f32 %v13971_v45, %v6541_v26  ;;  %v6612_v50 = vadd.f32 %v13971_v45, %v6542_v9  ;;  %v6543_v0 = vmul.f32 %v13966_v31, %v16600_v57  ;;  %v16607_v16 = vld [vmem:[#allocation95_spill] sm:$0xff] }
 0x6d7   :  { %v6729_v46 = vpack.c.bf16 %v6672_v18, %v6671_v56  ;;  %v6673_v42 = vmax.f32 %v6609_v35, 0.0  ;;  %v6674_v44 = vmax.f32 %v6610_v43, 0.0  ;;  %v6544_v49 = vmul.f32 %v13966_v31, %v16601_v38  ;;  %v16608_v35 = vld [vmem:[#allocation109_spill] sm:$0xff] }
 0x6d8   :  { %v6675_v60 = vmax.f32 %v6611_v1, 0.0  ;;  %v6676_v29 = vmax.f32 %v6612_v50, 0.0  ;;  %v6545_v54 = vmul.f32 %v13966_v31, %v16602_v34  ;;  %v6546_v14 = vmul.f32 %v13966_v31, %v16603_v27  ;;  %v16610_v50 = vld [vmem:[#allocation100_spill] sm:$0xff] }
 0x6d9   :  { %v6613_v15 = vadd.f32 %v13971_v45, %v6543_v0  ;;  %v6614_v4 = vadd.f32 %v13971_v45, %v6544_v49  ;;  %v6730_v12 = vpack.c.bf16 %v6674_v44, %v6673_v42  ;;  %v6547_v37 = vmul.f32 %v13966_v31, %v16604_v13  ;;  %v16611_v42 = vld [vmem:[#allocation116_spill] sm:$0xff] }
 0x6da   :  { %v6615_v53 = vadd.f32 %v13971_v45, %v6545_v54  ;;  %v6616_v24 = vadd.f32 %v13971_v45, %v6546_v14  ;;  %v6731_v52 = vpack.c.bf16 %v6676_v29, %v6675_v60  ;;  %v6548_v58 = vmul.f32 %v13966_v31, %v16605_v22 }
 0x6db   :  { %v6677_v55 = vmax.f32 %v6613_v15, 0.0  ;;  %v6678_v11 = vmax.f32 %v6614_v4, 0.0  ;;  %v6549_v41 = vmul.f32 %v13966_v31, %v16606_v23  ;;  %v6550_v33 = vmul.f32 %v13966_v31, %v16607_v16  ;;  %v16612_v15 = vld [vmem:[#allocation48_spill] sm:$0xff] }
 0x6dc   :  { %v6679_v40 = vmax.f32 %v6615_v53, 0.0  ;;  %v6680_v47 = vmax.f32 %v6616_v24, 0.0  ;;  %v6617_v56 = vadd.f32 %v13971_v45, %v6547_v37  ;;  %v6618_v18 = vadd.f32 %v13971_v45, %v6548_v58  ;;  %v16614_v24 = vld [vmem:[#allocation122_spill] sm:$0xff] }
 0x6dd   :  { %8615 = vmatmul.mubr.msk.bf16.gmra.mxu0 %vm505_vm0, %v6728_v48  ;;  %v6732_v17 = vpack.c.bf16 %v6678_v11, %v6677_v55  ;;  %v6619_v32 = vadd.f32 %v13971_v45, %v6549_v41  ;;  %v6620_v39 = vadd.f32 %v13971_v45, %v6550_v33  ;;  %v6551_v43 = vmul.f32 %v13966_v31, %v16608_v35  ;;  %v16609_v48 = vld [vmem:[#allocation10_spill] sm:$0xff]  ;;  %v16615_v55 = vld [vmem:[#allocation96_spill] sm:$0xff] }
 0x6de   :  { %8618 = vmatprep.mubr.msk.bf16.mxu0 %vm505_vm0, %v6729_v46  ;;  %v6733_v2 = vpack.c.bf16 %v6680_v47, %v6679_v40  ;;  %v6681_v62 = vmax.f32 %v6617_v56, 0.0  ;;  %v6682_v26 = vmax.f32 %v6618_v18, 0.0  ;;  %v6552_v1 = vmul.f32 %v13966_v31, %v16609_v48 }
 0x6df   :  { %v6683_v7 = vmax.f32 %v6619_v32, 0.0  ;;  %v6684_v9 = vmax.f32 %v6620_v39, 0.0  ;;  %v6553_v46 = vmul.f32 %v13966_v31, %v16610_v50  ;;  %v6554_v44 = vmul.f32 %v13966_v31, %v16611_v42 }
 0x6e0   :  { %v6621_v60 = vadd.f32 %v13971_v45, %v6551_v43  ;;  %v6622_v29 = vadd.f32 %v13971_v45, %v6552_v1  ;;  %v6734_v57 = vpack.c.bf16 %v6682_v26, %v6681_v62  ;;  %v6555_v4 = vmul.f32 %v13966_v31, %v16612_v15 }
 0x6e1   :  { %v6623_v0 = vadd.f32 %v13971_v45, %v6553_v46  ;;  %v6624_v38 = vadd.f32 %v13971_v45, %v6554_v44  ;;  %v6735_v49 = vpack.c.bf16 %v6684_v9, %v6683_v7  ;;  %v6558_v11 = vmul.f32 %v13966_v31, %v16615_v55 }
 0x6e2   :  { %v6685_v34 = vmax.f32 %v6621_v60, 0.0  ;;  %v6686_v54 = vmax.f32 %v6622_v29, 0.0  ;;  %v6625_v40 = vadd.f32 %v13971_v45, %v6555_v4 }
 0x6e3   :  { %v6687_v27 = vmax.f32 %v6623_v0, 0.0  ;;  %v6688_v14 = vmax.f32 %v6624_v38, 0.0  ;;  %v6628_v22 = vadd.f32 %v13971_v45, %v6558_v11 }
 0x6e4   :  { %v6736_v13 = vpack.c.bf16 %v6686_v54, %v6685_v34  ;;  %v6689_v23 = vmax.f32 %v6625_v40, 0.0 }
 0x6e5   :  { %8619 = vmatmul.mubr.msk.bf16.gmra.mxu0 %vm505_vm0, %v6730_v12  ;;  %v16613_v12 = vld [vmem:[#allocation107_spill] sm:$0xff]  ;;  %v6737_v58 = vpack.c.bf16 %v6688_v14, %v6687_v27  ;;  %v6692_v33 = vmax.f32 %v6628_v22, 0.0 }
 0x6e6   :  { %8622 = vmatprep.mubr.msk.bf16.mxu0 %vm505_vm0, %v6731_v52  ;;  %v6556_v53 = vmul.f32 %v13966_v31, %v16613_v12  ;;  %v6557_v52 = vmul.f32 %v13966_v31, %v16614_v24 }
 0x6e8   :  { %v6626_v47 = vadd.f32 %v13971_v45, %v6556_v53  ;;  %v6627_v37 = vadd.f32 %v13971_v45, %v6557_v52 }
 0x6ea   :  { %v6690_v41 = vmax.f32 %v6626_v47, 0.0  ;;  %v6691_v16 = vmax.f32 %v6627_v37, 0.0 }
 0x6ec   :  { %v6738_v56 = vpack.c.bf16 %v6690_v41, %v6689_v23  ;;  %v6739_v31 = vpack.c.bf16 %v6692_v33, %v6691_v16 }
 0x6ed   :  { %8623 = vmatmul.mubr.msk.bf16.gmra.mxu0 %vm505_vm0, %v6732_v17 }
 0x6ee   :  { %8626 = vmatprep.mubr.msk.bf16.mxu0 %vm505_vm0, %v6733_v2 }
 0x6f5   :  { %8627 = vmatmul.mubr.msk.bf16.gmra.mxu0 %vm505_vm0, %v6734_v57 }
 0x6f6   :  { %8630 = vmatprep.mubr.msk.bf16.mxu0 %vm505_vm0, %v6735_v49 }
 0x6fd   :  { %8631 = vmatmul.mubr.msk.bf16.gmra.mxu0 %vm505_vm0, %v6736_v13 }
 0x6fe   :  { %8634 = vmatprep.mubr.msk.bf16.mxu0 %vm505_vm0, %v6737_v58 }
 0x705   :  { %8635 = vmatmul.mubr.msk.bf16.gmra.mxu0 %vm505_vm0, %v6738_v56 }
 0x706   :  { %8638 = vmatprep.mubr.msk.bf16.mxu0 %vm505_vm0, %v6739_v31 }
 0x70d   :  { %8639 = vmatmul.mubr.msk.bf16.gmra.mxu0 %vm505_vm0, %v14180_v21 }
 0x70e   :  { %8642 = vmatprep.mubr.msk.bf16.mxu0 %vm505_vm0, %v14208_v10 }
 0x715   :  { %8643 = vmatmul.mubr.msk.bf16.gmra.mxu0 %vm505_vm0, %v14182_v20 }
 0x716   :  { %8646 = vmatprep.mubr.msk.bf16.mxu0 %vm505_vm0, %v14210_v28 }
 0x71d   :  { %8647 = vmatmul.mubr.msk.bf16.gmra.mxu0 %vm505_vm0, %v14184_v25 }
 0x71e   :  { %8650 = vmatprep.mubr.msk.bf16.mxu0 %vm505_vm0, %v14212_v5 }
 0x725   :  { %8651 = vmatmul.mubr.msk.bf16.gmra.mxu0 %vm505_vm0, %v14187_v8 }
 0x726   :  { %8654 = vmatprep.mubr.msk.bf16.mxu0 %vm505_vm0, %v14214_v63 }
 0x72d   :  { %8655 = vmatmul.mubr.msk.bf16.gmra.mxu0 %vm505_vm0, %v14189_v59 }
 0x72e   :  { %8658 = vmatprep.mubr.msk.bf16.mxu0 %vm505_vm0, %v14216_v51 }
 0x735   :  { %8659 = vmatmul.mubr.msk.bf16.gmra.mxu0 %vm505_vm0, %v14191_v3 }
 0x736   :  { %8662 = vmatprep.mubr.msk.bf16.mxu0 %vm505_vm0, %v14222_v30 }
 0x73d   :  { %8663 = vmatmul.mubr.msk.bf16.gmra.mxu0 %vm505_vm0, %v14193_v19 }
 0x73e   :  { %8666 = vmatprep.mubr.msk.bf16.mxu0 %vm505_vm0, %v14224_v61 }
 0x745   :  { %8667 = vmatmul.mubr.msk.bf16.gmra.mxu0 %vm505_vm0, %v13975_v6 }
 0x78d   :  { %v14334_v45 = vpop.f32.mrf.mxu0 }
 0x78e   :  { %v7230_v6 = vmul.f32 %v14334_v45, %v14334_v45 }
 0x78f   :  { %v14336_v21 = vpop.f32.mrf.mxu0 }
 0x790   :  { %v7228_v8 = vmul.f32 %v14336_v21, %v14336_v21 }
 0x791   :  { %v14338_v20 = vpop.f32.mrf.mxu0 }
 0x792   :  { %v7231_v63 = vmul.f32 %v14338_v20, %v14338_v20 }
 0x793   :  { %v14340_v25 = vpop.f32.mrf.mxu0 }
 0x794   :  { %v7158_v59 = vadd.f32 %v14340_v25, %v14336_v21  ;;  %v7229_v3 = vmul.f32 %v14340_v25, %v14340_v25 }
 0x795   :  { %v14348_v19 = vpop.f32.mrf.mxu0 }
 0x796   :  { %v7159_v10 = vadd.f32 %v14334_v45, %v7158_v59  ;;  %v7292_v28 = vadd.f32 %v7229_v3, %v7228_v8  ;;  %v7234_v9 = vmul.f32 %v14348_v19, %v14348_v19 }
 0x797   :  { %v14353_v5 = vpop.f32.mrf.mxu0 }
 0x798   :  { %v7293_v51 = vadd.f32 %v7292_v28, %v7230_v6  ;;  %v7160_v30 = vadd.f32 %v14338_v20, %v7159_v10  ;;  %v7232_v17 = vmul.f32 %v14353_v5, %v14353_v5 }
 0x799   :  { %v14358_v61 = vpop.f32.mrf.mxu0 }
 0x79a   :  { %v7161_v18 = vadd.f32 %v7160_v30, %v14353_v5  ;;  %v7294_v32 = vadd.f32 %v7293_v51, %v7231_v63  ;;  %v7235_v1 = vmul.f32 %v14358_v61, %v14358_v61 }
 0x79b   :  { %v14363_v39 = vpop.f32.mrf.mxu0 }
 0x79c   :  { %v7295_v2 = vadd.f32 %v7294_v32, %v7232_v17  ;;  %v7162_v62 = vadd.f32 %v7161_v18, %v14363_v39  ;;  %v7233_v26 = vmul.f32 %v14363_v39, %v14363_v39 }
 0x79d   :  { %v14368_v7 = vpop.f32.mrf.mxu0 }
 0x79e   :  { %v7163_v35 = vadd.f32 %v14348_v19, %v7162_v62  ;;  %v7296_v43 = vadd.f32 %v7295_v2, %v7233_v26  ;;  %v7238_v54 = vmul.f32 %v14368_v7, %v14368_v7 }
 0x79f   :  { %v14373_v48 = vpop.f32.mrf.mxu0 }
 0x7a0   :  { %v7297_v50 = vadd.f32 %v7296_v43, %v7234_v9  ;;  %v7164_v46 = vadd.f32 %v14358_v61, %v7163_v35  ;;  %v7236_v60 = vmul.f32 %v14373_v48, %v14373_v48 }
 0x7a1   :  { %v14378_v42 = vpop.f32.mrf.mxu0 }
 0x7a2   :  { %v7165_v44 = vadd.f32 %v7164_v46, %v14373_v48  ;;  %v7298_v29 = vadd.f32 %v7297_v50, %v7235_v1  ;;  %v7239_v4 = vmul.f32 %v14378_v42, %v14378_v42 }
 0x7a3   :  { %v14383_v57 = vpop.f32.mrf.mxu0 }
 0x7a4   :  { %v7299_v0 = vadd.f32 %v7298_v29, %v7236_v60  ;;  %v7166_v38 = vadd.f32 %v7165_v44, %v14383_v57  ;;  %v7237_v49 = vmul.f32 %v14383_v57, %v14383_v57 }
 0x7a5   :  { %v14388_v34 = vpop.f32.mrf.mxu0 }
 0x7a6   :  { %v7167_v27 = vadd.f32 %v14368_v7, %v7166_v38  ;;  %v7300_v14 = vadd.f32 %v7299_v0, %v7237_v49  ;;  %v7242_v58 = vmul.f32 %v14388_v34, %v14388_v34 }
 0x7a7   :  { %v14393_v15 = vpop.f32.mrf.mxu0 }
 0x7a8   :  { %v7301_v12 = vadd.f32 %v7300_v14, %v7238_v54  ;;  %v7168_v53 = vadd.f32 %v14378_v42, %v7167_v27  ;;  %v7240_v55 = vmul.f32 %v14393_v15, %v14393_v15 }
 0x7a9   :  { %v14398_v24 = vpop.f32.mrf.mxu0 }
 0x7aa   :  { %v7169_v52 = vadd.f32 %v7168_v53, %v14393_v15  ;;  %v7302_v11 = vadd.f32 %v7301_v12, %v7239_v4  ;;  %v7243_v33 = vmul.f32 %v14398_v24, %v14398_v24 }
 0x7ab   :  { %v14403_v40 = vpop.f32.mrf.mxu0 }
 0x7ac   :  { %v7303_v47 = vadd.f32 %v7302_v11, %v7240_v55  ;;  %v7170_v13 = vadd.f32 %v7169_v52, %v14403_v40  ;;  %v7241_v37 = vmul.f32 %v14403_v40, %v14403_v40 }
 0x7ad   :  { %v14408_v22 = vpop.f32.mrf.mxu0 }
 0x7ae   :  { %v7171_v23 = vadd.f32 %v14388_v34, %v7170_v13  ;;  %v7304_v41 = vadd.f32 %v7303_v47, %v7241_v37  ;;  %v7246_v18 = vmul.f32 %v14408_v22, %v14408_v22 }
 0x7af   :  { %v14413_v16 = vpop.f32.mrf.mxu0 }
 0x7b0   :  { %v7305_v56 = vadd.f32 %v7304_v41, %v7242_v58  ;;  %v7172_v31 = vadd.f32 %v14398_v24, %v7171_v23  ;;  %v7244_v3 = vmul.f32 %v14413_v16, %v14413_v16 }
 0x7b1   :  { %v14418_v8 = vpop.f32.mrf.mxu0 }
 0x7b2   :  { %v7173_v59 = vadd.f32 %v7172_v31, %v14413_v16  ;;  %v7306_v6 = vadd.f32 %v7305_v56, %v7243_v33  ;;  %v7247_v62 = vmul.f32 %v14418_v8, %v14418_v8 }
 0x7b3   :  { %v14423_v10 = vpop.f32.mrf.mxu0 }
 0x7b4   :  { %v7307_v28 = vadd.f32 %v7306_v6, %v7244_v3  ;;  %v7174_v63 = vadd.f32 %v7173_v59, %v14423_v10  ;;  %v7245_v51 = vmul.f32 %v14423_v10, %v14423_v10 }
 0x7b5   :  { %v14428_v30 = vpop.f32.mrf.mxu0 }
 0x7b6   :  { %v7175_v17 = vadd.f32 %v14408_v22, %v7174_v63  ;;  %v7308_v32 = vadd.f32 %v7307_v28, %v7245_v51  ;;  %v7250_v38 = vmul.f32 %v14428_v30, %v14428_v30 }
 0x7b7   :  { %v14433_v2 = vpop.f32.mrf.mxu0 }
 0x7b8   :  { %v7309_v26 = vadd.f32 %v7308_v32, %v7246_v18  ;;  %v7176_v9 = vadd.f32 %v14418_v8, %v7175_v17  ;;  %v7248_v1 = vmul.f32 %v14433_v2, %v14433_v2 }
 0x7b9   :  { %v14438_v35 = vpop.f32.mrf.mxu0 }
 0x7ba   :  { %v7177_v43 = vadd.f32 %v7176_v9, %v14433_v2  ;;  %v7310_v50 = vadd.f32 %v7309_v26, %v7247_v62  ;;  %v7251_v14 = vmul.f32 %v14438_v35, %v14438_v35 }
 0x7bb   :  { %v14443_v46 = vpop.f32.mrf.mxu0 }
 0x7bc   :  { %v7311_v44 = vadd.f32 %v7310_v50, %v7248_v1  ;;  %v7178_v60 = vadd.f32 %v7177_v43, %v14443_v46  ;;  %v7249_v29 = vmul.f32 %v14443_v46, %v14443_v46 }
 0x7bd   :  { %v14448_v0 = vpop.f32.mrf.mxu0 }
 0x7be   :  { %v7179_v49 = vadd.f32 %v14428_v30, %v7178_v60  ;;  %v7312_v54 = vadd.f32 %v7311_v44, %v7249_v29  ;;  %v7254_v41 = vmul.f32 %v14448_v0, %v14448_v0 }
 0x7bf   :  { %v14453_v27 = vpop.f32.mrf.mxu0 }
 0x7c0   :  { %v7313_v4 = vadd.f32 %v7312_v54, %v7250_v38  ;;  %v7180_v12 = vadd.f32 %v14438_v35, %v7179_v49  ;;  %v7252_v55 = vmul.f32 %v14453_v27, %v14453_v27 }
 0x7c1   :  { %v14458_v53 = vpop.f32.mrf.mxu0 }
 0x7c2   :  { %v7181_v52 = vadd.f32 %v7180_v12, %v14453_v27  ;;  %v7314_v11 = vadd.f32 %v7313_v4, %v7251_v14  ;;  %v7255_v59 = vmul.f32 %v14458_v53, %v14458_v53 }
 0x7c3   :  { %v14463_v47 = vpop.f32.mrf.mxu0 }
 0x7c4   :  { %v7315_v13 = vadd.f32 %v7314_v11, %v7252_v55  ;;  %v7182_v37 = vadd.f32 %v7181_v52, %v14463_v47  ;;  %v7253_v58 = vmul.f32 %v14463_v47, %v14463_v47 }
 0x7c5   :  { %v14468_v23 = vpop.f32.mrf.mxu0 }
 0x7c6   :  { %v7183_v33 = vadd.f32 %v14448_v0, %v7182_v37  ;;  %v7316_v56 = vadd.f32 %v7315_v13, %v7253_v58  ;;  %v7258_v43 = vmul.f32 %v14468_v23, %v14468_v23 }
 0x7c7   :  { %v14473_v31 = vpop.f32.mrf.mxu0 }
 0x7c8   :  { %v7317_v3 = vadd.f32 %v7316_v56, %v7254_v41  ;;  %v7184_v6 = vadd.f32 %v14458_v53, %v7183_v33  ;;  %v7256_v51 = vmul.f32 %v14473_v31, %v14473_v31 }
 0x7c9   :  { %v14478_v28 = vpop.f32.mrf.mxu0 }
 0x7ca   :  { %v7185_v63 = vadd.f32 %v7184_v6, %v14473_v31  ;;  %v7318_v18 = vadd.f32 %v7317_v3, %v7255_v59  ;;  %v7259_v60 = vmul.f32 %v14478_v28, %v14478_v28 }
 0x7cb   :  { %v14483_v17 = vpop.f32.mrf.mxu0 }
 0x7cc   :  { %v7319_v32 = vadd.f32 %v7318_v18, %v7256_v51  ;;  %v7186_v62 = vadd.f32 %v7185_v63, %v14483_v17  ;;  %v7257_v26 = vmul.f32 %v14483_v17, %v14483_v17 }
 0x7cd   :  { %v14488_v9 = vpop.f32.mrf.mxu0 }
 0x7ce   :  { %v7187_v1 = vadd.f32 %v14468_v23, %v7186_v62  ;;  %v7320_v50 = vadd.f32 %v7319_v32, %v7257_v26  ;;  %v7262_v37 = vmul.f32 %v14488_v9, %v14488_v9 }
 0x7cf   :  { %v14493_v44 = vpop.f32.mrf.mxu0 }
 0x7d0   :  { %v7321_v29 = vadd.f32 %v7320_v50, %v7258_v43  ;;  %v7188_v38 = vadd.f32 %v14478_v28, %v7187_v1  ;;  %v7260_v14 = vmul.f32 %v14493_v44, %v14493_v44 }
 0x7d1   :  { %v14498_v49 = vpop.f32.mrf.mxu0 }
 0x7d2   :  { %v7189_v54 = vadd.f32 %v7188_v38, %v14493_v44  ;;  %v7322_v4 = vadd.f32 %v7321_v29, %v7259_v60  ;;  %v7263_v56 = vmul.f32 %v14498_v49, %v14498_v49 }
 0x7d3   :  { %v14503_v12 = vpop.f32.mrf.mxu0 }
 0x7d4   :  { %v7323_v52 = vadd.f32 %v7322_v4, %v7260_v14  ;;  %v7190_v55 = vadd.f32 %v7189_v54, %v14503_v12  ;;  %v7261_v11 = vmul.f32 %v14503_v12, %v14503_v12 }
 0x7d5   :  { %v14508_v13 = vpop.f32.mrf.mxu0 }
 0x7d6   :  { %16616 = vst [vmem:[#allocation39_spill] sm:$0xff] %v14508_v13  ;;  %v7191_v58 = vadd.f32 %v14488_v9, %v7190_v55  ;;  %v7324_v41 = vadd.f32 %v7323_v52, %v7261_v11  ;;  %v7266_v50 = vmul.f32 %v14508_v13, %v14508_v13 }
 0x7d7   :  { %v14513_v33 = vpop.f32.mrf.mxu0 }
 0x7d8   :  { %v7325_v59 = vadd.f32 %v7324_v41, %v7262_v37  ;;  %v7192_v3 = vadd.f32 %v14498_v49, %v7191_v58  ;;  %v7264_v51 = vmul.f32 %v14513_v33, %v14513_v33 }
 0x7d9   :  { %v14518_v6 = vpop.f32.mrf.mxu0 }
 0x7da   :  { %16617 = vst [vmem:[#allocation113_spill] sm:$0xff] %v14518_v6  ;;  %v7193_v63 = vadd.f32 %v7192_v3, %v14513_v33  ;;  %v7326_v18 = vadd.f32 %v7325_v59, %v7263_v56  ;;  %v7267_v54 = vmul.f32 %v14518_v6, %v14518_v6 }
 0x7db   :  { %v14523_v32 = vpop.f32.mrf.mxu0 }
 0x7dc   :  { %16618 = vst [vmem:[#allocation40_spill] sm:$0xff] %v14523_v32  ;;  %v7327_v62 = vadd.f32 %v7326_v18, %v7264_v51  ;;  %v7194_v26 = vadd.f32 %v7193_v63, %v14523_v32  ;;  %v7265_v43 = vmul.f32 %v14523_v32, %v14523_v32 }
 0x7dd   :  { %v14528_v1 = vpop.f32.mrf.mxu0 }
 0x7de   :  { %16619 = vst [vmem:[#allocation115_spill] sm:$0xff] %v14528_v1  ;;  %v7195_v60 = vadd.f32 %v14508_v13, %v7194_v26  ;;  %v7328_v29 = vadd.f32 %v7327_v62, %v7265_v43  ;;  %v7270_v63 = vmul.f32 %v14528_v1, %v14528_v1 }
 0x7df   :  { %v14533_v38 = vpop.f32.mrf.mxu0 }
 0x7e0   :  { %16620 = vst [vmem:[#allocation49_spill] sm:$0xff] %v14533_v38  ;;  %v7329_v14 = vadd.f32 %v7328_v29, %v7266_v50  ;;  %v7196_v4 = vadd.f32 %v14518_v6, %v7195_v60  ;;  %v7268_v11 = vmul.f32 %v14533_v38, %v14533_v38 }
 0x7e1   :  { %v14538_v52 = vpop.f32.mrf.mxu0 }
 0x7e2   :  { %16621 = vst [vmem:[#allocation105_spill] sm:$0xff] %v14538_v52  ;;  %v7197_v55 = vadd.f32 %v7196_v4, %v14533_v38  ;;  %v7330_v37 = vadd.f32 %v7329_v14, %v7267_v54  ;;  %v7271_v26 = vmul.f32 %v14538_v52, %v14538_v52 }
 0x7e3   :  { %v14543_v58 = vpop.f32.mrf.mxu0 }
 0x7e4   :  { %16622 = vst [vmem:[#allocation121_spill] sm:$0xff] %v14543_v58  ;;  %v7331_v41 = vadd.f32 %v7330_v37, %v7268_v11  ;;  %v7198_v56 = vadd.f32 %v7197_v55, %v14543_v58  ;;  %v7269_v59 = vmul.f32 %v14543_v58, %v14543_v58 }
 0x7e5   :  { %v14548_v3 = vpop.f32.mrf.mxu0 }
 0x7e6   :  { %16623 = vst [vmem:[#allocation50_spill] sm:$0xff] %v14548_v3  ;;  %v7199_v51 = vadd.f32 %v14528_v1, %v7198_v56  ;;  %v7332_v18 = vadd.f32 %v7331_v41, %v7269_v59  ;;  %v7274_v56 = vmul.f32 %v14548_v3, %v14548_v3 }
 0x7e7   :  { %v14553_v62 = vpop.f32.mrf.mxu0 }
 0x7e8   :  { %16624 = vst [vmem:[#allocation111_spill] sm:$0xff] %v14553_v62  ;;  %v7333_v43 = vadd.f32 %v7332_v18, %v7270_v63  ;;  %v7200_v50 = vadd.f32 %v14538_v52, %v7199_v51  ;;  %v7272_v54 = vmul.f32 %v14553_v62, %v14553_v62 }
 0x7e9   :  { %v14558_v60 = vpop.f32.mrf.mxu0 }
 0x7ea   :  { %16625 = vst [vmem:[#allocation127_spill] sm:$0xff] %v14558_v60  ;;  %v7201_v29 = vadd.f32 %v7200_v50, %v14553_v62  ;;  %v7334_v14 = vadd.f32 %v7333_v43, %v7271_v26  ;;  %v7275_v18 = vmul.f32 %v14558_v60, %v14558_v60 }
 0x7eb   :  { %v14563_v4 = vpop.f32.mrf.mxu0 }
 0x7ec   :  { %16626 = vst [vmem:[#allocation106_spill] sm:$0xff] %v14563_v4  ;;  %v7335_v55 = vadd.f32 %v7334_v14, %v7272_v54  ;;  %v7202_v11 = vadd.f32 %v7201_v29, %v14563_v4  ;;  %v7273_v37 = vmul.f32 %v14563_v4, %v14563_v4 }
 0x7ed   :  { %v14568_v41 = vpop.f32.mrf.mxu0 }
 0x7ee   :  { %16627 = vst [vmem:[#allocation119_spill] sm:$0xff] %v14568_v41  ;;  %v7203_v59 = vadd.f32 %v14548_v3, %v7202_v11  ;;  %v7336_v63 = vadd.f32 %v7335_v55, %v7273_v37 }
 0x7ef   :  { %v14573_v51 = vpop.f32.mrf.mxu0 }
 0x7f0   :  { %16628 = vst [vmem:[#allocation131_spill] sm:$0xff] %v14573_v51  ;;  %v7337_v26 = vadd.f32 %v7336_v63, %v7274_v56  ;;  %v7204_v43 = vadd.f32 %v14558_v60, %v7203_v59  ;;  %v7276_v54 = vmul.f32 %v14573_v51, %v14573_v51  ;;  %v7278_v56 = vmul.f32 %v14568_v41, %v14568_v41 }
 0x7f1   :  { %v14578_v50 = vpop.f32.mrf.mxu0 }
 0x7f2   :  { %16629 = vst [vmem:[#allocation114_spill] sm:$0xff] %v14578_v50  ;;  %v7205_v29 = vadd.f32 %v7204_v43, %v14573_v51  ;;  %v7338_v14 = vadd.f32 %v7337_v26, %v7275_v18  ;;  %v7279_v18 = vmul.f32 %v14578_v50, %v14578_v50 }
 0x7f3   :  { %v14583_v4 = vpop.f32.mrf.mxu0 }
 0x7f4   :  { %16630 = vst [vmem:[#allocation41_spill] sm:$0xff] %v14583_v4  ;;  %v7339_v11 = vadd.f32 %v7338_v14, %v7276_v54  ;;  %v7206_v55 = vadd.f32 %v7205_v29, %v14583_v4  ;;  %v7277_v37 = vmul.f32 %v14583_v4, %v14583_v4 }
 0x7f5   :  { %v14588_v3 = vpop.f32.mrf.mxu0 }
 0x7f6   :  { %16631 = vst [vmem:[#allocation125_spill] sm:$0xff] %v14588_v3  ;;  %v7207_v59 = vadd.f32 %v14568_v41, %v7206_v55  ;;  %v7340_v63 = vadd.f32 %v7339_v11, %v7277_v37 }
 0x7f7   :  { %v14593_v43 = vpop.f32.mrf.mxu0 }
 0x7f8   :  { %16632 = vst [vmem:[#allocation42_spill] sm:$0xff] %v14593_v43  ;;  %v7341_v26 = vadd.f32 %v7340_v63, %v7278_v56  ;;  %v7208_v54 = vadd.f32 %v14578_v50, %v7207_v59  ;;  %v7280_v4 = vmul.f32 %v14593_v43, %v14593_v43  ;;  %v7282_v56 = vmul.f32 %v14588_v3, %v14588_v3 }
 0x7f9   :  { %v14598_v29 = vpop.f32.mrf.mxu0 }
 0x7fa   :  { %16633 = vst [vmem:[#allocation126_spill] sm:$0xff] %v14598_v29  ;;  %v7209_v14 = vadd.f32 %v7208_v54, %v14593_v43  ;;  %v7342_v51 = vadd.f32 %v7341_v26, %v7279_v18  ;;  %v7283_v18 = vmul.f32 %v14598_v29, %v14598_v29 }
 0x7fb   :  { %v14603_v60 = vpop.f32.mrf.mxu0 }
 0x7fc   :  { %16634 = vst [vmem:[#allocation118_spill] sm:$0xff] %v14603_v60  ;;  %v7343_v55 = vadd.f32 %v7342_v51, %v7280_v4  ;;  %v7210_v11 = vadd.f32 %v7209_v14, %v14603_v60  ;;  %v7281_v37 = vmul.f32 %v14603_v60, %v14603_v60 }
 0x7fd   :  { %v14608_v41 = vpop.f32.mrf.mxu0 }
 0x7fe   :  { %16635 = vst [vmem:[#allocation117_spill] sm:$0xff] %v14608_v41  ;;  %v7211_v59 = vadd.f32 %v14588_v3, %v7210_v11  ;;  %v7344_v63 = vadd.f32 %v7343_v55, %v7281_v37 }
 0x7ff   :  { %v14613_v54 = vpop.f32.mrf.mxu0 }
 0x800   :  { %16636 = vst [vmem:[#allocation137_spill] sm:$0xff] %v14613_v54  ;;  %v7345_v26 = vadd.f32 %v7344_v63, %v7282_v56  ;;  %v7212_v4 = vadd.f32 %v14598_v29, %v7211_v59  ;;  %v7284_v60 = vmul.f32 %v14613_v54, %v14613_v54  ;;  %v7286_v56 = vmul.f32 %v14608_v41, %v14608_v41 }
 0x801   :  { %v14618_v51 = vpop.f32.mrf.mxu0 }
 0x802   :  { %16637 = vst [vmem:[#allocation61_spill] sm:$0xff] %v14618_v51  ;;  %v7213_v14 = vadd.f32 %v7212_v4, %v14613_v54  ;;  %v7346_v43 = vadd.f32 %v7345_v26, %v7283_v18  ;;  %v7287_v18 = vmul.f32 %v14618_v51, %v14618_v51 }
 0x803   :  { %v14623_v50 = vpop.f32.mrf.mxu0 }
 0x804   :  { %16638 = vst [vmem:[#allocation123_spill] sm:$0xff] %v14623_v50  ;;  %v7347_v11 = vadd.f32 %v7346_v43, %v7284_v60  ;;  %v7214_v55 = vadd.f32 %v7213_v14, %v14623_v50  ;;  %v7285_v37 = vmul.f32 %v14623_v50, %v14623_v50 }
 0x805   :  { %v14628_v3 = vpop.f32.mrf.mxu0 }
 0x806   :  { %16639 = vst [vmem:[#allocation136_spill] sm:$0xff] %v14628_v3  ;;  %v7215_v59 = vadd.f32 %v14608_v41, %v7214_v55  ;;  %v7348_v63 = vadd.f32 %v7347_v11, %v7285_v37  ;;  %v7290_v37 = vmul.f32 %v14628_v3, %v14628_v3 }
 0x807   :  { %v14633_v4 = vpop.f32.mrf.mxu0 }
 0x808   :  { %16640 = vst [vmem:[#allocation11_spill] sm:$0xff] %v14633_v4  ;;  %v7349_v26 = vadd.f32 %v7348_v63, %v7286_v56  ;;  %v7216_v60 = vadd.f32 %v14618_v51, %v7215_v59  ;;  %v7288_v50 = vmul.f32 %v14633_v4, %v14633_v4 }
 0x809   :  { %v14638_v43 = vpop.f32.mrf.mxu0 }
 0x80a   :  { %v7217_v14 = vadd.f32 %v7216_v60, %v14633_v4  ;;  %v7350_v54 = vadd.f32 %v7349_v26, %v7287_v18  ;;  %v7291_v59 = vmul.f32 %v14638_v43, %v14638_v43 }
 0x80b   :  { %v7144_v29 = vpop.f32.mrf.mxu0 }
 0x80c   :  { %v7351_v62 = vadd.f32 %v7350_v54, %v7288_v50  ;;  %v7218_v55 = vadd.f32 %v7217_v14, %v7144_v29  ;;  %v7289_v11 = vmul.f32 %v7144_v29, %v7144_v29 }
 0x80e   :  { %v7219_v41 = vadd.f32 %v14628_v3, %v7218_v55  ;;  %v7352_v56 = vadd.f32 %v7351_v62, %v7289_v11 }
 0x810   :  { %v7220_v63 = vadd.f32 %v14638_v43, %v7219_v41  ;;  %v7353_v60 = vadd.f32 %v7352_v56, %v7290_v37  ;;  %v7156_v41 = vld [vmem:[%s15623_s9] sm:$0x1] }
 0x812   :  { %v7221_v51 = vrot.slane %v7220_v63, 4  ;;  %v7354_v52 = vadd.f32 %v7353_v60, %v7291_v59 }
 0x814   :  { %v7222_v4 = vadd.f32 %v7221_v51, %v7220_v63  ;;  %v7355_v18 = vrot.slane %v7354_v52, 4 }
 0x816   :  { %v7223_v26 = vrot.slane %v7222_v4, 2  ;;  %v7356_v50 = vadd.f32 %v7355_v18, %v7354_v52  ;;  %v7157_v52 = vld [vmem:[%s15624_s10] sm:$0x1]  ;;  %v16641_v18 = vld [vmem:[#allocation40_spill] sm:$0xff] }
 0x818   :  { %v7224_v54 = vadd.f32 %v7223_v26, %v7222_v4  ;;  %v7357_v14 = vrot.slane %v7356_v50, 2 }
 0x81a   :  { %v7225_v1 = vrot.slane %v7224_v54, 1  ;;  %v7358_v58 = vadd.f32 %v7357_v14, %v7356_v50  ;;  %v16643_v50 = vld [vmem:[#allocation113_spill] sm:$0xff] }
 0x81b   :  { %v16645_v14 = vld [vmem:[#allocation121_spill] sm:$0xff] }
 0x81c   :  { %v7226_v38 = vadd.f32 %v7225_v1, %v7224_v54  ;;  %v7359_v6 = vrot.slane %v7358_v58, 1  ;;  %v16644_v54 = vld [vmem:[#allocation49_spill] sm:$0xff] }
 0x81e   :  { %v7227_v55 = vmul.f32 0.001953125, %v7226_v38  ;;  %v7360_v62 = vadd.f32 %v7359_v6, %v7358_v58 }
 0x820   :  { %v7361_v11 = vmul.f32 0.001953125, %v7360_v62  ;;  %v7362_v3 = vmul.f32 %v7227_v55, %v7227_v55 }
 0x822   :  { %v7363_v13 = vsub.f32 %v7361_v11, %v7362_v3  ;;  %v16647_v11 = vld [vmem:[#allocation105_spill] sm:$0xff] }
 0x824   :  { %v7364_v32 = vadd.f32 1e-05, %v7363_v13 }
 0x826   :  { %8862 = vrsqrt.f32 %v7364_v32 }
 0x833   :  { %v8863_v51 = vpop.eup %8862 }
 0x834   :  { %v7366_v37 = vmul.f32 %v8863_v51, %v7156_v41  ;;  %v16648_v51 = vld [vmem:[#allocation111_spill] sm:$0xff] }
 0x836   :  { %v7367_v4 = vmul.f32 %v7366_v37, %v7227_v55  ;;  %v14656_v1 = vrot.slane %v7366_v37, %v16591_v36  ;;  %v16646_v55 = vld [vmem:[#allocation115_spill] sm:$0xff] }
 0x838   :  { %v7368_v6 = vsub.f32 %v7157_v52, %v7367_v4  ;;  %v7436_v38 = vmul.f32 %v14656_v1, %v7144_v29  ;;  %v14661_v13 = vmul.f32 %v14656_v1, %v14336_v21  ;;  %v14665_v32 = vmul.f32 %v14656_v1, %v14340_v25  ;;  %v16649_v52 = vld [vmem:[#allocation106_spill] sm:$0xff] }
 0x839   :  { %v14669_v58 = vmul.f32 %v14334_v45, %v14656_v1  ;;  %v14673_v3 = vmul.f32 %v14338_v20, %v14656_v1  ;;  %v14677_v56 = vmul.f32 %v14656_v1, %v14353_v5  ;;  %v14681_v21 = vmul.f32 %v14656_v1, %v14363_v39  ;;  %v7570_v5 = vld [vmem:[%s15614_s0 + $0x1e8] sm:$0xff] }
 0x83a   :  { %v14684_v29 = vrot.slane %v7368_v6, %v16591_v36  ;;  %v14688_v25 = vmul.f32 %v14348_v19, %v14656_v1  ;;  %v14692_v45 = vmul.f32 %v14358_v61, %v14656_v1  ;;  %v14696_v20 = vmul.f32 %v14656_v1, %v14373_v48  ;;  %v16650_v6 = vld [vmem:[#allocation50_spill] sm:$0xff] }
 0x83b   :  { %v14703_v36 = vmul.f32 %v14656_v1, %v14383_v57  ;;  %v14707_v19 = vmul.f32 %v14368_v7, %v14656_v1  ;;  %v14711_v61 = vmul.f32 %v14378_v42, %v14656_v1  ;;  %v14715_v39 = vmul.f32 %v14656_v1, %v14393_v15 }
 0x83c   :  { %v7506_v48 = vadd.f32 %v14684_v29, %v7436_v38  ;;  %v14720_v59 = vmul.f32 %v14656_v1, %v14403_v40  ;;  %v14724_v57 = vmul.f32 %v14388_v34, %v14656_v1  ;;  %v14728_v7 = vmul.f32 %v14398_v24, %v14656_v1 }
 0x83d   :  { %v14732_v42 = vmul.f32 %v14656_v1, %v14413_v16  ;;  %v14736_v15 = vmul.f32 %v14656_v1, %v14423_v10  ;;  %v14740_v40 = vmul.f32 %v14408_v22, %v14656_v1  ;;  %v14744_v34 = vmul.f32 %v14418_v8, %v14656_v1 }
 0x83e   :  { %v7634_v63 = vadd.f32 %v7570_v5, %v7506_v48  ;;  %v14748_v24 = vmul.f32 %v14656_v1, %v14433_v2  ;;  %v14752_v16 = vmul.f32 %v14656_v1, %v14443_v46  ;;  %v14756_v10 = vmul.f32 %v14428_v30, %v14656_v1  ;;  %v16651_v5 = vld [vmem:[#allocation127_spill] sm:$0xff] }
 0x83f   :  { %v14760_v22 = vmul.f32 %v14438_v35, %v14656_v1  ;;  %v14764_v8 = vmul.f32 %v14656_v1, %v14453_v27  ;;  %v14768_v2 = vmul.f32 %v14656_v1, %v14463_v47  ;;  %v14772_v46 = vmul.f32 %v14448_v0, %v14656_v1 }
 0x840   :  { %v7698_v60 = vmax.f32 %v7634_v63, 0.0  ;;  %v14776_v30 = vmul.f32 %v14458_v53, %v14656_v1  ;;  %v14780_v35 = vmul.f32 %v14656_v1, %v14473_v31  ;;  %v14784_v27 = vmul.f32 %v14656_v1, %v14483_v17  ;;  %v16652_v63 = vld [vmem:[#allocation131_spill] sm:$0xff] }
 0x841   :  { %v14788_v47 = vmul.f32 %v14468_v23, %v14656_v1  ;;  %v14792_v0 = vmul.f32 %v14478_v28, %v14656_v1  ;;  %v14796_v53 = vmul.f32 %v14656_v1, %v14493_v44  ;;  %v14800_v31 = vmul.f32 %v14656_v1, %v14503_v12  ;;  %v16642_v12 = vld [vmem:[#allocation39_spill] sm:$0xff] }
 0x842   :  { %7762 = vst [vmem:[#allocation6 + $0x1e8] sm:$0xff] %v7698_v60  ;;  %v14804_v17 = vmul.f32 %v14488_v9, %v14656_v1  ;;  %v14808_v23 = vmul.f32 %v14498_v49, %v14656_v1  ;;  %v14812_v28 = vmul.f32 %v14656_v1, %v14513_v33  ;;  %v14816_v44 = vmul.f32 %v14656_v1, %v16641_v18  ;;  %v16653_v18 = vld [vmem:[#allocation41_spill] sm:$0xff] }
 0x843   :  { %v14820_v26 = vmul.f32 %v16642_v12, %v14656_v1  ;;  %v14824_v9 = vmul.f32 %v16643_v50, %v14656_v1  ;;  %v14828_v49 = vmul.f32 %v14656_v1, %v16644_v54  ;;  %v14832_v33 = vmul.f32 %v14656_v1, %v16645_v14  ;;  %v16654_v50 = vld [vmem:[#allocation119_spill] sm:$0xff]  ;;  %v16656_v14 = vld [vmem:[#allocation114_spill] sm:$0xff] }
 0x844   :  { %v14836_v62 = vmul.f32 %v16646_v55, %v14656_v1  ;;  %v14840_v41 = vmul.f32 %v16647_v11, %v14656_v1  ;;  %v14844_v37 = vmul.f32 %v14656_v1, %v16648_v51  ;;  %v14848_v4 = vmul.f32 %v14656_v1, %v16649_v52  ;;  %v16658_v11 = vld [vmem:[#allocation42_spill] sm:$0xff] }
 0x845   :  { %v14852_v38 = vmul.f32 %v16650_v6, %v14656_v1  ;;  %v14856_v48 = vmul.f32 %v16651_v5, %v14656_v1  ;;  %v14860_v60 = vmul.f32 %v14656_v1, %v16652_v63  ;;  %v14864_v12 = vmul.f32 %v14656_v1, %v16653_v18  ;;  %v16660_v52 = vld [vmem:[#allocation118_spill] sm:$0xff]  ;;  %v16662_v5 = vld [vmem:[#allocation125_spill] sm:$0xff] }
 0x846   :  { %v14868_v54 = vmul.f32 %v16654_v50, %v14656_v1  ;;  %v14872_v55 = vmul.f32 %v16656_v14, %v14656_v1  ;;  %v14876_v51 = vmul.f32 %v14656_v1, %v16658_v11  ;;  %v14880_v6 = vmul.f32 %v14656_v1, %v16660_v52  ;;  %v16664_v18 = vld [vmem:[#allocation126_spill] sm:$0xff] }
 0x847   :  { %v14884_v63 = vmul.f32 %v16662_v5, %v14656_v1  ;;  %v14888_v50 = vmul.f32 %v16664_v18, %v14656_v1 }
 0x848   :  { %16655 = vst [vmem:[#allocation129_spill] sm:$0xff] %v14868_v54  ;;  %16657 = vst [vmem:[#allocation53_spill] sm:$0xff] %v14872_v55  ;;  %v16666_v54 = vld [vmem:[#allocation137_spill] sm:$0xff]  ;;  %v16667_v55 = vld [vmem:[#allocation123_spill] sm:$0xff] }
 0x849   :  { %16659 = vst [vmem:[#allocation43_spill] sm:$0xff] %v14876_v51  ;;  %16661 = vst [vmem:[#allocation134_spill] sm:$0xff] %v14880_v6  ;;  %v14892_v14 = vmul.f32 %v14656_v1, %v16666_v54  ;;  %v14896_v11 = vmul.f32 %v14656_v1, %v16667_v55  ;;  %v16668_v51 = vld [vmem:[#allocation117_spill] sm:$0xff]  ;;  %v14916_v55 = vmul.f32 %v14638_v43, %v14656_v1 }
 0x84a   :  { %16663 = vst [vmem:[#allocation44_spill] sm:$0xff] %v14884_v63  ;;  %16665 = vst [vmem:[#allocation135_spill] sm:$0xff] %v14888_v50  ;;  %v14900_v52 = vmul.f32 %v16668_v51, %v14656_v1  ;;  %v16669_v6 = vld [vmem:[#allocation61_spill] sm:$0xff]  ;;  %v16670_v63 = vld [vmem:[#allocation11_spill] sm:$0xff]  ;;  %v14920_v51 = vadd.f32 %v14684_v29, %v14661_v13  ;;  %v14936_v43 = vadd.f32 %v14684_v29, %v14677_v56 }
 0x84b   :  { %v14904_v5 = vmul.f32 %v16669_v6, %v14656_v1  ;;  %v14908_v18 = vmul.f32 %v14656_v1, %v16670_v63  ;;  %v16671_v50 = vld [vmem:[#allocation136_spill] sm:$0xff]  ;;  %v14924_v6 = vadd.f32 %v14684_v29, %v14665_v32  ;;  %v14928_v63 = vadd.f32 %v14684_v29, %v14669_v58 }
 0x84c   :  { %v14912_v54 = vmul.f32 %v16671_v50, %v14656_v1  ;;  %v14932_v50 = vadd.f32 %v14684_v29, %v14673_v3  ;;  %v14940_v1 = vadd.f32 %v14684_v29, %v14681_v21  ;;  %v14944_v13 = vadd.f32 %v14684_v29, %v14688_v25 }
 0x84d   :  { %v14948_v32 = vadd.f32 %v14684_v29, %v14692_v45  ;;  %v14952_v58 = vadd.f32 %v14684_v29, %v14696_v20  ;;  %v14956_v3 = vadd.f32 %v14684_v29, %v14703_v36  ;;  %v14960_v56 = vadd.f32 %v14684_v29, %v14707_v19 }
 0x84e   :  { %v14964_v21 = vadd.f32 %v14684_v29, %v14711_v61  ;;  %v14968_v25 = vadd.f32 %v14684_v29, %v14715_v39  ;;  %v14972_v45 = vadd.f32 %v14684_v29, %v14720_v59  ;;  %v14976_v20 = vadd.f32 %v14684_v29, %v14724_v57 }
 0x84f   :  { %v14980_v36 = vadd.f32 %v14684_v29, %v14728_v7  ;;  %v14984_v19 = vadd.f32 %v14684_v29, %v14732_v42  ;;  %v14988_v61 = vadd.f32 %v14684_v29, %v14736_v15  ;;  %v14992_v39 = vadd.f32 %v14684_v29, %v14740_v40 }
 0x850   :  { %v14996_v59 = vadd.f32 %v14684_v29, %v14744_v34  ;;  %v15000_v57 = vadd.f32 %v14684_v29, %v14748_v24  ;;  %v15004_v7 = vadd.f32 %v14684_v29, %v14752_v16  ;;  %v15008_v42 = vadd.f32 %v14684_v29, %v14756_v10 }
 0x851   :  { %v15012_v15 = vadd.f32 %v14684_v29, %v14760_v22  ;;  %v15016_v40 = vadd.f32 %v14684_v29, %v14764_v8  ;;  %v15020_v34 = vadd.f32 %v14684_v29, %v14768_v2  ;;  %v15024_v24 = vadd.f32 %v14684_v29, %v14772_v46 }
 0x852   :  { %v15028_v16 = vadd.f32 %v14684_v29, %v14776_v30  ;;  %v15032_v10 = vadd.f32 %v14684_v29, %v14780_v35  ;;  %v15036_v22 = vadd.f32 %v14684_v29, %v14784_v27  ;;  %v15040_v8 = vadd.f32 %v14684_v29, %v14788_v47 }
 0x853   :  { %v15044_v2 = vadd.f32 %v14684_v29, %v14792_v0  ;;  %v15048_v46 = vadd.f32 %v14684_v29, %v14796_v53  ;;  %v15052_v30 = vadd.f32 %v14684_v29, %v14800_v31  ;;  %v15056_v35 = vadd.f32 %v14684_v29, %v14804_v17 }
 0x854   :  { %v15060_v27 = vadd.f32 %v14684_v29, %v14808_v23  ;;  %v15064_v47 = vadd.f32 %v14684_v29, %v14812_v28  ;;  %v15068_v0 = vadd.f32 %v14684_v29, %v14816_v44  ;;  %v15072_v53 = vadd.f32 %v14684_v29, %v14820_v26  ;;  %v7511_v44 = vld [vmem:[%s15614_s0 + $0x10] sm:$0xff]  ;;  %v7509_v26 = vld [vmem:[%s15614_s0] sm:$0xff] }
 0x855   :  { %16672 = vst [vmem:[#allocation128_spill] sm:$0xff] %v15056_v35  ;;  %v15076_v31 = vadd.f32 %v14684_v29, %v14824_v9  ;;  %v15080_v17 = vadd.f32 %v14684_v29, %v14828_v49  ;;  %v15084_v23 = vadd.f32 %v14684_v29, %v14832_v33  ;;  %v15088_v28 = vadd.f32 %v14684_v29, %v14836_v62  ;;  %v7512_v9 = vld [vmem:[%s15614_s0 + $0x18] sm:$0xff]  ;;  %v7510_v49 = vld [vmem:[%s15614_s0 + $0x8] sm:$0xff]  ;;  %v7527_v35 = vld [vmem:[%s15614_s0 + $0x90] sm:$0xff] }
 0x856   :  { %16673 = vst [vmem:[#allocation62_spill] sm:$0xff] %v15060_v27  ;;  %16674 = vst [vmem:[#allocation140_spill] sm:$0xff] %v15064_v47  ;;  %v15104_v33 = vadd.f32 %v14684_v29, %v14840_v41  ;;  %v15108_v62 = vadd.f32 %v14684_v29, %v14844_v37  ;;  %v7513_v41 = vld [vmem:[%s15614_s0 + $0x20] sm:$0xff]  ;;  %v7516_v37 = vld [vmem:[%s15614_s0 + $0x38] sm:$0xff] }
 0x857   :  { %16675 = vst [vmem:[#allocation74_spill] sm:$0xff] %v15068_v0  ;;  %16676 = vst [vmem:[#allocation138_spill] sm:$0xff] %v15072_v53  ;;  %v16696_v0 = vld [vmem:[#allocation44_spill] sm:$0xff]  ;;  %v7523_v27 = vld [vmem:[%s15614_s0 + $0x70] sm:$0xff] }
 0x858   :  { %16677 = vst [vmem:[#allocation99_spill] sm:$0xff] %v15076_v31  ;;  %16678 = vst [vmem:[#allocation45_spill] sm:$0xff] %v15080_v17  ;;  %v7515_v17 = vld [vmem:[%s15614_s0 + $0x30] sm:$0xff]  ;;  %v15172_v47 = vadd.f32 %v14684_v29, %v16696_v0 }
 0x859   :  { %16679 = vst [vmem:[#allocation145_spill] sm:$0xff] %v15084_v23  ;;  %16680 = vst [vmem:[#allocation46_spill] sm:$0xff] %v15088_v28  ;;  %v15112_v28 = vadd.f32 %v14684_v29, %v14848_v4  ;;  %v15116_v23 = vadd.f32 %v14684_v29, %v14852_v38  ;;  %v7514_v4 = vld [vmem:[%s15614_s0 + $0x28] sm:$0xff]  ;;  %v15132_v38 = vadd.f32 %v14684_v29, %v14856_v48  ;;  %v7519_v31 = vld [vmem:[%s15614_s0 + $0x50] sm:$0xff] }
 0x85a   :  { %16681 = vst [vmem:[#allocation98_spill] sm:$0xff] %v15104_v33  ;;  %16682 = vst [vmem:[#allocation23_spill] sm:$0xff] %v15108_v62  ;;  %v16688_v62 = vld [vmem:[#allocation129_spill] sm:$0xff] }
 0x85b   :  { %16683 = vst [vmem:[#allocation65_spill] sm:$0xff] %v15112_v28  ;;  %16684 = vst [vmem:[#allocation103_spill] sm:$0xff] %v15116_v23  ;;  %v15136_v23 = vadd.f32 %v14684_v29, %v14860_v60  ;;  %v15140_v28 = vadd.f32 %v14684_v29, %v14864_v12  ;;  %v15144_v33 = vadd.f32 %v14684_v29, %v16688_v62  ;;  %v7517_v48 = vld [vmem:[%s15614_s0 + $0x40] sm:$0xff]  ;;  %v7520_v60 = vld [vmem:[%s15614_s0 + $0x58] sm:$0xff] }
 0x85c   :  { %16685 = vst [vmem:[#allocation57_spill] sm:$0xff] %v15132_v38  ;;  %v7518_v12 = vld [vmem:[%s15614_s0 + $0x48] sm:$0xff]  ;;  %16697 = vst [vmem:[#allocation28_spill] sm:$0xff] %v15172_v47  ;;  %v15192_v47 = vadd.f32 %v14684_v29, %v14892_v14  ;;  %v7528_v14 = vld [vmem:[%s15614_s0 + $0x98] sm:$0xff] }
 0x85d   :  { %16686 = vst [vmem:[#allocation92_spill] sm:$0xff] %v15136_v23  ;;  %16687 = vst [vmem:[#allocation15_spill] sm:$0xff] %v15140_v28  ;;  %v16690_v28 = vld [vmem:[#allocation53_spill] sm:$0xff]  ;;  %v16694_v38 = vld [vmem:[#allocation134_spill] sm:$0xff] }
 0x85e   :  { %16689 = vst [vmem:[#allocation12_spill] sm:$0xff] %v15144_v33  ;;  %v15160_v62 = vadd.f32 %v14684_v29, %v16690_v28  ;;  %v16692_v33 = vld [vmem:[#allocation43_spill] sm:$0xff]  ;;  %v15168_v53 = vadd.f32 %v14684_v29, %v16694_v38  ;;  %v7521_v28 = vld [vmem:[%s15614_s0 + $0x60] sm:$0xff]  ;;  %v7522_v38 = vld [vmem:[%s15614_s0 + $0x68] sm:$0xff] }
 0x85f   :  { %v15164_v23 = vadd.f32 %v14684_v29, %v16692_v33  ;;  %v7524_v33 = vld [vmem:[%s15614_s0 + $0x78] sm:$0xff]  ;;  %16700 = vst [vmem:[#allocation112_spill] sm:$0xff] %v15192_v47  ;;  %v15228_v47 = vadd.f32 %v14684_v29, %v14916_v55  ;;  %v15249_v55 = vadd.f32 %v7511_v44, %v14928_v63  ;;  %v15267_v63 = vadd.f32 %v7513_v41, %v14936_v43 }
 0x860   :  { %16691 = vst [vmem:[#allocation18_spill] sm:$0xff] %v15160_v62  ;;  %16695 = vst [vmem:[#allocation19_spill] sm:$0xff] %v15168_v53  ;;  %v16698_v53 = vld [vmem:[#allocation135_spill] sm:$0xff]  ;;  %v15200_v62 = vadd.f32 %v14684_v29, %v14900_v52  ;;  %v15216_v52 = vadd.f32 %v14684_v29, %v14904_v5  ;;  %v7529_v5 = vld [vmem:[%s15614_s0 + $0xa0] sm:$0xff]  ;;  %v15273_v44 = vadd.f32 %v7515_v17, %v14944_v13 }
 0x861   :  { %16693 = vst [vmem:[#allocation101_spill] sm:$0xff] %v15164_v23  ;;  %v15188_v0 = vadd.f32 %v14684_v29, %v16698_v53  ;;  %v15196_v23 = vadd.f32 %v14684_v29, %v14896_v11  ;;  %v7525_v53 = vld [vmem:[%s15614_s0 + $0x80] sm:$0xff]  ;;  %v7526_v11 = vld [vmem:[%s15614_s0 + $0x88] sm:$0xff]  ;;  %16706 = vst [vmem:[#allocation29_spill] sm:$0xff] %v15228_v47  ;;  %v15252_v47 = vadd.f32 %v7512_v9, %v14932_v50 }
 0x862   :  { %16702 = vst [vmem:[#allocation47_spill] sm:$0xff] %v15200_v62  ;;  %16703 = vst [vmem:[#allocation72_spill] sm:$0xff] %v15216_v52  ;;  %v15220_v62 = vadd.f32 %v14684_v29, %v14908_v18  ;;  %v7532_v18 = vld [vmem:[%s15614_s0 + $0xb8] sm:$0xff]  ;;  %v7533_v52 = vld [vmem:[%s15614_s0 + $0xc0] sm:$0xff]  ;;  %v15270_v50 = vadd.f32 %v7514_v4, %v14940_v1  ;;  %v15291_v13 = vadd.f32 %v7517_v48, %v14952_v58 }
 0x863   :  { %16699 = vst [vmem:[#allocation78_spill] sm:$0xff] %v15188_v0  ;;  %16701 = vst [vmem:[#allocation63_spill] sm:$0xff] %v15196_v23  ;;  %v15224_v23 = vadd.f32 %v14684_v29, %v14912_v54  ;;  %v7531_v0 = vld [vmem:[%s15614_s0 + $0xb0] sm:$0xff]  ;;  %v7530_v54 = vld [vmem:[%s15614_s0 + $0xa8] sm:$0xff]  ;;  %v15246_v29 = vadd.f32 %v7510_v49, %v14924_v6  ;;  %v15297_v17 = vadd.f32 %v7519_v31, %v14960_v56 }
 0x864   :  { %16704 = vst [vmem:[#allocation75_spill] sm:$0xff] %v15220_v62  ;;  %v7535_v62 = vld [vmem:[%s15614_s0 + $0xd0] sm:$0xff]  ;;  %v7534_v6 = vld [vmem:[%s15614_s0 + $0xc8] sm:$0xff]  ;;  %v7537_v49 = vld [vmem:[%s15614_s0 + $0xe0] sm:$0xff]  ;;  %v15300_v41 = vadd.f32 %v7520_v60, %v14964_v21  ;;  %v15315_v56 = vadd.f32 %v7521_v28, %v14968_v25  ;;  %v15318_v21 = vadd.f32 %v7522_v38, %v14972_v45  ;;  %v15321_v31 = vadd.f32 %v7523_v27, %v14976_v20 }
 0x865   :  { %16705 = vst [vmem:[#allocation32_spill] sm:$0xff] %v15224_v23  ;;  %v15243_v23 = vadd.f32 %v7509_v26, %v14920_v51  ;;  %v7536_v51 = vld [vmem:[%s15614_s0 + $0xd8] sm:$0xff]  ;;  %v15276_v26 = vadd.f32 %v7516_v37, %v14948_v32  ;;  %v7539_v9 = vld [vmem:[%s15614_s0 + $0xf0] sm:$0xff]  ;;  %v7538_v1 = vld [vmem:[%s15614_s0 + $0xe8] sm:$0xff]  ;;  %v15294_v32 = vadd.f32 %v7518_v12, %v14956_v3  ;;  %v15324_v48 = vadd.f32 %v7524_v33, %v14980_v36 }
 0x866   :  { %v7540_v43 = vld [vmem:[%s15614_s0 + $0xf8] sm:$0xff]  ;;  %v7543_v37 = vld [vmem:[%s15614_s0 + $0x110] sm:$0xff]  ;;  %v7541_v4 = vld [vmem:[%s15614_s0 + $0x100] sm:$0xff]  ;;  %v15336_v45 = vadd.f32 %v7525_v53, %v14984_v19  ;;  %v15339_v20 = vadd.f32 %v7526_v11, %v14988_v61  ;;  %v15342_v36 = vadd.f32 %v7527_v35, %v14992_v39  ;;  %v15345_v27 = vadd.f32 %v7528_v14, %v14996_v59 }
 0x867   :  { %v7544_v58 = vld [vmem:[%s15614_s0 + $0x118] sm:$0xff]  ;;  %v7542_v3 = vld [vmem:[%s15614_s0 + $0x108] sm:$0xff]  ;;  %v7547_v60 = vld [vmem:[%s15614_s0 + $0x130] sm:$0xff]  ;;  %v15357_v61 = vadd.f32 %v7529_v5, %v15000_v57  ;;  %v15360_v39 = vadd.f32 %v7530_v54, %v15004_v7  ;;  %v15363_v59 = vadd.f32 %v7531_v0, %v15008_v42  ;;  %v15366_v35 = vadd.f32 %v7532_v18, %v15012_v15 }
 0x868   :  { %v7545_v12 = vld [vmem:[%s15614_s0 + $0x120] sm:$0xff]  ;;  %v7548_v25 = vld [vmem:[%s15614_s0 + $0x138] sm:$0xff]  ;;  %v7546_v28 = vld [vmem:[%s15614_s0 + $0x128] sm:$0xff]  ;;  %v15378_v7 = vadd.f32 %v7533_v52, %v15016_v40  ;;  %v15381_v42 = vadd.f32 %v7534_v6, %v15020_v34  ;;  %v15384_v15 = vadd.f32 %v7535_v62, %v15024_v24  ;;  %v15387_v0 = vadd.f32 %v7536_v51, %v15028_v16 }
 0x869   :  { %v7551_v33 = vld [vmem:[%s15614_s0 + $0x150] sm:$0xff]  ;;  %v7549_v19 = vld [vmem:[%s15614_s0 + $0x140] sm:$0xff]  ;;  %v7552_v38 = vld [vmem:[%s15614_s0 + $0x158] sm:$0xff]  ;;  %v15399_v34 = vadd.f32 %v7537_v49, %v15032_v10  ;;  %v15402_v24 = vadd.f32 %v7538_v1, %v15036_v22  ;;  %v15405_v16 = vadd.f32 %v7539_v9, %v15040_v8  ;;  %v15408_v62 = vadd.f32 %v7540_v43, %v15044_v2 }
 0x86a   :  { %v7550_v53 = vld [vmem:[%s15614_s0 + $0x148] sm:$0xff]  ;;  %v7555_v57 = vld [vmem:[%s15614_s0 + $0x170] sm:$0xff]  ;;  %v7553_v14 = vld [vmem:[%s15614_s0 + $0x160] sm:$0xff]  ;;  %v15420_v22 = vadd.f32 %v7541_v4, %v15048_v46  ;;  %v15423_v8 = vadd.f32 %v7542_v3, %v15052_v30 }
 0x86b   :  { %v7556_v11 = vld [vmem:[%s15614_s0 + $0x178] sm:$0xff]  ;;  %v7554_v40 = vld [vmem:[%s15614_s0 + $0x168] sm:$0xff]  ;;  %v7559_v52 = vld [vmem:[%s15614_s0 + $0x190] sm:$0xff] }
 0x86c   :  { %v7557_v5 = vld [vmem:[%s15614_s0 + $0x180] sm:$0xff]  ;;  %v7560_v10 = vld [vmem:[%s15614_s0 + $0x198] sm:$0xff]  ;;  %v16708_v54 = vld [vmem:[#allocation62_spill] sm:$0xff] }
 0x86d   :  { %v16707_v2 = vld [vmem:[#allocation128_spill] sm:$0xff]  ;;  %v15429_v51 = vadd.f32 %v7544_v58, %v16708_v54  ;;  %v7558_v6 = vld [vmem:[%s15614_s0 + $0x188] sm:$0xff]  ;;  %v7563_v9 = vld [vmem:[%s15614_s0 + $0x1b0] sm:$0xff] }
 0x86e   :  { %v15426_v18 = vadd.f32 %v7543_v37, %v16707_v2  ;;  %v7561_v46 = vld [vmem:[%s15614_s0 + $0x1a0] sm:$0xff]  ;;  %v16710_v30 = vld [vmem:[#allocation140_spill] sm:$0xff]  ;;  %v16712_v43 = vld [vmem:[#allocation74_spill] sm:$0xff] }
 0x86f   :  { %16709 = vst [vmem:[#allocation141_spill] sm:$0xff] %v15429_v51  ;;  %v15441_v49 = vadd.f32 %v7545_v12, %v16710_v30  ;;  %v15444_v1 = vadd.f32 %v7546_v28, %v16712_v43  ;;  %v16714_v37 = vld [vmem:[#allocation138_spill] sm:$0xff]  ;;  %v16716_v58 = vld [vmem:[#allocation99_spill] sm:$0xff]  ;;  %v7564_v2 = vld [vmem:[%s15614_s0 + $0x1b8] sm:$0xff] }
 0x870   :  { %v15447_v4 = vadd.f32 %v7547_v60, %v16714_v37  ;;  %v15450_v3 = vadd.f32 %v7548_v25, %v16716_v58  ;;  %v7562_v54 = vld [vmem:[%s15614_s0 + $0x1a8] sm:$0xff]  ;;  %v7567_v12 = vld [vmem:[%s15614_s0 + $0x1d0] sm:$0xff]  ;;  %v16718_v28 = vld [vmem:[#allocation45_spill] sm:$0xff] }
 0x871   :  { %16711 = vst [vmem:[#allocation64_spill] sm:$0xff] %v15441_v49  ;;  %16713 = vst [vmem:[#allocation139_spill] sm:$0xff] %v15444_v1  ;;  %v15462_v30 = vadd.f32 %v7549_v19, %v16718_v28  ;;  %v16720_v60 = vld [vmem:[#allocation145_spill] sm:$0xff]  ;;  %v16722_v25 = vld [vmem:[#allocation46_spill] sm:$0xff] }
 0x872   :  { %16715 = vst [vmem:[#allocation147_spill] sm:$0xff] %v15447_v4  ;;  %16717 = vst [vmem:[#allocation14_spill] sm:$0xff] %v15450_v3  ;;  %v15465_v43 = vadd.f32 %v7550_v53, %v16720_v60  ;;  %v15468_v37 = vadd.f32 %v7551_v33, %v16722_v25  ;;  %v16724_v58 = vld [vmem:[#allocation98_spill] sm:$0xff]  ;;  %v7565_v4 = vld [vmem:[%s15614_s0 + $0x1c0] sm:$0xff] }
 0x873   :  { %16719 = vst [vmem:[#allocation124_spill] sm:$0xff] %v15462_v30  ;;  %v15471_v3 = vadd.f32 %v7552_v38, %v16724_v58  ;;  %v7568_v1 = vld [vmem:[%s15614_s0 + $0x1d8] sm:$0xff]  ;;  %v7566_v19 = vld [vmem:[%s15614_s0 + $0x1c8] sm:$0xff]  ;;  %v16726_v53 = vld [vmem:[#allocation23_spill] sm:$0xff] }
 0x874   :  { %16721 = vst [vmem:[#allocation22_spill] sm:$0xff] %v15465_v43  ;;  %16723 = vst [vmem:[#allocation71_spill] sm:$0xff] %v15468_v37  ;;  %v15483_v28 = vadd.f32 %v7553_v14, %v16726_v53  ;;  %v16728_v33 = vld [vmem:[#allocation65_spill] sm:$0xff]  ;;  %v16730_v38 = vld [vmem:[#allocation103_spill] sm:$0xff] }
 0x875   :  { %16725 = vst [vmem:[#allocation83_spill] sm:$0xff] %v15471_v3  ;;  %v15486_v60 = vadd.f32 %v7554_v40, %v16728_v33  ;;  %v15489_v25 = vadd.f32 %v7555_v57, %v16730_v38  ;;  %v16732_v58 = vld [vmem:[#allocation57_spill] sm:$0xff]  ;;  %v7571_v37 = vld [vmem:[%s15614_s0 + $0x1f0] sm:$0xff]  ;;  %v7572_v14 = vld [vmem:[%s15614_s0 + $0x1f8] sm:$0xff] }
 0x876   :  { %16727 = vst [vmem:[#allocation77_spill] sm:$0xff] %v15483_v28  ;;  %v15492_v3 = vadd.f32 %v7556_v11, %v16732_v58  ;;  %v7569_v43 = vld [vmem:[%s15614_s0 + $0x1e0] sm:$0xff]  ;;  %v16734_v40 = vld [vmem:[#allocation92_spill] sm:$0xff]  ;;  %v16735_v57 = vld [vmem:[#allocation15_spill] sm:$0xff]  ;;  %s8915_s0 = smov [#allocation6]  }
 0x877   :  { %16729 = vst [vmem:[#allocation79_spill] sm:$0xff] %v15486_v60  ;;  %16731 = vst [vmem:[#allocation89_spill] sm:$0xff] %v15489_v25  ;;  %v15504_v53 = vadd.f32 %v7557_v5, %v16734_v40  ;;  %v15507_v33 = vadd.f32 %v7558_v6, %v16735_v57  ;;  %v16736_v11 = vld [vmem:[#allocation12_spill] sm:$0xff]  ;;  %v16737_v58 = vld [vmem:[#allocation18_spill] sm:$0xff]  ;;  %s7770_s29 = sshll.u32 %s8915_s0, 4  ;;  %s7771_s29 = int_to_ptr.vmem [resolvable:$true] %s7770_s29 }
 0x878   :  { %16733 = vst [vmem:[#allocation84_spill] sm:$0xff] %v15492_v3  ;;  %v15510_v38 = vadd.f32 %v7559_v52, %v16736_v11  ;;  %v15513_v3 = vadd.f32 %v7560_v10, %v16737_v58  ;;  %v16738_v25 = vld [vmem:[#allocation101_spill] sm:$0xff]  ;;  %v16739_v28 = vld [vmem:[#allocation19_spill] sm:$0xff]  ;;  %v16740_v49 = vld [vmem:[#allocation28_spill] sm:$0xff]  ;;  %s8884_s1 = scalar_lea.vmem %s7771_s29, 8192  ;;  %p8889_p6 = scmp.lt.s32.totalorder %s7771_s29, %s7771_s29 }
 0x879   :  { %v15516_v60 = vadd.f32 %v7561_v46, %v16738_v25  ;;  %v15519_v30 = vadd.f32 %v7562_v54, %v16739_v28  ;;  %v15522_v51 = vadd.f32 %v7563_v9, %v16740_v49  ;;  %v16741_v5 = vld [vmem:[#allocation78_spill] sm:$0xff]  ;;  %v16742_v6 = vld [vmem:[#allocation112_spill] sm:$0xff]  ;;  %v16743_v52 = vld [vmem:[#allocation63_spill] sm:$0xff]  ;;  %p8885_p5 = scmp.ne.s32.totalorder %s7771_s29, %s8884_s1  ;;  %p8890_p7 = scmp.lt.s32.totalorder %s8884_s1, %s8884_s1 }
 0x87a   :  { %v15525_v40 = vadd.f32 %v7564_v2, %v16741_v5  ;;  %v15528_v57 = vadd.f32 %v7565_v4, %v16742_v6  ;;  %v15531_v11 = vadd.f32 %v7566_v19, %v16743_v52  ;;  %v16744_v10 = vld [vmem:[#allocation47_spill] sm:$0xff]  ;;  %v16745_v46 = vld [vmem:[#allocation72_spill] sm:$0xff]  ;;  %v16748_v2 = vld [vmem:[#allocation29_spill] sm:$0xff]  ;;  %v7637_v4 = vmax.f32 %v15243_v23, 0.0 }
 0x87b   :  { %v15534_v58 = vadd.f32 %v7567_v12, %v16744_v10  ;;  %v15537_v25 = vadd.f32 %v7568_v1, %v16745_v46  ;;  %v16746_v54 = vld [vmem:[#allocation75_spill] sm:$0xff]  ;;  %v16747_v9 = vld [vmem:[#allocation32_spill] sm:$0xff]  ;;  %v15546_v5 = vadd.f32 %v7572_v14, %v16748_v2  ;;  %v7638_v19 = vmax.f32 %v15246_v29, 0.0  ;;  %v16753_v46 = vld [vmem:[#allocation14_spill] sm:$0xff]  ;;  %p8891_p8 = por %p8890_p7, %p8889_p6 }
 0x87c   :  { %v15540_v28 = vadd.f32 %v7569_v43, %v16746_v54  ;;  %v15543_v49 = vadd.f32 %v7571_v37, %v16747_v9  ;;  %v7639_v6 = vmax.f32 %v15249_v55, 0.0  ;;  %v7640_v12 = vmax.f32 %v15252_v47, 0.0  ;;  %7701 = vst [vmem:[#allocation6] sm:$0xff] %v7637_v4  ;;  %v16754_v9 = vld [vmem:[#allocation124_spill] sm:$0xff]  ;;  %v16756_v4 = vld [vmem:[#allocation71_spill] sm:$0xff] }
 0x87d   :  { %v7641_v1 = vmax.f32 %v15267_v63, 0.0  ;;  %v7642_v52 = vmax.f32 %v15270_v50, 0.0  ;;  %v7643_v43 = vmax.f32 %v15273_v44, 0.0  ;;  %v7644_v37 = vmax.f32 %v15276_v26, 0.0  ;;  %7702 = vst [vmem:[#allocation6 + $0x8] sm:$0xff] %v7638_v19  ;;  %p8892_p9 = pnand %p8891_p8, %p8885_p5 }
 0x87e   :  { %v7645_v10 = vmax.f32 %v15291_v13, 0.0  ;;  %v7646_v14 = vmax.f32 %v15294_v32, 0.0  ;;  %v7647_v23 = vmax.f32 %v15297_v17, 0.0  ;;  %v7648_v29 = vmax.f32 %v15300_v41, 0.0  ;;  %7703 = vst [vmem:[#allocation6 + $0x10] sm:$0xff] %v7639_v6  ;;  %7704 = vst [vmem:[#allocation6 + $0x18] sm:$0xff] %v7640_v12 }
 0x87f   :  { %v7649_v55 = vmax.f32 %v15315_v56, 0.0  ;;  %7705 = vst [vmem:[#allocation6 + $0x20] sm:$0xff] %v7641_v1  ;;  %v7650_v47 = vmax.f32 %v15318_v21, 0.0  ;;  %v7651_v63 = vmax.f32 %v15321_v31, 0.0  ;;  %v7652_v50 = vmax.f32 %v15324_v48, 0.0  ;;  %7706 = vst [vmem:[#allocation6 + $0x28] sm:$0xff] %v7642_v52 }
 0x880   :  { %v7653_v44 = vmax.f32 %v15336_v45, 0.0  ;;  %7707 = vst [vmem:[#allocation6 + $0x30] sm:$0xff] %v7643_v43  ;;  %7708 = vst [vmem:[#allocation6 + $0x38] sm:$0xff] %v7644_v37  ;;  %v7654_v26 = vmax.f32 %v15339_v20, 0.0  ;;  %v7655_v13 = vmax.f32 %v15342_v36, 0.0  ;;  %v7656_v32 = vmax.f32 %v15345_v27, 0.0 }
 0x881   :  { %7709 = vst [vmem:[#allocation6 + $0x40] sm:$0xff] %v7645_v10  ;;  %v7657_v17 = vmax.f32 %v15357_v61, 0.0  ;;  %7710 = vst [vmem:[#allocation6 + $0x48] sm:$0xff] %v7646_v14  ;;  %v7658_v41 = vmax.f32 %v15360_v39, 0.0  ;;  %v7659_v56 = vmax.f32 %v15363_v59, 0.0  ;;  %v7660_v21 = vmax.f32 %v15366_v35, 0.0 }
 0x882   :  { %7711 = vst [vmem:[#allocation6 + $0x50] sm:$0xff] %v7647_v23  ;;  %7712 = vst [vmem:[#allocation6 + $0x58] sm:$0xff] %v7648_v29  ;;  %v7661_v31 = vmax.f32 %v15378_v7, 0.0  ;;  %v7662_v48 = vmax.f32 %v15381_v42, 0.0  ;;  %v7663_v45 = vmax.f32 %v15384_v15, 0.0  ;;  %v7664_v20 = vmax.f32 %v15387_v0, 0.0 }
 0x883   :  { %7713 = vst [vmem:[#allocation6 + $0x60] sm:$0xff] %v7649_v55  ;;  %7714 = vst [vmem:[#allocation6 + $0x68] sm:$0xff] %v7650_v47  ;;  %v7665_v36 = vmax.f32 %v15399_v34, 0.0  ;;  %v7666_v27 = vmax.f32 %v15402_v24, 0.0  ;;  %v7667_v61 = vmax.f32 %v15405_v16, 0.0  ;;  %v7668_v39 = vmax.f32 %v15408_v62, 0.0 }
 0x884   :  { %7715 = vst [vmem:[#allocation6 + $0x70] sm:$0xff] %v7651_v63  ;;  %7716 = vst [vmem:[#allocation6 + $0x78] sm:$0xff] %v7652_v50  ;;  %v7669_v59 = vmax.f32 %v15420_v22, 0.0  ;;  %v7670_v35 = vmax.f32 %v15423_v8, 0.0  ;;  %v7671_v7 = vmax.f32 %v15426_v18, 0.0  ;;  %v16749_v42 = vld [vmem:[#allocation141_spill] sm:$0xff] }
 0x885   :  { %7717 = vst [vmem:[#allocation6 + $0x80] sm:$0xff] %v7653_v44  ;;  %7718 = vst [vmem:[#allocation6 + $0x88] sm:$0xff] %v7654_v26  ;;  %v7672_v15 = vmax.f32 %v16749_v42, 0.0  ;;  %v16750_v0 = vld [vmem:[#allocation64_spill] sm:$0xff]  ;;  %v16751_v24 = vld [vmem:[#allocation139_spill] sm:$0xff]  ;;  %v7676_v54 = vmax.f32 %v16753_v46, 0.0 }
 0x886   :  { %7719 = vst [vmem:[#allocation6 + $0x90] sm:$0xff] %v7655_v13  ;;  %7720 = vst [vmem:[#allocation6 + $0x98] sm:$0xff] %v7656_v32  ;;  %v7673_v34 = vmax.f32 %v16750_v0, 0.0  ;;  %v7674_v16 = vmax.f32 %v16751_v24, 0.0  ;;  %v16752_v62 = vld [vmem:[#allocation147_spill] sm:$0xff]  ;;  %v7677_v2 = vmax.f32 %v16754_v9, 0.0 }
 0x887   :  { %7721 = vst [vmem:[#allocation6 + $0xa0] sm:$0xff] %v7657_v17  ;;  %7722 = vst [vmem:[#allocation6 + $0xa8] sm:$0xff] %v7658_v41  ;;  %v7675_v22 = vmax.f32 %v16752_v62, 0.0  ;;  %v16755_v8 = vld [vmem:[#allocation22_spill] sm:$0xff]  ;;  %v7679_v19 = vmax.f32 %v16756_v4, 0.0  ;;  %v16757_v6 = vld [vmem:[#allocation83_spill] sm:$0xff] }
 0x888   :  { %7723 = vst [vmem:[#allocation6 + $0xb0] sm:$0xff] %v7659_v56  ;;  %7724 = vst [vmem:[#allocation6 + $0xb8] sm:$0xff] %v7660_v21  ;;  %v7678_v18 = vmax.f32 %v16755_v8, 0.0  ;;  %v7680_v12 = vmax.f32 %v16757_v6, 0.0  ;;  %v16758_v1 = vld [vmem:[#allocation77_spill] sm:$0xff]  ;;  %v16759_v43 = vld [vmem:[#allocation79_spill] sm:$0xff] }
 0x889   :  { %7725 = vst [vmem:[#allocation6 + $0xc0] sm:$0xff] %v7661_v31  ;;  %7726 = vst [vmem:[#allocation6 + $0xc8] sm:$0xff] %v7662_v48  ;;  %v7681_v52 = vmax.f32 %v16758_v1, 0.0  ;;  %v7682_v37 = vmax.f32 %v16759_v43, 0.0  ;;  %v16760_v10 = vld [vmem:[#allocation89_spill] sm:$0xff]  ;;  %v16761_v23 = vld [vmem:[#allocation84_spill] sm:$0xff] }
 0x88a   :  { %7727 = vst [vmem:[#allocation6 + $0xd0] sm:$0xff] %v7663_v45  ;;  %7728 = vst [vmem:[#allocation6 + $0xd8] sm:$0xff] %v7664_v20  ;;  %v7683_v14 = vmax.f32 %v16760_v10, 0.0  ;;  %v7684_v29 = vmax.f32 %v16761_v23, 0.0  ;;  %v7685_v55 = vmax.f32 %v15504_v53, 0.0  ;;  %v7686_v47 = vmax.f32 %v15507_v33, 0.0 }
 0x88b   :  { %7729 = vst [vmem:[#allocation6 + $0xe0] sm:$0xff] %v7665_v36  ;;  %7730 = vst [vmem:[#allocation6 + $0xe8] sm:$0xff] %v7666_v27  ;;  %v7687_v63 = vmax.f32 %v15510_v38, 0.0  ;;  %v7688_v50 = vmax.f32 %v15513_v3, 0.0  ;;  %v7689_v44 = vmax.f32 %v15516_v60, 0.0  ;;  %v7690_v53 = vmax.f32 %v15519_v30, 0.0 }
 0x88c   :  { %7731 = vst [vmem:[#allocation6 + $0xf0] sm:$0xff] %v7667_v61  ;;  %7732 = vst [vmem:[#allocation6 + $0xf8] sm:$0xff] %v7668_v39  ;;  %v7691_v26 = vmax.f32 %v15522_v51, 0.0  ;;  %v7692_v13 = vmax.f32 %v15525_v40, 0.0  ;;  %v7693_v32 = vmax.f32 %v15528_v57, 0.0  ;;  %v7694_v3 = vmax.f32 %v15531_v11, 0.0 }
 0x88d   :  { %7733 = vst [vmem:[#allocation6 + $0x100] sm:$0xff] %v7669_v59  ;;  %7734 = vst [vmem:[#allocation6 + $0x108] sm:$0xff] %v7670_v35  ;;  %v7695_v60 = vmax.f32 %v15534_v58, 0.0  ;;  %v7696_v33 = vmax.f32 %v15537_v25, 0.0  ;;  %v7697_v38 = vmax.f32 %v15540_v28, 0.0  ;;  %v7699_v51 = vmax.f32 %v15543_v49, 0.0 }
 0x88e   :  { %7735 = vst [vmem:[#allocation6 + $0x110] sm:$0xff] %v7671_v7  ;;  %7736 = vst [vmem:[#allocation6 + $0x118] sm:$0xff] %v7672_v15  ;;  %v7700_v30 = vmax.f32 %v15546_v5, 0.0 }
 0x88f   :  { %7737 = vst [vmem:[#allocation6 + $0x120] sm:$0xff] %v7673_v34  ;;  %7738 = vst [vmem:[#allocation6 + $0x128] sm:$0xff] %v7674_v16 }
 0x890   :  { %7739 = vst [vmem:[#allocation6 + $0x130] sm:$0xff] %v7675_v22  ;;  %7740 = vst [vmem:[#allocation6 + $0x138] sm:$0xff] %v7676_v54 }
 0x891   :  { %7741 = vst [vmem:[#allocation6 + $0x140] sm:$0xff] %v7677_v2  ;;  %7742 = vst [vmem:[#allocation6 + $0x148] sm:$0xff] %v7678_v18 }
 0x892   :  { %7743 = vst [vmem:[#allocation6 + $0x150] sm:$0xff] %v7679_v19  ;;  %7744 = vst [vmem:[#allocation6 + $0x158] sm:$0xff] %v7680_v12 }
 0x893   :  { %7745 = vst [vmem:[#allocation6 + $0x160] sm:$0xff] %v7681_v52  ;;  %7746 = vst [vmem:[#allocation6 + $0x168] sm:$0xff] %v7682_v37 }
 0x894   :  { %7747 = vst [vmem:[#allocation6 + $0x170] sm:$0xff] %v7683_v14  ;;  %7748 = vst [vmem:[#allocation6 + $0x178] sm:$0xff] %v7684_v29 }
 0x895   :  { %7749 = vst [vmem:[#allocation6 + $0x180] sm:$0xff] %v7685_v55  ;;  %7750 = vst [vmem:[#allocation6 + $0x188] sm:$0xff] %v7686_v47 }
 0x896   :  { %7751 = vst [vmem:[#allocation6 + $0x190] sm:$0xff] %v7687_v63  ;;  %7752 = vst [vmem:[#allocation6 + $0x198] sm:$0xff] %v7688_v50 }
 0x897   :  { %7753 = vst [vmem:[#allocation6 + $0x1a0] sm:$0xff] %v7689_v44  ;;  %7754 = vst [vmem:[#allocation6 + $0x1a8] sm:$0xff] %v7690_v53 }
 0x898   :  { %7755 = vst [vmem:[#allocation6 + $0x1b0] sm:$0xff] %v7691_v26  ;;  %7756 = vst [vmem:[#allocation6 + $0x1b8] sm:$0xff] %v7692_v13 }
 0x899   :  { %7757 = vst [vmem:[#allocation6 + $0x1c0] sm:$0xff] %v7693_v32  ;;  %7758 = vst [vmem:[#allocation6 + $0x1c8] sm:$0xff] %v7694_v3 }
 0x89a   :  { %7759 = vst [vmem:[#allocation6 + $0x1d0] sm:$0xff] %v7695_v60  ;;  %7760 = vst [vmem:[#allocation6 + $0x1d8] sm:$0xff] %v7696_v33 }
 0x89b   :  { %7761 = vst [vmem:[#allocation6 + $0x1e0] sm:$0xff] %v7697_v38  ;;  %7763 = vst [vmem:[#allocation6 + $0x1f0] sm:$0xff] %v7699_v51 }
 0x89c   :  { %7764 = vst [vmem:[#allocation6 + $0x1f8] sm:$0xff] %v7700_v30 }
 0x89d   :  { %8895 = shalt.err (!%p8892_p9)
}
 0x89e   :  { %s8916_s30 = smov 128   ;;  %s8917_s12 = smov 8  }
 0x89f   :  { %7776 = dma.vmem_to_hbm [thread:$0]  %s7771_s29, 8192, %s15625_s11, [#allocation5], %s8916_s30, %s8916_s30, %s8917_s12  }
 0x8a0   :  { %8906 = dma.done.wait [#allocation5], 8192  }
 0x8a1   :  { %8907 = vsyncadd [#allocation5], 4294959104 }
 0x8a2   :  { %7780 = vsyncpa [#allocation4], 1 }
 0x8a3   :  { %7781 = vsyncpa [#allocation5], 1 }

</bundles_post_ra>
